<compile_context>
chip_gen: v7x
topology: tpu7x:2x2x1
jax: 0.10.0
libtpu: 0.0.40
codegen_flags: <defaults>
</compile_context>

<pallas_src>
import functools

import jax
import jax.numpy as jnp
import numpy as np
from jax.experimental import pallas as pl
from jax.experimental.pallas import tpu as pltpu


# -----------------------------------------------------------------------------
# Kernel
# -----------------------------------------------------------------------------
def bottleneck_kernel(x_ref, w1_ref, b1_ref, w2_ref, b2_ref, w3_ref, b3_ref,
                      o_ref):
    """One (Nb, H, W, C) block per grid step.

    x_ref : (Nb, H, W, Cin)    input tile (NHWC, f32)
    w1    : (Cin, Cp)          1x1 conv, BN1 scale folded, width padded, bf16
    w2    : (3, 3*Cp, Cp)      3x3 conv as 3 dy-grouped matmuls, bf16
    w3    : (Cp, Cout)         1x1 conv, BN3 scale folded, bf16 (Cout == Cin)
    b*    : (1, C)             folded BatchNorm biases, f32 (padded lanes = 0)
    """
    Nb, H, W, Cin = x_ref.shape
    Cp = w1_ref.shape[1]
    Cout = w3_ref.shape[1]
    M = Nb * H * W

    x_f32 = x_ref[...].reshape(M, Cin)                    # identity (f32)
    x_bf = x_f32.astype(jnp.bfloat16)

    # ---- stage 1: conv1x1 + bias + ReLU ----
    h1 = jnp.dot(x_bf, w1_ref[...], preferred_element_type=jnp.float32)
    h1 = jnp.maximum(h1 + b1_ref[...], 0.0)               # (M, Cp) f32
    h1 = h1.astype(jnp.bfloat16).reshape(Nb, H, W, Cp)

    # ---- stage 2: conv3x3 (stride 1, pad 1), dy-grouped im2col ----
    # dx taps along W; each chunk is a full lane-dense Cp=128 group so the
    # channel concat boundaries fall on vreg tiles.
    zc = jnp.zeros((Nb, H, 1, Cp), jnp.bfloat16)
    left = jnp.concatenate([zc, h1[:, :, :W - 1, :]], axis=2)   # x[.., w-1, .]
    right = jnp.concatenate([h1[:, :, 1:, :], zc], axis=2)      # x[.., w+1, .]
    taps_x = jnp.concatenate([left, h1, right], axis=-1)        # (Nb,H,W,3Cp)

    # dy handled with three K=3*Cp matmuls over sublane-aligned H windows
    # (each H step spans W=16 rows of the flattened tensor).
    zr = jnp.zeros((Nb, 1, W, 3 * Cp), jnp.bfloat16)
    tp = jnp.concatenate([zr, taps_x, zr], axis=1)               # (Nb,H+2,W,3Cp)
    h2 = None
    for dy in range(3):
        win = tp[:, dy:dy + H].reshape(M, 3 * Cp)
        part = jnp.dot(win, w2_ref[dy], preferred_element_type=jnp.float32)
        h2 = part if h2 is None else h2 + part
    h2 = jnp.maximum(h2 + b2_ref[...], 0.0).astype(jnp.bfloat16)  # (M, Cp)

    # ---- stage 3: conv1x1 + bias, residual add, final ReLU ----
    h3 = jnp.dot(h2, w3_ref[...], preferred_element_type=jnp.float32)
    h3 = h3 + b3_ref[...]                                        # (M, Cout) f32
    out = jnp.maximum(h3 + x_f32, 0.0)
    o_ref[...] = out.reshape(Nb, H, W, Cout).astype(o_ref.dtype)


# -----------------------------------------------------------------------------
# Wrapper
# -----------------------------------------------------------------------------
@functools.partial(jax.jit, static_argnames=("batch_block",))
def bottleneck_pallas(x_nchw, kernel_params, *, batch_block=4):
    """x_nchw: (N, Cin, H, W) float32.  Returns NCHW output."""
    w1p, b1p, w2p, b2p, w3p, b3p = kernel_params
    N, C, H, W = x_nchw.shape
    Cp = w1p.shape[1]
    Cout = w3p.shape[1]
    # TODO(synk): only stride=1, groups=1, dilation=1, downsample=None is
    #             implemented (identity residual requires Cout == Cin).
    assert Cout == C, "residual add requires Cout == Cin (no downsample)"
    Nb = min(batch_block, N)
    assert N % Nb == 0, "demo wrapper requires N % batch_block == 0"

    x_nhwc = jnp.transpose(x_nchw, (0, 2, 3, 1))              # NHWC

    def full_spec(arr):
        nd = arr.ndim
        return pl.BlockSpec(arr.shape, lambda n, _nd=nd: (0,) * _nd)

    flops = int(2 * N * H * W * (C * Cp + 3 * (3 * Cp) * Cp + Cp * Cout))
    bytes_accessed = int(
        N * H * W * C * 4 + N * H * W * Cout * 4 +
        sum(int(np.prod(a.shape)) * a.dtype.itemsize for a in kernel_params))

    out_nhwc = pl.pallas_call(
        bottleneck_kernel,
        out_shape=jax.ShapeDtypeStruct((N, H, W, Cout), x_nhwc.dtype),
        grid=(N // Nb,),
        in_specs=[
            pl.BlockSpec((Nb, H, W, C), lambda n: (n, 0, 0, 0)),
            full_spec(w1p), full_spec(b1p),
            full_spec(w2p), full_spec(b2p),
            full_spec(w3p), full_spec(b3p),
        ],
        out_specs=pl.BlockSpec((Nb, H, W, Cout), lambda n: (n, 0, 0, 0)),
        compiler_params=pltpu.CompilerParams(
            dimension_semantics=("parallel",),        # batch-block axis
            vmem_limit_bytes=32 * 1024 * 1024),       # fits v7x's 64 MiB VMEM
        cost_estimate=pl.CostEstimate(
            flops=flops, transcendentals=0, bytes_accessed=bytes_accessed),
    )(x_nhwc, w1p, b1p, w2p, b2p, w3p, b3p)

    return jnp.transpose(out_nhwc, (0, 3, 1, 2))              # back to NCHW


# -----------------------------------------------------------------------------
# Parameters: raw conv/BN params + folding/padding into kernel-ready form
# -----------------------------------------------------------------------------
def make_params(key, inplanes, planes, base_width=64, groups=1):
    """Deterministic synthetic parameters matching Bottleneck.__init__ shapes."""
    width = int(planes * (base_width / 64.0)) * groups
    out_c = planes * 4
    ks = jax.random.split(key, 6)
    std = 0.1
    w1 = jax.random.normal(ks[0], (inplanes, width), jnp.float32) * std
    w2 = jax.random.normal(ks[1], (3, 3, width, width), jnp.float32) * std
    w3 = jax.random.normal(ks[2], (width, out_c), jnp.float32) * std

    def bn(k, c):
        k1, k2, k3, k4 = jax.random.split(k, 4)
        gamma = 1.0 + 0.1 * jax.random.normal(k1, (c,), jnp.float32)
        beta = 0.1 * jax.random.normal(k2, (c,), jnp.float32)
        mean = 0.1 * jax.random.normal(k3, (c,), jnp.float32)
        var = 1.0 + 0.1 * jax.random.uniform(k4, (c,), jnp.float32)
        return (gamma, beta, mean, var)

    return (w1, bn(ks[3], width), w2, bn(ks[4], width), w3, bn(ks[5], out_c))


def fold_params(raw, eps=1e-5, lane=128):
    """Fold eval-mode BatchNorm into conv weights + per-stage bias, then pad
    the bottleneck width to a lane-dense multiple of 128.  Padded channels are
    exact zeros everywhere (zero weight rows/cols, zero bias -> ReLU(0)=0).

    TODO(synk): PyTorch default (train-mode batch statistics) not reproduced;
                inference-mode BN with running stats is folded instead.
    """
    w1, bn1, w2, bn2, w3, bn3 = raw
    width = w1.shape[1]

    def fold(gamma, beta, mean, var):
        s = gamma / jnp.sqrt(var + eps)
        return s, beta - mean * s

    s1, b1 = fold(*bn1)
    s2, b2 = fold(*bn2)
    s3, b3 = fold(*bn3)

    w1f = (w1 * s1[None, :]).astype(jnp.bfloat16)                   # (Cin, Cw)
    w2f = (w2 * s2[None, None, None, :]).astype(jnp.bfloat16)       # (3,3,Cw,Cw)
    w3f = (w3 * s3[None, :]).astype(jnp.bfloat16)                   # (Cw, Cout)
    ref_params = (w1f, b1, w2f, b2, w3f, b3)

    cp = ((width + lane - 1) // lane) * lane
    pw = cp - width
    w1p = jnp.pad(w1f, ((0, 0), (0, pw)))                           # (Cin, Cp)
    b1p = jnp.pad(b1, (0, pw))[None, :]                             # (1, Cp)
    w2p = jnp.pad(w2f, ((0, 0), (0, 0), (0, pw), (0, pw)))          # (3,3,Cp,Cp)
    w2p = w2p.reshape(3, 3 * cp, cp)                                # (3, 3Cp, Cp)
    b2p = jnp.pad(b2, (0, pw))[None, :]                             # (1, Cp)
    w3p = jnp.pad(w3f, ((0, pw), (0, 0)))                           # (Cp, Cout)
    b3p = b3[None, :]                                               # (1, Cout)
    kernel_params = (w1p, b1p, w2p, b2p, w3p, b3p)
    return kernel_params, ref_params


# -----------------------------------------------------------------------------
# Pure-JAX reference (lax convs, same bf16 weights / cast points as the kernel)
# -----------------------------------------------------------------------------
def bottleneck_reference(x_nchw, ref_params):
    w1f, b1, w2f, b2, w3f, b3 = ref_params
    x = jnp.transpose(x_nchw, (0, 2, 3, 1))                   # NHWC f32
    dn = ('NHWC', 'HWIO', 'NHWC')
    h = jax.lax.conv_general_dilated(
        x.astype(jnp.bfloat16), w1f[None, None], (1, 1), 'VALID',
        dimension_numbers=dn, preferred_element_type=jnp.float32)
    h = jnp.maximum(h + b1, 0.0)
    h = jax.lax.conv_general_dilated(
        h.astype(jnp.bfloat16), w2f, (1, 1), 'SAME',
        dimension_numbers=dn, preferred_element_type=jnp.float32)
    h = jnp.maximum(h + b2, 0.0)
    h = jax.lax.conv_general_dilated(
        h.astype(jnp.bfloat16), w3f[None, None], (1, 1), 'VALID',
        dimension_numbers=dn, preferred_element_type=jnp.float32)
    h = h + b3
    out = jnp.maximum(h + x, 0.0)
    return jnp.transpose(out, (0, 3, 1, 2))


if __name__ == "__main__":
    # Shapes consistent with Bottleneck: inplanes = planes * expansion so the
    # identity residual is valid.  Cin = Cout = 128 -> lane-dense I/O.
    # N=16 with batch_block=4 -> 4 grid steps of M = 4*16*16 = 1024 MXU rows.
    N, planes, H, W = 16, 32, 16, 16
    inplanes = planes * 4                       # expansion = 4
    key = jax.random.PRNGKey(0)
    kx, kp = jax.random.split(key)
    x = jax.random.normal(kx, (N, inplanes, H, W), jnp.float32)

    raw = make_params(kp, inplanes, planes)
    kernel_params, ref_params = fold_params(raw)

    out = jax.block_until_ready(bottleneck_pallas(x, kernel_params,
                                                  batch_block=4))
    ref = jax.block_until_ready(bottleneck_reference(x, ref_params))

    np.testing.assert_allclose(np.asarray(out), np.asarray(ref),
                               rtol=2e-3, atol=2e-3)
    assert out.shape == (N, inplanes, H, W)
    print("KERNEL_OK")
</pallas_src>

<mosaic_0001>
module attributes {stable_mosaic.version = 11 : i64} {
  func.func @bottleneck_kernel(%arg0: i32, %arg1: memref<4x16x16x128xf32, #tpu.memory_space<vmem>>, %arg2: memref<128x128xbf16, #tpu.memory_space<vmem>>, %arg3: memref<1x128xf32, #tpu.memory_space<vmem>>, %arg4: memref<3x384x128xbf16, #tpu.memory_space<vmem>>, %arg5: memref<1x128xf32, #tpu.memory_space<vmem>>, %arg6: memref<128x128xbf16, #tpu.memory_space<vmem>>, %arg7: memref<1x128xf32, #tpu.memory_space<vmem>>, %arg8: memref<4x16x16x128xf32, #tpu.memory_space<vmem>>) attributes {dimension_semantics = [#tpu.dimension_semantics<parallel>], iteration_bounds = array<i64: 4>, scalar_prefetch = 0 : i64, scratch_operands = 0 : i64, tpu.core_type = #tpu.core_type<tc>, window_params = [{transform_indices = @transform_0, window_bounds = array<i64: 4, 16, 16, 128>}, {pipeline_mode = #tpu.pipeline_mode<synchronous>, transform_indices = @transform_1, window_bounds = array<i64: 128, 128>}, {pipeline_mode = #tpu.pipeline_mode<synchronous>, transform_indices = @transform_2, window_bounds = array<i64: 1, 128>}, {pipeline_mode = #tpu.pipeline_mode<synchronous>, transform_indices = @transform_3, window_bounds = array<i64: 3, 384, 128>}, {pipeline_mode = #tpu.pipeline_mode<synchronous>, transform_indices = @transform_4, window_bounds = array<i64: 1, 128>}, {pipeline_mode = #tpu.pipeline_mode<synchronous>, transform_indices = @transform_5, window_bounds = array<i64: 128, 128>}, {pipeline_mode = #tpu.pipeline_mode<synchronous>, transform_indices = @transform_6, window_bounds = array<i64: 1, 128>}, {transform_indices = @transform_7, window_bounds = array<i64: 4, 16, 16, 128>}]} {
    %c0 = arith.constant 0 : index
    %c0_0 = arith.constant 0 : index
    %c0_1 = arith.constant 0 : index
    %c0_2 = arith.constant 0 : index
    %0 = vector.load %arg1[%c0, %c0_0, %c0_1, %c0_2] : memref<4x16x16x128xf32, #tpu.memory_space<vmem>>, vector<4x16x16x128xf32>
    %1 = vector.shape_cast %0 : vector<4x16x16x128xf32> to vector<1024x128xf32>
    %2 = arith.truncf %1 : vector<1024x128xf32> to vector<1024x128xbf16>
    %c0_3 = arith.constant 0 : index
    %c0_4 = arith.constant 0 : index
    %3 = vector.load %arg2[%c0_3, %c0_4] : memref<128x128xbf16, #tpu.memory_space<vmem>>, vector<128x128xbf16>
    %cst = arith.constant dense<0.000000e+00> : vector<1024x128xf32>
    %4 = tpu.matmul %2, %3, %cst {dimension_numbers = #tpu.dot_dimension_numbers<[1], [0], [0], [1], [0, 0, 1, 1], [], []>} : vector<1024x128xbf16>, vector<128x128xbf16>, vector<1024x128xf32> -> vector<1024x128xf32>
    %c0_5 = arith.constant 0 : index
    %c0_6 = arith.constant 0 : index
    %5 = vector.load %arg3[%c0_5, %c0_6] : memref<1x128xf32, #tpu.memory_space<vmem>>, vector<1x128xf32>
    %6 = vector.broadcast %5 : vector<1x128xf32> to vector<1024x128xf32>
    %7 = arith.addf %4, %6 : vector<1024x128xf32>
    %cst_7 = arith.constant 0.000000e+00 : f32
    %8 = vector.broadcast %cst_7 : f32 to vector<1024x128xf32>
    %9 = arith.maximumf %7, %8 : vector<1024x128xf32>
    %10 = arith.truncf %9 : vector<1024x128xf32> to vector<1024x128xbf16>
    %11 = vector.shape_cast %10 : vector<1024x128xbf16> to vector<4x16x16x128xbf16>
    %cst_8 = arith.constant 0.000000e+00 : bf16
    %12 = vector.broadcast %cst_8 : bf16 to vector<4x16x1x128xbf16>
    %13 = vector.extract_strided_slice %11 {offsets = [0, 0, 0, 0], sizes = [4, 16, 15, 128], strides = [1, 1, 1, 1]} : vector<4x16x16x128xbf16> to vector<4x16x15x128xbf16>
    %14 = tpu.concatenate %12, %13 in 2 : vector<4x16x1x128xbf16>, vector<4x16x15x128xbf16> -> vector<4x16x16x128xbf16>
    %15 = vector.extract_strided_slice %11 {offsets = [0, 0, 1, 0], sizes = [4, 16, 15, 128], strides = [1, 1, 1, 1]} : vector<4x16x16x128xbf16> to vector<4x16x15x128xbf16>
    %16 = tpu.concatenate %15, %12 in 2 : vector<4x16x15x128xbf16>, vector<4x16x1x128xbf16> -> vector<4x16x16x128xbf16>
    %17 = tpu.concatenate %14, %11, %16 in 3 : vector<4x16x16x128xbf16>, vector<4x16x16x128xbf16>, vector<4x16x16x128xbf16> -> vector<4x16x16x384xbf16>
    %cst_9 = arith.constant 0.000000e+00 : bf16
    %18 = vector.broadcast %cst_9 : bf16 to vector<4x1x16x384xbf16>
    %19 = tpu.concatenate %18, %17, %18 in 1 : vector<4x1x16x384xbf16>, vector<4x16x16x384xbf16>, vector<4x1x16x384xbf16> -> vector<4x18x16x384xbf16>
    %20 = vector.extract_strided_slice %19 {offsets = [0, 0, 0, 0], sizes = [4, 16, 16, 384], strides = [1, 1, 1, 1]} : vector<4x18x16x384xbf16> to vector<4x16x16x384xbf16>
    %21 = vector.shape_cast %20 : vector<4x16x16x384xbf16> to vector<1024x384xbf16>
    %c0_10 = arith.constant 0 : index
    %c0_11 = arith.constant 0 : index
    %c0_12 = arith.constant 0 : index
    %22 = vector.load %arg4[%c0_10, %c0_11, %c0_12] : memref<3x384x128xbf16, #tpu.memory_space<vmem>>, vector<1x384x128xbf16>
    %23 = vector.shape_cast %22 : vector<1x384x128xbf16> to vector<384x128xbf16>
    %cst_13 = arith.constant dense<0.000000e+00> : vector<1024x128xf32>
    %24 = tpu.matmul %21, %23, %cst_13 {dimension_numbers = #tpu.dot_dimension_numbers<[1], [0], [0], [1], [0, 0, 1, 1], [], []>} : vector<1024x384xbf16>, vector<384x128xbf16>, vector<1024x128xf32> -> vector<1024x128xf32>
    %25 = vector.extract_strided_slice %19 {offsets = [0, 1, 0, 0], sizes = [4, 16, 16, 384], strides = [1, 1, 1, 1]} : vector<4x18x16x384xbf16> to vector<4x16x16x384xbf16>
    %26 = vector.shape_cast %25 : vector<4x16x16x384xbf16> to vector<1024x384xbf16>
    %c1 = arith.constant 1 : index
    %c0_14 = arith.constant 0 : index
    %c0_15 = arith.constant 0 : index
    %27 = vector.load %arg4[%c1, %c0_14, %c0_15] : memref<3x384x128xbf16, #tpu.memory_space<vmem>>, vector<1x384x128xbf16>
    %28 = vector.shape_cast %27 : vector<1x384x128xbf16> to vector<384x128xbf16>
    %cst_16 = arith.constant dense<0.000000e+00> : vector<1024x128xf32>
    %29 = tpu.matmul %26, %28, %cst_16 {dimension_numbers = #tpu.dot_dimension_numbers<[1], [0], [0], [1], [0, 0, 1, 1], [], []>} : vector<1024x384xbf16>, vector<384x128xbf16>, vector<1024x128xf32> -> vector<1024x128xf32>
    %30 = arith.addf %24, %29 : vector<1024x128xf32>
    %31 = vector.extract_strided_slice %19 {offsets = [0, 2, 0, 0], sizes = [4, 16, 16, 384], strides = [1, 1, 1, 1]} : vector<4x18x16x384xbf16> to vector<4x16x16x384xbf16>
    %32 = vector.shape_cast %31 : vector<4x16x16x384xbf16> to vector<1024x384xbf16>
    %c2 = arith.constant 2 : index
    %c0_17 = arith.constant 0 : index
    %c0_18 = arith.constant 0 : index
    %33 = vector.load %arg4[%c2, %c0_17, %c0_18] : memref<3x384x128xbf16, #tpu.memory_space<vmem>>, vector<1x384x128xbf16>
    %34 = vector.shape_cast %33 : vector<1x384x128xbf16> to vector<384x128xbf16>
    %cst_19 = arith.constant dense<0.000000e+00> : vector<1024x128xf32>
    %35 = tpu.matmul %32, %34, %cst_19 {dimension_numbers = #tpu.dot_dimension_numbers<[1], [0], [0], [1], [0, 0, 1, 1], [], []>} : vector<1024x384xbf16>, vector<384x128xbf16>, vector<1024x128xf32> -> vector<1024x128xf32>
    %36 = arith.addf %30, %35 : vector<1024x128xf32>
    %c0_20 = arith.constant 0 : index
    %c0_21 = arith.constant 0 : index
    %37 = vector.load %arg5[%c0_20, %c0_21] : memref<1x128xf32, #tpu.memory_space<vmem>>, vector<1x128xf32>
    %38 = vector.broadcast %37 : vector<1x128xf32> to vector<1024x128xf32>
    %39 = arith.addf %36, %38 : vector<1024x128xf32>
    %cst_22 = arith.constant 0.000000e+00 : f32
    %40 = vector.broadcast %cst_22 : f32 to vector<1024x128xf32>
    %41 = arith.maximumf %39, %40 : vector<1024x128xf32>
    %42 = arith.truncf %41 : vector<1024x128xf32> to vector<1024x128xbf16>
    %c0_23 = arith.constant 0 : index
    %c0_24 = arith.constant 0 : index
    %43 = vector.load %arg6[%c0_23, %c0_24] : memref<128x128xbf16, #tpu.memory_space<vmem>>, vector<128x128xbf16>
    %cst_25 = arith.constant dense<0.000000e+00> : vector<1024x128xf32>
    %44 = tpu.matmul %42, %43, %cst_25 {dimension_numbers = #tpu.dot_dimension_numbers<[1], [0], [0], [1], [0, 0, 1, 1], [], []>} : vector<1024x128xbf16>, vector<128x128xbf16>, vector<1024x128xf32> -> vector<1024x128xf32>
    %c0_26 = arith.constant 0 : index
    %c0_27 = arith.constant 0 : index
    %45 = vector.load %arg7[%c0_26, %c0_27] : memref<1x128xf32, #tpu.memory_space<vmem>>, vector<1x128xf32>
    %46 = vector.broadcast %45 : vector<1x128xf32> to vector<1024x128xf32>
    %47 = arith.addf %44, %46 : vector<1024x128xf32>
    %48 = arith.addf %47, %1 : vector<1024x128xf32>
    %cst_28 = arith.constant 0.000000e+00 : f32
    %49 = vector.broadcast %cst_28 : f32 to vector<1024x128xf32>
    %50 = arith.maximumf %48, %49 : vector<1024x128xf32>
    %51 = vector.shape_cast %50 : vector<1024x128xf32> to vector<4x16x16x128xf32>
    %c0_29 = arith.constant 0 : index
    %c0_30 = arith.constant 0 : index
    %c0_31 = arith.constant 0 : index
    %c0_32 = arith.constant 0 : index
    %52 = vector.load %arg8[%c0_29, %c0_30, %c0_31, %c0_32] : memref<4x16x16x128xf32, #tpu.memory_space<vmem>>, vector<4x16x16x128xf32>
    tpu.vector_store %arg8[%c0_29, %c0_30, %c0_31, %c0_32], %51 {strides = array<i32>} : memref<4x16x16x128xf32, #tpu.memory_space<vmem>>, vector<4x16x16x128xf32>,
    return
  }
  func.func @transform_0(%arg0: i32) -> (i32, i32, i32, i32) {
    %c0_i32 = arith.constant 0 : i32
    %c0_i32_0 = arith.constant 0 : i32
    %c0_i32_1 = arith.constant 0 : i32
    %c0_i32_2 = arith.constant 0 : i32
    return %arg0, %c0_i32, %c0_i32_0, %c0_i32_1 : i32, i32, i32, i32
  }
  func.func @transform_1(%arg0: i32) -> (i32, i32) {
    %c0_i32 = arith.constant 0 : i32
    %c0_i32_0 = arith.constant 0 : i32
    %c0_i32_1 = arith.constant 0 : i32
    return %c0_i32, %c0_i32_0 : i32, i32
  }
  func.func @transform_2(%arg0: i32) -> (i32, i32) {
    %c0_i32 = arith.constant 0 : i32
    %c0_i32_0 = arith.constant 0 : i32
    %c0_i32_1 = arith.constant 0 : i32
    return %c0_i32, %c0_i32_0 : i32, i32
  }
  func.func @transform_3(%arg0: i32) -> (i32, i32, i32) {
    %c0_i32 = arith.constant 0 : i32
    %c0_i32_0 = arith.constant 0 : i32
    %c0_i32_1 = arith.constant 0 : i32
    %c0_i32_2 = arith.constant 0 : i32
    return %c0_i32, %c0_i32_0, %c0_i32_1 : i32, i32, i32
  }
  func.func @transform_4(%arg0: i32) -> (i32, i32) {
    %c0_i32 = arith.constant 0 : i32
    %c0_i32_0 = arith.constant 0 : i32
    %c0_i32_1 = arith.constant 0 : i32
    return %c0_i32, %c0_i32_0 : i32, i32
  }
  func.func @transform_5(%arg0: i32) -> (i32, i32) {
    %c0_i32 = arith.constant 0 : i32
    %c0_i32_0 = arith.constant 0 : i32
    %c0_i32_1 = arith.constant 0 : i32
    return %c0_i32, %c0_i32_0 : i32, i32
  }
  func.func @transform_6(%arg0: i32) -> (i32, i32) {
    %c0_i32 = arith.constant 0 : i32
    %c0_i32_0 = arith.constant 0 : i32
    %c0_i32_1 = arith.constant 0 : i32
    return %c0_i32, %c0_i32_0 : i32, i32
  }
  func.func @transform_7(%arg0: i32) -> (i32, i32, i32, i32) {
    %c0_i32 = arith.constant 0 : i32
    %c0_i32_0 = arith.constant 0 : i32
    %c0_i32_1 = arith.constant 0 : i32
    %c0_i32_2 = arith.constant 0 : i32
    return %arg0, %c0_i32, %c0_i32_0, %c0_i32_1 : i32, i32, i32, i32
  }
}

</mosaic_0001>

<bundles_post_ra>
// kernel: bottleneck_pallas.1
= control target key start
LH: loop header
LB: loop body
LE: loop exit
PB: predicated region body
PF: predicated region fallthrough
CT: control target
= control target key end

     0   :  { %12 = vsyncpa [#allocation3], 0  ;;  %s14633_s0 = inlined_call_operand.hbm [shape: f32[16,16,16,128], index: 0, kind: input, shape index: {}]   ;;  %s14634_s1 = inlined_call_operand.hbm [shape: bf16[128,128], index: 1, kind: input, shape index: {}]   ;;  %s14635_s2 = inlined_call_operand.hbm [shape: f32[1,128], index: 2, kind: input, shape index: {}]   ;;  %s14636_s3 = inlined_call_operand.hbm [shape: bf16[3,384,128], index: 3, kind: input, shape index: {}]   ;;  %s14637_s4 = inlined_call_operand.hbm [shape: f32[1,128], index: 4, kind: input, shape index: {}]   ;;  %s14638_s5 = inlined_call_operand.hbm [shape: bf16[128,128], index: 5, kind: input, shape index: {}]   ;;  %s14639_s6 = inlined_call_operand.hbm [shape: f32[1,128], index: 6, kind: input, shape index: {}]   ;;  %s14640_s7 = inlined_call_operand.hbm [shape: f32[16,16,16,128], index: 7, kind: output, shape index: {}]  }
   0x1   :  { %14 = vsyncpa [#allocation3 + $0x1], 0 }
   0x2   :  { %15 = vsyncpa [#allocation6], 0 }
   0x3   :  { %16 = vsyncpa [#allocation9], 0 }
   0x4   :  { %17 = vsyncpa [#allocation12], 0 }
   0x5   :  { %18 = vsyncpa [#allocation4], 0 }
   0x6   :  { %20 = vsyncpa [#allocation4 + $0x1], 0  ;;  %s9555_s24 = smov 0   ;;  %s9557_s25 = smov 0  }
   0x7   :  { %s9559_s26 = smov 0   ;;  %s9561_s27 = smov 0  }
   0x8 LB: > { %s9500_s28 = smov [#allocation5]   ;;  %s9576_s30 = sadd.s32 4294967295, %s9498_s27   ;;  %s9498_s27 = sphi %s9561_s27, %s16488_s27   ;;  %s9494_s26 = sphi %s9559_s26, %s16487_s26   ;;  %s9490_s25 = sphi %s9557_s25, %s16486_s25   ;;  %s9486_s24 = sphi %s9555_s24, %s16485_s24  }
   0x9   : > { %s221_s29 = sshll.u32 %s9500_s28, 4  ;;  %p7669_p0 = scmp.ge.s32.totalorder %s9498_s27, 1  ;;  %s9581_s29 = int_to_ptr.vmem [resolvable:$true] %s221_s29 }
   0xa   : > { %p14641_p1 = scmp.eq.s32.totalorder %s9576_s30, 0  ;;  %p209_p2 = scmp.lt.s32.totalorder %s9498_s27, 5 }
   0xb   : > { %s9501_s9 = smov [#allocation8]   ;;  %s9502_s12 = smov [#allocation11]  }
   0xc   : > { %p9583_p3 = pnand %p7669_p0, %p209_p2  ;;  %s245_s10 = sshll.u32 %s9501_s9, 4  ;;  %s9595_s10 = int_to_ptr.vmem [resolvable:$true] %s245_s10 }
   0xd   : > { %s269_s13 = sshll.u32 %s9502_s12, 4  ;;  %s9222_s16 = scalar_lea.hbm %s14634_s1, 1024  ;;  %s9597_s13 = int_to_ptr.vmem [resolvable:$true] %s269_s13 }
   0xe   : > { %s15081_s8 = scalar_select %p9583_p3, 1, 0 }
   0xf   : > { %p8915_p4 = pneg %p9583_p3  ;;  %p9223_p6 = scmp.ne.s32.totalorder %s14634_s1, %s9222_s16 }
  0x10   : > { %p9229_p10 = scmp.lt.u32.totalorder %s9222_s16, %s14634_s1 }
  0x11   : > { %p9591_p5 = pnand %p8915_p4, %p14641_p1 }
  0x13   : > { %p9607_p7 = pneg %p9591_p5 }
  0x15   : > { %p9225_p8 = pnand %p9607_p7, %p9223_p6 }
  0x17   : > { %p9226_p9 = pneg %p9225_p8 }
  0x19   : > { %p9231_p11 = pnand %p9229_p10, %p9226_p9 }
  0x1b   : > { %9234 = shalt.err (!%p9231_p11)
}
  0x1c   : > { %s9235_s22 = scalar_lea.vmem %s9581_s29, 1024  ;;  %p9243_p2 = scmp.lt.s32.totalorder %s9581_s29, %s9581_s29 }
  0x1d   : > { %p9236_p12 = scmp.ne.s32.totalorder %s9581_s29, %s9235_s22  ;;  %p9244_p4 = scmp.lt.s32.totalorder %s9235_s22, %s9235_s22 }
  0x1f   : > { %p9238_p13 = pnand %p9236_p12, %p9607_p7  ;;  %p9245_p6 = por %p9244_p4, %p9243_p2 }
  0x21   : > { %p9239_p0 = pneg %p9238_p13 }
  0x23   : > { %p9246_p8 = pnand %p9245_p6, %p9239_p0 }
  0x25   : > { %9249 = shalt.err (!%p9246_p8)
}
  0x26   : > { %s9503_s23 = smov 64   ;;  %s9504_s28 = smov 4  }
  0x27   : > { %8918 = dma.hbm_to_vmem [thread:$0]  (!%p9591_p5), %s14634_s1, 1024, %s9581_s29, [#allocation6], %s9503_s23, %s9503_s23, %s9504_s28  }
  0x28   : > { %s9250_s16 = scalar_lea.hbm %s14636_s3, 9216 }
  0x29   : > { %p9251_p9 = scmp.ne.s32.totalorder %s14636_s3, %s9250_s16  ;;  %p9257_p12 = scmp.lt.u32.totalorder %s9250_s16, %s14636_s3 }
  0x2b   : > { %p9253_p10 = pnand %p9251_p9, %p9607_p7 }
  0x2d   : > { %p9254_p11 = pneg %p9253_p10 }
  0x2f   : > { %p9259_p13 = pnand %p9257_p12, %p9254_p11 }
  0x31   : > { %9262 = shalt.err (!%p9259_p13)
}
  0x32   : > { %s9263_s29 = scalar_lea.vmem %s9595_s10, 9216  ;;  %p9271_p6 = scmp.lt.s32.totalorder %s9595_s10, %s9595_s10 }
  0x33   : > { %p9264_p0 = scmp.ne.s32.totalorder %s9595_s10, %s9263_s29  ;;  %p9272_p8 = scmp.lt.s32.totalorder %s9263_s29, %s9263_s29 }
  0x35   : > { %p9266_p2 = pnand %p9264_p0, %p9607_p7  ;;  %p9273_p9 = por %p9272_p8, %p9271_p6 }
  0x37   : > { %p9267_p4 = pneg %p9266_p2 }
  0x39   : > { %p9274_p10 = pnand %p9273_p9, %p9267_p4 }
  0x3b   : > { %9277 = shalt.err (!%p9274_p10)
}
  0x3c   : > { %8924 = dma.hbm_to_vmem [thread:$0]  (!%p9591_p5), %s14636_s3, 9216, %s9595_s10, [#allocation9], %s9503_s23, %s9503_s23, %s9504_s28  }
  0x3d   : > { %s9278_s15 = scalar_lea.hbm %s14638_s5, 1024 }
  0x3e   : > { %p9279_p11 = scmp.ne.s32.totalorder %s14638_s5, %s9278_s15  ;;  %p9285_p0 = scmp.lt.u32.totalorder %s9278_s15, %s14638_s5 }
  0x40   : > { %p9281_p12 = pnand %p9279_p11, %p9607_p7 }
  0x42   : > { %p9282_p13 = pneg %p9281_p12 }
  0x44   : > { %p9287_p2 = pnand %p9285_p0, %p9282_p13 }
  0x46   : > { %9290 = shalt.err (!%p9287_p2)
}
  0x47   : > { %s9291_s10 = scalar_lea.vmem %s9597_s13, 1024  ;;  %p9299_p9 = scmp.lt.s32.totalorder %s9597_s13, %s9597_s13 }
  0x48   : > { %p9292_p4 = scmp.ne.s32.totalorder %s9597_s13, %s9291_s10  ;;  %p9300_p10 = scmp.lt.s32.totalorder %s9291_s10, %s9291_s10 }
  0x4a   : > { %p9294_p6 = pnand %p9292_p4, %p9607_p7  ;;  %p9301_p11 = por %p9300_p10, %p9299_p9 }
  0x4c   : > { %p9295_p8 = pneg %p9294_p6 }
  0x4e   : > { %p9302_p12 = pnand %p9301_p11, %p9295_p8 }
  0x50   : > { %9305 = shalt.err (!%p9302_p12)
}
  0x51   : > { %8930 = dma.hbm_to_vmem [thread:$0]  (!%p9591_p5), %s14638_s5, 1024, %s9597_s13, [#allocation12], %s9503_s23, %s9503_s23, %s9504_s28  }
  0x52   : > { %s9505_s22 = smov [#allocation7]   ;;  %s9506_s12 = smov [#allocation10]  }
  0x53   : > { %s235_s9 = sshll.u32 %s9505_s22, 4  ;;  %s259_s14 = sshll.u32 %s9506_s12, 4  ;;  %s236_s9 = int_to_ptr.vmem [resolvable:$true] %s235_s9  ;;  %s260_s14 = int_to_ptr.vmem [resolvable:$true] %s259_s14 }
  0x54   : > { %s9306_s17 = scalar_lea.hbm %s14635_s2, 16 }
  0x55   : > { %p9307_p13 = scmp.ne.s32.totalorder %s14635_s2, %s9306_s17  ;;  %p9313_p4 = scmp.lt.u32.totalorder %s9306_s17, %s14635_s2 }
  0x57   : > { %p9309_p0 = pnand %p9307_p13, %p9607_p7 }
  0x59   : > { %p9310_p2 = pneg %p9309_p0 }
  0x5b   : > { %p9315_p6 = pnand %p9313_p4, %p9310_p2 }
  0x5d   : > { %9318 = shalt.err (!%p9315_p6)
}
  0x5e   : > { %s9319_s13 = scalar_lea.vmem %s236_s9, 16  ;;  %s9326_s23 = scalar_lea.vmem %s236_s9, 32 }
  0x5f   : > { %p9320_p8 = scmp.ne.s32.totalorder %s236_s9, %s9319_s13  ;;  %p9327_p11 = scmp.lt.s32.totalorder %s236_s9, %s236_s9 }
  0x60   : > { %p9328_p12 = scmp.lt.s32.totalorder %s9326_s23, %s9319_s13 }
  0x61   : > { %p9322_p9 = pnand %p9320_p8, %p9607_p7 }
  0x62   : > { %p9329_p1 = por %p9328_p12, %p9327_p11 }
  0x63   : > { %p9323_p10 = pneg %p9322_p9 }
  0x65   : > { %p9330_p3 = pnand %p9329_p1, %p9323_p10 }
  0x67   : > { %9333 = shalt.err (!%p9330_p3)
}
  0x68   : > { %8921 = dma.hbm_to_vmem [thread:$0]  (!%p9591_p5), %s14635_s2, 16, %s236_s9, [#allocation6]  }
  0x69   : > { %s9334_s15 = scalar_lea.hbm %s14637_s4, 16 }
  0x6a   : > { %p9335_p13 = scmp.ne.s32.totalorder %s14637_s4, %s9334_s15  ;;  %p9341_p3 = scmp.lt.u32.totalorder %s9334_s15, %s14637_s4 }
  0x6c   : > { %p9337_p0 = pnand %p9335_p13, %p9607_p7 }
  0x6e   : > { %p9338_p1 = pneg %p9337_p0 }
  0x70   : > { %p9343_p2 = pnand %p9341_p3, %p9338_p1 }
  0x72   : > { %9346 = shalt.err (!%p9343_p2)
}
  0x73   : > { %s9347_s10 = scalar_lea.vmem %s260_s14, 16  ;;  %s9354_s9 = scalar_lea.vmem %s260_s14, 32 }
  0x74   : > { %p9348_p4 = scmp.ne.s32.totalorder %s260_s14, %s9347_s10  ;;  %p9355_p9 = scmp.lt.s32.totalorder %s260_s14, %s260_s14 }
  0x75   : > { %p9356_p10 = scmp.lt.s32.totalorder %s9354_s9, %s9347_s10 }
  0x76   : > { %p9350_p6 = pnand %p9348_p4, %p9607_p7 }
  0x77   : > { %p9357_p11 = por %p9356_p10, %p9355_p9 }
  0x78   : > { %p9351_p8 = pneg %p9350_p6 }
  0x7a   : > { %p9358_p12 = pnand %p9357_p11, %p9351_p8 }
  0x7c   : > { %9361 = shalt.err (!%p9358_p12)
}
  0x7d   : > { %8927 = dma.hbm_to_vmem [thread:$0]  (!%p9591_p5), %s14637_s4, 16, %s260_s14, [#allocation9]  }
  0x7e   : > { %s9507_s23 = smov [#allocation13]   ;;  %s9362_s12 = scalar_lea.hbm %s14639_s6, 16 }
  0x7f   : > { %s283_s28 = sshll.u32 %s9507_s23, 4  ;;  %p9363_p13 = scmp.ne.s32.totalorder %s14639_s6, %s9362_s12  ;;  %s284_s28 = int_to_ptr.vmem [resolvable:$true] %s283_s28 }
  0x80   : > { %p9369_p3 = scmp.lt.u32.totalorder %s9362_s12, %s14639_s6 }
  0x81   : > { %p9365_p0 = pnand %p9363_p13, %p9607_p7 }
  0x83   : > { %p9366_p1 = pneg %p9365_p0 }
  0x85   : > { %p9371_p2 = pnand %p9369_p3, %p9366_p1 }
  0x87   : > { %9374 = shalt.err (!%p9371_p2)
}
  0x88   : > { %s9375_s14 = scalar_lea.vmem %s284_s28, 16  ;;  %s9382_s20 = scalar_lea.vmem %s284_s28, 32 }
  0x89   : > { %p9376_p4 = scmp.ne.s32.totalorder %s284_s28, %s9375_s14  ;;  %p9383_p9 = scmp.lt.s32.totalorder %s284_s28, %s284_s28 }
  0x8a   : > { %p9384_p10 = scmp.lt.s32.totalorder %s9382_s20, %s9375_s14 }
  0x8b   : > { %p9378_p6 = pnand %p9376_p4, %p9607_p7 }
  0x8c   : > { %p9385_p11 = por %p9384_p10, %p9383_p9 }
  0x8d   : > { %p9379_p8 = pneg %p9378_p6 }
  0x8f   : > { %p9386_p12 = pnand %p9385_p11, %p9379_p8 }
  0x91   : > { %9389 = shalt.err (!%p9386_p12)
}
  0x92   : > { %8933 = dma.hbm_to_vmem [thread:$0]  (!%p9591_p5), %s14639_s6, 16, %s284_s28, [#allocation12]  }
  0x93   : > { %s7668_s19 = sadd.s32 4294967294, %s9498_s27   ;;  %s9739_s11 = sadd.s32 1, %s9498_s27  }
  0x94   : > { %s30_s21 = ssub.s32 %s9498_s27, %s9739_s11  ;;  %s33_s13 = sadd.s32 1, %s9494_s26 }
  0x95   : > { %p31_p7 = scmp.eq.s32.totalorder %s30_s21, 0  ;;  %p40_p13 = scmp.ne.s32.totalorder %s9494_s26, %s9490_s25 }
  0x96   : > { %p41_p0 = scmp.eq.s32.totalorder %s9498_s27, 0  ;;  %p46_p1 = scmp.ne.s32.totalorder %s9490_s25, %s9486_s24 }
  0x97   : > { %s9750_s23 = scalar_select %p31_p7, %s9494_s26, %s33_s13  }
  0x98   : > { %p9752_p3 = por %p41_p0, %p40_p13  ;;  %p15085_p2 = scmp.eq.s32.totalorder %s9576_s30, 0 }
  0x99   : > { %p196_p4 = scmp.eq.s32.totalorder %s9576_s30, 3  ;;  %p202_p6 = scmp.eq.s32.totalorder %s7668_s19, 3 }
  0x9a   : > { %p9758_p5 = por %p15085_p2, %p46_p1  ;;  %p8948_p8 = scmp.lt.s32.totalorder %s9498_s27, 4 }
  0x9b   : > { %s294_s22 = sand.u32 1, %s9494_s26   ;;  %p9765_p9 = por %p196_p4, %p40_p13 }
  0x9c   : > { %p9769_p10 = por %p202_p6, %p46_p1  ;;  %s7677_s16 = sshll.u32 %s294_s22, 10 }
  0x9d   : > { %s15087_s12 = scalar_select %p9765_p9, 1, 0 }
  0x9e   : > { %s15088_s15 = scalar_select %p9769_p10, 1, 0 }
  0x9f   : > { %s7788_s17 = sshll.u32 %s9498_s27, 14  ;;  %s298_s10 = scalar_lea.vmem [#allocation2], %s7677_s16 }
  0xa0   : > { %s9777_s20 = scalar_lea.hbm %s14633_s0, %s7788_s17  ;;  %s306_s9 = sshll.u32 %s298_s10, 4  ;;  %s9779_s9 = int_to_ptr.vmem [resolvable:$true] %s306_s9 }
  0xa1   : > { %p9783_p11 = pnand %p8948_p8, %p9752_p3  ;;  %s9787_s21 = scalar_lea.sflag [#allocation3], %s294_s22 }
  0xa2   : > { %s9390_s13 = scalar_lea.hbm %s9777_s20, 16384  ;;  %s9395_s29 = scalar_lea.hbm %s14633_s0, 65536 }
  0xa3   : > { %p9391_p12 = scmp.ne.s32.totalorder %s9777_s20, %s9390_s13  ;;  %p9392_p7 = pneg %p9783_p11 }
  0xa4   : > { %p9396_p1 = scmp.lt.u32.totalorder %s9777_s20, %s14633_s0  ;;  %p9397_p3 = scmp.lt.u32.totalorder %s9395_s29, %s9390_s13 }
  0xa5   : > { %p9393_p13 = pnand %p9392_p7, %p9391_p12  ;;  %p9399_p4 = scmp.lt.u32.totalorder %s9390_s13, %s9777_s20 }
  0xa6   : > { %p9398_p2 = por %p9397_p3, %p9396_p1 }
  0xa7   : > { %p9394_p0 = pneg %p9393_p13 }
  0xa8   : > { %p9400_p6 = por %p9399_p4, %p9398_p2 }
  0xaa   : > { %p9401_p8 = pnand %p9400_p6, %p9394_p0 }
  0xac   : > { %9404 = shalt.err (!%p9401_p8)
}
  0xad   : > { %s9405_s22 = scalar_lea.vmem %s9779_s9, 16384  ;;  %s9508_s10 = smov [#allocation2]  }
  0xae   : > { %p9406_p12 = scmp.ne.s32.totalorder %s9779_s9, %s9405_s22  ;;  %s9410_s16 = sshll.u32 %s9508_s10, 4  ;;  %s9411_s16 = int_to_ptr.vmem [resolvable:$false] %s9410_s16 }
  0xaf   : > { %s9412_s17 = scalar_lea.vmem %s9411_s16, 32768  ;;  %p9413_p9 = scmp.lt.s32.totalorder %s9779_s9, %s9411_s16 }
  0xb0   : > { %p9408_p13 = pnand %p9406_p12, %p9392_p7  ;;  %p9414_p1 = scmp.lt.s32.totalorder %s9412_s17, %s9405_s22 }
  0xb2   : > { %p9409_p10 = pneg %p9408_p13  ;;  %p9415_p3 = por %p9414_p1, %p9413_p9 }
  0xb4   : > { %p9416_p2 = pnand %p9415_p3, %p9409_p10 }
  0xb6   : > { %9419 = shalt.err (!%p9416_p2)
}
  0xb7   : > { %s9509_s13 = smov 128   ;;  %s9510_s29 = smov 8  }
  0xb8   : > { %8937 = dma.hbm_to_vmem [thread:$0]  (!%p9783_p11), %s9777_s20, 16384, %s9779_s9, %s9787_s21, %s9509_s13, %s9509_s13, %s9510_s29  }
  0xb9   : > { %p15090_p7 = scmp.ne.s32.totalorder %s15081_s8, 0 }
  0xbb   : > { %318 = sbr.rel (%p15090_p7) target bundleno = 2205 (0x89d), region = 48 }
  0xc2   : > { %s9818_s18 = sand.u32 1, %s9490_s25  }
  0xc3   : > { %s7682_s14 = sshll.u32 %s9818_s18, 10  ;;  %s321_s22 = scalar_lea.sflag [#allocation3], %s9818_s18 }
  0xc4   : > { %s9824_s10 = scalar_lea.vmem [#allocation2], %s7682_s14 }
  0xc5   : > { %9465 = dma.done.wait (%p9758_p5), %s321_s22, 16384  }
  0xc6   : > { %9467 = vsyncadd (%p9758_p5), %s321_s22, 4294950912  ;;  %p15091_p9 = scmp.eq.s32.totalorder %s9576_s30, 0 }
  0xc8   : > { %9469 = dma.done.wait (%p15091_p9), [#allocation6], 1040   ;;  %p15092_p10 = pmov %p15091_p9 }
  0xc9   : > { %p15093_p11 = pmov %p15091_p9 }
  0xca   : > { %9471 = vsyncadd (%p15092_p10), [#allocation6], 4294966256 }
  0xcb   : > { %9473 = dma.done.wait (%p15093_p11), [#allocation9], 9232   ;;  %p15094_p0 = pmov %p15091_p9 }
  0xcd   : > { %9475 = vsyncadd (%p15094_p0), [#allocation9], 4294958064  ;;  %p15095_p4 = pmov %p15094_p0 }
  0xce   : > { %p15096_p6 = pmov %p15094_p0 }
  0xcf   : > { %9477 = dma.done.wait (%p15095_p4), [#allocation12], 1040  }
  0xd0   : > { %9479 = vsyncadd (%p15096_p6), [#allocation12], 4294966256  ;;  %v9001_v0 = vld [vmem:[#allocation5] sm:$0xff]   ;;  %v9002_v1 = vld [vmem:[#allocation5 + $0x8] sm:$0xff]   ;;  %v14644_v27 = vmov 0   ;;  %vm1894_vm0 = vcmask 1040384  }
  0xd1   : > { %8151 = vmatprep.subr.bf16.mxu0 %v9001_v0  ;;  %8871 = vmatprep.subr.bf16.mxu1 %v9001_v0  ;;  %v9003_v2 = vld [vmem:[#allocation5 + $0x10] sm:$0xff]   ;;  %v9004_v3 = vld [vmem:[#allocation5 + $0x18] sm:$0xff]   ;;  %v382_v4 = vld [vmem:[%s9824_s10] sm:$0xff]  ;;  %vm1895_vm1 = vsmask.f32 256  ;;  %vm2153_vm2 = vcmask 1047552  }
  0xd2   : > { %8152 = vmatpush3.bf16.msra.mxu0 %v9001_v0  ;;  %8879 = vmatpush3.bf16.msra.mxu1 %v9001_v0  ;;  %v383_v5 = vld [vmem:[%s9824_s10 + $0x8] sm:$0xff]  ;;  %v9005_v7 = vld [vmem:[#allocation5 + $0x20] sm:$0xff]   ;;  %v9007_v9 = vld [vmem:[#allocation5 + $0x30] sm:$0xff]   ;;  %vm2154_vm3 = vsmask.f32 7424  ;;  %s14006_s8 = scalar_lea.vmem [#allocation14], %s7682_s14 }
  0xd3   : > { %8153 = vmatprep.subr.bf16.mxu0 %v9002_v1  ;;  %8872 = vmatprep.subr.bf16.mxu1 %v9002_v1  ;;  %v510_v6 = vpack.c.bf16 %v383_v5, %v382_v4  ;;  %v9006_v8 = vld [vmem:[#allocation5 + $0x28] sm:$0xff]   ;;  %v9008_v10 = vld [vmem:[#allocation5 + $0x38] sm:$0xff]   ;;  %v446_v11 = vld [vmem:[%s9824_s10 + $0x200] sm:$0xff]  ;;  %s7790_s28 = sshll.u32 %s9576_s30, 14  ;;  %s7538_s20 = sshll.u32 %s14006_s8, 4  ;;  %s14587_s20 = int_to_ptr.vmem [resolvable:$true] %s7538_s20 }
  0xd4   : > { %v447_v12 = vld [vmem:[%s9824_s10 + $0x208] sm:$0xff]  ;;  %v384_v14 = vld [vmem:[%s9824_s10 + $0x10] sm:$0xff]  ;;  %v385_v15 = vld [vmem:[%s9824_s10 + $0x18] sm:$0xff]  ;;  %s14585_s21 = scalar_lea.hbm %s14640_s7, %s7790_s28  ;;  %s7524_s30 = scalar_lea.sflag [#allocation4], %s9818_s18 }
  0xd5   : > { %8167 = vmatprep.mubr.bf16.mxu0 %v510_v6  ;;  %v542_v13 = vpack.c.bf16 %v447_v12, %v446_v11  ;;  %v386_v16 = vld [vmem:[%s9824_s10 + $0x20] sm:$0xff]  ;;  %v387_v17 = vld [vmem:[%s9824_s10 + $0x28] sm:$0xff]  ;;  %v448_v18 = vld [vmem:[%s9824_s10 + $0x210] sm:$0xff]  ;;  %v511_v22 = vpack.c.bf16 %v385_v15, %v384_v14  ;;  %s9420_s16 = scalar_lea.vmem %s14587_s20, 16384  ;;  %p16483_p8 = scmp.ne.s32.totalorder %s15087_s12, 0 }
  0xd6   : > { %8154 = vmatpush3.bf16.msra.mxu0 %v9002_v1  ;;  %8880 = vmatpush3.bf16.msra.mxu1 %v9002_v1  ;;  %v449_v19 = vld [vmem:[%s9824_s10 + $0x218] sm:$0xff]  ;;  %v450_v20 = vld [vmem:[%s9824_s10 + $0x220] sm:$0xff]  ;;  %v451_v21 = vld [vmem:[%s9824_s10 + $0x228] sm:$0xff]  ;;  %v512_v23 = vpack.c.bf16 %v387_v17, %v386_v16  ;;  %p9421_p5 = scmp.ne.s32.totalorder %s14587_s20, %s9420_s16  ;;  %s9512_s17 = smov [#allocation14]  }
  0xd7   : > { %8155 = vmatprep.subr.bf16.mxu0 %v9003_v2  ;;  %8873 = vmatprep.subr.bf16.mxu1 %v9003_v2  ;;  %v543_v24 = vpack.c.bf16 %v449_v19, %v448_v18  ;;  %v9009_v25 = vld [vmem:[#allocation8 + $0xc0] sm:$0xff]   ;;  %v544_v26 = vpack.c.bf16 %v451_v21, %v450_v20  ;;  %v388_v28 = vld [vmem:[%s9824_s10 + $0x30] sm:$0xff]  ;;  %v389_v29 = vld [vmem:[%s9824_s10 + $0x38] sm:$0xff]  ;;  %s9424_s13 = sshll.u32 %s9512_s17, 4  ;;  %s9425_s13 = int_to_ptr.vmem [resolvable:$false] %s9424_s13 }
  0xd8   : > { %8231 = vmatprep.mubr.bf16.mxu1 %v542_v13  ;;  %v390_v30 = vld [vmem:[%s9824_s10 + $0x40] sm:$0xff]  ;;  %v391_v31 = vld [vmem:[%s9824_s10 + $0x48] sm:$0xff]  ;;  %v452_v32 = vld [vmem:[%s9824_s10 + $0x230] sm:$0xff]  ;;  %v513_v37 = vpack.c.bf16 %v389_v29, %v388_v28  ;;  %p9422_p12 = pnand %p9421_p5, %p16483_p8  ;;  %s9426_s29 = scalar_lea.vmem %s9425_s13, 32768 }
  0xd9   : > { %v453_v33 = vld [vmem:[%s9824_s10 + $0x238] sm:$0xff]  ;;  %v9010_v34 = vld [vmem:[#allocation8 + $0xc8] sm:$0xff]   ;;  %v454_v35 = vld [vmem:[%s9824_s10 + $0x240] sm:$0xff]  ;;  %v514_v38 = vpack.c.bf16 %v391_v31, %v390_v30  ;;  %p9427_p1 = scmp.lt.s32.totalorder %s14587_s20, %s9425_s13  ;;  %p9428_p3 = scmp.lt.s32.totalorder %s9426_s29, %s9420_s16 }
  0xda   : > { %8156 = vmatpush3.bf16.msra.mxu0 %v9003_v2  ;;  %8881 = vmatpush3.bf16.msra.mxu1 %v9003_v2  ;;  %v455_v36 = vld [vmem:[%s9824_s10 + $0x248] sm:$0xff]  ;;  %v545_v39 = vpack.c.bf16 %v453_v33, %v452_v32  ;;  %v9011_v41 = vld [vmem:[#allocation8 + $0xd0] sm:$0xff]   ;;  %v394_v44 = vld [vmem:[%s9824_s10 + $0x60] sm:$0xff]  ;;  %p9423_p13 = pneg %p9422_p12 }
  0xdb   : > { %8157 = vmatprep.subr.bf16.mxu0 %v9004_v3  ;;  %8874 = vmatprep.subr.bf16.mxu1 %v9004_v3  ;;  %v546_v40 = vpack.c.bf16 %v455_v36, %v454_v35  ;;  %v392_v42 = vld [vmem:[%s9824_s10 + $0x50] sm:$0xff]  ;;  %v393_v43 = vld [vmem:[%s9824_s10 + $0x58] sm:$0xff]  ;;  %v395_v45 = vld [vmem:[%s9824_s10 + $0x68] sm:$0xff]  ;;  %p9429_p2 = por %p9428_p3, %p9427_p1 }
  0xdc   : > { %v456_v46 = vld [vmem:[%s9824_s10 + $0x250] sm:$0xff]  ;;  %v457_v47 = vld [vmem:[%s9824_s10 + $0x258] sm:$0xff]  ;;  %v458_v49 = vld [vmem:[%s9824_s10 + $0x260] sm:$0xff]  ;;  %v515_v51 = vpack.c.bf16 %v393_v43, %v392_v42  ;;  %v516_v52 = vpack.c.bf16 %v395_v45, %v394_v44 }
  0xdd   : > { %v9012_v48 = vld [vmem:[#allocation8 + $0xd8] sm:$0xff]   ;;  %v459_v50 = vld [vmem:[%s9824_s10 + $0x268] sm:$0xff]  ;;  %v547_v53 = vpack.c.bf16 %v457_v47, %v456_v46  ;;  %v396_v56 = vld [vmem:[%s9824_s10 + $0x70] sm:$0xff]  ;;  %p9430_p7 = pnand %p9429_p2, %p9423_p13 }
  0xde   : > { %8158 = vmatpush3.bf16.msra.mxu0 %v9004_v3  ;;  %8882 = vmatpush3.bf16.msra.mxu1 %v9004_v3  ;;  %v548_v54 = vpack.c.bf16 %v459_v50, %v458_v49  ;;  %v9013_v55 = vld [vmem:[#allocation8 + $0xe0] sm:$0xff]   ;;  %v397_v57 = vld [vmem:[%s9824_s10 + $0x78] sm:$0xff]  ;;  %v460_v60 = vld [vmem:[%s9824_s10 + $0x270] sm:$0xff] }
  0xdf   : > { %8159 = vmatprep.subr.bf16.mxu0 %v9005_v7  ;;  %8875 = vmatprep.subr.bf16.mxu1 %v9005_v7  ;;  %v398_v58 = vld [vmem:[%s9824_s10 + $0x80] sm:$0xff]  ;;  %v399_v59 = vld [vmem:[%s9824_s10 + $0x88] sm:$0xff]  ;;  %v461_v61 = vld [vmem:[%s9824_s10 + $0x278] sm:$0xff]  ;;  %v517_v1 = vpack.c.bf16 %v397_v57, %v396_v56 }
  0xe0   : > { %v9014_v62 = vld [vmem:[#allocation8 + $0xe8] sm:$0xff]   ;;  %v462_v63 = vld [vmem:[%s9824_s10 + $0x280] sm:$0xff]  ;;  %v518_v2 = vpack.c.bf16 %v399_v59, %v398_v58  ;;  %v549_v3 = vpack.c.bf16 %v461_v61, %v460_v60  ;;  %v9015_v5 = vld [vmem:[#allocation8 + $0xf0] sm:$0xff]  }
  0xe1   : > { %v463_v0 = vld [vmem:[%s9824_s10 + $0x288] sm:$0xff]  ;;  %v400_v6 = vld [vmem:[%s9824_s10 + $0x90] sm:$0xff]  ;;  %v465_v11 = vld [vmem:[%s9824_s10 + $0x298] sm:$0xff] }
  0xe2   : > { %8160 = vmatpush3.bf16.msra.mxu0 %v9005_v7  ;;  %8883 = vmatpush3.bf16.msra.mxu1 %v9005_v7  ;;  %v550_v4 = vpack.c.bf16 %v463_v0, %v462_v63  ;;  %v401_v7 = vld [vmem:[%s9824_s10 + $0x98] sm:$0xff]  ;;  %v9022_v13 = vld [vmem:[#allocation8 + $0x140] sm:$0xff]   ;;  %v9023_v17 = vld [vmem:[#allocation8 + $0x148] sm:$0xff]  }
  0xe3   : > { %8161 = vmatprep.subr.bf16.mxu0 %v9006_v8  ;;  %8876 = vmatprep.subr.bf16.mxu1 %v9006_v8  ;;  %v9016_v12 = vld [vmem:[#allocation8 + $0xf8] sm:$0xff]   ;;  %v467_v15 = vld [vmem:[%s9824_s10 + $0x2a8] sm:$0xff]  ;;  %v519_v16 = vpack.c.bf16 %v401_v7, %v400_v6  ;;  %v9025_v29 = vld [vmem:[#allocation8 + $0x150] sm:$0xff]  }
  0xe4   : > { %v466_v14 = vld [vmem:[%s9824_s10 + $0x2a0] sm:$0xff]  ;;  %v469_v28 = vld [vmem:[%s9824_s10 + $0x2b8] sm:$0xff]  ;;  %v471_v31 = vld [vmem:[%s9824_s10 + $0x2c8] sm:$0xff] }
  0xe5   : > { %v552_v20 = vpack.c.bf16 %v467_v15, %v466_v14  ;;  %v9017_v21 = vld [vmem:[#allocation8 + $0x100] sm:$0xff]   ;;  %v9018_v32 = vld [vmem:[#allocation8 + $0x108] sm:$0xff]   ;;  %v9026_v33 = vld [vmem:[#allocation8 + $0x158] sm:$0xff]  }
  0xe6   : > { %8162 = vmatpush3.bf16.msra.mxu0 %v9006_v8  ;;  %8884 = vmatpush3.bf16.msra.mxu1 %v9006_v8  ;;  %v402_v8 = vld [vmem:[%s9824_s10 + $0xa0] sm:$0xff]  ;;  %v9019_v35 = vld [vmem:[#allocation8 + $0x110] sm:$0xff]   ;;  %v411_v42 = vld [vmem:[%s9824_s10 + $0xe8] sm:$0xff] }
  0xe7   : > { %8163 = vmatprep.subr.bf16.mxu0 %v9007_v9  ;;  %8877 = vmatprep.subr.bf16.mxu1 %v9007_v9  ;;  %v470_v30 = vld [vmem:[%s9824_s10 + $0x2c0] sm:$0xff]  ;;  %v472_v43 = vld [vmem:[%s9824_s10 + $0x2d0] sm:$0xff]  ;;  %v473_v44 = vld [vmem:[%s9824_s10 + $0x2d8] sm:$0xff] }
  0xe8   : > { %v9020_v45 = vld [vmem:[#allocation8 + $0x118] sm:$0xff]   ;;  %v475_v47 = vld [vmem:[%s9824_s10 + $0x2e8] sm:$0xff]  ;;  %v476_v57 = vld [vmem:[%s9824_s10 + $0x2f0] sm:$0xff] }
  0xe9   : > { %v474_v46 = vld [vmem:[%s9824_s10 + $0x2e0] sm:$0xff]  ;;  %v415_v56 = vld [vmem:[%s9824_s10 + $0x108] sm:$0xff]  ;;  %v477_v58 = vld [vmem:[%s9824_s10 + $0x2f8] sm:$0xff] }
  0xea   : > { %8164 = vmatpush3.bf16.msra.mxu0 %v9007_v9  ;;  %8885 = vmatpush3.bf16.msra.mxu1 %v9007_v9  ;;  %v403_v9 = vld [vmem:[%s9824_s10 + $0xa8] sm:$0xff]  ;;  %v478_v60 = vld [vmem:[%s9824_s10 + $0x300] sm:$0xff]  ;;  %v557_v0 = vpack.c.bf16 %v477_v58, %v476_v57  ;;  %v480_v6 = vld [vmem:[%s9824_s10 + $0x310] sm:$0xff] }
  0xeb   : > { %8165 = vmatprep.subr.bf16.mxu0 %v9008_v10  ;;  %8878 = vmatprep.subr.bf16.mxu1 %v9008_v10  ;;  %v520_v18 = vpack.c.bf16 %v403_v9, %v402_v8  ;;  %v9021_v49 = vld [vmem:[#allocation8 + $0x120] sm:$0xff]   ;;  %v9024_v59 = vld [vmem:[#allocation8 + $0x128] sm:$0xff]   ;;  %v481_v7 = vld [vmem:[%s9824_s10 + $0x318] sm:$0xff] }
  0xec   : > { %v479_v61 = vld [vmem:[%s9824_s10 + $0x308] sm:$0xff]  ;;  %v482_v8 = vld [vmem:[%s9824_s10 + $0x320] sm:$0xff]  ;;  %v420_v14 = vld [vmem:[%s9824_s10 + $0x130] sm:$0xff] }
  0xed   : > { %v483_v9 = vld [vmem:[%s9824_s10 + $0x328] sm:$0xff]  ;;  %v421_v15 = vld [vmem:[%s9824_s10 + $0x138] sm:$0xff]  ;;  %v496_v58 = vld [vmem:[%s9824_s10 + $0x390] sm:$0xff] }
  0xee   : > { %8166 = vmatpush3.bf16.msra.mxu0 %v9008_v10  ;;  %8886 = vmatpush3.bf16.msra.mxu1 %v9008_v10  ;;  %v464_v10 = vld [vmem:[%s9824_s10 + $0x290] sm:$0xff]  ;;  %v435_v57 = vld [vmem:[%s9824_s10 + $0x1a8] sm:$0xff]  ;;  %vm10020_vm4 = vmand %vm1894_vm0, %vm1895_vm1 }
  0xef   : > { %2461 = vmatprep.subr.bf16.mxu1 %v14644_v27  ;;  %8295 = vmatprep.subr.bf16.mxu0 %v9022_v13  ;;  %v551_v19 = vpack.c.bf16 %v465_v11, %v464_v10  ;;  %vm10026_vm5 = vmand %vm2153_vm2, %vm2154_vm3 }
  0xf1   : > { %8168 = vmatmul.mubr.bf16.vlgmr.msra.gmra.mrb[0].mxu0 %v511_v22  ;;  %8232 = vmatmul.mubr.bf16.vlgmr.msra.gmra.mrb[0].mxu1 %v543_v24  ;;  %v404_v22 = vld [vmem:[%s9824_s10 + $0xb0] sm:$0xff]  ;;  %v406_v24 = vld [vmem:[%s9824_s10 + $0xc0] sm:$0xff] }
  0xf2   : > { %8171 = vmatprep.mubr.bf16.mxu0 %v512_v23  ;;  %2462 = vmatpush1.bf16.msra.mxu1 %v9009_v25  ;;  %v405_v23 = vld [vmem:[%s9824_s10 + $0xb8] sm:$0xff]  ;;  %v407_v25 = vld [vmem:[%s9824_s10 + $0xc8] sm:$0xff] }
  0xf3   : > { %8235 = vmatprep.mubr.bf16.mxu1 %v544_v26  ;;  %2463 = vmatprep.subr.bf16.mxu1 %v14644_v27  ;;  %v468_v26 = vld [vmem:[%s9824_s10 + $0x2b0] sm:$0xff]  ;;  %v522_v36 = vpack.c.bf16 %v407_v25, %v406_v24 }
  0xf4   : > { %8296 = vmatpush3.bf16.msra.mxu0 %v9022_v13  ;;  %v560_v13 = vpack.c.bf16 %v483_v9, %v482_v8  ;;  %v439_v8 = vld [vmem:[%s9824_s10 + $0x1c8] sm:$0xff]  ;;  %v500_v9 = vld [vmem:[%s9824_s10 + $0x3b0] sm:$0xff] }
  0xf5   : > { %8297 = vmatprep.subr.bf16.mxu0 %v9023_v17 }
  0xf6   : > { %2464 = vmatpush1.bf16.msra.mxu1 %v9010_v34  ;;  %v521_v34 = vpack.c.bf16 %v405_v23, %v404_v22  ;;  %v529_v22 = vpack.c.bf16 %v421_v15, %v420_v14 }
  0xf7   : > { %2465 = vmatprep.subr.bf16.mxu1 %v14644_v27 }
  0xf8   : > { %8298 = vmatpush3.bf16.msra.mxu0 %v9023_v17  ;;  %v423_v17 = vld [vmem:[%s9824_s10 + $0x148] sm:$0xff] }
  0xf9   : > { %8172 = vmatmul.mubr.bf16.gmra.mrb[4].mxu0 %v513_v37  ;;  %8236 = vmatmul.mubr.bf16.gmra.mrb[4].mxu1 %v545_v39  ;;  %v553_v37 = vpack.c.bf16 %v469_v28, %v468_v26  ;;  %v408_v39 = vld [vmem:[%s9824_s10 + $0xd0] sm:$0xff]  ;;  %v425_v28 = vld [vmem:[%s9824_s10 + $0x158] sm:$0xff] }
  0xfa   : > { %8175 = vmatprep.mubr.bf16.mxu0 %v514_v38  ;;  %8239 = vmatprep.mubr.bf16.mxu1 %v546_v40  ;;  %v554_v38 = vpack.c.bf16 %v471_v31, %v470_v30  ;;  %v409_v40 = vld [vmem:[%s9824_s10 + $0xd8] sm:$0xff]  ;;  %v424_v26 = vld [vmem:[%s9824_s10 + $0x150] sm:$0xff]  ;;  %v427_v30 = vld [vmem:[%s9824_s10 + $0x168] sm:$0xff] }
  0xfb   : > { %2466 = vmatpush1.bf16.msra.mxu1 %v9011_v41  ;;  %8299 = vmatprep.subr.bf16.mxu0 %v9025_v29  ;;  %v410_v41 = vld [vmem:[%s9824_s10 + $0xe0] sm:$0xff]  ;;  %v488_v31 = vld [vmem:[%s9824_s10 + $0x350] sm:$0xff] }
  0xfc   : > { %2467 = vmatprep.subr.bf16.mxu1 %v14644_v27  ;;  %8300 = vmatpush3.bf16.msra.mxu0 %v9025_v29  ;;  %v524_v50 = vpack.c.bf16 %v411_v42, %v410_v41  ;;  %v426_v29 = vld [vmem:[%s9824_s10 + $0x160] sm:$0xff]  ;;  %v431_v42 = vld [vmem:[%s9824_s10 + $0x188] sm:$0xff] }
  0xfd   : > { %8301 = vmatprep.subr.bf16.mxu0 %v9026_v33  ;;  %v430_v41 = vld [vmem:[%s9824_s10 + $0x180] sm:$0xff] }
  0xff   : > { %2468 = vmatpush1.bf16.msra.mxu1 %v9012_v48  ;;  %v523_v48 = vpack.c.bf16 %v409_v40, %v408_v39  ;;  %v428_v39 = vld [vmem:[%s9824_s10 + $0x170] sm:$0xff]  ;;  %v429_v40 = vld [vmem:[%s9824_s10 + $0x178] sm:$0xff] }
 0x100   : > { %2469 = vmatprep.subr.bf16.mxu1 %v14644_v27  ;;  %8302 = vmatpush3.bf16.msra.mxu0 %v9026_v33  ;;  %v490_v33 = vld [vmem:[%s9824_s10 + $0x360] sm:$0xff] }
 0x101   : > { %8176 = vmatmul.mubr.bf16.gmra.mrb[8].mxu0 %v515_v51  ;;  %8240 = vmatmul.mubr.bf16.gmra.mrb[8].mxu1 %v547_v53  ;;  %v555_v51 = vpack.c.bf16 %v473_v44, %v472_v43  ;;  %v412_v53 = vld [vmem:[%s9824_s10 + $0xf0] sm:$0xff]  ;;  %v493_v44 = vld [vmem:[%s9824_s10 + $0x378] sm:$0xff] }
 0x102   : > { %8179 = vmatprep.mubr.bf16.mxu0 %v516_v52  ;;  %8243 = vmatprep.mubr.bf16.mxu1 %v548_v54  ;;  %v556_v52 = vpack.c.bf16 %v475_v47, %v474_v46  ;;  %v413_v54 = vld [vmem:[%s9824_s10 + $0xf8] sm:$0xff]  ;;  %v492_v43 = vld [vmem:[%s9824_s10 + $0x370] sm:$0xff]  ;;  %v495_v46 = vld [vmem:[%s9824_s10 + $0x388] sm:$0xff] }
 0x103   : > { %2470 = vmatpush1.bf16.msra.mxu1 %v9013_v55  ;;  %v414_v55 = vld [vmem:[%s9824_s10 + $0x100] sm:$0xff] }
 0x104   : > { %2471 = vmatprep.subr.bf16.mxu1 %v14644_v27  ;;  %v526_v63 = vpack.c.bf16 %v415_v56, %v414_v55  ;;  %v9028_v47 = vld [vmem:[#allocation8 + $0x160] sm:$0xff]   ;;  %v433_v55 = vld [vmem:[%s9824_s10 + $0x198] sm:$0xff] }
 0x105   : > { %8303 = vmatprep.subr.bf16.mxu0 %v9028_v47  ;;  %v434_v56 = vld [vmem:[%s9824_s10 + $0x1a0] sm:$0xff] }
 0x106   : > { %8304 = vmatpush3.bf16.msra.mxu0 %v9028_v47 }
 0x107   : > { %2472 = vmatpush1.bf16.msra.mxu1 %v9014_v62  ;;  %v525_v62 = vpack.c.bf16 %v413_v54, %v412_v53  ;;  %v9029_v53 = vld [vmem:[#allocation8 + $0x168] sm:$0xff]  }
 0x108   : > { %2473 = vmatprep.subr.bf16.mxu1 %v14644_v27  ;;  %v432_v54 = vld [vmem:[%s9824_s10 + $0x190] sm:$0xff]  ;;  %8305 = vmatprep.subr.bf16.mxu0 %v9029_v53 }
 0x109   : > { %8180 = vmatmul.mubr.bf16.gmra.mrb[12].mxu0 %v517_v1  ;;  %8244 = vmatmul.mubr.bf16.gmra.mrb[12].mxu1 %v549_v3  ;;  %v558_v1 = vpack.c.bf16 %v479_v61, %v478_v60  ;;  %v417_v3 = vld [vmem:[%s9824_s10 + $0x118] sm:$0xff]  ;;  %v498_v60 = vld [vmem:[%s9824_s10 + $0x3a0] sm:$0xff]  ;;  %v499_v61 = vld [vmem:[%s9824_s10 + $0x3a8] sm:$0xff] }
 0x10a   : > { %8183 = vmatprep.mubr.bf16.mxu0 %v518_v2  ;;  %8247 = vmatprep.mubr.bf16.mxu1 %v550_v4  ;;  %v416_v2 = vld [vmem:[%s9824_s10 + $0x110] sm:$0xff]  ;;  %v418_v4 = vld [vmem:[%s9824_s10 + $0x120] sm:$0xff] }
 0x10b   : > { %2474 = vmatpush1.bf16.msra.mxu1 %v9015_v5  ;;  %v419_v5 = vld [vmem:[%s9824_s10 + $0x128] sm:$0xff]  ;;  %v527_v10 = vpack.c.bf16 %v417_v3, %v416_v2  ;;  %8306 = vmatpush3.bf16.msra.mxu0 %v9029_v53  ;;  %v568_v2 = vpack.c.bf16 %v499_v61, %v498_v60  ;;  %v9030_v3 = vld [vmem:[#allocation8 + $0x138] sm:$0xff]  }
 0x10c   : > { %2475 = vmatprep.subr.bf16.mxu1 %v14644_v27  ;;  %v528_v11 = vpack.c.bf16 %v419_v5, %v418_v4  ;;  %v9032_v4 = vld [vmem:[#allocation8 + $0x178] sm:$0xff]   ;;  %v436_v5 = vld [vmem:[%s9824_s10 + $0x1b0] sm:$0xff] }
 0x10f   : > { %2476 = vmatpush1.bf16.msra.mxu1 %v9016_v12  ;;  %v559_v12 = vpack.c.bf16 %v481_v7, %v480_v6  ;;  %v437_v6 = vld [vmem:[%s9824_s10 + $0x1b8] sm:$0xff]  ;;  %v438_v7 = vld [vmem:[%s9824_s10 + $0x1c0] sm:$0xff] }
 0x110   : > { %2477 = vmatprep.subr.bf16.mxu1 %v14644_v27  ;;  %v538_v14 = vpack.c.bf16 %v439_v8, %v438_v7 }
 0x111   : > { %8184 = vmatmul.mubr.bf16.gmra.mrb[16].mxu0 %v519_v16  ;;  %8248 = vmatmul.mubr.bf16.gmra.mrb[16].mxu1 %v551_v19  ;;  %v422_v16 = vld [vmem:[%s9824_s10 + $0x140] sm:$0xff]  ;;  %v485_v19 = vld [vmem:[%s9824_s10 + $0x338] sm:$0xff] }
 0x112   : > { %8187 = vmatprep.mubr.bf16.mxu0 %v520_v18  ;;  %8251 = vmatprep.mubr.bf16.mxu1 %v552_v20  ;;  %v484_v18 = vld [vmem:[%s9824_s10 + $0x330] sm:$0xff]  ;;  %v486_v20 = vld [vmem:[%s9824_s10 + $0x340] sm:$0xff]  ;;  %v530_v23 = vpack.c.bf16 %v423_v17, %v422_v16 }
 0x113   : > { %2478 = vmatpush1.bf16.msra.mxu1 %v9017_v21  ;;  %v487_v21 = vld [vmem:[%s9824_s10 + $0x348] sm:$0xff]  ;;  %v561_v24 = vpack.c.bf16 %v485_v19, %v484_v18  ;;  %v440_v18 = vld [vmem:[%s9824_s10 + $0x1d0] sm:$0xff]  ;;  %v441_v19 = vld [vmem:[%s9824_s10 + $0x1d8] sm:$0xff] }
 0x114   : > { %2479 = vmatprep.subr.bf16.mxu1 %v14644_v27  ;;  %v562_v25 = vpack.c.bf16 %v487_v21, %v486_v20  ;;  %v9974_v17 = vld [vmem:[#allocation8 + $0x80] sm:$0xff]  }
 0x115   : > { %v442_v20 = vld [vmem:[%s9824_s10 + $0x1e0] sm:$0xff]  ;;  %v443_v21 = vld [vmem:[%s9824_s10 + $0x1e8] sm:$0xff] }
 0x117   : > { %2480 = vmatpush1.bf16.msra.mxu1 %v9018_v32  ;;  %v489_v32 = vld [vmem:[%s9824_s10 + $0x358] sm:$0xff] }
 0x118   : > { %2481 = vmatprep.subr.bf16.mxu1 %v14644_v27 }
 0x119   : > { %8188 = vmatmul.mubr.bf16.gmra.mrb[20].mxu0 %v521_v34  ;;  %8252 = vmatmul.mubr.bf16.gmra.mrb[20].mxu1 %v553_v37  ;;  %v491_v34 = vld [vmem:[%s9824_s10 + $0x368] sm:$0xff]  ;;  %v563_v37 = vpack.c.bf16 %v489_v32, %v488_v31  ;;  %v444_v31 = vld [vmem:[%s9824_s10 + $0x1f0] sm:$0xff]  ;;  %v445_v32 = vld [vmem:[%s9824_s10 + $0x1f8] sm:$0xff] }
 0x11a   : > { %8191 = vmatprep.mubr.bf16.mxu0 %v522_v36  ;;  %8255 = vmatprep.mubr.bf16.mxu1 %v554_v38  ;;  %v532_v36 = vpack.c.bf16 %v427_v30, %v426_v29  ;;  %v564_v38 = vpack.c.bf16 %v491_v34, %v490_v33  ;;  %v508_v33 = vld [vmem:[%s9824_s10 + $0x3f0] sm:$0xff]  ;;  %v509_v34 = vld [vmem:[%s9824_s10 + $0x3f8] sm:$0xff] }
 0x11b   : > { %2482 = vmatpush1.bf16.msra.mxu1 %v9019_v35  ;;  %v531_v35 = vpack.c.bf16 %v425_v28, %v424_v26  ;;  %v539_v26 = vpack.c.bf16 %v441_v19, %v440_v18  ;;  %v540_v28 = vpack.c.bf16 %v443_v21, %v442_v20 }
 0x11c   : > { %2483 = vmatprep.subr.bf16.mxu1 %v14644_v27 }
 0x11f   : > { %2484 = vmatpush1.bf16.msra.mxu1 %v9020_v45  ;;  %v494_v45 = vld [vmem:[%s9824_s10 + $0x380] sm:$0xff] }
 0x120   : > { %2485 = vmatprep.subr.bf16.mxu1 %v14644_v27 }
 0x121   : > { %8192 = vmatmul.mubr.bf16.gmra.mrb[24].mxu0 %v523_v48  ;;  %8256 = vmatmul.mubr.bf16.gmra.mrb[24].mxu1 %v555_v51  ;;  %v533_v48 = vpack.c.bf16 %v429_v40, %v428_v39  ;;  %v566_v51 = vpack.c.bf16 %v495_v46, %v494_v45 }
 0x122   : > { %8195 = vmatprep.mubr.bf16.mxu0 %v524_v50  ;;  %8259 = vmatprep.mubr.bf16.mxu1 %v556_v52  ;;  %v565_v50 = vpack.c.bf16 %v493_v44, %v492_v43  ;;  %v9027_v52 = vld [vmem:[#allocation8 + $0x130] sm:$0xff]  }
 0x123   : > { %2486 = vmatpush1.bf16.msra.mxu1 %v9021_v49  ;;  %v534_v49 = vpack.c.bf16 %v431_v42, %v430_v41 }
 0x124   : > { %2487 = vmatprep.subr.bf16.mxu1 %v14644_v27 }
 0x127   : > { %2488 = vmatpush1.bf16.msra.mxu1 %v9024_v59  ;;  %v497_v59 = vld [vmem:[%s9824_s10 + $0x398] sm:$0xff] }
 0x128   : > { %2489 = vmatprep.subr.bf16.mxu1 %v14644_v27 }
 0x129   : > { %8196 = vmatmul.mubr.bf16.gmra.mrb[28].mxu0 %v525_v62  ;;  %8260 = vmatmul.mubr.bf16.gmra.mrb[28].mxu1 %v557_v0  ;;  %v9031_v62 = vld [vmem:[#allocation8 + $0x170] sm:$0xff]   ;;  %v536_v0 = vpack.c.bf16 %v435_v57, %v434_v56 }
 0x12a   : > { %8199 = vmatprep.mubr.bf16.mxu0 %v526_v63  ;;  %8263 = vmatprep.mubr.bf16.mxu1 %v558_v1  ;;  %v535_v63 = vpack.c.bf16 %v433_v55, %v432_v54  ;;  %v567_v1 = vpack.c.bf16 %v497_v59, %v496_v58 }
 0x12b   : > { %2490 = vmatpush1.bf16.msra.mxu1 %v9027_v52  ;;  %8307 = vmatprep.subr.bf16.mxu0 %v9031_v62 }
 0x12c   : > { %2491 = vmatprep.subr.bf16.mxu1 %v14644_v27  ;;  %8308 = vmatpush3.bf16.msra.mxu0 %v9031_v62 }
 0x12d   : > { %8309 = vmatprep.subr.bf16.mxu0 %v9032_v4 }
 0x12f   : > { %2492 = vmatpush1.bf16.msra.mxu1 %v9030_v3 }
 0x130   : > { %8310 = vmatpush3.bf16.msra.mxu0 %v9032_v4  ;;  %8439 = vmatprep.subr.bf16.mxu1 %v9974_v17 }
 0x131   : > { %8200 = vmatmul.mubr.bf16.gmra.mrb[32].mxu0 %v527_v10  ;;  %8264 = vmatmul.mubr.bf16.gmra.mrb[32].mxu1 %v559_v12  ;;  %v501_v10 = vld [vmem:[%s9824_s10 + $0x3b8] sm:$0xff]  ;;  %v503_v12 = vld [vmem:[%s9824_s10 + $0x3c8] sm:$0xff] }
 0x132   : > { %8203 = vmatprep.mubr.bf16.mxu0 %v528_v11  ;;  %8267 = vmatprep.mubr.bf16.mxu1 %v560_v13  ;;  %v502_v11 = vld [vmem:[%s9824_s10 + $0x3c0] sm:$0xff]  ;;  %v537_v13 = vpack.c.bf16 %v437_v6, %v436_v5  ;;  %v569_v15 = vpack.c.bf16 %v501_v10, %v500_v9 }
 0x133   : > { %v570_v16 = vpack.c.bf16 %v503_v12, %v502_v11  ;;  %3695 = vmatprep.subr.bf16.mxu0 %v14644_v27 }
 0x139   : > { %8204 = vmatmul.mubr.bf16.gmra.mrb[36].mxu0 %v529_v22  ;;  %8268 = vmatmul.mubr.bf16.gmra.mrb[36].mxu1 %v561_v24  ;;  %v504_v22 = vld [vmem:[%s9824_s10 + $0x3d0] sm:$0xff]  ;;  %v506_v24 = vld [vmem:[%s9824_s10 + $0x3e0] sm:$0xff] }
 0x13a   : > { %8207 = vmatprep.mubr.bf16.mxu0 %v530_v23  ;;  %8271 = vmatprep.mubr.bf16.mxu1 %v562_v25  ;;  %v505_v23 = vld [vmem:[%s9824_s10 + $0x3d8] sm:$0xff]  ;;  %v507_v25 = vld [vmem:[%s9824_s10 + $0x3e8] sm:$0xff] }
 0x13b   : > { %v571_v29 = vpack.c.bf16 %v505_v23, %v504_v22  ;;  %v572_v30 = vpack.c.bf16 %v507_v25, %v506_v24 }
 0x141   : > { %8208 = vmatmul.mubr.bf16.gmra.mrb[40].mxu0 %v531_v35  ;;  %8272 = vmatmul.mubr.bf16.gmra.mrb[40].mxu1 %v563_v37  ;;  %v541_v35 = vpack.c.bf16 %v445_v32, %v444_v31  ;;  %v9990_v37 = vld [vmem:[#allocation7] ss:$0 sm:$0xff] }
 0x142   : > { %8211 = vmatprep.mubr.bf16.mxu0 %v532_v36  ;;  %8275 = vmatprep.mubr.bf16.mxu1 %v564_v38  ;;  %v573_v36 = vpack.c.bf16 %v509_v34, %v508_v33 }
 0x149   : > { %8212 = vmatmul.mubr.bf16.gmra.mrb[44].mxu0 %v533_v48  ;;  %8276 = vmatmul.mubr.bf16.gmra.mrb[44].mxu1 %v565_v50 }
 0x14a   : > { %8215 = vmatprep.mubr.bf16.mxu0 %v534_v49  ;;  %8279 = vmatprep.mubr.bf16.mxu1 %v566_v51 }
 0x151   : > { %8216 = vmatmul.mubr.bf16.gmra.mrb[48].mxu0 %v535_v63  ;;  %8280 = vmatmul.mubr.bf16.gmra.mrb[48].mxu1 %v567_v1 }
 0x152   : > { %8219 = vmatprep.mubr.bf16.mxu0 %v536_v0  ;;  %8283 = vmatprep.mubr.bf16.mxu1 %v568_v2 }
 0x159   : > { %8220 = vmatmul.mubr.bf16.gmra.mrb[52].mxu0 %v537_v13  ;;  %8284 = vmatmul.mubr.bf16.gmra.mrb[52].mxu1 %v569_v15 }
 0x15a   : > { %8223 = vmatprep.mubr.bf16.mxu0 %v538_v14  ;;  %8287 = vmatprep.mubr.bf16.mxu1 %v570_v16 }
 0x161   : > { %8224 = vmatmul.mubr.bf16.gmra.mrb[56].mxu0 %v539_v26  ;;  %8288 = vmatmul.mubr.bf16.gmra.mrb[56].mxu1 %v571_v29 }
 0x162   : > { %8227 = vmatprep.mubr.bf16.mxu0 %v540_v28  ;;  %8291 = vmatprep.mubr.bf16.mxu1 %v572_v30 }
 0x169   : > { %8228 = vmatmul.mubr.bf16.gmra.mrb[60].mxu0 %v541_v35  ;;  %8292 = vmatmul.mubr.bf16.gmra.mrb[60].mxu1 %v573_v36  ;;  %v9034_v35 = vld [vmem:[#allocation8 + $0x88] sm:$0xff]  }
 0x1c4   : > { %v8169_v38 = vpop.f32.mrb[0].mxu0  ;;  %v8233_v41 = vpop.f32.mrb[0].mxu1 }
 0x1c5   : > { %v688_v39 = vadd.f32 %v8169_v38, %v9990_v37  ;;  %v679_v40 = vpop.f32.mrb[1].mxu0  ;;  %v944_v44 = vadd.f32 %v8233_v41, %v9990_v37  ;;  %v935_v45 = vpop.f32.mrb[1].mxu1 }
 0x1c6   : > { %v680_v42 = vadd.f32 %v9990_v37, %v679_v40  ;;  %v8170_v43 = vpop.f32.mrb[2].mxu0  ;;  %v936_v48 = vadd.f32 %v9990_v37, %v935_v45  ;;  %v8234_v49 = vpop.f32.mrb[2].mxu1 }
 0x1c7   : > { %v691_v46 = vadd.f32 %v8170_v43, %v9990_v37  ;;  %v682_v47 = vpop.f32.mrb[3].mxu0  ;;  %v1256_v51 = vmax.f32 %v944_v44, 0.0  ;;  %v947_v52 = vadd.f32 %v8234_v49, %v9990_v37  ;;  %v938_v53 = vpop.f32.mrb[3].mxu1  ;;  %v1192_v54 = vmax.f32 %v688_v39, 0.0 }
 0x1c8   : > { %v683_v50 = vadd.f32 %v9990_v37, %v682_v47  ;;  %v1254_v56 = vmax.f32 %v936_v48, 0.0  ;;  %v939_v57 = vadd.f32 %v9990_v37, %v938_v53  ;;  %v1190_v58 = vmax.f32 %v680_v42, 0.0 }
 0x1c9   : > { %v1193_v55 = vmax.f32 %v691_v46, 0.0  ;;  %v1257_v60 = vmax.f32 %v947_v52, 0.0 }
 0x1ca   : > { %v1191_v59 = vmax.f32 %v683_v50, 0.0  ;;  %v1255_v62 = vmax.f32 %v939_v57, 0.0 }
 0x1cb   : > { %v10000_v61 = vpack.c.bf16 %v1193_v55, %v1192_v54  ;;  %v10004_v1 = vpack.c.bf16 %v1257_v60, %v1256_v51 }
 0x1cc   : > { %v10002_v63 = vpack.c.bf16 %v1191_v59, %v1190_v58  ;;  %v8173_v0 = vpop.f32.mrb[4].mxu0  ;;  %v10008_v5 = vpack.c.bf16 %v1255_v62, %v1254_v56  ;;  %v8237_v6 = vpop.f32.mrb[4].mxu1 }
 0x1cd   : > { %15097 = vst [vmem:[#allocation20_spill] sm:$0xff] %v10000_v61  ;;  %15099 = vst [vmem:[#allocation22_spill] sm:$0xff] %v10004_v1  ;;  %v704_v2 = vadd.f32 %v8173_v0, %v9990_v37  ;;  %v695_v3 = vpop.f32.mrb[5].mxu0  ;;  %v1393_v4 = vshll.u32 %v10000_v61, 16  ;;  %v1390_v11 = vshrl.u32 %v10000_v61, 16  ;;  %v951_v12 = vpop.f32.mrb[5].mxu1  ;;  %v960_v18 = vadd.f32 %v8237_v6, %v9990_v37 }
 0x1ce   : > { %15098 = vst [vmem:[#allocation21_spill] sm:$0xff] %v10002_v63  ;;  %15100 = vst [vmem:[#allocation23_spill] sm:$0xff] %v10008_v5  ;;  %v696_v7 = vadd.f32 %v9990_v37, %v695_v3  ;;  %v8174_v8 = vpop.f32.mrb[6].mxu0  ;;  %2493 = vmatprep.mubr.bf16.mxu1 %v10002_v63  ;;  %v1383_v9 = vshrl.u32 %v10002_v63, 16  ;;  %v1386_v10 = vshll.u32 %v10002_v63, 16  ;;  %v8238_v19 = vpop.f32.mrb[6].mxu1  ;;  %v952_v38 = vadd.f32 %v9990_v37, %v951_v12 }
 0x1cf   : > { %v1196_v13 = vmax.f32 %v704_v2, 0.0  ;;  %v707_v14 = vadd.f32 %v8174_v8, %v9990_v37  ;;  %v698_v15 = vpop.f32.mrb[7].mxu0  ;;  %v1963_v16 = vrot.slane %v1393_v4, 1  ;;  %v954_v25 = vpop.f32.mrb[7].mxu1  ;;  %v1392_v33 = vrot.slane %v1390_v11, 7  ;;  %v9035_v0 = vld [vmem:[#allocation8 + $0x90] sm:$0xff]  }
 0x1d0   : > { %v1194_v20 = vmax.f32 %v696_v7, 0.0  ;;  %v699_v21 = vadd.f32 %v9990_v37, %v698_v15  ;;  %v1385_v22 = vrot.slane %v1383_v9, 7  ;;  %v1961_v24 = vrot.slane %v1386_v10, 1 }
 0x1d1   : > { %v1197_v26 = vmax.f32 %v707_v14, 0.0  ;;  %v1964_v29 = vor.u32 %v1963_v16, %v1390_v11  ;;  %v1260_v36 = vmax.f32 %v960_v18, 0.0  ;;  %v963_v39 = vadd.f32 %v8238_v19, %v9990_v37 }
 0x1d2   : > { %v1195_v30 = vmax.f32 %v699_v21, 0.0  ;;  %v1388_v31 = vor.u32 %v1386_v10, %v1385_v22  ;;  %v1962_v32 = vor.u32 %v1961_v24, %v1383_v9  ;;  %v955_v55 = vadd.f32 %v9990_v37, %v954_v25 }
 0x1d3   : > { %v10030_v34 = vpack.c.bf16 %v1197_v26, %v1196_v13  ;;  %v10046_v44 = vsel %vm10026_vm5, %v1964_v29, 0  ;;  %v1261_v49 = vmax.f32 %v963_v39, 0.0  ;;  %v1395_v60 = vor.u32 %v1393_v4, %v1392_v33 }
 0x1d4   : > { %v10034_v40 = vpack.c.bf16 %v1195_v30, %v1194_v20  ;;  %v8177_v41 = vpop.f32.mrb[8].mxu0  ;;  %v10038_v42 = vsel %vm10020_vm4, 0, %v1388_v31  ;;  %v10042_v43 = vsel %vm10026_vm5, %v1962_v32, 0  ;;  %15109 = vst [vmem:[#allocation28_spill] sm:$0xff] %v10046_v44  ;;  %v8241_v50 = vpop.f32.mrb[8].mxu1  ;;  %v1258_v7 = vmax.f32 %v952_v38, 0.0 }
 0x1d5   : > { %15105 = vst [vmem:[#allocation24_spill] sm:$0xff] %v10030_v34  ;;  %15107 = vst [vmem:[#allocation26_spill] sm:$0xff] %v10038_v42  ;;  %v720_v45 = vadd.f32 %v8177_v41, %v9990_v37  ;;  %v711_v46 = vpop.f32.mrb[9].mxu0  ;;  %2494 = vmatmul.mubr.bf16.vlgmr.msra.gmra.mrb[64].mxu1 %v10038_v42  ;;  %8311 = vmatprep.mubr.bf16.mxu0 %v10042_v43  ;;  %v1404_v47 = vshrl.u32 %v10030_v34, 16  ;;  %v1407_v48 = vshll.u32 %v10030_v34, 16  ;;  %v967_v56 = vpop.f32.mrb[9].mxu1 }
 0x1d6   : > { %15106 = vst [vmem:[#allocation25_spill] sm:$0xff] %v10034_v40  ;;  %15108 = vst [vmem:[#allocation27_spill] sm:$0xff] %v10042_v43  ;;  %v712_v51 = vadd.f32 %v9990_v37, %v711_v46  ;;  %8440 = vmatpush3.bf16.msra.mxu1 %v9974_v17  ;;  %v8178_v52 = vpop.f32.mrb[10].mxu0  ;;  %2501 = vmatprep.mubr.bf16.mxu1 %v10000_v61  ;;  %v1397_v53 = vshrl.u32 %v10034_v40, 16  ;;  %v1400_v54 = vshll.u32 %v10034_v40, 16  ;;  %v8242_v62 = vpop.f32.mrb[10].mxu1 }
 0x1d7   : > { %v1200_v57 = vmax.f32 %v720_v45, 0.0  ;;  %v723_v58 = vadd.f32 %v8178_v52, %v9990_v37  ;;  %8312 = vmatmul.mubr.bf16.vlgmr.msra.gmra.mrb[64].mxu0 %v10046_v44  ;;  %v714_v59 = vpop.f32.mrb[11].mxu0  ;;  %v1967_v17 = vrot.slane %v1407_v48, 1  ;;  %8441 = vmatprep.subr.bf16.mxu1 %v9034_v35  ;;  %v970_v8 = vpop.f32.mrb[11].mxu1  ;;  %v10066_v12 = vpack.c.bf16 %v1261_v49, %v1260_v36 }
 0x1d8   : > { %v1198_v2 = vmax.f32 %v712_v51, 0.0  ;;  %v715_v3 = vadd.f32 %v9990_v37, %v714_v59  ;;  %v1965_v6 = vrot.slane %v1400_v54, 1  ;;  %v1399_v11 = vrot.slane %v1397_v53, 7 }
 0x1d9   : > { %v1201_v9 = vmax.f32 %v723_v58, 0.0  ;;  %v1968_v10 = vor.u32 %v1967_v17, %v1404_v47  ;;  %15110 = vst [vmem:[#allocation29_spill] sm:$0xff] %v10066_v12  ;;  %v1259_v14 = vmax.f32 %v955_v55, 0.0  ;;  %v10072_v16 = vsel %vm10020_vm4, 0, %v1395_v60 }
 0x1da   : > { %v1199_v4 = vmax.f32 %v715_v3, 0.0  ;;  %v1966_v13 = vor.u32 %v1965_v6, %v1397_v53  ;;  %8442 = vmatpush3.bf16.msra.mxu1 %v9034_v35  ;;  %15112 = vst [vmem:[#allocation31_spill] sm:$0xff] %v10072_v16  ;;  %v1402_v26 = vor.u32 %v1400_v54, %v1399_v11  ;;  %v976_v38 = vadd.f32 %v8241_v50, %v9990_v37 }
 0x1db   : > { %v10068_v15 = vpack.c.bf16 %v1201_v9, %v1200_v57  ;;  %8443 = vmatprep.subr.bf16.mxu1 %v9035_v0  ;;  %v10082_v21 = vsel %vm10026_vm5, %v1968_v10, 0  ;;  %v10084_v22 = vpack.c.bf16 %v1259_v14, %v1258_v7  ;;  %v968_v51 = vadd.f32 %v9990_v37, %v967_v56 }
 0x1dc   : > { %v10074_v18 = vpack.c.bf16 %v1199_v4, %v1198_v2  ;;  %v8181_v19 = vpop.f32.mrb[12].mxu0  ;;  %v10078_v20 = vsel %vm10026_vm5, %v1966_v13, 0  ;;  %15115 = vst [vmem:[#allocation34_spill] sm:$0xff] %v10082_v21  ;;  %v10091_v31 = vpop.f32.mrb[12].mxu1  ;;  %v1406_v59 = vrot.slane %v1404_v47, 7  ;;  %v1264_v56 = vmax.f32 %v976_v38, 0.0 }
 0x1dd   : > { %15111 = vst [vmem:[#allocation30_spill] sm:$0xff] %v10068_v15  ;;  %15114 = vst [vmem:[#allocation33_spill] sm:$0xff] %v10078_v20  ;;  %v736_v24 = vadd.f32 %v8181_v19, %v9990_v37  ;;  %v727_v25 = vpop.f32.mrb[13].mxu0  ;;  %2502 = vmatmul.mubr.bf16.gmra.mrb[68].mxu1 %v10072_v16  ;;  %8315 = vmatprep.mubr.bf16.mxu0 %v10078_v20  ;;  %v1418_v29 = vshrl.u32 %v10068_v15, 16  ;;  %v1421_v30 = vshll.u32 %v10068_v15, 16  ;;  %v10098_v39 = vpop.f32.mrb[13].mxu1 }
 0x1de   : > { %15113 = vst [vmem:[#allocation32_spill] sm:$0xff] %v10074_v18  ;;  %15116 = vst [vmem:[#allocation35_spill] sm:$0xff] %v10084_v22  ;;  %v728_v32 = vadd.f32 %v9990_v37, %v727_v25  ;;  %v8182_v33 = vpop.f32.mrb[14].mxu0  ;;  %2509 = vmatprep.mubr.bf16.mxu1 %v10034_v40  ;;  %v1411_v35 = vshrl.u32 %v10074_v18, 16  ;;  %v1414_v36 = vshll.u32 %v10074_v18, 16  ;;  %8444 = vmatpush3.bf16.msra.mxu1 %v9035_v0  ;;  %v10105_v52 = vpop.f32.mrb[14].mxu1 }
 0x1df   : > { %v1204_v41 = vmax.f32 %v736_v24, 0.0  ;;  %v739_v45 = vadd.f32 %v8182_v33, %v9990_v37  ;;  %8316 = vmatmul.mubr.bf16.gmra.mrb[68].mxu0 %v10082_v21  ;;  %v730_v46 = vpop.f32.mrb[15].mxu0  ;;  %v1971_v49 = vrot.slane %v1421_v30, 1  ;;  %v10110_v55 = vpop.f32.mrb[15].mxu1  ;;  %v979_v0 = vadd.f32 %v8242_v62, %v9990_v37 }
 0x1e0   : > { %v1202_v53 = vmax.f32 %v728_v32, 0.0  ;;  %v731_v54 = vadd.f32 %v9990_v37, %v730_v46  ;;  %v1969_v50 = vrot.slane %v1414_v36, 1  ;;  %v10121_v3 = vsel %vm10020_vm4, 0, %v1402_v26 }
 0x1e1   : > { %v1205_v57 = vmax.f32 %v739_v45, 0.0  ;;  %v1972_v58 = vor.u32 %v1971_v49, %v1418_v29  ;;  %15118 = vst [vmem:[#allocation37_spill] sm:$0xff] %v10121_v3  ;;  %v1262_v6 = vmax.f32 %v968_v51, 0.0  ;;  %v971_v7 = vadd.f32 %v9990_v37, %v970_v8 }
 0x1e2   : > { %v1203_v60 = vmax.f32 %v731_v54, 0.0  ;;  %v1970_v17 = vor.u32 %v1969_v50, %v1411_v35  ;;  %v1265_v62 = vmax.f32 %v979_v0, 0.0  ;;  %v1409_v51 = vor.u32 %v1407_v48, %v1406_v59 }
 0x1e3   : > { %v10117_v2 = vpack.c.bf16 %v1205_v57, %v1204_v41  ;;  %v10132_v11 = vsel %vm10026_vm5, %v1972_v58, 0  ;;  %v1263_v19 = vmax.f32 %v971_v7, 0.0 }
 0x1e4   : > { %v10124_v9 = vpack.c.bf16 %v1203_v60, %v1202_v53  ;;  %v8185_v10 = vpop.f32.mrb[16].mxu0  ;;  %v10128_v47 = vsel %vm10026_vm5, %v1970_v17, 0  ;;  %15121 = vst [vmem:[#allocation40_spill] sm:$0xff] %v10132_v11  ;;  %v10139_v24 = vpop.f32.mrb[16].mxu1  ;;  %v10145_v38 = vpack.c.bf16 %v1265_v62, %v1264_v56  ;;  %v1413_v60 = vrot.slane %v1411_v35, 7 }
 0x1e5   : > { %15117 = vst [vmem:[#allocation36_spill] sm:$0xff] %v10117_v2  ;;  %15120 = vst [vmem:[#allocation39_spill] sm:$0xff] %v10128_v47  ;;  %v752_v4 = vadd.f32 %v8185_v10, %v9990_v37  ;;  %v743_v13 = vpop.f32.mrb[17].mxu0  ;;  %2510 = vmatmul.mubr.bf16.gmra.mrb[72].mxu1 %v10121_v3  ;;  %8319 = vmatprep.mubr.bf16.mxu0 %v10128_v47  ;;  %v14647_v8 = vshrl.u32 %v10117_v2, 16  ;;  %v14646_v14 = vshll.u32 %v10117_v2, 16  ;;  %v10147_v41 = vpop.f32.mrb[17].mxu1 }
 0x1e6   : > { %15119 = vst [vmem:[#allocation38_spill] sm:$0xff] %v10124_v9  ;;  %v744_v25 = vadd.f32 %v9990_v37, %v743_v13  ;;  %v8186_v26 = vpop.f32.mrb[18].mxu0  ;;  %2517 = vmatprep.mubr.bf16.mxu1 %v10030_v34  ;;  %v14650_v32 = vshrl.u32 %v10124_v9, 16  ;;  %v14648_v33 = vshll.u32 %v10124_v9, 16  ;;  %15122 = vst [vmem:[#allocation41_spill] sm:$0xff] %v10145_v38  ;;  %v10155_v54 = vpop.f32.mrb[18].mxu1  ;;  %v10164_v7 = vpack.c.bf16 %v1263_v19, %v1262_v6 }
 0x1e7   : > { %v1208_v45 = vmax.f32 %v752_v4, 0.0  ;;  %v755_v46 = vadd.f32 %v8186_v26, %v9990_v37  ;;  %8320 = vmatmul.mubr.bf16.gmra.mrb[72].mxu0 %v10132_v11  ;;  %v746_v49 = vpop.f32.mrb[19].mxu0  ;;  %v1975_v53 = vrot.slane %v14646_v14, 1  ;;  %v10160_v17 = vpop.f32.mrb[19].mxu1  ;;  %v10172_v62 = vsel %vm10020_vm4, 0, %v1409_v51  ;;  %v9037_v3 = vld [vmem:[#allocation8] sm:$0xff]  }
 0x1e8   : > { %v1206_v50 = vmax.f32 %v744_v25, 0.0  ;;  %v747_v57 = vadd.f32 %v9990_v37, %v746_v49  ;;  %v1973_v58 = vrot.slane %v14648_v33, 1  ;;  %15123 = vst [vmem:[#allocation42_spill] sm:$0xff] %v10164_v7  ;;  %15125 = vst [vmem:[#allocation44_spill] sm:$0xff] %v10172_v62  ;;  %v992_v35 = vadd.f32 %v10091_v31, %v9990_v37  ;;  %3696 = vmatpush1.bf16.msra.mxu0 %v9037_v3 }
 0x1e9   : > { %v1209_v56 = vmax.f32 %v755_v46, 0.0  ;;  %v1976_v0 = vor.u32 %v1975_v53, %v14647_v8  ;;  %v1416_v25 = vor.u32 %v1414_v36, %v1413_v60  ;;  %v984_v49 = vadd.f32 %v9990_v37, %v10098_v39 }
 0x1ea   : > { %v1207_v48 = vmax.f32 %v747_v57, 0.0  ;;  %v1974_v59 = vor.u32 %v1973_v58, %v14650_v32  ;;  %v995_v58 = vadd.f32 %v10105_v52, %v9990_v37  ;;  %v1420_v8 = vrot.slane %v1418_v29, 7 }
 0x1eb   : > { %v10168_v10 = vpack.c.bf16 %v1209_v56, %v1208_v45  ;;  %v10184_v19 = vsel %vm10026_vm5, %v1976_v0, 0 }
 0x1ec   : > { %v10176_v4 = vpack.c.bf16 %v1207_v48, %v1206_v50  ;;  %v8189_v13 = vpop.f32.mrb[20].mxu0  ;;  %v10180_v6 = vsel %vm10026_vm5, %v1974_v59, 0  ;;  %15128 = vst [vmem:[#allocation47_spill] sm:$0xff] %v10184_v19  ;;  %v10195_v51 = vpop.f32.mrb[20].mxu1  ;;  %v1268_v59 = vmax.f32 %v992_v35, 0.0  ;;  %v1269_v33 = vmax.f32 %v995_v58, 0.0 }
 0x1ed   : > { %15124 = vst [vmem:[#allocation43_spill] sm:$0xff] %v10168_v10  ;;  %15127 = vst [vmem:[#allocation46_spill] sm:$0xff] %v10180_v6  ;;  %v768_v26 = vadd.f32 %v8189_v13, %v9990_v37  ;;  %v759_v45 = vpop.f32.mrb[21].mxu0  ;;  %2518 = vmatmul.mubr.bf16.gmra.mrb[76].mxu1 %v10172_v62  ;;  %8323 = vmatprep.mubr.bf16.mxu0 %v10180_v6  ;;  %v14652_v31 = vshrl.u32 %v10168_v10, 16  ;;  %v14649_v46 = vshll.u32 %v10168_v10, 16  ;;  %v10203_v60 = vpop.f32.mrb[21].mxu1 }
 0x1ee   : > { %15126 = vst [vmem:[#allocation45_spill] sm:$0xff] %v10176_v4  ;;  %v760_v53 = vadd.f32 %v9990_v37, %v759_v45  ;;  %v8190_v50 = vpop.f32.mrb[22].mxu0  ;;  %2525 = vmatprep.mubr.bf16.mxu1 %v10074_v18  ;;  %v14653_v36 = vshrl.u32 %v10176_v4, 16  ;;  %v14651_v57 = vshll.u32 %v10176_v4, 16  ;;  %v10209_v13 = vpop.f32.mrb[22].mxu1 }
 0x1ef   : > { %v1212_v56 = vmax.f32 %v768_v26, 0.0  ;;  %v771_v0 = vadd.f32 %v8190_v50, %v9990_v37  ;;  %8324 = vmatmul.mubr.bf16.gmra.mrb[76].mxu0 %v10184_v19  ;;  %v762_v39 = vpop.f32.mrb[23].mxu0  ;;  %v1979_v48 = vrot.slane %v14649_v46, 1  ;;  %v10214_v14 = vpop.f32.mrb[23].mxu1 }
 0x1f0   : > { %v1210_v45 = vmax.f32 %v760_v53, 0.0  ;;  %v763_v27 = vadd.f32 %v9990_v37, %v762_v39  ;;  %v1977_v52 = vrot.slane %v14651_v57, 1  ;;  %v1266_v53 = vmax.f32 %v984_v49, 0.0 }
 0x1f1   : > { %v1213_v26 = vmax.f32 %v771_v0, 0.0  ;;  %v1980_v50 = vor.u32 %v1979_v48, %v14652_v31  ;;  %v987_v39 = vadd.f32 %v9990_v37, %v10110_v55  ;;  %v10228_v0 = vsel %vm10020_vm4, 0, %v1416_v25 }
 0x1f2   : > { %v1211_v46 = vmax.f32 %v763_v27, 0.0  ;;  %v1978_v35 = vor.u32 %v1977_v52, %v14653_v36  ;;  %15130 = vst [vmem:[#allocation49_spill] sm:$0xff] %v10228_v0  ;;  %v10230_v57 = vpack.c.bf16 %v1269_v33, %v1268_v59  ;;  %v1423_v33 = vor.u32 %v1421_v30, %v1420_v8 }
 0x1f3   : > { %v10224_v32 = vpack.c.bf16 %v1213_v26, %v1212_v56  ;;  %v10240_v49 = vsel %vm10026_vm5, %v1980_v50, 0  ;;  %v1267_v55 = vmax.f32 %v987_v39, 0.0  ;;  %v1008_v31 = vadd.f32 %v10139_v24, %v9990_v37 }
 0x1f4   : > { %15131 = vst [vmem:[#allocation50_spill] sm:$0xff] %v10230_v57  ;;  %v10232_v48 = vpack.c.bf16 %v1211_v46, %v1210_v45  ;;  %v8193_v29 = vpop.f32.mrb[24].mxu0  ;;  %v10236_v27 = vsel %vm10026_vm5, %v1978_v35, 0  ;;  %15134 = vst [vmem:[#allocation53_spill] sm:$0xff] %v10240_v49  ;;  %v10249_v59 = vpop.f32.mrb[24].mxu1 }
 0x1f5   : > { %15129 = vst [vmem:[#allocation48_spill] sm:$0xff] %v10224_v32  ;;  %15133 = vst [vmem:[#allocation52_spill] sm:$0xff] %v10236_v27  ;;  %v784_v58 = vadd.f32 %v8193_v29, %v9990_v37  ;;  %v775_v56 = vpop.f32.mrb[25].mxu0  ;;  %2526 = vmatmul.mubr.bf16.gmra.mrb[80].mxu1 %v10228_v0  ;;  %8327 = vmatprep.mubr.bf16.mxu0 %v10236_v27  ;;  %v14666_v25 = vshrl.u32 %v10224_v32, 16  ;;  %v14658_v46 = vshll.u32 %v10224_v32, 16  ;;  %v10257_v39 = vpop.f32.mrb[25].mxu1 }
 0x1f6   : > { %15132 = vst [vmem:[#allocation51_spill] sm:$0xff] %v10232_v48  ;;  %v776_v45 = vadd.f32 %v9990_v37, %v775_v56  ;;  %v8194_v52 = vpop.f32.mrb[26].mxu0  ;;  %2533 = vmatprep.mubr.bf16.mxu1 %v10068_v15  ;;  %v14663_v50 = vshll.u32 %v10232_v48, 16  ;;  %v10255_v35 = vpack.c.bf16 %v1267_v55, %v1266_v53  ;;  %v10265_v36 = vpop.f32.mrb[26].mxu1  ;;  %v15137_v24 = vshrl.u32 %v10232_v48, 16 }
 0x1f7   : > { %v1216_v30 = vmax.f32 %v784_v58, 0.0  ;;  %v787_v8 = vadd.f32 %v8194_v52, %v9990_v37  ;;  %8328 = vmatmul.mubr.bf16.gmra.mrb[80].mxu0 %v10240_v49  ;;  %v778_v29 = vpop.f32.mrb[27].mxu0  ;;  %v1983_v56 = vrot.slane %v14658_v46, 1  ;;  %v10270_v58 = vpop.f32.mrb[27].mxu1  ;;  %v10276_v46 = vsel %vm10020_vm4, 0, %v1423_v33 }
 0x1f8   : > { %15135 = vst [vmem:[#allocation54_spill] sm:$0xff] %v10255_v35  ;;  %v1214_v26 = vmax.f32 %v776_v45, 0.0  ;;  %v779_v53 = vadd.f32 %v9990_v37, %v778_v29  ;;  %v1981_v55 = vrot.slane %v14663_v50, 1  ;;  %15136 = vst [vmem:[#allocation55_spill] sm:$0xff] %v10276_v46  ;;  %v15139_v29 = vshrl.u32 %v10124_v9, 16 }
 0x1f9   : > { %v1217_v52 = vmax.f32 %v787_v8, 0.0  ;;  %v1984_v49 = vor.u32 %v1983_v56, %v14666_v25  ;;  %v1272_v50 = vmax.f32 %v1008_v31, 0.0  ;;  %v1011_v8 = vadd.f32 %v10155_v54, %v9990_v37 }
 0x1fa   : > { %v1215_v27 = vmax.f32 %v779_v53, 0.0  ;;  %v1982_v19 = vor.u32 %v1981_v55, %v15137_v24  ;;  %v1427_v6 = vrot.slane %v15139_v29, 7  ;;  %v1003_v29 = vadd.f32 %v9990_v37, %v10160_v17 }
 0x1fb   : > { %v10280_v45 = vpack.c.bf16 %v1217_v52, %v1216_v30  ;;  %v10294_v33 = vsel %vm10026_vm5, %v1984_v49, 0  ;;  %v1000_v30 = vadd.f32 %v9990_v37, %v10147_v41 }
 0x1fc   : > { %v10286_v11 = vpack.c.bf16 %v1215_v27, %v1214_v26  ;;  %v8197_v56 = vpop.f32.mrb[28].mxu0  ;;  %v10290_v53 = vsel %vm10026_vm5, %v1982_v19, 0  ;;  %15142 = vst [vmem:[#allocation59_spill] sm:$0xff] %v10294_v33  ;;  %v1273_v19 = vmax.f32 %v1011_v8, 0.0  ;;  %v10303_v26 = vpop.f32.mrb[28].mxu1 }
 0x1fd   : > { %15138 = vst [vmem:[#allocation56_spill] sm:$0xff] %v10280_v45  ;;  %15141 = vst [vmem:[#allocation58_spill] sm:$0xff] %v10290_v53  ;;  %v800_v55 = vadd.f32 %v8197_v56, %v9990_v37  ;;  %v791_v31 = vpop.f32.mrb[29].mxu0  ;;  %2534 = vmatmul.mubr.bf16.gmra.mrb[84].mxu1 %v10276_v46  ;;  %8331 = vmatprep.mubr.bf16.mxu0 %v10290_v53  ;;  %v10311_v56 = vpop.f32.mrb[29].mxu1  ;;  %v15144_v53 = vshll.u32 %v10280_v45, 16  ;;  %v1271_v46 = vmax.f32 %v1003_v29, 0.0 }
 0x1fe   : > { %15140 = vst [vmem:[#allocation57_spill] sm:$0xff] %v10286_v11  ;;  %v792_v49 = vadd.f32 %v9990_v37, %v791_v31  ;;  %v8198_v52 = vpop.f32.mrb[30].mxu0  ;;  %2541 = vmatprep.mubr.bf16.mxu1 %v10124_v9  ;;  %v15143_v31 = vshll.u32 %v10124_v9, 16  ;;  %v10319_v41 = vpop.f32.mrb[30].mxu1  ;;  %v15145_v17 = vshll.u32 %v10286_v11, 16  ;;  %v10328_v9 = vpack.c.bf16 %v1273_v19, %v1272_v50 }
 0x1ff   : > { %v1220_v25 = vmax.f32 %v800_v55, 0.0  ;;  %v803_v54 = vadd.f32 %v8198_v52, %v9990_v37  ;;  %8332 = vmatmul.mubr.bf16.gmra.mrb[84].mxu0 %v10294_v33  ;;  %v794_v8 = vpop.f32.mrb[31].mxu0  ;;  %v1987_v47 = vrot.slane %v15144_v53, 1  ;;  %v1270_v55 = vmax.f32 %v1000_v30, 0.0  ;;  %v10324_v44 = vpop.f32.mrb[31].mxu1 }
 0x200   : > { %v1430_v27 = vor.u32 %v15143_v31, %v1427_v6  ;;  %v1218_v24 = vmax.f32 %v792_v49, 0.0  ;;  %v795_v21 = vadd.f32 %v9990_v37, %v794_v8  ;;  %v1985_v20 = vrot.slane %v15145_v17, 1  ;;  %15147 = vst [vmem:[#allocation60_spill] sm:$0xff] %v10328_v9 }
 0x201   : > { %v1221_v52 = vmax.f32 %v803_v54, 0.0  ;;  %v15146_v33 = vshrl.u32 %v10280_v45, 16  ;;  %v15148_v53 = vshrl.u32 %v10286_v11, 16  ;;  %v15151_v30 = vshrl.u32 %v10117_v2, 16 }
 0x202   : > { %v1219_v6 = vmax.f32 %v795_v21, 0.0  ;;  %v10336_v8 = vsel %vm10020_vm4, 0, %v1430_v27  ;;  %v1024_v54 = vadd.f32 %v10195_v51, %v9990_v37  ;;  %v15206_v9 = vshrl.u32 %v10286_v11, 16 }
 0x203   : > { %v1988_v43 = vor.u32 %v1987_v47, %v15146_v33  ;;  %v1986_v31 = vor.u32 %v1985_v20, %v15148_v53  ;;  %v10332_v49 = vpack.c.bf16 %v1221_v52, %v1220_v25  ;;  %15150 = vst [vmem:[#allocation62_spill] sm:$0xff] %v10336_v8  ;;  %v1434_v17 = vrot.slane %v15151_v30, 7 }
 0x204   : > { %v10342_v47 = vpack.c.bf16 %v1219_v6, %v1218_v24  ;;  %v8201_v50 = vpop.f32.mrb[32].mxu0  ;;  %v10352_v25 = vpack.c.bf16 %v1271_v46, %v1270_v55  ;;  %v1276_v24 = vmax.f32 %v1024_v54, 0.0  ;;  %v10359_v29 = vpop.f32.mrb[32].mxu1  ;;  %v1016_v6 = vadd.f32 %v9990_v37, %v10203_v60 }
 0x205   : > { %15149 = vst [vmem:[#allocation61_spill] sm:$0xff] %v10332_v49  ;;  %v10346_v21 = vsel %vm10026_vm5, %v1986_v31, 0  ;;  %v10350_v20 = vsel %vm10026_vm5, %v1988_v43, 0  ;;  %v816_v33 = vadd.f32 %v8201_v50, %v9990_v37  ;;  %v807_v27 = vpop.f32.mrb[33].mxu0  ;;  %2542 = vmatmul.mubr.bf16.gmra.mrb[88].mxu1 %v10336_v8  ;;  %v14692_v19 = vshll.u32 %v10332_v49, 16  ;;  %v10367_v53 = vpop.f32.mrb[33].mxu1 }
 0x206   : > { %15152 = vst [vmem:[#allocation63_spill] sm:$0xff] %v10342_v47  ;;  %15153 = vst [vmem:[#allocation64_spill] sm:$0xff] %v10346_v21  ;;  %8335 = vmatprep.mubr.bf16.mxu0 %v10346_v21  ;;  %v808_v52 = vadd.f32 %v9990_v37, %v807_v27  ;;  %v8202_v43 = vpop.f32.mrb[34].mxu0  ;;  %2549 = vmatprep.mubr.bf16.mxu1 %v10117_v2  ;;  %v1027_v27 = vadd.f32 %v10209_v13, %v9990_v37  ;;  %v10375_v46 = vpop.f32.mrb[34].mxu1  ;;  %v15156_v60 = vshll.u32 %v10117_v2, 16 }
 0x207   : > { %15154 = vst [vmem:[#allocation65_spill] sm:$0xff] %v10350_v20  ;;  %15155 = vst [vmem:[#allocation66_spill] sm:$0xff] %v10352_v25  ;;  %v1224_v31 = vmax.f32 %v816_v33, 0.0  ;;  %v819_v30 = vadd.f32 %v8202_v43, %v9990_v37  ;;  %8336 = vmatmul.mubr.bf16.gmra.mrb[88].mxu0 %v10350_v20  ;;  %v810_v54 = vpop.f32.mrb[35].mxu0  ;;  %v1991_v50 = vrot.slane %v14692_v19, 1  ;;  %v15157_v33 = vshll.u32 %v10342_v47, 16 }
 0x208   : > { %v1222_v51 = vmax.f32 %v808_v52, 0.0  ;;  %v811_v55 = vadd.f32 %v9990_v37, %v810_v54  ;;  %v1437_v21 = vor.u32 %v15156_v60, %v1434_v17  ;;  %v10382_v8 = vpop.f32.mrb[35].mxu1  ;;  %v15158_v15 = vshrl.u32 %v10332_v49, 16 }
 0x209   : > { %v1989_v43 = vrot.slane %v15157_v33, 1  ;;  %v1225_v20 = vmax.f32 %v819_v30, 0.0  ;;  %v1277_v0 = vmax.f32 %v1027_v27, 0.0  ;;  %v15159_v13 = vshrl.u32 %v10342_v47, 16 }
 0x20a   : > { %v1992_v19 = vor.u32 %v1991_v50, %v15158_v15  ;;  %v1223_v18 = vmax.f32 %v811_v55, 0.0  ;;  %v15160_v52 = vshrl.u32 %v10176_v4, 16  ;;  %v1274_v17 = vmax.f32 %v1016_v6, 0.0 }
 0x20b   : > { %v1990_v62 = vor.u32 %v1989_v43, %v15159_v13  ;;  %v10390_v34 = vpack.c.bf16 %v1225_v20, %v1224_v31  ;;  %v10392_v60 = vpack.c.bf16 %v1277_v0, %v1276_v24  ;;  %v1019_v33 = vadd.f32 %v9990_v37, %v10214_v14 }
 0x20c   : > { %v1441_v54 = vrot.slane %v15160_v52, 7  ;;  %v10396_v30 = vpack.c.bf16 %v1223_v18, %v1222_v51  ;;  %v8205_v2 = vpop.f32.mrb[36].mxu0  ;;  %v10400_v15 = vsel %vm10020_vm4, 0, %v1437_v21  ;;  %v10408_v20 = vsel %vm10026_vm5, %v1992_v19, 0  ;;  %v10415_v51 = vpop.f32.mrb[36].mxu1 }
 0x20d   : > { %15161 = vst [vmem:[#allocation67_spill] sm:$0xff] %v10390_v34  ;;  %15162 = vst [vmem:[#allocation68_spill] sm:$0xff] %v10392_v60  ;;  %v10404_v55 = vsel %vm10026_vm5, %v1990_v62, 0  ;;  %v832_v0 = vadd.f32 %v8205_v2, %v9990_v37  ;;  %v823_v24 = vpop.f32.mrb[37].mxu0  ;;  %2550 = vmatmul.mubr.bf16.gmra.mrb[92].mxu1 %v10400_v15  ;;  %v14708_v14 = vshll.u32 %v10390_v34, 16  ;;  %v1275_v21 = vmax.f32 %v1019_v33, 0.0 }
 0x20e   : > { %15163 = vst [vmem:[#allocation69_spill] sm:$0xff] %v10396_v30  ;;  %15164 = vst [vmem:[#allocation70_spill] sm:$0xff] %v10400_v15  ;;  %8339 = vmatprep.mubr.bf16.mxu0 %v10404_v55  ;;  %v824_v62 = vadd.f32 %v9990_v37, %v823_v24  ;;  %v8206_v6 = vpop.f32.mrb[38].mxu0  ;;  %2557 = vmatprep.mubr.bf16.mxu1 %v10176_v4  ;;  %v15167_v19 = vshll.u32 %v10176_v4, 16  ;;  %v14711_v50 = vshll.u32 %v10396_v30, 16  ;;  %v10423_v27 = vpop.f32.mrb[37].mxu1 }
 0x20f   : > { %15165 = vst [vmem:[#allocation71_spill] sm:$0xff] %v10404_v55  ;;  %15166 = vst [vmem:[#allocation72_spill] sm:$0xff] %v10408_v20  ;;  %v1228_v43 = vmax.f32 %v832_v0, 0.0  ;;  %v835_v13 = vadd.f32 %v8206_v6, %v9990_v37  ;;  %8340 = vmatmul.mubr.bf16.gmra.mrb[92].mxu0 %v10408_v20  ;;  %v826_v52 = vpop.f32.mrb[39].mxu0  ;;  %v1995_v33 = vrot.slane %v14708_v14, 1  ;;  %v10429_v24 = vpack.c.bf16 %v1275_v21, %v1274_v17  ;;  %v10431_v18 = vpop.f32.mrb[38].mxu1 }
 0x210   : > { %v1444_v2 = vor.u32 %v15167_v19, %v1441_v54  ;;  %v1226_v54 = vmax.f32 %v824_v62, 0.0  ;;  %v827_v19 = vadd.f32 %v9990_v37, %v826_v52  ;;  %v1993_v31 = vrot.slane %v14711_v50, 1  ;;  %v10436_v55 = vpop.f32.mrb[39].mxu1  ;;  %v9036_v0 = vld [vmem:[#allocation8 + $0x98] sm:$0xff]  }
 0x211   : > { %15168 = vst [vmem:[#allocation73_spill] sm:$0xff] %v10429_v24  ;;  %v1229_v6 = vmax.f32 %v835_v13, 0.0  ;;  %v15169_v20 = vshrl.u32 %v10390_v34, 16  ;;  %v1040_v14 = vadd.f32 %v10249_v59, %v9990_v37  ;;  %v15170_v21 = vshrl.u32 %v10396_v30, 16  ;;  %8445 = vmatprep.subr.bf16.mxu1 %v9036_v0 }
 0x212   : > { %v1227_v17 = vmax.f32 %v827_v19, 0.0  ;;  %v1043_v62 = vadd.f32 %v10265_v36, %v9990_v37  ;;  %v10450_v50 = vsel %vm10020_vm4, 0, %v1444_v2  ;;  %v15173_v13 = vshrl.u32 %v10168_v10, 16  ;;  %8446 = vmatpush3.bf16.msra.mxu1 %v9036_v0 }
 0x213   : > { %v1996_v4 = vor.u32 %v1995_v33, %v15169_v20  ;;  %v1994_v15 = vor.u32 %v1993_v31, %v15170_v21  ;;  %v10446_v52 = vpack.c.bf16 %v1229_v6, %v1228_v43  ;;  %15172 = vst [vmem:[#allocation75_spill] sm:$0xff] %v10450_v50  ;;  %v1280_v33 = vmax.f32 %v1040_v14, 0.0 }
 0x214   : > { %v1448_v20 = vrot.slane %v15173_v13, 7  ;;  %v10454_v59 = vpack.c.bf16 %v1227_v17, %v1226_v54  ;;  %v8209_v19 = vpop.f32.mrb[40].mxu0  ;;  %v1281_v43 = vmax.f32 %v1043_v62, 0.0  ;;  %v10471_v0 = vpop.f32.mrb[40].mxu1  ;;  %v1469_v25 = vrot.slane %v15206_v9, 7  ;;  %v9042_v9 = vld [vmem:[#allocation8 + $0x28] sm:$0xff]  }
 0x215   : > { %15171 = vst [vmem:[#allocation74_spill] sm:$0xff] %v10446_v52  ;;  %v10458_v31 = vsel %vm10026_vm5, %v1994_v15, 0  ;;  %v10462_v36 = vsel %vm10026_vm5, %v1996_v4, 0  ;;  %v848_v2 = vadd.f32 %v8209_v19, %v9990_v37  ;;  %v839_v6 = vpop.f32.mrb[41].mxu0  ;;  %2558 = vmatmul.mubr.bf16.gmra.mrb[96].mxu1 %v10450_v50  ;;  %v1032_v15 = vadd.f32 %v9990_v37, %v10257_v39  ;;  %v10479_v19 = vpop.f32.mrb[41].mxu1 }
 0x216   : > { %15174 = vst [vmem:[#allocation76_spill] sm:$0xff] %v10454_v59  ;;  %15175 = vst [vmem:[#allocation77_spill] sm:$0xff] %v10458_v31  ;;  %8343 = vmatprep.mubr.bf16.mxu0 %v10458_v31  ;;  %v840_v4 = vadd.f32 %v9990_v37, %v839_v6  ;;  %v8210_v17 = vpop.f32.mrb[42].mxu0  ;;  %2565 = vmatprep.mubr.bf16.mxu1 %v10168_v10  ;;  %v14729_v62 = vshll.u32 %v10454_v59, 16  ;;  %v10477_v13 = vpack.c.bf16 %v1281_v43, %v1280_v33  ;;  %v10485_v50 = vpop.f32.mrb[42].mxu1 }
 0x217   : > { %15176 = vst [vmem:[#allocation78_spill] sm:$0xff] %v10462_v36  ;;  %v1232_v14 = vmax.f32 %v848_v2, 0.0  ;;  %v851_v54 = vadd.f32 %v8210_v17, %v9990_v37  ;;  %8344 = vmatmul.mubr.bf16.gmra.mrb[96].mxu0 %v10462_v36  ;;  %v842_v39 = vpop.f32.mrb[43].mxu0  ;;  %v15178_v31 = vshll.u32 %v10446_v52, 16  ;;  %v15179_v33 = vshll.u32 %v10168_v10, 16  ;;  %v10492_v16 = vpop.f32.mrb[43].mxu1 }
 0x218   : > { %15177 = vst [vmem:[#allocation79_spill] sm:$0xff] %v10477_v13  ;;  %v1230_v40 = vmax.f32 %v840_v4, 0.0  ;;  %v843_v21 = vadd.f32 %v9990_v37, %v842_v39  ;;  %v1997_v2 = vrot.slane %v14729_v62, 1  ;;  %v15180_v36 = vshrl.u32 %v10446_v52, 16 }
 0x219   : > { %v1999_v6 = vrot.slane %v15178_v31, 1  ;;  %v1451_v43 = vor.u32 %v15179_v33, %v1448_v20  ;;  %v1233_v17 = vmax.f32 %v851_v54, 0.0  ;;  %v1278_v42 = vmax.f32 %v1032_v15, 0.0  ;;  %v9038_v20 = vld [vmem:[#allocation8 + $0x8] sm:$0xff]  }
 0x21a   : > { %v1035_v31 = vadd.f32 %v9990_v37, %v10270_v58  ;;  %v1231_v4 = vmax.f32 %v843_v21, 0.0  ;;  %v15181_v39 = vshrl.u32 %v10454_v59, 16  ;;  %v15182_v10 = vmov 0  }
 0x21b   : > { %v2000_v61 = vor.u32 %v1999_v6, %v15180_v36  ;;  %3697 = vmatprep.subr.bf16.mxu0 %v15182_v10  ;;  %v10501_v33 = vpack.c.bf16 %v1233_v17, %v1232_v14  ;;  %v15184_v62 = vshrl.u32 %v10232_v48, 16  ;;  %v10509_v58 = vsel %vm10020_vm4, 0, %v1451_v43 }
 0x21c   : > { %v1998_v63 = vor.u32 %v1997_v2, %v15181_v39  ;;  %v1279_v13 = vmax.f32 %v1035_v31, 0.0  ;;  %v10505_v60 = vpack.c.bf16 %v1231_v4, %v1230_v40  ;;  %v8213_v36 = vpop.f32.mrb[44].mxu0  ;;  %15186 = vst [vmem:[#allocation82_spill] sm:$0xff] %v10509_v58  ;;  %v10526_v43 = vpop.f32.mrb[44].mxu1  ;;  %v15190_v31 = vshrl.u32 %v10224_v32, 16  ;;  %3698 = vmatpush1.bf16.msra.mxu0 %v9038_v20 }
 0x21d   : > { %15183 = vst [vmem:[#allocation80_spill] sm:$0xff] %v10501_v33  ;;  %v1455_v54 = vrot.slane %v15184_v62, 7  ;;  %v10517_v15 = vsel %vm10026_vm5, %v2000_v61, 0  ;;  %v864_v14 = vadd.f32 %v8213_v36, %v9990_v37  ;;  %v855_v21 = vpop.f32.mrb[45].mxu0  ;;  %2566 = vmatmul.mubr.bf16.gmra.mrb[100].mxu1 %v10509_v58  ;;  %v14740_v62 = vshll.u32 %v10501_v33, 16  ;;  %v10534_v39 = vpop.f32.mrb[45].mxu1  ;;  %3699 = vmatprep.subr.bf16.mxu0 %v15182_v10 }
 0x21e   : > { %15185 = vst [vmem:[#allocation81_spill] sm:$0xff] %v10505_v60  ;;  %v10513_v3 = vsel %vm10026_vm5, %v1998_v63, 0  ;;  %15188 = vst [vmem:[#allocation84_spill] sm:$0xff] %v10517_v15  ;;  %v10524_v6 = vpack.c.bf16 %v1279_v13, %v1278_v42  ;;  %v856_v63 = vadd.f32 %v9990_v37, %v855_v21  ;;  %v8214_v2 = vpop.f32.mrb[46].mxu0  ;;  %2573 = vmatprep.mubr.bf16.mxu1 %v10232_v48  ;;  %v1462_v4 = vrot.slane %v15190_v31, 7  ;;  %v9039_v31 = vld [vmem:[#allocation8 + $0x10] sm:$0xff]  }
 0x21f   : > { %15187 = vst [vmem:[#allocation83_spill] sm:$0xff] %v10513_v3  ;;  %8347 = vmatprep.mubr.bf16.mxu0 %v10513_v3  ;;  %v1236_v36 = vmax.f32 %v864_v14, 0.0  ;;  %v867_v42 = vadd.f32 %v8214_v2, %v9990_v37  ;;  %v858_v13 = vpop.f32.mrb[47].mxu0  ;;  %v15191_v21 = vshll.u32 %v10232_v48, 16  ;;  %v2003_v61 = vrot.slane %v14740_v62, 1  ;;  %v10542_v3 = vpop.f32.mrb[46].mxu1 }
 0x220   : > { %15189 = vst [vmem:[#allocation85_spill] sm:$0xff] %v10524_v6  ;;  %8348 = vmatmul.mubr.bf16.gmra.mrb[100].mxu0 %v10517_v15  ;;  %v1234_v17 = vmax.f32 %v856_v63, 0.0  ;;  %v859_v20 = vadd.f32 %v9990_v37, %v858_v13  ;;  %v15192_v14 = vshll.u32 %v10505_v60, 16  ;;  %v10548_v58 = vpop.f32.mrb[47].mxu1  ;;  %v15193_v48 = vshrl.u32 %v10501_v33, 16 }
 0x221   : > { %v1458_v40 = vor.u32 %v15191_v21, %v1455_v54  ;;  %v1237_v15 = vmax.f32 %v867_v42, 0.0  ;;  %v1056_v21 = vadd.f32 %v10303_v26, %v9990_v37  ;;  %v15194_v6 = vshrl.u32 %v10505_v60, 16  ;;  %3700 = vmatpush1.bf16.msra.mxu0 %v9039_v31 }
 0x222   : > { %v2001_v2 = vrot.slane %v15192_v14, 1  ;;  %v2004_v54 = vor.u32 %v2003_v61, %v15193_v48  ;;  %v1235_v62 = vmax.f32 %v859_v20, 0.0  ;;  %v10558_v63 = vadd.f32 %v9990_v37, %v10311_v56  ;;  %v9040_v14 = vld [vmem:[#allocation8 + $0x18] sm:$0xff]   ;;  %3701 = vmatprep.subr.bf16.mxu0 %v15182_v10 }
 0x223   : > { %v1059_v13 = vadd.f32 %v10319_v41, %v9990_v37  ;;  %v10562_v42 = vpack.c.bf16 %v1237_v15, %v1236_v36  ;;  %v10566_v48 = vsel %vm10020_vm4, 0, %v1458_v40  ;;  %v15197_v26 = vshll.u32 %v10224_v32, 16 }
 0x224   : > { %v2002_v24 = vor.u32 %v2001_v2, %v15194_v6  ;;  %15196 = vst [vmem:[#allocation87_spill] sm:$0xff] %v10566_v48  ;;  %v1284_v20 = vmax.f32 %v1056_v21, 0.0  ;;  %v10571_v6 = vpack.c.bf16 %v1235_v62, %v1234_v17  ;;  %v8217_v56 = vpop.f32.mrb[48].mxu0  ;;  %v10579_v15 = vsel %vm10026_vm5, %v2004_v54, 0  ;;  %v10589_v2 = vld [vmem:[#allocation7] ss:$0 sm:$0xff] }
 0x225   : > { %15195 = vst [vmem:[#allocation86_spill] sm:$0xff] %v10562_v42  ;;  %v1465_v61 = vor.u32 %v15197_v26, %v1462_v4  ;;  %15200 = vst [vmem:[#allocation90_spill] sm:$0xff] %v10579_v15  ;;  %v1285_v36 = vmax.f32 %v1059_v13, 0.0  ;;  %v880_v40 = vadd.f32 %v8217_v56, %v9990_v37  ;;  %v871_v31 = vpop.f32.mrb[49].mxu0  ;;  %2574 = vmatmul.mubr.bf16.gmra.mrb[104].mxu1 %v10566_v48  ;;  %v1282_v4 = vmax.f32 %v10558_v63, 0.0 }
 0x226   : > { %15198 = vst [vmem:[#allocation88_spill] sm:$0xff] %v10571_v6  ;;  %v10575_v41 = vsel %vm10026_vm5, %v2002_v24, 0  ;;  %v10587_v24 = vpop.f32.mrb[48].mxu1  ;;  %v872_v54 = vadd.f32 %v10589_v2, %v871_v31  ;;  %v8218_v21 = vpop.f32.mrb[50].mxu0  ;;  %2581 = vmatprep.mubr.bf16.mxu1 %v10224_v32  ;;  %v14756_v13 = vshll.u32 %v10571_v6, 16  ;;  %3702 = vmatpush1.bf16.msra.mxu0 %v9040_v14  ;;  %v15202_v31 = vshll.u32 %v10562_v42, 16 }
 0x227   : > { %15199 = vst [vmem:[#allocation89_spill] sm:$0xff] %v10575_v41  ;;  %8351 = vmatprep.mubr.bf16.mxu0 %v10575_v41  ;;  %v10595_v26 = vpack.c.bf16 %v1285_v36, %v1284_v20  ;;  %v10597_v56 = vpop.f32.mrb[49].mxu1  ;;  %v1240_v62 = vmax.f32 %v880_v40, 0.0  ;;  %v883_v63 = vadd.f32 %v10589_v2, %v8218_v21  ;;  %v874_v17 = vpop.f32.mrb[51].mxu0  ;;  %v15203_v32 = vshrl.u32 %v10390_v34, 16  ;;  %3703 = vmatprep.subr.bf16.mxu0 %v15182_v10  ;;  %v9041_v20 = vld [vmem:[#allocation8 + $0x20] sm:$0xff]  }
 0x228   : > { %8352 = vmatmul.mubr.bf16.gmra.mrb[104].mxu0 %v10579_v15  ;;  %v2007_v41 = vrot.slane %v15202_v31, 1  ;;  %v10605_v37 = vpop.f32.mrb[50].mxu1  ;;  %v1238_v36 = vmax.f32 %v872_v54, 0.0  ;;  %v875_v14 = vadd.f32 %v10589_v2, %v874_v17  ;;  %v2005_v40 = vrot.slane %v14756_v13, 1 }
 0x229   : > { %15201 = vst [vmem:[#allocation91_spill] sm:$0xff] %v10595_v26  ;;  %v1504_v48 = vrot.slane %v15203_v32, 7  ;;  %15204 = vst [vmem:[#allocation92_spill] sm:$0xff] %v10605_v37  ;;  %v1051_v21 = vadd.f32 %v10589_v2, %v10324_v44  ;;  %v10613_v15 = vpop.f32.mrb[51].mxu1  ;;  %v1241_v31 = vmax.f32 %v883_v63, 0.0  ;;  %v15205_v26 = vshrl.u32 %v10562_v42, 16 }
 0x22a   : > { %v15207_v57 = vshll.u32 %v10390_v34, 16  ;;  %v1239_v17 = vmax.f32 %v875_v14, 0.0  ;;  %v15208_v35 = vshrl.u32 %v10571_v6, 16  ;;  %3704 = vmatpush1.bf16.msra.mxu0 %v9041_v20  ;;  %v10629_v63 = vsel %vm10020_vm4, 0, %v1465_v61 }
 0x22b   : > { %v2008_v32 = vor.u32 %v2007_v41, %v15205_v26  ;;  %v1283_v37 = vmax.f32 %v1051_v21, 0.0  ;;  %v10625_v44 = vpack.c.bf16 %v1241_v31, %v1240_v62  ;;  %15210 = vst [vmem:[#allocation94_spill] sm:$0xff] %v10629_v63  ;;  %v15211_v41 = vshrl.u32 %v10280_v45, 16  ;;  %3705 = vmatprep.subr.bf16.mxu0 %v15182_v10 }
 0x22c   : > { %v10621_v54 = vor.u32 %v15207_v57, %v1504_v48  ;;  %v2006_v13 = vor.u32 %v2005_v40, %v15208_v35  ;;  %v10634_v57 = vpack.c.bf16 %v1239_v17, %v1238_v36  ;;  %v8221_v48 = vpop.f32.mrb[52].mxu0  ;;  %v15216_v36 = vshll.u32 %v10286_v11, 16  ;;  %v10653_v31 = vpop.f32.mrb[52].mxu1 }
 0x22d   : > { %15209 = vst [vmem:[#allocation93_spill] sm:$0xff] %v10625_v44  ;;  %v1476_v26 = vrot.slane %v15211_v41, 7  ;;  %v10642_v62 = vsel %vm10026_vm5, %v2008_v32, 0  ;;  %v10644_v20 = vpack.c.bf16 %v1283_v37, %v1282_v4  ;;  %v896_v61 = vadd.f32 %v10589_v2, %v8221_v48  ;;  %v887_v14 = vpop.f32.mrb[53].mxu0  ;;  %2582 = vmatmul.mubr.bf16.gmra.mrb[108].mxu1 %v10629_v63  ;;  %v10659_v41 = vpop.f32.mrb[53].mxu1 }
 0x22e   : > { %15212 = vst [vmem:[#allocation95_spill] sm:$0xff] %v10634_v57  ;;  %v10638_v35 = vsel %vm10026_vm5, %v2006_v13, 0  ;;  %15214 = vst [vmem:[#allocation97_spill] sm:$0xff] %v10642_v62  ;;  %v1472_v40 = vor.u32 %v15216_v36, %v1469_v25  ;;  %v14765_v13 = vshll.u32 %v10625_v44, 16  ;;  %v888_v32 = vadd.f32 %v10589_v2, %v887_v14  ;;  %v8222_v4 = vpop.f32.mrb[54].mxu0  ;;  %2589 = vmatprep.mubr.bf16.mxu1 %v10286_v11  ;;  %v10665_v14 = vpop.f32.mrb[54].mxu1 }
 0x22f   : > { %15213 = vst [vmem:[#allocation96_spill] sm:$0xff] %v10638_v35  ;;  %15215 = vst [vmem:[#allocation98_spill] sm:$0xff] %v10644_v20  ;;  %8355 = vmatprep.mubr.bf16.mxu0 %v10638_v35  ;;  %3706 = vmatpush1.bf16.msra.mxu0 %v9042_v9  ;;  %v1244_v48 = vmax.f32 %v896_v61, 0.0  ;;  %v899_v25 = vadd.f32 %v10589_v2, %v8222_v4  ;;  %v890_v36 = vpop.f32.mrb[55].mxu0  ;;  %v9043_v35 = vld [vmem:[#allocation8 + $0x30] sm:$0xff]   ;;  %v15218_v11 = vshll.u32 %v10634_v57, 16 }
 0x230   : > { %8356 = vmatmul.mubr.bf16.gmra.mrb[108].mxu0 %v10642_v62  ;;  %v2011_v21 = vrot.slane %v14765_v13, 1  ;;  %15217 = vst [vmem:[#allocation99_spill] sm:$0xff] %v10665_v14  ;;  %3707 = vmatprep.subr.bf16.mxu0 %v15182_v10  ;;  %v1242_v37 = vmax.f32 %v888_v32, 0.0  ;;  %v891_v17 = vadd.f32 %v10589_v2, %v890_v36  ;;  %v15219_v61 = vshll.u32 %v10280_v45, 16  ;;  %v10673_v63 = vpop.f32.mrb[55].mxu1 }
 0x231   : > { %v2009_v9 = vrot.slane %v15218_v11, 1  ;;  %v1245_v62 = vmax.f32 %v899_v25, 0.0  ;;  %v10677_v13 = vsel %vm10020_vm4, 0, %v1472_v40  ;;  %v15221_v20 = vshrl.u32 %v10625_v44, 16 }
 0x232   : > { %v1479_v4 = vor.u32 %v15219_v61, %v1476_v26  ;;  %15220 = vst [vmem:[#allocation100_spill] sm:$0xff] %v10677_v13  ;;  %v1072_v32 = vadd.f32 %v10589_v2, %v10359_v29  ;;  %v1243_v36 = vmax.f32 %v891_v17, 0.0  ;;  %v15222_v14 = vshrl.u32 %v10634_v57, 16  ;;  %v9044_v17 = vld [vmem:[#allocation8 + $0x38] sm:$0xff]  }
 0x233   : > { %v2012_v42 = vor.u32 %v2011_v21, %v15221_v20  ;;  %v1064_v26 = vadd.f32 %v10589_v2, %v10367_v53  ;;  %v1075_v25 = vadd.f32 %v10589_v2, %v10375_v46  ;;  %3708 = vmatpush1.bf16.msra.mxu0 %v9043_v35  ;;  %v10689_v61 = vpack.c.bf16 %v1245_v62, %v1244_v48 }
 0x234   : > { %v2010_v11 = vor.u32 %v2009_v9, %v15222_v14  ;;  %v15225_v20 = vshrl.u32 %v10342_v47, 16  ;;  %v1288_v21 = vmax.f32 %v1072_v32, 0.0  ;;  %3709 = vmatprep.subr.bf16.mxu0 %v15182_v10  ;;  %v10698_v14 = vpack.c.bf16 %v1243_v36, %v1242_v37  ;;  %v8225_v53 = vpop.f32.mrb[56].mxu0 }
 0x235   : > { %15223 = vst [vmem:[#allocation101_spill] sm:$0xff] %v10689_v61  ;;  %v10693_v40 = vsel %vm10026_vm5, %v2012_v42, 0  ;;  %v1286_v35 = vmax.f32 %v1064_v26, 0.0  ;;  %v1289_v62 = vmax.f32 %v1075_v25, 0.0  ;;  %v912_v48 = vadd.f32 %v10589_v2, %v8225_v53  ;;  %v903_v42 = vpop.f32.mrb[57].mxu0  ;;  %2590 = vmatmul.mubr.bf16.gmra.mrb[112].mxu1 %v10677_v13 }
 0x236   : > { %15224 = vst [vmem:[#allocation102_spill] sm:$0xff] %v10693_v40  ;;  %v1483_v29 = vrot.slane %v15225_v20, 7  ;;  %15226 = vst [vmem:[#allocation103_spill] sm:$0xff] %v10698_v14  ;;  %v10702_v46 = vsel %vm10026_vm5, %v2010_v11, 0  ;;  %v15228_v37 = vshrl.u32 %v10454_v59, 16  ;;  %v10711_v20 = vpop.f32.mrb[56].mxu1  ;;  %v904_v11 = vadd.f32 %v10589_v2, %v903_v42  ;;  %2597 = vmatprep.mubr.bf16.mxu1 %v10280_v45 }
 0x237   : > { %15227 = vst [vmem:[#allocation104_spill] sm:$0xff] %v10702_v46  ;;  %8359 = vmatprep.mubr.bf16.mxu0 %v10702_v46  ;;  %15229 = vst [vmem:[#allocation105_spill] sm:$0xff] %v10711_v20  ;;  %v8226_v26 = vpop.f32.mrb[58].mxu0  ;;  %v14782_v53 = vshll.u32 %v10698_v14, 16  ;;  %v10717_v13 = vpack.c.bf16 %v1289_v62, %v1288_v21  ;;  %v10719_v46 = vpop.f32.mrb[57].mxu1  ;;  %3710 = vmatpush1.bf16.msra.mxu0 %v9044_v17  ;;  %v1248_v9 = vmax.f32 %v912_v48, 0.0 }
 0x238   : > { %v1511_v36 = vrot.slane %v15228_v37, 7  ;;  %15231 = vst [vmem:[#allocation107_spill] sm:$0xff] %v10719_v46  ;;  %v915_v32 = vadd.f32 %v10589_v2, %v8226_v26  ;;  %8360 = vmatmul.mubr.bf16.gmra.mrb[112].mxu0 %v10693_v40  ;;  %v906_v37 = vpop.f32.mrb[59].mxu0  ;;  %v15232_v42 = vshll.u32 %v10689_v61, 16  ;;  %v15233_v45 = vshll.u32 %v10454_v59, 16  ;;  %v10729_v25 = vpop.f32.mrb[58].mxu1  ;;  %3711 = vmatprep.subr.bf16.mxu0 %v15182_v10 }
 0x239   : > { %15230 = vst [vmem:[#allocation106_spill] sm:$0xff] %v10717_v13  ;;  %15234 = vst [vmem:[#allocation108_spill] sm:$0xff] %v10729_v25  ;;  %v9045_v21 = vld [vmem:[#allocation8 + $0x40] sm:$0xff]   ;;  %v1246_v62 = vmax.f32 %v904_v11, 0.0  ;;  %v907_v17 = vadd.f32 %v10589_v2, %v906_v37  ;;  %v2013_v48 = vrot.slane %v14782_v53, 1  ;;  %v1067_v26 = vadd.f32 %v10589_v2, %v10382_v8  ;;  %v10737_v40 = vpop.f32.mrb[59].mxu1 }
 0x23a   : > { %v2015_v44 = vrot.slane %v15232_v42, 1  ;;  %v10727_v57 = vor.u32 %v15233_v45, %v1511_v36  ;;  %15235 = vst [vmem:[#allocation109_spill] sm:$0xff] %v10737_v40  ;;  %v1249_v42 = vmax.f32 %v915_v32, 0.0  ;;  %v15236_v45 = vshrl.u32 %v10689_v61, 16 }
 0x23b   : > { %v1247_v13 = vmax.f32 %v907_v17, 0.0  ;;  %v15237_v25 = vshrl.u32 %v10698_v14, 16  ;;  %v1287_v20 = vmax.f32 %v1067_v26, 0.0  ;;  %3712 = vmatpush1.bf16.msra.mxu0 %v9045_v21  ;;  %v10747_v37 = vsel %vm10020_vm4, 0, %v1479_v4 }
 0x23c   : > { %v2016_v36 = vor.u32 %v2015_v44, %v15236_v45  ;;  %v10743_v11 = vpack.c.bf16 %v1249_v42, %v1248_v9  ;;  %15239 = vst [vmem:[#allocation111_spill] sm:$0xff] %v10747_v37  ;;  %v15240_v8 = vshll.u32 %v10342_v47, 16  ;;  %v15241_v32 = vshrl.u32 %v10332_v49, 16  ;;  %3713 = vmatprep.subr.bf16.mxu0 %v15182_v10  ;;  %v9046_v44 = vld [vmem:[#allocation8 + $0x48] sm:$0xff]   ;;  %v10772_v26 = vpop.f32.mrb[60].mxu1 }
 0x23d   : > { %v2014_v46 = vor.u32 %v2013_v48, %v15237_v25  ;;  %v10754_v17 = vpack.c.bf16 %v1247_v13, %v1246_v62  ;;  %v8229_v25 = vpop.f32.mrb[60].mxu0  ;;  %v10764_v21 = vpack.c.bf16 %v1287_v20, %v1286_v35  ;;  %2598 = vmatmul.mubr.bf16.gmra.mrb[116].mxu1 %v10747_v37  ;;  %v9047_v35 = vld [vmem:[#allocation8 + $0x50] sm:$0xff]   ;;  %v15252_v61 = vshll.u32 %v10008_v5, 16 }
 0x23e   : > { %15238 = vst [vmem:[#allocation110_spill] sm:$0xff] %v10743_v11  ;;  %v1486_v53 = vor.u32 %v15240_v8, %v1483_v29  ;;  %v1490_v40 = vrot.slane %v15241_v32, 7  ;;  %v10762_v4 = vsel %vm10026_vm5, %v2016_v36, 0  ;;  %v928_v29 = vadd.f32 %v10589_v2, %v8229_v25  ;;  %v919_v48 = vpop.f32.mrb[61].mxu0  ;;  %2605 = vmatprep.mubr.bf16.mxu1 %v10342_v47  ;;  %v10778_v36 = vpop.f32.mrb[61].mxu1 }
 0x23f   : > { %15242 = vst [vmem:[#allocation112_spill] sm:$0xff] %v10754_v17  ;;  %v10758_v9 = vsel %vm10026_vm5, %v2014_v46, 0  ;;  %15244 = vst [vmem:[#allocation114_spill] sm:$0xff] %v10762_v4  ;;  %v14791_v62 = vshll.u32 %v10743_v11, 16  ;;  %v920_v42 = vadd.f32 %v10589_v2, %v919_v48  ;;  %v8230_v45 = vpop.f32.mrb[62].mxu0  ;;  %3714 = vmatpush1.bf16.msra.mxu0 %v9046_v44  ;;  %v10788_v13 = vpop.f32.mrb[62].mxu1 }
 0x240   : > { %15243 = vst [vmem:[#allocation113_spill] sm:$0xff] %v10758_v9  ;;  %15245 = vst [vmem:[#allocation115_spill] sm:$0xff] %v10764_v21  ;;  %8363 = vmatprep.mubr.bf16.mxu0 %v10758_v9  ;;  %v1252_v8 = vmax.f32 %v928_v29, 0.0  ;;  %v931_v32 = vadd.f32 %v10589_v2, %v8230_v45  ;;  %v922_v25 = vpop.f32.mrb[63].mxu0  ;;  %v10784_v46 = vsel %vm10020_vm4, 0, %v1486_v53  ;;  %3715 = vmatprep.subr.bf16.mxu0 %v15182_v10  ;;  %v15249_v29 = vshll.u32 %v10754_v17, 16 }
 0x241   : > { %15246 = vst [vmem:[#allocation116_spill] sm:$0xff] %v10778_v36  ;;  %8364 = vmatmul.mubr.bf16.gmra.mrb[116].mxu0 %v10762_v4  ;;  %15247 = vst [vmem:[#allocation117_spill] sm:$0xff] %v10784_v46  ;;  %v2019_v48 = vrot.slane %v14791_v62, 1  ;;  %v1250_v20 = vmax.f32 %v920_v42, 0.0  ;;  %v923_v44 = vadd.f32 %v10589_v2, %v922_v25  ;;  %v15250_v4 = vshll.u32 %v10332_v49, 16  ;;  %v10796_v47 = vpop.f32.mrb[63].mxu1 }
 0x242   : > { %15248 = vst [vmem:[#allocation118_spill] sm:$0xff] %v10788_v13  ;;  %v2017_v45 = vrot.slane %v15249_v29, 1  ;;  %v1253_v53 = vmax.f32 %v931_v32, 0.0  ;;  %v15251_v37 = vshrl.u32 %v10743_v11, 16  ;;  %v2025_v14 = vrot.slane %v15252_v61, 1 }
 0x243   : > { %v1493_v9 = vor.u32 %v15250_v4, %v1490_v40  ;;  %v1088_v42 = vadd.f32 %v10589_v2, %v10415_v51  ;;  %v1251_v13 = vmax.f32 %v923_v44, 0.0  ;;  %v15253_v25 = vshrl.u32 %v10754_v17, 16  ;;  %3716 = vmatpush1.bf16.msra.mxu0 %v9047_v35 }
 0x244   : > { %v2020_v62 = vor.u32 %v2019_v48, %v15251_v37  ;;  %v1080_v29 = vadd.f32 %v10589_v2, %v10423_v27  ;;  %v1091_v40 = vadd.f32 %v10589_v2, %v10431_v18  ;;  %v10810_v4 = vpack.c.bf16 %v1253_v53, %v1252_v8  ;;  %3717 = vmatprep.subr.bf16.mxu0 %v15182_v10  ;;  %v9048_v48 = vld [vmem:[#allocation8 + $0x58] sm:$0xff]  }
 0x245   : > { %v2018_v36 = vor.u32 %v2017_v45, %v15253_v25  ;;  %v1292_v61 = vmax.f32 %v1088_v42, 0.0  ;;  %v15256_v51 = vshrl.u32 %v10446_v52, 16  ;;  %v10819_v44 = vpack.c.bf16 %v1251_v13, %v1250_v20  ;;  %2606 = vmatmul.mubr.bf16.gmra.mrb[120].mxu1 %v10784_v46 }
 0x246   : > { %15254 = vst [vmem:[#allocation119_spill] sm:$0xff] %v10810_v4  ;;  %v10814_v37 = vsel %vm10026_vm5, %v2020_v62, 0  ;;  %v1290_v18 = vmax.f32 %v1080_v29, 0.0  ;;  %v1293_v35 = vmax.f32 %v1091_v40, 0.0  ;;  %v14800_v62 = vshrl.u32 %v10810_v4, 16  ;;  %2613 = vmatprep.mubr.bf16.mxu1 %v10332_v49 }
 0x247   : > { %15255 = vst [vmem:[#allocation120_spill] sm:$0xff] %v10814_v37  ;;  %v1518_v32 = vrot.slane %v15256_v51, 7  ;;  %15257 = vst [vmem:[#allocation121_spill] sm:$0xff] %v10819_v44  ;;  %v10823_v27 = vsel %vm10026_vm5, %v2018_v36, 0  ;;  %v14796_v8 = vshll.u32 %v10810_v4, 16  ;;  %v15259_v45 = vshll.u32 %v10446_v52, 16  ;;  %3718 = vmatpush1.bf16.msra.mxu0 %v9048_v48 }
 0x248   : > { %15258 = vst [vmem:[#allocation122_spill] sm:$0xff] %v10823_v27  ;;  %8367 = vmatprep.mubr.bf16.mxu0 %v10823_v27  ;;  %v1083_v13 = vadd.f32 %v10589_v2, %v10436_v55  ;;  %v14801_v20 = vshrl.u32 %v10819_v44, 16  ;;  %v14797_v36 = vshll.u32 %v10819_v44, 16  ;;  %v10838_v42 = vpack.c.bf16 %v1293_v35, %v1292_v61  ;;  %3719 = vmatprep.subr.bf16.mxu0 %v15182_v10  ;;  %v9049_v55 = vld [vmem:[#allocation8 + $0x60] sm:$0xff]   ;;  %v15302_v27 = vld [vmem:[#allocation105_spill] sm:$0xff] }
 0x249   : > { %v10831_v53 = vor.u32 %v15259_v45, %v1518_v32  ;;  %8368 = vmatmul.mubr.bf16.gmra.mrb[120].mxu0 %v10814_v37  ;;  %v2023_v25 = vrot.slane %v14796_v8, 1  ;;  %v14799_v29 = vshrl.u32 %v10008_v5, 16  ;;  %v10848_v32 = vsel %vm10020_vm4, 0, %v1493_v9 }
 0x24a   : > { %15260 = vst [vmem:[#allocation123_spill] sm:$0xff] %v10838_v42  ;;  %v1291_v51 = vmax.f32 %v1083_v13, 0.0  ;;  %15261 = vst [vmem:[#allocation124_spill] sm:$0xff] %v10848_v32  ;;  %v2021_v61 = vrot.slane %v14797_v36, 1  ;;  %v1104_v48 = vadd.f32 %v10589_v2, %v10471_v0  ;;  %v1096_v8 = vadd.f32 %v10589_v2, %v10479_v19 }
 0x24b   : > { %v2024_v35 = vor.u32 %v2023_v25, %v14800_v62  ;;  %v2026_v45 = vor.u32 %v2025_v14, %v14799_v29  ;;  %v15263_v40 = vshrl.u32 %v10396_v30, 16  ;;  %v1107_v0 = vadd.f32 %v10589_v2, %v10485_v50  ;;  %3720 = vmatpush1.bf16.msra.mxu0 %v9049_v55 }
 0x24c   : > { %v10858_v13 = vpack.c.bf16 %v1291_v51, %v1290_v18  ;;  %v2022_v9 = vor.u32 %v2021_v61, %v14801_v20  ;;  %v1296_v49 = vmax.f32 %v1104_v48, 0.0  ;;  %v15265_v14 = vshll.u32 %v10004_v1, 16  ;;  %3721 = vmatprep.subr.bf16.mxu0 %v15182_v10 }
 0x24d   : > { %v1497_v36 = vrot.slane %v15263_v40, 7  ;;  %v10870_v25 = vsel %vm10026_vm5, %v2024_v35, 0  ;;  %v14802_v19 = vshll.u32 %v10084_v22, 16  ;;  %v15266_v51 = vshrl.u32 %v10505_v60, 16  ;;  %v9050_v40 = vld [vmem:[#allocation8 + $0x68] sm:$0xff]   ;;  %2614 = vmatmul.mubr.bf16.gmra.mrb[124].mxu1 %v10848_v32 }
 0x24e   : > { %15262 = vst [vmem:[#allocation125_spill] sm:$0xff] %v10858_v13  ;;  %15264 = vst [vmem:[#allocation126_spill] sm:$0xff] %v10870_v25  ;;  %v2027_v18 = vrot.slane %v15265_v14, 1  ;;  %v10880_v48 = vsel %vm10026_vm5, %v2022_v9, 0  ;;  %v1294_v50 = vmax.f32 %v1096_v8, 0.0  ;;  %v1297_v55 = vmax.f32 %v1107_v0, 0.0  ;;  %2621 = vmatprep.mubr.bf16.mxu1 %v10396_v30 }
 0x24f   : > { %v1525_v61 = vrot.slane %v15266_v51, 7  ;;  %15267 = vst [vmem:[#allocation127_spill] sm:$0xff] %v10880_v48  ;;  %v1099_v35 = vadd.f32 %v10589_v2, %v10492_v16  ;;  %8371 = vmatprep.mubr.bf16.mxu0 %v10880_v48  ;;  %v14803_v14 = vshrl.u32 %v10004_v1, 16  ;;  %v15268_v29 = vshll.u32 %v10505_v60, 16  ;;  %3722 = vmatpush1.bf16.msra.mxu0 %v9050_v40 }
 0x250   : > { %v10895_v8 = vsel %vm10026_vm5, %v2026_v45, 0  ;;  %v15270_v16 = vshll.u32 %v10396_v30, 16  ;;  %v10899_v0 = vpack.c.bf16 %v1297_v55, %v1296_v49  ;;  %v1120_v45 = vadd.f32 %v10589_v2, %v10526_v43  ;;  %3723 = vmatprep.subr.bf16.mxu0 %v15182_v10 }
 0x251   : > { %v10890_v62 = vor.u32 %v15268_v29, %v1525_v61  ;;  %15269 = vst [vmem:[#allocation128_spill] sm:$0xff] %v10895_v8  ;;  %v1295_v20 = vmax.f32 %v1099_v35, 0.0  ;;  %8372 = vmatmul.mubr.bf16.gmra.mrb[124].mxu0 %v10870_v25  ;;  %v2028_v51 = vor.u32 %v2027_v18, %v14803_v14  ;;  %v2029_v61 = vrot.slane %v14802_v19, 1 }
 0x252   : > { %v1500_v9 = vor.u32 %v15270_v16, %v1497_v36  ;;  %15271 = vst [vmem:[#allocation129_spill] sm:$0xff] %v10899_v0  ;;  %v9051_v36 = vld [vmem:[#allocation8 + $0x70] sm:$0xff]   ;;  %8375 = vmatprep.mubr.bf16.mxu0 %v10895_v8  ;;  %v1112_v40 = vadd.f32 %v10589_v2, %v10534_v39  ;;  %v1123_v18 = vadd.f32 %v10589_v2, %v10542_v3  ;;  %v15273_v55 = vshrl.u32 %v10501_v33, 16 }
 0x253   : > { %v10911_v49 = vpack.c.bf16 %v1295_v20, %v1294_v50  ;;  %v15274_v16 = vshll.u32 %v10066_v12, 16  ;;  %v14807_v43 = vshll.u32 %v10164_v7, 16  ;;  %v1300_v14 = vmax.f32 %v1120_v45, 0.0  ;;  %3724 = vmatpush1.bf16.msra.mxu0 %v9051_v36  ;;  %v9053_v45 = vld [vmem:[#allocation8 + $0xa0] sm:$0xff]  }
 0x254   : > { %v1532_v35 = vrot.slane %v15273_v55, 7  ;;  %v1115_v29 = vadd.f32 %v10589_v2, %v10548_v58  ;;  %v1298_v20 = vmax.f32 %v1112_v40, 0.0  ;;  %v1301_v50 = vmax.f32 %v1123_v18, 0.0  ;;  %3725 = vmatprep.subr.bf16.mxu0 %v15182_v10  ;;  %8447 = vmatprep.subr.bf16.mxu1 %v9053_v45  ;;  %v15281_v18 = vld [vmem:[#allocation92_spill] sm:$0xff] }
 0x255   : > { %15272 = vst [vmem:[#allocation130_spill] sm:$0xff] %v10911_v49  ;;  %v2031_v19 = vrot.slane %v15274_v16, 1  ;;  %v15275_v25 = vshll.u32 %v10501_v33, 16  ;;  %v15276_v3 = vshrl.u32 %v10084_v22, 16  ;;  %v14808_v55 = vshrl.u32 %v10066_v12, 16  ;;  %v9052_v16 = vld [vmem:[#allocation8 + $0x78] sm:$0xff]   ;;  %8448 = vmatpush3.bf16.msra.mxu1 %v9053_v45 }
 0x256   : > { %v1299_v8 = vmax.f32 %v1115_v29, 0.0  ;;  %v10934_v58 = vsel %vm10020_vm4, 0, %v1500_v9  ;;  %v10938_v40 = vsel %vm10026_vm5, %v2028_v51, 0  ;;  %v2033_v29 = vrot.slane %v14807_v43, 1 }
 0x257   : > { %v10926_v39 = vor.u32 %v15275_v25, %v1532_v35  ;;  %v2030_v32 = vor.u32 %v2029_v61, %v15276_v3  ;;  %15277 = vst [vmem:[#allocation131_spill] sm:$0xff] %v10934_v58  ;;  %15278 = vst [vmem:[#allocation132_spill] sm:$0xff] %v10938_v40  ;;  %v10940_v25 = vpack.c.bf16 %v1301_v50, %v1300_v14  ;;  %2622 = vmatmul.mubr.bf16.gmra.mrb[128].mxu1 %v10934_v58 }
 0x258   : > { %v2032_v61 = vor.u32 %v2031_v19, %v14808_v55  ;;  %v10947_v36 = vpack.c.bf16 %v1299_v8, %v1298_v20  ;;  %v1136_v9 = vadd.f32 %v10589_v2, %v10587_v24  ;;  %2629 = vmatprep.mubr.bf16.mxu1 %v10390_v34  ;;  %v14814_v51 = vshll.u32 %v10145_v38, 16  ;;  %3726 = vmatpush1.bf16.msra.mxu0 %v9052_v16  ;;  %v15284_v8 = vld [vmem:[#allocation54_spill] sm:$0xff] }
 0x259   : > { %15279 = vst [vmem:[#allocation133_spill] sm:$0xff] %v10940_v25  ;;  %v1128_v14 = vadd.f32 %v10589_v2, %v10597_v56  ;;  %v1139_v35 = vadd.f32 %v10589_v2, %v15281_v18  ;;  %v15282_v19 = vshrl.u32 %v10571_v6, 16  ;;  %8376 = vmatmul.mubr.bf16.gmra.mrb[128].mxu0 %v10938_v40  ;;  %v10962_v24 = vsel %vm10026_vm5, %v2030_v32, 0  ;;  %v15291_v40 = vld [vmem:[#allocation99_spill] sm:$0xff] }
 0x25a   : > { %15280 = vst [vmem:[#allocation134_spill] sm:$0xff] %v10947_v36  ;;  %15283 = vst [vmem:[#allocation92_spill] sm:$0xff] %v10962_v24  ;;  %v14815_v20 = vshll.u32 %v15284_v8, 16  ;;  %v1304_v3 = vmax.f32 %v1136_v9, 0.0  ;;  %v1131_v43 = vadd.f32 %v10589_v2, %v10613_v15  ;;  %8379 = vmatprep.mubr.bf16.mxu0 %v10962_v24  ;;  %v14813_v56 = vshrl.u32 %v10164_v7, 16 }
 0x25b   : > { %v1539_v50 = vrot.slane %v15282_v19, 7  ;;  %v1302_v18 = vmax.f32 %v1128_v14, 0.0  ;;  %v1305_v19 = vmax.f32 %v1139_v35, 0.0  ;;  %v15285_v16 = vshll.u32 %v10571_v6, 16 }
 0x25c   : > { %v10976_v32 = vsel %vm10020_vm4, 0, %v10621_v54  ;;  %v1303_v9 = vmax.f32 %v1131_v43, 0.0  ;;  %v10980_v15 = vsel %vm10026_vm5, %v2032_v61, 0  ;;  %v2034_v45 = vor.u32 %v2033_v29, %v14813_v56  ;;  %v15290_v61 = vld [vmem:[#allocation50_spill] sm:$0xff] }
 0x25d   : > { %v10971_v55 = vor.u32 %v15285_v16, %v1539_v50  ;;  %15286 = vst [vmem:[#allocation135_spill] sm:$0xff] %v10976_v32  ;;  %15287 = vst [vmem:[#allocation136_spill] sm:$0xff] %v10980_v15  ;;  %v2035_v14 = vrot.slane %v14814_v51, 1  ;;  %v10986_v35 = vpack.c.bf16 %v1305_v19, %v1304_v3  ;;  %v2037_v50 = vrot.slane %v14815_v20, 1  ;;  %v15292_v56 = vld [vmem:[#allocation86_spill] sm:$0xff] }
 0x25e   : > { %v10990_v16 = vpack.c.bf16 %v1303_v9, %v1302_v18  ;;  %v1152_v54 = vadd.f32 %v10589_v2, %v10653_v31  ;;  %v1144_v43 = vadd.f32 %v10589_v2, %v10659_v41  ;;  %v1155_v29 = vadd.f32 %v10589_v2, %v15291_v40  ;;  %v15294_v9 = vld [vmem:[#allocation66_spill] sm:$0xff] }
 0x25f   : > { %15288 = vst [vmem:[#allocation137_spill] sm:$0xff] %v10986_v35  ;;  %v15293_v51 = vshrl.u32 %v15292_v56, 16  ;;  %v1147_v19 = vadd.f32 %v10589_v2, %v10673_v63  ;;  %2630 = vmatmul.mubr.bf16.gmra.mrb[132].mxu1 %v10976_v32  ;;  %v14822_v18 = vshrl.u32 %v10145_v38, 16  ;;  %v14829_v41 = vshrl.u32 %v15284_v8, 16 }
 0x260   : > { %15289 = vst [vmem:[#allocation138_spill] sm:$0xff] %v10990_v16  ;;  %v1308_v20 = vmax.f32 %v1152_v54, 0.0  ;;  %v1306_v48 = vmax.f32 %v1144_v43, 0.0  ;;  %2637 = vmatprep.mubr.bf16.mxu1 %v10454_v59  ;;  %v1309_v24 = vmax.f32 %v1155_v29, 0.0  ;;  %v15295_v40 = vshll.u32 %v15292_v56, 16  ;;  %v15303_v59 = vld [vmem:[#allocation107_spill] sm:$0xff] }
 0x261   : > { %v1546_v3 = vrot.slane %v15293_v51, 7  ;;  %v1307_v51 = vmax.f32 %v1147_v19, 0.0  ;;  %8380 = vmatmul.mubr.bf16.gmra.mrb[132].mxu0 %v10980_v15  ;;  %v11015_v63 = vsel %vm10026_vm5, %v2034_v45, 0  ;;  %v11020_v54 = vsel %vm10020_vm4, 0, %v10727_v57 }
 0x262   : > { %15296 = vst [vmem:[#allocation99_spill] sm:$0xff] %v11015_v63  ;;  %15297 = vst [vmem:[#allocation139_spill] sm:$0xff] %v11020_v54  ;;  %v2036_v43 = vor.u32 %v2035_v14, %v14822_v18  ;;  %v14832_v29 = vshrl.u32 %v10764_v21, 16  ;;  %8383 = vmatprep.mubr.bf16.mxu0 %v11015_v63  ;;  %v15298_v19 = vshll.u32 %v15290_v61, 16  ;;  %v11030_v45 = vpack.c.bf16 %v1309_v24, %v1308_v20  ;;  %v15305_v20 = vld [vmem:[#allocation95_spill] sm:$0xff] }
 0x263   : > { %v11010_v37 = vor.u32 %v15295_v40, %v1546_v3  ;;  %v2038_v3 = vor.u32 %v2037_v50, %v14829_v41  ;;  %v11032_v31 = vpack.c.bf16 %v1307_v51, %v1306_v48  ;;  %v15301_v57 = vshll.u32 %v15294_v9, 16  ;;  %v15304_v41 = vld [vmem:[#allocation108_spill] sm:$0xff] }
 0x264   : > { %v2039_v40 = vrot.slane %v15298_v19, 1  ;;  %15299 = vst [vmem:[#allocation140_spill] sm:$0xff] %v11030_v45  ;;  %v1721_v14 = vrot.slane %v14832_v29, 7  ;;  %v14842_v18 = vshll.u32 %v10764_v21, 16  ;;  %v1168_v63 = vadd.f32 %v10589_v2, %v15302_v27  ;;  %v15307_v19 = vld [vmem:[#allocation109_spill] sm:$0xff] }
 0x265   : > { %15300 = vst [vmem:[#allocation141_spill] sm:$0xff] %v11032_v31  ;;  %v2041_v15 = vrot.slane %v15301_v57, 1  ;;  %v1160_v50 = vadd.f32 %v10589_v2, %v15303_v59  ;;  %v1171_v24 = vadd.f32 %v10589_v2, %v15304_v41  ;;  %v15306_v48 = vshrl.u32 %v15305_v20, 16 }
 0x266   : > { %v1163_v57 = vadd.f32 %v10589_v2, %v15307_v19  ;;  %v14839_v32 = vshrl.u32 %v15290_v61, 16  ;;  %v14840_v29 = vshrl.u32 %v15294_v9, 16  ;;  %v11053_v34 = vor.u32 %v14842_v18, %v1721_v14  ;;  %v15312_v14 = vld [vmem:[#allocation106_spill] sm:$0xff] }
 0x267   : > { %v1553_v51 = vrot.slane %v15306_v48, 7  ;;  %v1312_v27 = vmax.f32 %v1168_v63, 0.0  ;;  %v1310_v58 = vmax.f32 %v1160_v50, 0.0  ;;  %v1313_v59 = vmax.f32 %v1171_v24, 0.0  ;;  %2638 = vmatmul.mubr.bf16.gmra.mrb[136].mxu1 %v11020_v54 }
 0x268   : > { %15308 = vst [vmem:[#allocation105_spill] sm:$0xff] %v11053_v34  ;;  %v15309_v30 = vshll.u32 %v15305_v20, 16  ;;  %v1311_v46 = vmax.f32 %v1163_v57, 0.0  ;;  %v11062_v48 = vsel %vm10026_vm5, %v2036_v43, 0  ;;  %v11066_v19 = vsel %vm10026_vm5, %v2038_v3, 0  ;;  %2645 = vmatprep.mubr.bf16.mxu1 %v10446_v52  ;;  %v15327_v34 = vld [vmem:[#allocation73_spill] sm:$0xff] }
 0x269   : > { %15310 = vst [vmem:[#allocation107_spill] sm:$0xff] %v11062_v48  ;;  %15311 = vst [vmem:[#allocation108_spill] sm:$0xff] %v11066_v19  ;;  %v2040_v63 = vor.u32 %v2039_v40, %v14839_v32  ;;  %v14841_v50 = vshrl.u32 %v15312_v14, 16  ;;  %v11074_v24 = vpack.c.bf16 %v1313_v59, %v1312_v27  ;;  %v14847_v43 = vshrl.u32 %v10858_v13, 16  ;;  %8384 = vmatmul.mubr.bf16.gmra.mrb[136].mxu0 %v11062_v48  ;;  %v15316_v27 = vld [vmem:[#allocation118_spill] sm:$0xff] }
 0x26a   : > { %v11057_v41 = vor.u32 %v15309_v30, %v1553_v51  ;;  %v2042_v30 = vor.u32 %v2041_v15, %v14840_v29  ;;  %v11076_v51 = vpack.c.bf16 %v1311_v46, %v1310_v58  ;;  %v1184_v32 = vadd.f32 %v10589_v2, %v10772_v26  ;;  %8387 = vmatprep.mubr.bf16.mxu0 %v11066_v19  ;;  %v15315_v58 = vld [vmem:[#allocation116_spill] sm:$0xff]  ;;  %v15317_v29 = vld [vmem:[#allocation93_spill] sm:$0xff] }
 0x26b   : > { %15313 = vst [vmem:[#allocation109_spill] sm:$0xff] %v11074_v24  ;;  %v1728_v3 = vrot.slane %v14841_v50, 7  ;;  %v1735_v46 = vrot.slane %v14847_v43, 7  ;;  %v1176_v15 = vadd.f32 %v10589_v2, %v15315_v58  ;;  %v1187_v59 = vadd.f32 %v10589_v2, %v15316_v27  ;;  %v15320_v26 = vld [vmem:[#allocation60_spill] sm:$0xff] }
 0x26c   : > { %15314 = vst [vmem:[#allocation142_spill] sm:$0xff] %v11076_v51  ;;  %v15318_v50 = vshrl.u32 %v15317_v29, 16  ;;  %v11098_v57 = vsel %vm10020_vm4, 0, %v10831_v53  ;;  %v15321_v19 = vshll.u32 %v15312_v14, 16  ;;  %v1316_v43 = vmax.f32 %v1184_v32, 0.0 }
 0x26d   : > { %15319 = vst [vmem:[#allocation116_spill] sm:$0xff] %v11098_v57  ;;  %v11107_v58 = vsel %vm10026_vm5, %v2040_v63, 0  ;;  %v15324_v27 = vshll.u32 %v10858_v13, 16  ;;  %v15326_v54 = vshll.u32 %v15317_v29, 16  ;;  %v1314_v9 = vmax.f32 %v1176_v15, 0.0 }
 0x26e   : > { %v1560_v18 = vrot.slane %v15318_v50, 7  ;;  %v11103_v48 = vor.u32 %v15321_v19, %v1728_v3  ;;  %15323 = vst [vmem:[#allocation143_spill] sm:$0xff] %v11107_v58  ;;  %v1317_v50 = vmax.f32 %v1187_v59, 0.0  ;;  %v1179_v19 = vadd.f32 %v10589_v2, %v10796_v47 }
 0x26f   : > { %v11111_v52 = vor.u32 %v15324_v27, %v1735_v46  ;;  %v14853_v32 = vshrl.u32 %v10838_v42, 16  ;;  %v11123_v63 = vsel %vm10026_vm5, %v2042_v30, 0  ;;  %v14858_v59 = vshrl.u32 %v10911_v49, 16  ;;  %2646 = vmatmul.mubr.bf16.gmra.mrb[140].mxu1 %v11098_v57  ;;  %v15331_v27 = vld [vmem:[#allocation103_spill] sm:$0xff] }
 0x270   : > { %15322 = vst [vmem:[#allocation118_spill] sm:$0xff] %v11103_v48  ;;  %v11115_v53 = vor.u32 %v15326_v54, %v1560_v18  ;;  %15328 = vst [vmem:[#allocation145_spill] sm:$0xff] %v11123_v63  ;;  %v11126_v46 = vpack.c.bf16 %v1317_v50, %v1316_v43  ;;  %v15330_v18 = vshll.u32 %v15320_v26, 16  ;;  %v1315_v15 = vmax.f32 %v1179_v19, 0.0  ;;  %2653 = vmatprep.mubr.bf16.mxu1 %v10505_v60 }
 0x271   : > { %15325 = vst [vmem:[#allocation144_spill] sm:$0xff] %v11111_v52  ;;  %v1742_v47 = vrot.slane %v14853_v32, 7  ;;  %v1749_v30 = vrot.slane %v14858_v59, 7  ;;  %v14863_v43 = vshll.u32 %v10911_v49, 16  ;;  %v15332_v50 = vshrl.u32 %v15331_v27, 16  ;;  %8388 = vmatmul.mubr.bf16.gmra.mrb[140].mxu0 %v11107_v58 }
 0x272   : > { %15329 = vst [vmem:[#allocation146_spill] sm:$0xff] %v11126_v46  ;;  %v2043_v54 = vrot.slane %v15330_v18, 1  ;;  %v15333_v18 = vshll.u32 %v15327_v34, 16  ;;  %v11146_v2 = vpack.c.bf16 %v1315_v15, %v1314_v9  ;;  %v15335_v60 = vshll.u32 %v10838_v42, 16  ;;  %8391 = vmatprep.mubr.bf16.mxu0 %v11123_v63 }
 0x273   : > { %v1567_v3 = vrot.slane %v15332_v50, 7  ;;  %v11155_v50 = vor.u32 %v14863_v43, %v1749_v30  ;;  %v15338_v59 = vshll.u32 %v15331_v27, 16  ;;  %v15339_v19 = vshrl.u32 %v10899_v0, 16 }
 0x274   : > { %v2045_v32 = vrot.slane %v15333_v18, 1  ;;  %15334 = vst [vmem:[#allocation147_spill] sm:$0xff] %v11146_v2  ;;  %v11150_v57 = vor.u32 %v15335_v60, %v1742_v47  ;;  %v14864_v9 = vshll.u32 %v10899_v0, 16  ;;  %v15340_v15 = vshrl.u32 %v15320_v26, 16  ;;  %v15341_v60 = vld [vmem:[#allocation68_spill] sm:$0xff] }
 0x275   : > { %15337 = vst [vmem:[#allocation149_spill] sm:$0xff] %v11155_v50  ;;  %v11159_v40 = vor.u32 %v15338_v59, %v1567_v3  ;;  %v1756_v58 = vrot.slane %v15339_v19, 7  ;;  %v14869_v47 = vshll.u32 %v15341_v60, 16  ;;  %v14865_v52 = vshrl.u32 %v10947_v36, 16  ;;  %v15344_v3 = vld [vmem:[#allocation101_spill] sm:$0xff] }
 0x276   : > { %15336 = vst [vmem:[#allocation148_spill] sm:$0xff] %v11150_v57  ;;  %v2044_v18 = vor.u32 %v2043_v54, %v15340_v15  ;;  %v15342_v57 = vld [vmem:[#allocation85_spill] sm:$0xff]  ;;  %v15345_v59 = vshrl.u32 %v15344_v3, 16  ;;  %v15346_v19 = vshrl.u32 %v15327_v34, 16  ;;  %v14868_v54 = vshll.u32 %v10947_v36, 16 }
 0x277   : > { %v11171_v30 = vor.u32 %v14864_v9, %v1756_v58  ;;  %v1763_v48 = vrot.slane %v14865_v52, 7  ;;  %v11183_v15 = vsel %vm10020_vm4, 0, %v10890_v62  ;;  %v15348_v63 = vshll.u32 %v15344_v3, 16 }
 0x278   : > { %v1574_v43 = vrot.slane %v15345_v59, 7  ;;  %v2046_v50 = vor.u32 %v2045_v32, %v15346_v19  ;;  %15347 = vst [vmem:[#allocation151_spill] sm:$0xff] %v11183_v15  ;;  %v14870_v9 = vshrl.u32 %v10940_v25, 16  ;;  %2654 = vmatmul.mubr.bf16.gmra.mrb[144].mxu1 %v11183_v15  ;;  %v11194_v32 = vsel %vm10026_vm5, %v2044_v18, 0 }
 0x279   : > { %15343 = vst [vmem:[#allocation150_spill] sm:$0xff] %v11171_v30  ;;  %15349 = vst [vmem:[#allocation152_spill] sm:$0xff] %v11194_v32  ;;  %v2047_v19 = vrot.slane %v14869_v47, 1  ;;  %v15350_v62 = vshll.u32 %v15342_v57, 16  ;;  %2661 = vmatprep.mubr.bf16.mxu1 %v10501_v33  ;;  %v15352_v18 = vshrl.u32 %v10990_v16, 16  ;;  %8392 = vmatmul.mubr.bf16.gmra.mrb[144].mxu0 %v11194_v32  ;;  %v15356_v30 = vshll.u32 %v10940_v25, 16 }
 0x27a   : > { %v11187_v58 = vor.u32 %v15348_v63, %v1574_v43  ;;  %v11202_v63 = vor.u32 %v14868_v54, %v1763_v48  ;;  %v1770_v43 = vrot.slane %v14870_v9, 7  ;;  %v15354_v54 = vshrl.u32 %v10754_v17, 16 }
 0x27b   : > { %v2049_v52 = vrot.slane %v15350_v62, 1  ;;  %v1777_v15 = vrot.slane %v15352_v18, 7  ;;  %v11214_v62 = vsel %vm10026_vm5, %v2046_v50, 0  ;;  %v14879_v9 = vshrl.u32 %v10986_v35, 16  ;;  %v15355_v18 = vld [vmem:[#allocation79_spill] sm:$0xff] }
 0x27c   : > { %15351 = vst [vmem:[#allocation153_spill] sm:$0xff] %v11202_v63  ;;  %15353 = vst [vmem:[#allocation154_spill] sm:$0xff] %v11214_v62  ;;  %v1581_v47 = vrot.slane %v15354_v54, 7  ;;  %8395 = vmatprep.mubr.bf16.mxu0 %v11214_v62  ;;  %v11225_v32 = vor.u32 %v15356_v30, %v1770_v43  ;;  %v15358_v50 = vshll.u32 %v10990_v16, 16  ;;  %v15360_v48 = vshll.u32 %v10754_v17, 16 }
 0x27d   : > { %v1784_v54 = vrot.slane %v14879_v9, 7  ;;  %v14881_v62 = vshll.u32 %v10986_v35, 16  ;;  %v14880_v59 = vshrl.u32 %v11032_v31, 16  ;;  %v15361_v63 = vshrl.u32 %v15341_v60, 16 }
 0x27e   : > { %15357 = vst [vmem:[#allocation155_spill] sm:$0xff] %v11225_v32  ;;  %v11229_v33 = vor.u32 %v15358_v50, %v1777_v15  ;;  %v11233_v61 = vor.u32 %v15360_v48, %v1581_v47  ;;  %v15362_v30 = vshrl.u32 %v15342_v57, 16  ;;  %v15363_v15 = vshrl.u32 %v10743_v11, 16 }
 0x27f   : > { %v2048_v8 = vor.u32 %v2047_v19, %v15361_v63  ;;  %v11248_v47 = vor.u32 %v14881_v62, %v1784_v54  ;;  %v1791_v48 = vrot.slane %v14880_v59, 7  ;;  %v14882_v9 = vshll.u32 %v11032_v31, 16 }
 0x280   : > { %15359 = vst [vmem:[#allocation156_spill] sm:$0xff] %v11229_v33  ;;  %v2050_v43 = vor.u32 %v2049_v52, %v15362_v30  ;;  %v1588_v50 = vrot.slane %v15363_v15, 7  ;;  %v15364_v33 = vld [vmem:[#allocation98_spill] sm:$0xff]  ;;  %v11256_v19 = vsel %vm10020_vm4, 0, %v10926_v39  ;;  %v15367_v52 = vshll.u32 %v10743_v11, 16 }
 0x281   : > { %v14888_v32 = vshll.u32 %v15364_v33, 16  ;;  %15365 = vst [vmem:[#allocation157_spill] sm:$0xff] %v11248_v47  ;;  %15366 = vst [vmem:[#allocation158_spill] sm:$0xff] %v11256_v19  ;;  %v14883_v30 = vshrl.u32 %v11030_v45, 16  ;;  %2662 = vmatmul.mubr.bf16.gmra.mrb[148].mxu1 %v11256_v19  ;;  %v15368_v15 = vshll.u32 %v15355_v18, 16  ;;  %v11269_v62 = vor.u32 %v14882_v9, %v1791_v48 }
 0x282   : > { %v11260_v63 = vor.u32 %v15367_v52, %v1588_v50  ;;  %v14889_v39 = vshrl.u32 %v11076_v51, 16  ;;  %2669 = vmatprep.mubr.bf16.mxu1 %v10571_v6  ;;  %v11275_v50 = vsel %vm10026_vm5, %v2048_v8, 0  ;;  %v11279_v52 = vsel %vm10026_vm5, %v2050_v43, 0 }
 0x283   : > { %v2051_v59 = vrot.slane %v15368_v15, 1  ;;  %15369 = vst [vmem:[#allocation159_spill] sm:$0xff] %v11269_v62  ;;  %15370 = vst [vmem:[#allocation160_spill] sm:$0xff] %v11275_v50  ;;  %v1798_v54 = vrot.slane %v14883_v30, 7  ;;  %v14896_v15 = vshll.u32 %v11030_v45, 16  ;;  %8396 = vmatmul.mubr.bf16.gmra.mrb[148].mxu0 %v11275_v50  ;;  %v2053_v48 = vrot.slane %v14888_v32, 1 }
 0x284   : > { %15371 = vst [vmem:[#allocation161_spill] sm:$0xff] %v11279_v52  ;;  %v1805_v9 = vrot.slane %v14889_v39, 7  ;;  %v14900_v8 = vshll.u32 %v11076_v51, 16  ;;  %v15372_v62 = vshrl.u32 %v10819_v44, 16  ;;  %8399 = vmatprep.mubr.bf16.mxu0 %v11279_v52  ;;  %v14899_v30 = vshrl.u32 %v11074_v24, 16  ;;  %v15377_v52 = vld [vmem:[#allocation91_spill] sm:$0xff] }
 0x285   : > { %v11295_v43 = vor.u32 %v14896_v15, %v1798_v54  ;;  %v15374_v50 = vshrl.u32 %v15355_v18, 16  ;;  %v1705_v32 = vshrl.u32 %v15364_v33, 16  ;;  %v15376_v19 = vshll.u32 %v10819_v44, 16 }
 0x286   : > { %v1595_v47 = vrot.slane %v15372_v62, 7  ;;  %v11303_v39 = vor.u32 %v14900_v8, %v1805_v9  ;;  %v1715_v38 = vshll.u32 %v15377_v52, 16  ;;  %v1812_v54 = vrot.slane %v14899_v30, 7 }
 0x287   : > { %15373 = vst [vmem:[#allocation162_spill] sm:$0xff] %v11295_v43  ;;  %v2052_v6 = vor.u32 %v2051_v59, %v15374_v50  ;;  %v14902_v15 = vshll.u32 %v11074_v24, 16  ;;  %v14901_v43 = vshrl.u32 %v11146_v2, 16  ;;  %v2054_v59 = vor.u32 %v2053_v48, %v1705_v32 }
 0x288   : > { %15375 = vst [vmem:[#allocation163_spill] sm:$0xff] %v11303_v39  ;;  %v11307_v62 = vor.u32 %v15376_v19, %v1595_v47  ;;  %v15378_v50 = vshrl.u32 %v10810_v4, 16  ;;  %v11319_v9 = vsel %vm10020_vm4, 0, %v10971_v55  ;;  %v14903_v30 = vshll.u32 %v11146_v2, 16 }
 0x289   : > { %15379 = vst [vmem:[#allocation164_spill] sm:$0xff] %v11319_v9  ;;  %v11323_v47 = vor.u32 %v14902_v15, %v1812_v54  ;;  %v1819_v19 = vrot.slane %v14901_v43, 7  ;;  %2670 = vmatmul.mubr.bf16.gmra.mrb[152].mxu1 %v11319_v9  ;;  %v15381_v48 = vshll.u32 %v10810_v4, 16  ;;  %v11337_v55 = vsel %vm10026_vm5, %v2052_v6, 0 }
 0x28a   : > { %v1602_v7 = vrot.slane %v15378_v50, 7  ;;  %v14906_v50 = vshrl.u32 %v11126_v46, 16  ;;  %2677 = vmatprep.mubr.bf16.mxu1 %v15292_v56  ;;  %15382 = vst [vmem:[#allocation166_spill] sm:$0xff] %v11337_v55  ;;  %v2055_v54 = vrot.slane %v1715_v38, 1  ;;  %v11346_v15 = vsel %vm10026_vm5, %v2054_v59, 0 }
 0x28b   : > { %15380 = vst [vmem:[#allocation165_spill] sm:$0xff] %v11323_v47  ;;  %v11341_v43 = vor.u32 %v14903_v30, %v1819_v19  ;;  %8400 = vmatmul.mubr.bf16.gmra.mrb[152].mxu0 %v11337_v55  ;;  %15384 = vst [vmem:[#allocation168_spill] sm:$0xff] %v11346_v15  ;;  %v14909_v6 = vshll.u32 %v11126_v46, 16  ;;  %v1712_v39 = vshrl.u32 %v15377_v52, 16  ;;  %v15387_v59 = vshrl.u32 %v10764_v21, 16 }
 0x28c   : > { %v11331_v8 = vor.u32 %v15381_v48, %v1602_v7  ;;  %v15385_v7 = vshll.u32 %v10764_v21, 16  ;;  %v1826_v47 = vrot.slane %v14906_v50, 7  ;;  %8403 = vmatprep.mubr.bf16.mxu0 %v11346_v15  ;;  %v15389_v50 = vshrl.u32 %v15320_v26, 16 }
 0x28d   : > { %15383 = vst [vmem:[#allocation167_spill] sm:$0xff] %v11341_v43  ;;  %v2056_v30 = vor.u32 %v2055_v54, %v1712_v39  ;;  %v15391_v54 = vshll.u32 %v15312_v14, 16  ;;  %v15395_v43 = vshll.u32 %v10858_v13, 16  ;;  %v15401_v9 = vshrl.u32 %v15355_v18, 16 }
 0x28e   : > { %v2057_v48 = vrot.slane %v15385_v7, 1  ;;  %v11357_v19 = vor.u32 %v14909_v6, %v1826_v47  ;;  %v11364_v7 = vsel %vm10020_vm4, 0, %v11010_v37  ;;  %v1672_v15 = vrot.slane %v15389_v50, 7 }
 0x28f   : > { %15388 = vst [vmem:[#allocation170_spill] sm:$0xff] %v11364_v7  ;;  %v11372_v47 = vsel %vm10026_vm5, %v2056_v30, 0  ;;  %v2059_v6 = vrot.slane %v15391_v54, 1  ;;  %v15393_v37 = vshrl.u32 %v15341_v60, 16  ;;  %v15396_v30 = vshll.u32 %v15320_v26, 16 }
 0x290   : > { %15386 = vst [vmem:[#allocation169_spill] sm:$0xff] %v11357_v19  ;;  %v2058_v55 = vor.u32 %v2057_v48, %v15387_v59  ;;  %15390 = vst [vmem:[#allocation171_spill] sm:$0xff] %v11372_v47  ;;  %v15392_v48 = vshrl.u32 %v15327_v34, 16  ;;  %v15397_v54 = vshrl.u32 %v15342_v57, 16  ;;  %v15402_v21 = vshll.u32 %v15342_v57, 16 }
 0x291   : > { %2678 = vmatmul.mubr.bf16.gmra.mrb[156].mxu1 %v11364_v7  ;;  %v1686_v19 = vrot.slane %v15393_v37, 7  ;;  %v11389_v7 = vor.u32 %v15396_v30, %v1672_v15  ;;  %v1707_v30 = vrot.slane %v1705_v32, 7  ;;  %v1714_v52 = vrot.slane %v1712_v39, 7 }
 0x292   : > { %2685 = vmatprep.mubr.bf16.mxu1 %v15305_v20  ;;  %v1679_v59 = vrot.slane %v15392_v48, 7  ;;  %v11383_v50 = vsel %vm10026_vm5, %v2058_v55, 0  ;;  %v2061_v20 = vrot.slane %v15395_v43, 1  ;;  %v1693_v56 = vrot.slane %v15397_v54, 7 }
 0x293   : > { %8404 = vmatmul.mubr.bf16.gmra.mrb[156].mxu0 %v11372_v47  ;;  %15394 = vst [vmem:[#allocation172_spill] sm:$0xff] %v11383_v50  ;;  %v15398_v48 = vshll.u32 %v15327_v34, 16  ;;  %v15399_v47 = vshll.u32 %v15341_v60, 16  ;;  %v1700_v43 = vrot.slane %v15401_v9, 7  ;;  %v15403_v54 = vshrl.u32 %v15312_v14, 16 }
 0x294   : > { %8407 = vmatprep.mubr.bf16.mxu0 %v11383_v50  ;;  %v11406_v15 = vor.u32 %v15402_v21, %v1693_v56  ;;  %v15404_v34 = vshll.u32 %v15355_v18, 16  ;;  %v11420_v57 = vor.u32 %v1715_v38, %v1714_v52  ;;  %v11425_v21 = vsel %vm10020_vm4, 0, %v11057_v41 }
 0x295   : > { %v11396_v37 = vor.u32 %v15398_v48, %v1679_v59  ;;  %v11400_v55 = vor.u32 %v15399_v47, %v1686_v19  ;;  %v2060_v50 = vor.u32 %v2059_v6, %v15403_v54  ;;  %v15405_v48 = vshrl.u32 %v10858_v13, 16  ;;  %v9054_v47 = vld [vmem:[#allocation8 + $0xa8] sm:$0xff]   ;;  %15407 = vst [vmem:[#allocation174_spill] sm:$0xff] %v11425_v21 }
 0x296   : > { %v11412_v59 = vor.u32 %v15404_v34, %v1700_v43  ;;  %8449 = vmatprep.subr.bf16.mxu1 %v9054_v47  ;;  %v15409_v56 = vshll.u32 %v10838_v42, 16  ;;  %v15411_v41 = vshll.u32 %v10911_v49, 16  ;;  %v15412_v39 = vshrl.u32 %v10838_v42, 16 }
 0x297   : > { %15400 = vst [vmem:[#allocation173_spill] sm:$0xff] %v11400_v55  ;;  %v2062_v19 = vor.u32 %v2061_v20, %v15405_v48  ;;  %v15406_v55 = vshll.u32 %v15364_v33, 16  ;;  %v11431_v34 = vsel %vm10026_vm5, %v2060_v50, 0  ;;  %8450 = vmatpush3.bf16.msra.mxu1 %v9054_v47  ;;  %v15413_v6 = vshrl.u32 %v10911_v49, 16 }
 0x298   : > { %15408 = vst [vmem:[#allocation175_spill] sm:$0xff] %v11431_v34  ;;  %v2063_v20 = vrot.slane %v15409_v56, 1  ;;  %v2065_v32 = vrot.slane %v15411_v41, 1  ;;  %v15419_v47 = vshrl.u32 %v10899_v0, 16 }
 0x299   : > { %v11418_v9 = vor.u32 %v15406_v55, %v1707_v30  ;;  %2686 = vmatmul.mubr.bf16.gmra.mrb[160].mxu1 %v11425_v21  ;;  %v11438_v38 = vsel %vm10026_vm5, %v2062_v19, 0  ;;  %v11450_v55 = vsel %vm10020_vm4, 0, %v11115_v53  ;;  %v15416_v30 = vshll.u32 %v10899_v0, 16 }
 0x29a   : > { %2693 = vmatprep.mubr.bf16.mxu1 %v15317_v29  ;;  %15410 = vst [vmem:[#allocation176_spill] sm:$0xff] %v11438_v38  ;;  %v2064_v52 = vor.u32 %v2063_v20, %v15412_v39  ;;  %v2066_v50 = vor.u32 %v2065_v32, %v15413_v6  ;;  %15414 = vst [vmem:[#allocation177_spill] sm:$0xff] %v11450_v55  ;;  %v15418_v53 = vshll.u32 %v10947_v36, 16  ;;  %v15420_v20 = vshrl.u32 %v10947_v36, 16 }
 0x29b   : > { %8408 = vmatmul.mubr.bf16.gmra.mrb[160].mxu0 %v11431_v34  ;;  %v2067_v54 = vrot.slane %v15416_v30, 1  ;;  %v11475_v32 = vsel %vm10020_vm4, 0, %v11159_v40  ;;  %v15425_v40 = vshll.u32 %v10990_v16, 16  ;;  %v15436_v34 = vshrl.u32 %v10986_v35, 16 }
 0x29c   : > { %8411 = vmatprep.mubr.bf16.mxu0 %v11438_v38  ;;  %v11456_v43 = vsel %vm10026_vm5, %v2064_v52, 0  ;;  %v11463_v48 = vsel %vm10026_vm5, %v2066_v50, 0  ;;  %v2069_v19 = vrot.slane %v15418_v53, 1  ;;  %15421 = vst [vmem:[#allocation180_spill] sm:$0xff] %v11475_v32  ;;  %v15423_v52 = vshll.u32 %v10940_v25, 16 }
 0x29d   : > { %15415 = vst [vmem:[#allocation178_spill] sm:$0xff] %v11456_v43  ;;  %15417 = vst [vmem:[#allocation179_spill] sm:$0xff] %v11463_v48  ;;  %v2068_v56 = vor.u32 %v2067_v54, %v15419_v47  ;;  %v2073_v30 = vrot.slane %v15425_v40, 1  ;;  %v11502_v40 = vsel %vm10020_vm4, 0, %v11187_v58 }
 0x29e   : > { %v2070_v41 = vor.u32 %v2069_v19, %v15420_v20  ;;  %v2071_v6 = vrot.slane %v15423_v52, 1  ;;  %15429 = vst [vmem:[#allocation184_spill] sm:$0xff] %v11502_v40 }
 0x29f   : > { %v11481_v39 = vsel %vm10026_vm5, %v2068_v56, 0  ;;  %v15426_v56 = vshrl.u32 %v10940_v25, 16 }
 0x2a0   : > { %15422 = vst [vmem:[#allocation181_spill] sm:$0xff] %v11481_v39  ;;  %v11488_v50 = vsel %vm10026_vm5, %v2070_v41, 0 }
 0x2a1   : > { %2694 = vmatmul.mubr.bf16.gmra.mrb[164].mxu1 %v11450_v55  ;;  %15424 = vst [vmem:[#allocation182_spill] sm:$0xff] %v11488_v50  ;;  %v2072_v20 = vor.u32 %v2071_v6, %v15426_v56 }
 0x2a2   : > { %2701 = vmatprep.mubr.bf16.mxu1 %v15331_v27 }
 0x2a3   : > { %8412 = vmatmul.mubr.bf16.gmra.mrb[164].mxu0 %v11456_v43  ;;  %v11510_v6 = vsel %vm10026_vm5, %v2072_v20, 0 }
 0x2a4   : > { %8415 = vmatprep.mubr.bf16.mxu0 %v11463_v48  ;;  %15431 = vst [vmem:[#allocation186_spill] sm:$0xff] %v11510_v6 }
 0x2a8   : > { %v2495_v54 = vpop.f32.mrb[64].mxu1 }
 0x2a9   : > { %2702 = vmatmul.mubr.bf16.gmra.mrb[168].mxu1 %v11475_v32  ;;  %v2497_v53 = vpop.f32.mrb[65].mxu1 }
 0x2aa   : > { %2709 = vmatprep.mubr.bf16.mxu1 %v15344_v3  ;;  %v8313_v19 = vpop.f32.mrb[64].mxu0  ;;  %v2498_v47 = vpop.f32.mrb[66].mxu1 }
 0x2ab   : > { %8416 = vmatmul.mubr.bf16.gmra.mrb[168].mxu0 %v11481_v39  ;;  %v3040_v48 = vpop.f32.mrb[65].mxu0  ;;  %v2500_v52 = vpop.f32.mrb[67].mxu1  ;;  %v15427_v39 = vshrl.u32 %v10990_v16, 16 }
 0x2ac   : > { %8419 = vmatprep.mubr.bf16.mxu0 %v11488_v50  ;;  %v11497_v38 = vadd.f32 %v3040_v48, %v2495_v54  ;;  %v8314_v41 = vpop.f32.mrb[66].mxu0  ;;  %v15432_v48 = vshll.u32 %v10986_v35, 16 }
 0x2ad   : > { %v2074_v43 = vor.u32 %v2073_v30, %v15427_v39  ;;  %v3043_v50 = vpop.f32.mrb[67].mxu0  ;;  %v15434_v30 = vshll.u32 %v11032_v31, 16 }
 0x2ae   : > { %15428 = vst [vmem:[#allocation183_spill] sm:$0xff] %v11497_v38  ;;  %v11505_v53 = vadd.f32 %v3043_v50, %v2498_v47  ;;  %v2075_v39 = vrot.slane %v15432_v48, 1 }
 0x2af   : > { %v11517_v58 = vsel %vm10026_vm5, %v2074_v43, 0  ;;  %v2077_v54 = vrot.slane %v15434_v30, 1  ;;  %v15438_v43 = vshrl.u32 %v11032_v31, 16  ;;  %v11533_v30 = vsel %vm10020_vm4, 0, %v11233_v61 }
 0x2b0   : > { %15430 = vst [vmem:[#allocation185_spill] sm:$0xff] %v11505_v53  ;;  %15433 = vst [vmem:[#allocation187_spill] sm:$0xff] %v11517_v58  ;;  %v2503_v50 = vpop.f32.mrb[68].mxu1  ;;  %v2076_v48 = vor.u32 %v2075_v39, %v15436_v34  ;;  %v15443_v61 = vshll.u32 %v11076_v51, 16 }
 0x2b1   : > { %2710 = vmatmul.mubr.bf16.gmra.mrb[172].mxu1 %v11502_v40  ;;  %v11522_v47 = vadd.f32 %v8313_v19, %v2503_v50  ;;  %v2505_v56 = vpop.f32.mrb[69].mxu1  ;;  %v2078_v3 = vor.u32 %v2077_v54, %v15438_v43  ;;  %15439 = vst [vmem:[#allocation190_spill] sm:$0xff] %v11533_v30  ;;  %v15445_v43 = vshrl.u32 %v11030_v45, 16 }
 0x2b2   : > { %2717 = vmatprep.mubr.bf16.mxu1 %v10754_v17  ;;  %v8317_v20 = vpop.f32.mrb[68].mxu0  ;;  %v2506_v52 = vpop.f32.mrb[70].mxu1  ;;  %v11539_v34 = vsel %vm10026_vm5, %v2076_v48, 0  ;;  %v2081_v54 = vrot.slane %v15443_v61, 1  ;;  %v11562_v61 = vsel %vm10020_vm4, 0, %v11260_v63  ;;  %v15452_v63 = vshll.u32 %v11146_v2, 16 }
 0x2b3   : > { %8420 = vmatmul.mubr.bf16.gmra.mrb[172].mxu0 %v11510_v6  ;;  %15435 = vst [vmem:[#allocation188_spill] sm:$0xff] %v11522_v47  ;;  %v11526_v17 = vadd.f32 %v8314_v41, %v2506_v52  ;;  %v3056_v6 = vpop.f32.mrb[69].mxu0  ;;  %v2508_v40 = vpop.f32.mrb[71].mxu1  ;;  %15440 = vst [vmem:[#allocation191_spill] sm:$0xff] %v11539_v34  ;;  %v15441_v41 = vshll.u32 %v11030_v45, 16  ;;  %v11546_v39 = vsel %vm10026_vm5, %v2078_v3, 0 }
 0x2b4   : > { %8423 = vmatprep.mubr.bf16.mxu0 %v11517_v58  ;;  %v8318_v32 = vpop.f32.mrb[70].mxu0  ;;  %15442 = vst [vmem:[#allocation192_spill] sm:$0xff] %v11546_v39  ;;  %v15447_v3 = vshrl.u32 %v11076_v51, 16  ;;  %15448 = vst [vmem:[#allocation195_spill] sm:$0xff] %v11562_v61 }
 0x2b5   : > { %15437 = vst [vmem:[#allocation189_spill] sm:$0xff] %v11526_v17  ;;  %v3059_v19 = vpop.f32.mrb[71].mxu0  ;;  %v2079_v40 = vrot.slane %v15441_v41, 1 }
 0x2b7   : > { %v2080_v58 = vor.u32 %v2079_v40, %v15445_v43 }
 0x2b8   : > { %v2511_v50 = vpop.f32.mrb[72].mxu1 }
 0x2b9   : > { %2718 = vmatmul.mubr.bf16.gmra.mrb[176].mxu1 %v11533_v30  ;;  %v11551_v56 = vadd.f32 %v3056_v6, %v2511_v50  ;;  %v2513_v52 = vpop.f32.mrb[73].mxu1  ;;  %v2082_v30 = vor.u32 %v2081_v54, %v15447_v3 }
 0x2ba   : > { %2725 = vmatprep.mubr.bf16.mxu1 %v10743_v11  ;;  %v2514_v48 = vpop.f32.mrb[74].mxu1  ;;  %v8321_v41 = vpop.f32.mrb[72].mxu0  ;;  %v2085_v52 = vrot.slane %v15452_v63, 1  ;;  %v11593_v63 = vsel %vm10020_vm4, 0, %v11307_v62 }
 0x2bb   : > { %8424 = vmatmul.mubr.bf16.gmra.mrb[176].mxu0 %v11539_v34  ;;  %15444 = vst [vmem:[#allocation193_spill] sm:$0xff] %v11551_v56  ;;  %v11555_v11 = vadd.f32 %v3059_v19, %v2514_v48  ;;  %v2516_v34 = vpop.f32.mrb[75].mxu1  ;;  %v3072_v17 = vpop.f32.mrb[73].mxu0  ;;  %v11568_v19 = vsel %vm10026_vm5, %v2080_v58, 0  ;;  %v11575_v54 = vsel %vm10026_vm5, %v2082_v30, 0  ;;  %v15456_v30 = vshrl.u32 %v11146_v2, 16 }
 0x2bc   : > { %8427 = vmatprep.mubr.bf16.mxu0 %v11546_v39  ;;  %v8322_v6 = vpop.f32.mrb[74].mxu0  ;;  %15449 = vst [vmem:[#allocation196_spill] sm:$0xff] %v11568_v19  ;;  %v15450_v34 = vshll.u32 %v11074_v24, 16  ;;  %15451 = vst [vmem:[#allocation197_spill] sm:$0xff] %v11575_v54  ;;  %v15454_v39 = vshrl.u32 %v11074_v24, 16 }
 0x2bd   : > { %15446 = vst [vmem:[#allocation194_spill] sm:$0xff] %v11555_v11  ;;  %v3075_v50 = vpop.f32.mrb[75].mxu0  ;;  %v2086_v11 = vor.u32 %v2085_v52, %v15456_v30  ;;  %15457 = vst [vmem:[#allocation200_spill] sm:$0xff] %v11593_v63  ;;  %v15462_v30 = vshrl.u32 %v11126_v46, 16 }
 0x2be   : > { %v2083_v40 = vrot.slane %v15450_v34, 1 }
 0x2bf   : > { %v11608_v62 = vsel %vm10026_vm5, %v2086_v11, 0  ;;  %v11624_v11 = vsel %vm10020_vm4, 0, %v11331_v8  ;;  %v15467_v8 = vshll.u32 %v10008_v5, 16 }
 0x2c0   : > { %v2519_v48 = vpop.f32.mrb[76].mxu1  ;;  %15460 = vst [vmem:[#allocation202_spill] sm:$0xff] %v11608_v62  ;;  %15464 = vst [vmem:[#allocation205_spill] sm:$0xff] %v11624_v11 }
 0x2c1   : > { %2726 = vmatmul.mubr.bf16.gmra.mrb[180].mxu1 %v11562_v61  ;;  %v11580_v43 = vadd.f32 %v8317_v20, %v2519_v48  ;;  %v2521_v3 = vpop.f32.mrb[77].mxu1 }
 0x2c2   : > { %2733 = vmatprep.mubr.bf16.mxu1 %v10819_v44  ;;  %v2522_v58 = vpop.f32.mrb[78].mxu1  ;;  %v2084_v44 = vor.u32 %v2083_v40, %v15454_v39  ;;  %v11584_v34 = vpop.f32.mrb[76].mxu0  ;;  %v15459_v39 = vshll.u32 %v11126_v46, 16 }
 0x2c3   : > { %8428 = vmatmul.mubr.bf16.gmra.mrb[180].mxu0 %v11568_v19  ;;  %15453 = vst [vmem:[#allocation198_spill] sm:$0xff] %v11580_v43  ;;  %v11586_v19 = vadd.f32 %v8318_v32, %v2522_v58  ;;  %v2524_v61 = vpop.f32.mrb[79].mxu1  ;;  %v3088_v56 = vpop.f32.mrb[77].mxu0 }
 0x2c4   : > { %8431 = vmatprep.mubr.bf16.mxu0 %v11575_v54  ;;  %v11595_v20 = vpop.f32.mrb[78].mxu0  ;;  %v11601_v32 = vsel %vm10026_vm5, %v2084_v44, 0  ;;  %v2087_v61 = vrot.slane %v15459_v39, 1 }
 0x2c5   : > { %15455 = vst [vmem:[#allocation199_spill] sm:$0xff] %v11586_v19  ;;  %v3091_v48 = vpop.f32.mrb[79].mxu0  ;;  %15458 = vst [vmem:[#allocation201_spill] sm:$0xff] %v11601_v32 }
 0x2c6   : > { %v2088_v44 = vor.u32 %v2087_v61, %v15462_v30 }
 0x2c8   : > { %v2527_v40 = vpop.f32.mrb[80].mxu1 }
 0x2c9   : > { %2734 = vmatmul.mubr.bf16.gmra.mrb[184].mxu1 %v11593_v63  ;;  %v11611_v52 = vadd.f32 %v3072_v17, %v2527_v40  ;;  %v2529_v3 = vpop.f32.mrb[81].mxu1  ;;  %v15465_v17 = vshrl.u32 %v10008_v5, 16 }
 0x2ca   : > { %2741 = vmatprep.mubr.bf16.mxu1 %v10810_v4  ;;  %v2530_v58 = vpop.f32.mrb[82].mxu1  ;;  %v11615_v4 = vpop.f32.mrb[80].mxu0 }
 0x2cb   : > { %8432 = vmatmul.mubr.bf16.gmra.mrb[184].mxu0 %v11601_v32  ;;  %15461 = vst [vmem:[#allocation203_spill] sm:$0xff] %v11611_v52  ;;  %v11617_v54 = vadd.f32 %v3075_v50, %v2530_v58  ;;  %v2532_v39 = vpop.f32.mrb[83].mxu1  ;;  %v11619_v32 = vpop.f32.mrb[81].mxu0  ;;  %v1609_v40 = vrot.slane %v15465_v17, 7  ;;  %v11636_v50 = vsel %vm10026_vm5, %v2088_v44, 0 }
 0x2cc   : > { %8435 = vmatprep.mubr.bf16.mxu0 %v11608_v62  ;;  %v11628_v3 = vpop.f32.mrb[82].mxu0  ;;  %15466 = vst [vmem:[#allocation206_spill] sm:$0xff] %v11636_v50 }
 0x2cd   : > { %15463 = vst [vmem:[#allocation204_spill] sm:$0xff] %v11617_v54  ;;  %v11631_v61 = vpop.f32.mrb[83].mxu0  ;;  %v1612_v30 = vor.u32 %v15467_v8, %v1609_v40 }
 0x2cf   : > { %v11652_v44 = vsel %vm10020_vm4, 0, %v1612_v30 }
 0x2d0   : > { %v2535_v58 = vpop.f32.mrb[84].mxu1  ;;  %15470 = vst [vmem:[#allocation209_spill] sm:$0xff] %v11652_v44 }
 0x2d1   : > { %2742 = vmatmul.mubr.bf16.gmra.mrb[188].mxu1 %v11624_v11  ;;  %v11642_v39 = vadd.f32 %v8321_v41, %v2535_v58  ;;  %v2537_v17 = vpop.f32.mrb[85].mxu1  ;;  %v9055_v58 = vld [vmem:[#allocation8 + $0xb0] sm:$0xff]  }
 0x2d2   : > { %2749 = vmatprep.mubr.bf16.mxu1 %v10008_v5  ;;  %v2538_v11 = vpop.f32.mrb[86].mxu1  ;;  %v11644_v62 = vpop.f32.mrb[84].mxu0  ;;  %8451 = vmatprep.subr.bf16.mxu1 %v9055_v58 }
 0x2d3   : > { %8436 = vmatmul.mubr.bf16.gmra.mrb[188].mxu0 %v11636_v50  ;;  %15468 = vst [vmem:[#allocation207_spill] sm:$0xff] %v11642_v39  ;;  %v11646_v63 = vadd.f32 %v8322_v6, %v2538_v11  ;;  %v2540_v54 = vpop.f32.mrb[87].mxu1  ;;  %v11648_v28 = vpop.f32.mrb[85].mxu0  ;;  %v15471_v50 = vshrl.u32 %v10004_v1, 16  ;;  %v15472_v6 = vld [vmem:[#allocation21_spill] sm:$0xff]  ;;  %v15473_v11 = vshll.u32 %v10004_v1, 16  ;;  %8452 = vmatpush3.bf16.msra.mxu1 %v9055_v58 }
 0x2d4   : > { %3727 = vmatprep.mubr.bf16.mxu0 %v15182_v10  ;;  %v11656_v8 = vpop.f32.mrb[86].mxu0  ;;  %v15480_v58 = vshll.u32 %v10084_v22, 16 }
 0x2d5   : > { %15469 = vst [vmem:[#allocation208_spill] sm:$0xff] %v11646_v63  ;;  %v1616_v40 = vrot.slane %v15471_v50, 7  ;;  %v11659_v41 = vpop.f32.mrb[87].mxu0 }
 0x2d7   : > { %v1619_v30 = vor.u32 %v15473_v11, %v1616_v40 }
 0x2d8   : > { %v2543_v54 = vpop.f32.mrb[88].mxu1 }
 0x2d9   : > { %2750 = vmatmul.mubr.bf16.gmra.mrb[192].mxu1 %v11652_v44  ;;  %v11666_v50 = vadd.f32 %v3088_v56, %v2543_v54  ;;  %v2545_v17 = vpop.f32.mrb[89].mxu1  ;;  %v11676_v46 = vsel %vm10020_vm4, 0, %v1619_v30 }
 0x2da   : > { %2757 = vmatprep.mubr.bf16.mxu1 %v10004_v1  ;;  %v2546_v5 = vpop.f32.mrb[90].mxu1  ;;  %v11668_v44 = vpop.f32.mrb[88].mxu0  ;;  %15476 = vst [vmem:[#allocation211_spill] sm:$0xff] %v11676_v46 }
 0x2db   : > { %3728 = vmatmul.mubr.bf16.vlgmr.msra.gmra.mrb[192].mxu0 %v15182_v10  ;;  %15474 = vst [vmem:[#allocation21_spill] sm:$0xff] %v11666_v50  ;;  %v11670_v63 = vadd.f32 %v3091_v48, %v2546_v5  ;;  %v2548_v39 = vpop.f32.mrb[91].mxu1  ;;  %v11672_v52 = vpop.f32.mrb[89].mxu0  ;;  %v15478_v5 = vld [vmem:[#allocation26_spill] sm:$0xff]  ;;  %v15479_v48 = vld [vmem:[#allocation20_spill] sm:$0xff] }
 0x2dc   : > { %3735 = vmatprep.mubr.bf16.mxu0 %v15472_v6  ;;  %v15477_v6 = vshrl.u32 %v10084_v22, 16  ;;  %v11680_v40 = vpop.f32.mrb[90].mxu0 }
 0x2dd   : > { %15475 = vst [vmem:[#allocation210_spill] sm:$0xff] %v11670_v63  ;;  %v11683_v56 = vpop.f32.mrb[91].mxu0 }
 0x2de   : > { %v1623_v1 = vrot.slane %v15477_v6, 7 }
 0x2e0   : > { %v2551_v39 = vpop.f32.mrb[92].mxu1  ;;  %v1626_v54 = vor.u32 %v15480_v58, %v1623_v1 }
 0x2e1   : > { %2758 = vmatmul.mubr.bf16.gmra.mrb[196].mxu1 %v11676_v46  ;;  %v11691_v11 = vadd.f32 %v11584_v34, %v2551_v39  ;;  %v2553_v30 = vpop.f32.mrb[93].mxu1 }
 0x2e2   : > { %2765 = vmatprep.mubr.bf16.mxu1 %v10084_v22  ;;  %v2554_v17 = vpop.f32.mrb[94].mxu1  ;;  %v11693_v6 = vpop.f32.mrb[92].mxu0  ;;  %v15487_v30 = vshll.u32 %v10066_v12, 16 }
 0x2e3   : > { %3736 = vmatmul.mubr.bf16.gmra.mrb[196].mxu0 %v15478_v5  ;;  %15481 = vst [vmem:[#allocation26_spill] sm:$0xff] %v11691_v11  ;;  %v11696_v46 = vadd.f32 %v11595_v20, %v2554_v17  ;;  %v2556_v63 = vpop.f32.mrb[95].mxu1  ;;  %v11698_v50 = vpop.f32.mrb[93].mxu0  ;;  %v11702_v5 = vsel %vm10020_vm4, 0, %v1626_v54  ;;  %v15485_v20 = vld [vmem:[#allocation31_spill] sm:$0xff] }
 0x2e4   : > { %3743 = vmatprep.mubr.bf16.mxu0 %v15479_v48  ;;  %15483 = vst [vmem:[#allocation213_spill] sm:$0xff] %v11702_v5  ;;  %v15484_v48 = vshrl.u32 %v10066_v12, 16  ;;  %v11706_v58 = vpop.f32.mrb[94].mxu0  ;;  %v15486_v63 = vld [vmem:[#allocation25_spill] sm:$0xff] }
 0x2e5   : > { %15482 = vst [vmem:[#allocation212_spill] sm:$0xff] %v11696_v46  ;;  %v11709_v34 = vpop.f32.mrb[95].mxu0 }
 0x2e6   : > { %v1630_v1 = vrot.slane %v15484_v48, 7 }
 0x2e8   : > { %v2559_v39 = vpop.f32.mrb[96].mxu1  ;;  %v1633_v54 = vor.u32 %v15487_v30, %v1630_v1 }
 0x2e9   : > { %2766 = vmatmul.mubr.bf16.gmra.mrb[200].mxu1 %v11702_v5  ;;  %v11717_v17 = vadd.f32 %v11619_v32, %v2559_v39  ;;  %v2561_v48 = vpop.f32.mrb[97].mxu1 }
 0x2ea   : > { %2773 = vmatprep.mubr.bf16.mxu1 %v10066_v12  ;;  %v2562_v22 = vpop.f32.mrb[98].mxu1  ;;  %v11719_v46 = vpop.f32.mrb[96].mxu0 }
 0x2eb   : > { %3744 = vmatmul.mubr.bf16.gmra.mrb[200].mxu0 %v15485_v20  ;;  %15488 = vst [vmem:[#allocation214_spill] sm:$0xff] %v11717_v17  ;;  %v11722_v5 = vadd.f32 %v11631_v61, %v2562_v22  ;;  %v2564_v11 = vpop.f32.mrb[99].mxu1  ;;  %v11724_v19 = vpop.f32.mrb[97].mxu0  ;;  %v15491_v20 = vld [vmem:[#allocation42_spill] sm:$0xff]  ;;  %v15493_v22 = vld [vmem:[#allocation37_spill] sm:$0xff]  ;;  %v15494_v61 = vld [vmem:[#allocation24_spill] sm:$0xff] }
 0x2ec   : > { %3751 = vmatprep.mubr.bf16.mxu0 %v15486_v63  ;;  %v11728_v63 = vsel %vm10020_vm4, 0, %v1633_v54  ;;  %v15492_v12 = vshrl.u32 %v15491_v20, 16  ;;  %v11732_v30 = vpop.f32.mrb[98].mxu0  ;;  %v15495_v39 = vshll.u32 %v15491_v20, 16 }
 0x2ed   : > { %15489 = vst [vmem:[#allocation215_spill] sm:$0xff] %v11722_v5  ;;  %15490 = vst [vmem:[#allocation216_spill] sm:$0xff] %v11728_v63  ;;  %v11735_v32 = vpop.f32.mrb[99].mxu0 }
 0x2ee   : > { %v1637_v1 = vrot.slane %v15492_v12, 7 }
 0x2f0   : > { %v2567_v11 = vpop.f32.mrb[100].mxu1  ;;  %v1640_v54 = vor.u32 %v15495_v39, %v1637_v1 }
 0x2f1   : > { %2774 = vmatmul.mubr.bf16.gmra.mrb[204].mxu1 %v11728_v63  ;;  %v11743_v48 = vadd.f32 %v11615_v4, %v2567_v11  ;;  %v2569_v12 = vpop.f32.mrb[101].mxu1 }
 0x2f2   : > { %2781 = vmatprep.mubr.bf16.mxu1 %v15491_v20  ;;  %v2570_v5 = vpop.f32.mrb[102].mxu1 }
 0x2f3   : > { %3752 = vmatmul.mubr.bf16.gmra.mrb[204].mxu0 %v15493_v22  ;;  %15496 = vst [vmem:[#allocation217_spill] sm:$0xff] %v11743_v48  ;;  %v11745_v17 = vpop.f32.mrb[100].mxu0  ;;  %v11748_v63 = vadd.f32 %v11628_v3, %v2570_v5  ;;  %v2572_v43 = vpop.f32.mrb[103].mxu1  ;;  %v15499_v22 = vld [vmem:[#allocation41_spill] sm:$0xff]  ;;  %v15501_v3 = vld [vmem:[#allocation44_spill] sm:$0xff] }
 0x2f4   : > { %3759 = vmatprep.mubr.bf16.mxu0 %v15494_v61  ;;  %v11750_v2 = vpop.f32.mrb[101].mxu0  ;;  %v11754_v61 = vsel %vm10020_vm4, 0, %v1640_v54  ;;  %v15500_v20 = vshrl.u32 %v15499_v22, 16  ;;  %v15502_v43 = vld [vmem:[#allocation32_spill] sm:$0xff]  ;;  %v15503_v11 = vshll.u32 %v15499_v22, 16 }
 0x2f5   : > { %15497 = vst [vmem:[#allocation218_spill] sm:$0xff] %v11748_v63  ;;  %15498 = vst [vmem:[#allocation219_spill] sm:$0xff] %v11754_v61  ;;  %v11758_v39 = vpop.f32.mrb[102].mxu0 }
 0x2f6   : > { %v1644_v1 = vrot.slane %v15500_v20, 7  ;;  %v11761_v4 = vpop.f32.mrb[103].mxu0 }
 0x2f8   : > { %v2575_v5 = vpop.f32.mrb[104].mxu1  ;;  %v1647_v54 = vor.u32 %v15503_v11, %v1644_v1 }
 0x2f9   : > { %2782 = vmatmul.mubr.bf16.gmra.mrb[208].mxu1 %v11754_v61  ;;  %v11769_v12 = vadd.f32 %v11648_v28, %v2575_v5  ;;  %v2577_v20 = vpop.f32.mrb[105].mxu1 }
 0x2fa   : > { %2789 = vmatprep.mubr.bf16.mxu1 %v15499_v22  ;;  %v2578_v63 = vpop.f32.mrb[106].mxu1 }
 0x2fb   : > { %3760 = vmatmul.mubr.bf16.gmra.mrb[208].mxu0 %v15501_v3  ;;  %15504 = vst [vmem:[#allocation220_spill] sm:$0xff] %v11769_v12  ;;  %v11771_v48 = vpop.f32.mrb[104].mxu0  ;;  %v11774_v61 = vadd.f32 %v11659_v41, %v2578_v63  ;;  %v2580_v24 = vpop.f32.mrb[107].mxu1  ;;  %v15507_v3 = vld [vmem:[#allocation54_spill] sm:$0xff]  ;;  %v15509_v41 = vld [vmem:[#allocation49_spill] sm:$0xff] }
 0x2fc   : > { %3767 = vmatprep.mubr.bf16.mxu0 %v15502_v43  ;;  %v11776_v47 = vpop.f32.mrb[105].mxu0  ;;  %v11780_v43 = vsel %vm10020_vm4, 0, %v1647_v54  ;;  %v15508_v22 = vshrl.u32 %v15507_v3, 16  ;;  %v15510_v24 = vld [vmem:[#allocation30_spill] sm:$0xff]  ;;  %v15511_v5 = vshll.u32 %v15507_v3, 16 }
 0x2fd   : > { %15505 = vst [vmem:[#allocation221_spill] sm:$0xff] %v11774_v61  ;;  %15506 = vst [vmem:[#allocation222_spill] sm:$0xff] %v11780_v43  ;;  %v11784_v11 = vpop.f32.mrb[106].mxu0 }
 0x2fe   : > { %v1651_v1 = vrot.slane %v15508_v22, 7  ;;  %v11787_v28 = vpop.f32.mrb[107].mxu0 }
 0x300   : > { %v2583_v63 = vpop.f32.mrb[108].mxu1  ;;  %v1654_v54 = vor.u32 %v15511_v5, %v1651_v1 }
 0x301   : > { %2790 = vmatmul.mubr.bf16.gmra.mrb[212].mxu1 %v11780_v43  ;;  %v11795_v20 = vadd.f32 %v11644_v62, %v2583_v63  ;;  %v2585_v22 = vpop.f32.mrb[109].mxu1 }
 0x302   : > { %2797 = vmatprep.mubr.bf16.mxu1 %v15507_v3  ;;  %v2586_v61 = vpop.f32.mrb[110].mxu1 }
 0x303   : > { %3768 = vmatmul.mubr.bf16.gmra.mrb[212].mxu0 %v15509_v41  ;;  %15512 = vst [vmem:[#allocation223_spill] sm:$0xff] %v11795_v20  ;;  %v11797_v12 = vpop.f32.mrb[108].mxu0  ;;  %v11800_v43 = vadd.f32 %v11656_v8, %v2586_v61  ;;  %v2588_v51 = vpop.f32.mrb[111].mxu1  ;;  %v15515_v41 = vld [vmem:[#allocation50_spill] sm:$0xff]  ;;  %v15517_v8 = vld [vmem:[#allocation55_spill] sm:$0xff] }
 0x304   : > { %3775 = vmatprep.mubr.bf16.mxu0 %v15510_v24  ;;  %v11802_v53 = vpop.f32.mrb[109].mxu0  ;;  %v11806_v24 = vsel %vm10020_vm4, 0, %v1654_v54  ;;  %v15516_v3 = vshrl.u32 %v15515_v41, 16  ;;  %v15518_v51 = vld [vmem:[#allocation38_spill] sm:$0xff]  ;;  %v15519_v63 = vshll.u32 %v15515_v41, 16 }
 0x305   : > { %15513 = vst [vmem:[#allocation224_spill] sm:$0xff] %v11800_v43  ;;  %15514 = vst [vmem:[#allocation225_spill] sm:$0xff] %v11806_v24  ;;  %v11810_v5 = vpop.f32.mrb[110].mxu0 }
 0x306   : > { %v1658_v1 = vrot.slane %v15516_v3, 7  ;;  %v11813_v62 = vpop.f32.mrb[111].mxu0 }
 0x308   : > { %v2591_v61 = vpop.f32.mrb[112].mxu1  ;;  %v1661_v54 = vor.u32 %v15519_v63, %v1658_v1 }
 0x309   : > { %2798 = vmatmul.mubr.bf16.gmra.mrb[216].mxu1 %v11806_v24  ;;  %v11821_v22 = vadd.f32 %v11672_v52, %v2591_v61  ;;  %v2593_v3 = vpop.f32.mrb[113].mxu1 }
 0x30a   : > { %2805 = vmatprep.mubr.bf16.mxu1 %v15515_v41  ;;  %v2594_v43 = vpop.f32.mrb[114].mxu1 }
 0x30b   : > { %3776 = vmatmul.mubr.bf16.gmra.mrb[216].mxu0 %v15517_v8  ;;  %15520 = vst [vmem:[#allocation226_spill] sm:$0xff] %v11821_v22  ;;  %v11823_v20 = vpop.f32.mrb[112].mxu0  ;;  %v11826_v24 = vadd.f32 %v11683_v56, %v2594_v43  ;;  %v2596_v38 = vpop.f32.mrb[115].mxu1  ;;  %v15523_v8 = vld [vmem:[#allocation66_spill] sm:$0xff] }
 0x30c   : > { %3783 = vmatprep.mubr.bf16.mxu0 %v15518_v51  ;;  %v11828_v27 = vpop.f32.mrb[113].mxu0  ;;  %v11832_v51 = vsel %vm10020_vm4, 0, %v1661_v54  ;;  %v15524_v41 = vshrl.u32 %v15523_v8, 16  ;;  %v15525_v56 = vld [vmem:[#allocation62_spill] sm:$0xff]  ;;  %v15526_v38 = vld [vmem:[#allocation36_spill] sm:$0xff]  ;;  %v15527_v61 = vshll.u32 %v15523_v8, 16 }
 0x30d   : > { %15521 = vst [vmem:[#allocation227_spill] sm:$0xff] %v11826_v24  ;;  %15522 = vst [vmem:[#allocation228_spill] sm:$0xff] %v11832_v51  ;;  %v11836_v63 = vpop.f32.mrb[114].mxu0 }
 0x30e   : > { %v1665_v1 = vrot.slane %v15524_v41, 7  ;;  %v11839_v52 = vpop.f32.mrb[115].mxu0 }
 0x310   : > { %v2599_v43 = vpop.f32.mrb[116].mxu1  ;;  %v1668_v54 = vor.u32 %v15527_v61, %v1665_v1  ;;  %v9056_v1 = vld [vmem:[#allocation8 + $0xb8] sm:$0xff]  }
 0x311   : > { %2806 = vmatmul.mubr.bf16.gmra.mrb[220].mxu1 %v11832_v51  ;;  %v11847_v3 = vadd.f32 %v11668_v44, %v2599_v43  ;;  %v2601_v41 = vpop.f32.mrb[117].mxu1  ;;  %v15531_v43 = vld [vmem:[#allocation70_spill] sm:$0xff]  ;;  %8453 = vmatprep.subr.bf16.mxu1 %v9056_v1 }
 0x312   : > { %2813 = vmatprep.mubr.bf16.mxu1 %v15523_v8  ;;  %v2602_v24 = vpop.f32.mrb[118].mxu1  ;;  %8454 = vmatpush3.bf16.msra.mxu1 %v9056_v1 }
 0x313   : > { %3784 = vmatmul.mubr.bf16.gmra.mrb[220].mxu0 %v15525_v56  ;;  %15528 = vst [vmem:[#allocation229_spill] sm:$0xff] %v11847_v3  ;;  %v11852_v51 = vadd.f32 %v11680_v40, %v2602_v24  ;;  %v2604_v55 = vpop.f32.mrb[119].mxu1  ;;  %v15532_v40 = vld [vmem:[#allocation45_spill] sm:$0xff]  ;;  %4978 = vmatprep.subr.bf16.mxu1 %v15182_v10 }
 0x314   : > { %3791 = vmatprep.mubr.bf16.mxu0 %v15526_v38  ;;  %v11849_v22 = vpop.f32.mrb[116].mxu0  ;;  %v11858_v38 = vsel %vm10020_vm4, 0, %v1668_v54 }
 0x315   : > { %15529 = vst [vmem:[#allocation230_spill] sm:$0xff] %v11852_v51  ;;  %v11854_v45 = vpop.f32.mrb[117].mxu0  ;;  %15530 = vst [vmem:[#allocation231_spill] sm:$0xff] %v11858_v38 }
 0x316   : > { %v11860_v56 = vpop.f32.mrb[118].mxu0 }
 0x317   : > { %v11863_v44 = vpop.f32.mrb[119].mxu0 }
 0x318   : > { %v2607_v55 = vpop.f32.mrb[120].mxu1 }
 0x319   : > { %2814 = vmatmul.mubr.bf16.gmra.mrb[224].mxu1 %v11858_v38  ;;  %v11869_v24 = vadd.f32 %v11698_v50, %v2607_v55  ;;  %v2609_v61 = vpop.f32.mrb[121].mxu1  ;;  %v15536_v55 = vld [vmem:[#allocation73_spill] sm:$0xff] }
 0x31a   : > { %2821 = vmatprep.mubr.bf16.mxu1 %v15320_v26  ;;  %v2610_v54 = vpop.f32.mrb[122].mxu1  ;;  %v15537_v61 = vld [vmem:[#allocation75_spill] sm:$0xff] }
 0x31b   : > { %3792 = vmatmul.mubr.bf16.gmra.mrb[224].mxu0 %v15531_v43  ;;  %15533 = vst [vmem:[#allocation232_spill] sm:$0xff] %v11869_v24  ;;  %v11875_v38 = vadd.f32 %v11709_v34, %v2610_v54  ;;  %v2612_v26 = vpop.f32.mrb[123].mxu1  ;;  %v15538_v34 = vld [vmem:[#allocation43_spill] sm:$0xff] }
 0x31c   : > { %3799 = vmatprep.mubr.bf16.mxu0 %v15532_v40  ;;  %v11872_v41 = vpop.f32.mrb[120].mxu0  ;;  %v11882_v40 = vsel %vm10020_vm4, 0, %v11389_v7 }
 0x31d   : > { %15534 = vst [vmem:[#allocation233_spill] sm:$0xff] %v11875_v38  ;;  %v11877_v8 = vpop.f32.mrb[121].mxu0  ;;  %15535 = vst [vmem:[#allocation234_spill] sm:$0xff] %v11882_v40 }
 0x31e   : > { %v11884_v1 = vpop.f32.mrb[122].mxu0 }
 0x31f   : > { %v11887_v50 = vpop.f32.mrb[123].mxu0 }
 0x320   : > { %v2615_v26 = vpop.f32.mrb[124].mxu1 }
 0x321   : > { %2822 = vmatmul.mubr.bf16.gmra.mrb[228].mxu1 %v11882_v40  ;;  %v11893_v54 = vadd.f32 %v11693_v6, %v2615_v26  ;;  %v2617_v43 = vpop.f32.mrb[125].mxu1 }
 0x322   : > { %2829 = vmatprep.mubr.bf16.mxu1 %v15536_v55  ;;  %v2618_v38 = vpop.f32.mrb[126].mxu1  ;;  %v15542_v43 = vld [vmem:[#allocation82_spill] sm:$0xff] }
 0x323   : > { %3800 = vmatmul.mubr.bf16.gmra.mrb[228].mxu0 %v15537_v61  ;;  %15539 = vst [vmem:[#allocation235_spill] sm:$0xff] %v11893_v54  ;;  %v11898_v24 = vadd.f32 %v11706_v58, %v2618_v38  ;;  %v2620_v40 = vpop.f32.mrb[127].mxu1  ;;  %v11905_v61 = vsel %vm10020_vm4, 0, %v11396_v37  ;;  %v15543_v58 = vld [vmem:[#allocation51_spill] sm:$0xff] }
 0x324   : > { %3807 = vmatprep.mubr.bf16.mxu0 %v15538_v34  ;;  %v11895_v7 = vpop.f32.mrb[124].mxu0  ;;  %15541 = vst [vmem:[#allocation237_spill] sm:$0xff] %v11905_v61 }
 0x325   : > { %15540 = vst [vmem:[#allocation236_spill] sm:$0xff] %v11898_v24  ;;  %v11900_v51 = vpop.f32.mrb[125].mxu0 }
 0x326   : > { %v11907_v34 = vpop.f32.mrb[126].mxu0 }
 0x327   : > { %v11910_v6 = vpop.f32.mrb[127].mxu0 }
 0x329   : > { %2830 = vmatmul.mubr.bf16.gmra.mrb[232].mxu1 %v11905_v61 }
 0x32a   : > { %2837 = vmatprep.mubr.bf16.mxu1 %v15341_v60  ;;  %v2623_v38 = vpop.f32.mrb[128].mxu1  ;;  %v15548_v60 = vld [vmem:[#allocation173_spill] sm:$0xff] }
 0x32b   : > { %3808 = vmatmul.mubr.bf16.gmra.mrb[232].mxu0 %v15542_v43  ;;  %v11916_v40 = vadd.f32 %v11724_v19, %v2623_v38  ;;  %v2625_v26 = vpop.f32.mrb[129].mxu1  ;;  %v15550_v19 = vld [vmem:[#allocation85_spill] sm:$0xff]  ;;  %v15551_v38 = vld [vmem:[#allocation87_spill] sm:$0xff] }
 0x32c   : > { %3815 = vmatprep.mubr.bf16.mxu0 %v15543_v58  ;;  %v11918_v55 = vpop.f32.mrb[128].mxu0  ;;  %v2626_v37 = vpop.f32.mrb[130].mxu1  ;;  %v11930_v58 = vsel %vm10020_vm4, 0, %v15548_v60 }
 0x32d   : > { %15544 = vst [vmem:[#allocation238_spill] sm:$0xff] %v11916_v40  ;;  %15545 = vst [vmem:[#allocation239_spill] sm:$0xff] %v11918_v55  ;;  %v11921_v24 = vadd.f32 %v11735_v32, %v2626_v37  ;;  %v11923_v61 = vpop.f32.mrb[129].mxu0  ;;  %v2628_v54 = vpop.f32.mrb[131].mxu1  ;;  %v15552_v32 = vld [vmem:[#allocation48_spill] sm:$0xff] }
 0x32e   : > { %v11925_v3 = vpop.f32.mrb[130].mxu0  ;;  %15549 = vst [vmem:[#allocation173_spill] sm:$0xff] %v11930_v58 }
 0x32f   : > { %15546 = vst [vmem:[#allocation240_spill] sm:$0xff] %v11921_v24  ;;  %15547 = vst [vmem:[#allocation241_spill] sm:$0xff] %v11925_v3  ;;  %v11932_v43 = vpop.f32.mrb[131].mxu0 }
 0x331   : > { %2838 = vmatmul.mubr.bf16.gmra.mrb[236].mxu1 %v11930_v58 }
 0x332   : > { %2845 = vmatprep.mubr.bf16.mxu1 %v15550_v19  ;;  %v2631_v26 = vpop.f32.mrb[132].mxu1 }
 0x333   : > { %3816 = vmatmul.mubr.bf16.gmra.mrb[236].mxu0 %v15551_v38  ;;  %v11939_v54 = vadd.f32 %v11719_v46, %v2631_v26  ;;  %v2633_v37 = vpop.f32.mrb[133].mxu1  ;;  %v9057_v46 = vld [vmem:[#allocation8 + $0x200] sm:$0xff]   ;;  %v15556_v26 = vld [vmem:[#allocation94_spill] sm:$0xff] }
 0x334   : > { %3823 = vmatprep.mubr.bf16.mxu0 %v15552_v32  ;;  %v11941_v24 = vpop.f32.mrb[132].mxu0  ;;  %v2634_v40 = vpop.f32.mrb[134].mxu1  ;;  %v11953_v32 = vsel %vm10020_vm4, 0, %v11406_v15  ;;  %8583 = vmatprep.subr.bf16.mxu0 %v9057_v46 }
 0x335   : > { %15553 = vst [vmem:[#allocation242_spill] sm:$0xff] %v11939_v54  ;;  %v11944_v60 = vadd.f32 %v11732_v30, %v2634_v40  ;;  %v11946_v3 = vpop.f32.mrb[133].mxu0  ;;  %v2636_v58 = vpop.f32.mrb[135].mxu1  ;;  %15555 = vst [vmem:[#allocation244_spill] sm:$0xff] %v11953_v32  ;;  %v15557_v30 = vld [vmem:[#allocation57_spill] sm:$0xff]  ;;  %8584 = vmatpush3.bf16.msra.mxu0 %v9057_v46 }
 0x336   : > { %v11948_v55 = vpop.f32.mrb[134].mxu0 }
 0x337   : > { %15554 = vst [vmem:[#allocation243_spill] sm:$0xff] %v11944_v60  ;;  %v11955_v38 = vpop.f32.mrb[135].mxu0 }
 0x339   : > { %2846 = vmatmul.mubr.bf16.gmra.mrb[240].mxu1 %v11953_v32 }
 0x33a   : > { %2853 = vmatprep.mubr.bf16.mxu1 %v15355_v18  ;;  %v2639_v58 = vpop.f32.mrb[136].mxu1 }
 0x33b   : > { %3824 = vmatmul.mubr.bf16.gmra.mrb[240].mxu0 %v15556_v26  ;;  %v11962_v40 = vadd.f32 %v11750_v2, %v2639_v58  ;;  %v2641_v37 = vpop.f32.mrb[137].mxu1  ;;  %v15561_v2 = vld [vmem:[#allocation100_spill] sm:$0xff] }
 0x33c   : > { %3831 = vmatprep.mubr.bf16.mxu0 %v15557_v30  ;;  %v11964_v15 = vpop.f32.mrb[136].mxu0  ;;  %v2642_v19 = vpop.f32.mrb[138].mxu1  ;;  %v11976_v30 = vsel %vm10020_vm4, 0, %v11412_v59 }
 0x33d   : > { %15558 = vst [vmem:[#allocation245_spill] sm:$0xff] %v11962_v40  ;;  %v11967_v60 = vadd.f32 %v11761_v4, %v2642_v19  ;;  %v11969_v32 = vpop.f32.mrb[137].mxu0  ;;  %v2644_v18 = vpop.f32.mrb[139].mxu1  ;;  %15560 = vst [vmem:[#allocation247_spill] sm:$0xff] %v11976_v30  ;;  %v15562_v4 = vld [vmem:[#allocation56_spill] sm:$0xff] }
 0x33e   : > { %v11971_v54 = vpop.f32.mrb[138].mxu0 }
 0x33f   : > { %15559 = vst [vmem:[#allocation246_spill] sm:$0xff] %v11967_v60  ;;  %v11978_v46 = vpop.f32.mrb[139].mxu0 }
 0x341   : > { %2854 = vmatmul.mubr.bf16.gmra.mrb[244].mxu1 %v11976_v30 }
 0x342   : > { %2861 = vmatprep.mubr.bf16.mxu1 %v15364_v33  ;;  %v2647_v19 = vpop.f32.mrb[140].mxu1 }
 0x343   : > { %3832 = vmatmul.mubr.bf16.gmra.mrb[244].mxu0 %v15561_v2  ;;  %v11985_v18 = vadd.f32 %v11745_v17, %v2647_v19  ;;  %v2649_v58 = vpop.f32.mrb[141].mxu1  ;;  %v15567_v17 = vld [vmem:[#allocation91_spill] sm:$0xff] }
 0x344   : > { %3839 = vmatprep.mubr.bf16.mxu0 %v15562_v4  ;;  %v11987_v37 = vpop.f32.mrb[140].mxu0  ;;  %v2650_v26 = vpop.f32.mrb[142].mxu1  ;;  %v11999_v4 = vsel %vm10020_vm4, 0, %v11418_v9  ;;  %v15568_v19 = vld [vmem:[#allocation111_spill] sm:$0xff] }
 0x345   : > { %15563 = vst [vmem:[#allocation248_spill] sm:$0xff] %v11985_v18  ;;  %v11990_v59 = vadd.f32 %v11758_v39, %v2650_v26  ;;  %v11992_v60 = vpop.f32.mrb[141].mxu0  ;;  %v2652_v30 = vpop.f32.mrb[143].mxu1  ;;  %15566 = vst [vmem:[#allocation251_spill] sm:$0xff] %v11999_v4  ;;  %v15569_v39 = vld [vmem:[#allocation63_spill] sm:$0xff] }
 0x346   : > { %v11994_v40 = vpop.f32.mrb[142].mxu0 }
 0x347   : > { %15564 = vst [vmem:[#allocation249_spill] sm:$0xff] %v11990_v59  ;;  %15565 = vst [vmem:[#allocation250_spill] sm:$0xff] %v11994_v40  ;;  %v12001_v2 = vpop.f32.mrb[143].mxu0 }
 0x349   : > { %2862 = vmatmul.mubr.bf16.gmra.mrb[248].mxu1 %v11999_v4 }
 0x34a   : > { %2869 = vmatprep.mubr.bf16.mxu1 %v15567_v17  ;;  %v12022_v17 = vsel %vm10020_vm4, 0, %v11420_v57 }
 0x34b   : > { %3840 = vmatmul.mubr.bf16.gmra.mrb[248].mxu0 %v15568_v19  ;;  %v2655_v26 = vpop.f32.mrb[144].mxu1  ;;  %15573 = vst [vmem:[#allocation255_spill] sm:$0xff] %v12022_v17 }
 0x34c   : > { %3847 = vmatprep.mubr.bf16.mxu0 %v15569_v39  ;;  %v12008_v30 = vadd.f32 %v11776_v47, %v2655_v26  ;;  %v2657_v58 = vpop.f32.mrb[145].mxu1  ;;  %v12010_v33 = vpop.f32.mrb[144].mxu0  ;;  %v15574_v47 = vld [vmem:[#allocation115_spill] sm:$0xff]  ;;  %v15575_v26 = vld [vmem:[#allocation117_spill] sm:$0xff] }
 0x34d   : > { %v2658_v59 = vpop.f32.mrb[146].mxu1  ;;  %v12015_v18 = vpop.f32.mrb[145].mxu0 }
 0x34e   : > { %15570 = vst [vmem:[#allocation252_spill] sm:$0xff] %v12008_v30  ;;  %v12013_v9 = vadd.f32 %v11787_v28, %v2658_v59  ;;  %v2660_v4 = vpop.f32.mrb[147].mxu1  ;;  %v12017_v40 = vpop.f32.mrb[146].mxu0 }
 0x34f   : > { %15572 = vst [vmem:[#allocation254_spill] sm:$0xff] %v12017_v40  ;;  %v12024_v39 = vpop.f32.mrb[147].mxu0 }
 0x350   : > { %15571 = vst [vmem:[#allocation253_spill] sm:$0xff] %v12013_v9 }
 0x351   : > { %2870 = vmatmul.mubr.bf16.gmra.mrb[252].mxu1 %v12022_v17 }
 0x352   : > { %2877 = vmatprep.mubr.bf16.mxu1 %v15574_v47  ;;  %v15579_v47 = vld [vmem:[#allocation105_spill] sm:$0xff] }
 0x353   : > { %3848 = vmatmul.mubr.bf16.gmra.mrb[252].mxu0 %v15575_v26  ;;  %v12045_v26 = vsel %vm10020_vm4, 0, %v15579_v47 }
 0x354   : > { %v2663_v28 = vpop.f32.mrb[148].mxu1  ;;  %3855 = vmatprep.mubr.bf16.mxu0 %v15182_v10  ;;  %15580 = vst [vmem:[#allocation105_spill] sm:$0xff] %v12045_v26 }
 0x355   : > { %v12031_v4 = vadd.f32 %v11771_v48, %v2663_v28  ;;  %v2665_v59 = vpop.f32.mrb[149].mxu1  ;;  %v15581_v48 = vld [vmem:[#allocation69_spill] sm:$0xff] }
 0x356   : > { %v12033_v58 = vpop.f32.mrb[148].mxu0  ;;  %v2666_v19 = vpop.f32.mrb[150].mxu1 }
 0x357   : > { %15576 = vst [vmem:[#allocation256_spill] sm:$0xff] %v12031_v4  ;;  %v12036_v57 = vadd.f32 %v11784_v11, %v2666_v19  ;;  %v12038_v9 = vpop.f32.mrb[149].mxu0  ;;  %v2668_v17 = vpop.f32.mrb[151].mxu1 }
 0x358   : > { %v12040_v30 = vpop.f32.mrb[150].mxu0 }
 0x359   : > { %15577 = vst [vmem:[#allocation257_spill] sm:$0xff] %v12036_v57  ;;  %15578 = vst [vmem:[#allocation258_spill] sm:$0xff] %v12040_v30  ;;  %v12047_v40 = vpop.f32.mrb[151].mxu0  ;;  %2878 = vmatmul.mubr.bf16.gmra.mrb[0].mxu1 %v12045_v26 }
 0x35a   : > { %2885 = vmatprep.mubr.bf16.mxu1 %v15312_v14  ;;  %v15585_v14 = vld [vmem:[#allocation118_spill] sm:$0xff] }
 0x35b   : > { %3856 = vmatmul.mubr.bf16.gmra.mrb[0].mxu0 %v15182_v10 }
 0x35c   : > { %3863 = vmatprep.mubr.bf16.mxu0 %v15581_v48  ;;  %v2671_v11 = vpop.f32.mrb[152].mxu1  ;;  %v12068_v48 = vsel %vm10020_vm4, 0, %v15585_v14 }
 0x35d   : > { %v12054_v17 = vadd.f32 %v11802_v53, %v2671_v11  ;;  %v2673_v19 = vpop.f32.mrb[153].mxu1  ;;  %15586 = vst [vmem:[#allocation118_spill] sm:$0xff] %v12068_v48  ;;  %v15587_v53 = vld [vmem:[#allocation131_spill] sm:$0xff] }
 0x35e   : > { %v12056_v28 = vpop.f32.mrb[152].mxu0  ;;  %v2674_v59 = vpop.f32.mrb[154].mxu1 }
 0x35f   : > { %15582 = vst [vmem:[#allocation69_spill] sm:$0xff] %v12054_v17  ;;  %v12059_v47 = vadd.f32 %v11813_v62, %v2674_v59  ;;  %v12061_v57 = vpop.f32.mrb[153].mxu0  ;;  %v2676_v26 = vpop.f32.mrb[155].mxu1  ;;  %v15588_v62 = vld [vmem:[#allocation67_spill] sm:$0xff] }
 0x360   : > { %v12063_v4 = vpop.f32.mrb[154].mxu0 }
 0x361   : > { %15583 = vst [vmem:[#allocation259_spill] sm:$0xff] %v12059_v47  ;;  %15584 = vst [vmem:[#allocation260_spill] sm:$0xff] %v12063_v4  ;;  %v12070_v30 = vpop.f32.mrb[155].mxu0  ;;  %2886 = vmatmul.mubr.bf16.gmra.mrb[4].mxu1 %v12068_v48 }
 0x362   : > { %2893 = vmatprep.mubr.bf16.mxu1 %v10858_v13  ;;  %v15592_v13 = vld [vmem:[#allocation144_spill] sm:$0xff] }
 0x363   : > { %3864 = vmatmul.mubr.bf16.gmra.mrb[4].mxu0 %v15587_v53  ;;  %v12091_v53 = vsel %vm10020_vm4, 0, %v15592_v13 }
 0x364   : > { %3871 = vmatprep.mubr.bf16.mxu0 %v15588_v62  ;;  %v2679_v11 = vpop.f32.mrb[156].mxu1  ;;  %15593 = vst [vmem:[#allocation144_spill] sm:$0xff] %v12091_v53 }
 0x365   : > { %v12077_v26 = vadd.f32 %v11797_v12, %v2679_v11  ;;  %v2681_v19 = vpop.f32.mrb[157].mxu1  ;;  %v15594_v12 = vld [vmem:[#allocation135_spill] sm:$0xff] }
 0x366   : > { %v12079_v59 = vpop.f32.mrb[156].mxu0  ;;  %v2682_v47 = vpop.f32.mrb[158].mxu1 }
 0x367   : > { %15589 = vst [vmem:[#allocation131_spill] sm:$0xff] %v12077_v26  ;;  %v12082_v14 = vadd.f32 %v11810_v5, %v2682_v47  ;;  %v12084_v17 = vpop.f32.mrb[157].mxu0  ;;  %v2684_v48 = vpop.f32.mrb[159].mxu1  ;;  %v15595_v5 = vld [vmem:[#allocation76_spill] sm:$0xff] }
 0x368   : > { %v12086_v4 = vpop.f32.mrb[158].mxu0 }
 0x369   : > { %15590 = vst [vmem:[#allocation261_spill] sm:$0xff] %v12082_v14  ;;  %15591 = vst [vmem:[#allocation262_spill] sm:$0xff] %v12086_v4  ;;  %v12093_v62 = vpop.f32.mrb[159].mxu0  ;;  %2894 = vmatmul.mubr.bf16.gmra.mrb[8].mxu1 %v12091_v53 }
 0x36a   : > { %2901 = vmatprep.mubr.bf16.mxu1 %v10838_v42  ;;  %v15599_v42 = vld [vmem:[#allocation148_spill] sm:$0xff] }
 0x36b   : > { %3872 = vmatmul.mubr.bf16.gmra.mrb[8].mxu0 %v15594_v12 }
 0x36c   : > { %3879 = vmatprep.mubr.bf16.mxu0 %v15595_v5  ;;  %v2687_v47 = vpop.f32.mrb[160].mxu1  ;;  %v12114_v5 = vsel %vm10020_vm4, 0, %v15599_v42 }
 0x36d   : > { %v12100_v48 = vadd.f32 %v11828_v27, %v2687_v47  ;;  %v2689_v11 = vpop.f32.mrb[161].mxu1  ;;  %15600 = vst [vmem:[#allocation148_spill] sm:$0xff] %v12114_v5  ;;  %v15601_v27 = vld [vmem:[#allocation139_spill] sm:$0xff] }
 0x36e   : > { %v12102_v19 = vpop.f32.mrb[160].mxu0  ;;  %v2690_v14 = vpop.f32.mrb[162].mxu1 }
 0x36f   : > { %15596 = vst [vmem:[#allocation263_spill] sm:$0xff] %v12100_v48  ;;  %v12105_v13 = vadd.f32 %v11839_v52, %v2690_v14  ;;  %v12107_v26 = vpop.f32.mrb[161].mxu0  ;;  %v2692_v53 = vpop.f32.mrb[163].mxu1  ;;  %v15602_v52 = vld [vmem:[#allocation74_spill] sm:$0xff] }
 0x370   : > { %v12109_v4 = vpop.f32.mrb[162].mxu0 }
 0x371   : > { %15597 = vst [vmem:[#allocation264_spill] sm:$0xff] %v12105_v13  ;;  %15598 = vst [vmem:[#allocation265_spill] sm:$0xff] %v12109_v4  ;;  %v12116_v12 = vpop.f32.mrb[163].mxu0  ;;  %2902 = vmatmul.mubr.bf16.gmra.mrb[12].mxu1 %v12114_v5 }
 0x372   : > { %2909 = vmatprep.mubr.bf16.mxu1 %v10911_v49  ;;  %v15606_v49 = vld [vmem:[#allocation149_spill] sm:$0xff] }
 0x373   : > { %3880 = vmatmul.mubr.bf16.gmra.mrb[12].mxu0 %v15601_v27 }
 0x374   : > { %3887 = vmatprep.mubr.bf16.mxu0 %v15602_v52  ;;  %v2695_v14 = vpop.f32.mrb[164].mxu1  ;;  %v12137_v52 = vsel %vm10020_vm4, 0, %v15606_v49 }
 0x375   : > { %v12123_v53 = vadd.f32 %v11823_v20, %v2695_v14  ;;  %v2697_v47 = vpop.f32.mrb[165].mxu1  ;;  %15607 = vst [vmem:[#allocation149_spill] sm:$0xff] %v12137_v52  ;;  %v9060_v20 = vld [vmem:[#allocation8 + $0x208] sm:$0xff]  }
 0x376   : > { %v12125_v11 = vpop.f32.mrb[164].mxu0  ;;  %v2698_v13 = vpop.f32.mrb[166].mxu1  ;;  %v15608_v14 = vld [vmem:[#allocation116_spill] sm:$0xff]  ;;  %8585 = vmatprep.subr.bf16.mxu0 %v9060_v20 }
 0x377   : > { %15603 = vst [vmem:[#allocation266_spill] sm:$0xff] %v12123_v53  ;;  %v12128_v42 = vadd.f32 %v11836_v63, %v2698_v13  ;;  %v12130_v48 = vpop.f32.mrb[165].mxu0  ;;  %v2700_v5 = vpop.f32.mrb[167].mxu1  ;;  %v15609_v63 = vld [vmem:[#allocation81_spill] sm:$0xff]  ;;  %8586 = vmatpush3.bf16.msra.mxu0 %v9060_v20 }
 0x378   : > { %v12132_v4 = vpop.f32.mrb[166].mxu0 }
 0x379   : > { %15604 = vst [vmem:[#allocation267_spill] sm:$0xff] %v12128_v42  ;;  %15605 = vst [vmem:[#allocation268_spill] sm:$0xff] %v12132_v4  ;;  %v12139_v27 = vpop.f32.mrb[167].mxu0  ;;  %2910 = vmatmul.mubr.bf16.gmra.mrb[16].mxu1 %v12137_v52 }
 0x37a   : > { %2917 = vmatprep.mubr.bf16.mxu1 %v10899_v0 }
 0x37b   : > { %3888 = vmatmul.mubr.bf16.gmra.mrb[16].mxu0 %v15608_v14  ;;  %v15613_v14 = vld [vmem:[#allocation150_spill] sm:$0xff] }
 0x37c   : > { %3895 = vmatprep.mubr.bf16.mxu0 %v15609_v63  ;;  %v2703_v5 = vpop.f32.mrb[168].mxu1  ;;  %v12160_v63 = vsel %vm10020_vm4, 0, %v15613_v14 }
 0x37d   : > { %v12146_v13 = vadd.f32 %v11854_v45, %v2703_v5  ;;  %v2705_v47 = vpop.f32.mrb[169].mxu1  ;;  %15614 = vst [vmem:[#allocation150_spill] sm:$0xff] %v12160_v63  ;;  %v15615_v45 = vld [vmem:[#allocation151_spill] sm:$0xff] }
 0x37e   : > { %v12148_v49 = vpop.f32.mrb[168].mxu0  ;;  %v2706_v42 = vpop.f32.mrb[170].mxu1 }
 0x37f   : > { %15610 = vst [vmem:[#allocation269_spill] sm:$0xff] %v12146_v13  ;;  %v12151_v53 = vadd.f32 %v11863_v44, %v2706_v42  ;;  %v12153_v52 = vpop.f32.mrb[169].mxu0  ;;  %v2708_v0 = vpop.f32.mrb[171].mxu1  ;;  %v15616_v44 = vld [vmem:[#allocation80_spill] sm:$0xff] }
 0x380   : > { %v12155_v4 = vpop.f32.mrb[170].mxu0 }
 0x381   : > { %15611 = vst [vmem:[#allocation270_spill] sm:$0xff] %v12151_v53  ;;  %15612 = vst [vmem:[#allocation271_spill] sm:$0xff] %v12155_v4  ;;  %v12162_v20 = vpop.f32.mrb[171].mxu0  ;;  %2918 = vmatmul.mubr.bf16.gmra.mrb[20].mxu1 %v12160_v63 }
 0x382   : > { %2925 = vmatprep.mubr.bf16.mxu1 %v10947_v36  ;;  %v15620_v36 = vld [vmem:[#allocation153_spill] sm:$0xff] }
 0x383   : > { %3896 = vmatmul.mubr.bf16.gmra.mrb[20].mxu0 %v15615_v45 }
 0x384   : > { %3903 = vmatprep.mubr.bf16.mxu0 %v15616_v44  ;;  %v2711_v42 = vpop.f32.mrb[172].mxu1  ;;  %v12183_v44 = vsel %vm10020_vm4, 0, %v15620_v36 }
 0x385   : > { %v12169_v0 = vadd.f32 %v11849_v22, %v2711_v42  ;;  %v2713_v5 = vpop.f32.mrb[173].mxu1  ;;  %15621 = vst [vmem:[#allocation153_spill] sm:$0xff] %v12183_v44  ;;  %v15622_v22 = vld [vmem:[#allocation158_spill] sm:$0xff] }
 0x386   : > { %v12171_v47 = vpop.f32.mrb[172].mxu0  ;;  %v2714_v53 = vpop.f32.mrb[174].mxu1 }
 0x387   : > { %15617 = vst [vmem:[#allocation272_spill] sm:$0xff] %v12169_v0  ;;  %v12174_v14 = vadd.f32 %v11860_v56, %v2714_v53  ;;  %v12176_v13 = vpop.f32.mrb[173].mxu0  ;;  %v2716_v63 = vpop.f32.mrb[175].mxu1  ;;  %v15623_v56 = vld [vmem:[#allocation88_spill] sm:$0xff] }
 0x388   : > { %v12178_v4 = vpop.f32.mrb[174].mxu0 }
 0x389   : > { %15618 = vst [vmem:[#allocation273_spill] sm:$0xff] %v12174_v14  ;;  %15619 = vst [vmem:[#allocation274_spill] sm:$0xff] %v12178_v4  ;;  %v12185_v45 = vpop.f32.mrb[175].mxu0  ;;  %2926 = vmatmul.mubr.bf16.gmra.mrb[24].mxu1 %v12183_v44 }
 0x38a   : > { %2933 = vmatprep.mubr.bf16.mxu1 %v10940_v25  ;;  %v15627_v25 = vld [vmem:[#allocation155_spill] sm:$0xff] }
 0x38b   : > { %3904 = vmatmul.mubr.bf16.gmra.mrb[24].mxu0 %v15622_v22 }
 0x38c   : > { %3911 = vmatprep.mubr.bf16.mxu0 %v15623_v56  ;;  %v2719_v53 = vpop.f32.mrb[176].mxu1  ;;  %v12206_v56 = vsel %vm10020_vm4, 0, %v15627_v25 }
 0x38d   : > { %v12192_v63 = vadd.f32 %v11877_v8, %v2719_v53  ;;  %v2721_v42 = vpop.f32.mrb[177].mxu1  ;;  %15628 = vst [vmem:[#allocation155_spill] sm:$0xff] %v12206_v56  ;;  %v15629_v8 = vld [vmem:[#allocation164_spill] sm:$0xff] }
 0x38e   : > { %v12194_v5 = vpop.f32.mrb[176].mxu0  ;;  %v2722_v14 = vpop.f32.mrb[178].mxu1 }
 0x38f   : > { %15624 = vst [vmem:[#allocation275_spill] sm:$0xff] %v12192_v63  ;;  %v12197_v36 = vadd.f32 %v11887_v50, %v2722_v14  ;;  %v12199_v0 = vpop.f32.mrb[177].mxu0  ;;  %v2724_v44 = vpop.f32.mrb[179].mxu1  ;;  %v15630_v50 = vld [vmem:[#allocation86_spill] sm:$0xff] }
 0x390   : > { %v12201_v4 = vpop.f32.mrb[178].mxu0 }
 0x391   : > { %15625 = vst [vmem:[#allocation276_spill] sm:$0xff] %v12197_v36  ;;  %15626 = vst [vmem:[#allocation277_spill] sm:$0xff] %v12201_v4  ;;  %v12208_v22 = vpop.f32.mrb[179].mxu0  ;;  %2934 = vmatmul.mubr.bf16.gmra.mrb[28].mxu1 %v12206_v56 }
 0x392   : > { %2941 = vmatprep.mubr.bf16.mxu1 %v10990_v16  ;;  %v15634_v16 = vld [vmem:[#allocation156_spill] sm:$0xff] }
 0x393   : > { %3912 = vmatmul.mubr.bf16.gmra.mrb[28].mxu0 %v15629_v8 }
 0x394   : > { %3919 = vmatprep.mubr.bf16.mxu0 %v15630_v50  ;;  %v2727_v14 = vpop.f32.mrb[180].mxu1  ;;  %v12229_v50 = vsel %vm10020_vm4, 0, %v15634_v16 }
 0x395   : > { %v12215_v44 = vadd.f32 %v11872_v41, %v2727_v14  ;;  %v2729_v53 = vpop.f32.mrb[181].mxu1  ;;  %15635 = vst [vmem:[#allocation156_spill] sm:$0xff] %v12229_v50  ;;  %v15636_v41 = vld [vmem:[#allocation170_spill] sm:$0xff] }
 0x396   : > { %v12217_v42 = vpop.f32.mrb[180].mxu0  ;;  %v2730_v36 = vpop.f32.mrb[182].mxu1 }
 0x397   : > { %15631 = vst [vmem:[#allocation278_spill] sm:$0xff] %v12215_v44  ;;  %v12220_v25 = vadd.f32 %v11884_v1, %v2730_v36  ;;  %v12222_v63 = vpop.f32.mrb[181].mxu0  ;;  %v2732_v56 = vpop.f32.mrb[183].mxu1  ;;  %v15637_v1 = vld [vmem:[#allocation95_spill] sm:$0xff] }
 0x398   : > { %v12224_v4 = vpop.f32.mrb[182].mxu0 }
 0x399   : > { %15632 = vst [vmem:[#allocation279_spill] sm:$0xff] %v12220_v25  ;;  %15633 = vst [vmem:[#allocation280_spill] sm:$0xff] %v12224_v4  ;;  %v12231_v8 = vpop.f32.mrb[183].mxu0  ;;  %2942 = vmatmul.mubr.bf16.gmra.mrb[32].mxu1 %v12229_v50 }
 0x39a   : > { %2949 = vmatprep.mubr.bf16.mxu1 %v10986_v35  ;;  %v15640_v35 = vld [vmem:[#allocation157_spill] sm:$0xff] }
 0x39b   : > { %3920 = vmatmul.mubr.bf16.gmra.mrb[32].mxu0 %v15636_v41 }
 0x39c   : > { %3927 = vmatprep.mubr.bf16.mxu0 %v15637_v1  ;;  %v2735_v36 = vpop.f32.mrb[184].mxu1  ;;  %v12252_v1 = vsel %vm10020_vm4, 0, %v15640_v35 }
 0x39d   : > { %v12238_v56 = vadd.f32 %v11900_v51, %v2735_v36  ;;  %v2737_v14 = vpop.f32.mrb[185].mxu1  ;;  %15641 = vst [vmem:[#allocation157_spill] sm:$0xff] %v12252_v1 }
 0x39e   : > { %v12240_v53 = vpop.f32.mrb[184].mxu0  ;;  %v2738_v25 = vpop.f32.mrb[186].mxu1 }
 0x39f   : > { %15638 = vst [vmem:[#allocation281_spill] sm:$0xff] %v12238_v56  ;;  %v12243_v16 = vadd.f32 %v11910_v6, %v2738_v25  ;;  %v12245_v44 = vpop.f32.mrb[185].mxu0  ;;  %v2740_v50 = vpop.f32.mrb[187].mxu1  ;;  %v15656_v56 = vld [vmem:[#allocation162_spill] sm:$0xff] }
 0x3a0   : > { %v12247_v4 = vpop.f32.mrb[186].mxu0 }
 0x3a1   : > { %15639 = vst [vmem:[#allocation282_spill] sm:$0xff] %v12243_v16  ;;  %v12254_v41 = vpop.f32.mrb[187].mxu0  ;;  %2950 = vmatmul.mubr.bf16.gmra.mrb[36].mxu1 %v12252_v1 }
 0x3a2   : > { %2957 = vmatprep.mubr.bf16.mxu1 %v11032_v31  ;;  %v15646_v31 = vld [vmem:[#allocation159_spill] sm:$0xff] }
 0x3a3   : > { %3928 = vmatmul.mubr.bf16.gmra.mrb[36].mxu0 %v11425_v21 }
 0x3a4   : > { %3935 = vmatprep.mubr.bf16.mxu0 %v15317_v29  ;;  %v2743_v51 = vpop.f32.mrb[188].mxu1  ;;  %v12275_v29 = vsel %vm10020_vm4, 0, %v15646_v31 }
 0x3a5   : > { %v12261_v6 = vadd.f32 %v11895_v7, %v2743_v51  ;;  %v2745_v50 = vpop.f32.mrb[189].mxu1  ;;  %15647 = vst [vmem:[#allocation159_spill] sm:$0xff] %v12275_v29  ;;  %v15649_v7 = vld [vmem:[#allocation140_spill] sm:$0xff]  ;;  %v15650_v51 = vld [vmem:[#allocation177_spill] sm:$0xff] }
 0x3a6   : > { %v12263_v25 = vpop.f32.mrb[188].mxu0  ;;  %v2746_v36 = vpop.f32.mrb[190].mxu1 }
 0x3a7   : > { %15642 = vst [vmem:[#allocation283_spill] sm:$0xff] %v12261_v6  ;;  %15643 = vst [vmem:[#allocation284_spill] sm:$0xff] %v12263_v25  ;;  %v12266_v35 = vadd.f32 %v11907_v34, %v2746_v36  ;;  %v12268_v14 = vpop.f32.mrb[189].mxu0  ;;  %v2748_v1 = vpop.f32.mrb[191].mxu1  ;;  %v15651_v34 = vld [vmem:[#allocation103_spill] sm:$0xff] }
 0x3a8   : > { %v12270_v16 = vpop.f32.mrb[190].mxu0  ;;  %v15653_v6 = vld [vmem:[#allocation183_spill] sm:$0xff] }
 0x3a9   : > { %15644 = vst [vmem:[#allocation285_spill] sm:$0xff] %v12266_v35  ;;  %15645 = vst [vmem:[#allocation286_spill] sm:$0xff] %v12270_v16  ;;  %v12277_v21 = vpop.f32.mrb[191].mxu0  ;;  %2958 = vmatmul.mubr.bf16.gmra.mrb[40].mxu1 %v12275_v29 }
 0x3aa   : > { %15648 = vst [vmem:[#allocation287_spill] sm:$0xff] %v12277_v21  ;;  %2965 = vmatprep.mubr.bf16.mxu1 %v15649_v7 }
 0x3ab   : > { %3936 = vmatmul.mubr.bf16.gmra.mrb[40].mxu0 %v15650_v51  ;;  %v15658_v51 = vld [vmem:[#allocation185_spill] sm:$0xff] }
 0x3ac   : > { %3943 = vmatprep.mubr.bf16.mxu0 %v15651_v34  ;;  %v2751_v50 = vpop.f32.mrb[192].mxu1  ;;  %v12295_v34 = vsel %vm10020_vm4, 0, %v15656_v56 }
 0x3ad   : > { %v12284_v1 = vadd.f32 %v11923_v61, %v2751_v50  ;;  %v2753_v36 = vpop.f32.mrb[193].mxu1  ;;  %15657 = vst [vmem:[#allocation162_spill] sm:$0xff] %v12295_v34 }
 0x3ae   : > { %v3729_v35 = vpop.f32.mrb[192].mxu0  ;;  %v2754_v16 = vpop.f32.mrb[194].mxu1  ;;  %v15660_v36 = vld [vmem:[#allocation142_spill] sm:$0xff] }
 0x3af   : > { %15652 = vst [vmem:[#allocation288_spill] sm:$0xff] %v12284_v1  ;;  %v12287_v31 = vadd.f32 %v3729_v35, %v15653_v6  ;;  %v12290_v25 = vadd.f32 %v11932_v43, %v2754_v16  ;;  %v3731_v29 = vpop.f32.mrb[193].mxu0  ;;  %v2756_v21 = vpop.f32.mrb[195].mxu1  ;;  %v15661_v6 = vld [vmem:[#allocation180_spill] sm:$0xff]  ;;  %v15662_v43 = vld [vmem:[#allocation101_spill] sm:$0xff] }
 0x3b0   : > { %v3732_v7 = vpop.f32.mrb[194].mxu0  ;;  %v15663_v21 = vld [vmem:[#allocation239_spill] sm:$0xff]  ;;  %v15665_v1 = vld [vmem:[#allocation188_spill] sm:$0xff] }
 0x3b1   : > { %15654 = vst [vmem:[#allocation183_spill] sm:$0xff] %v12287_v31  ;;  %15655 = vst [vmem:[#allocation289_spill] sm:$0xff] %v12290_v25  ;;  %v12298_v61 = vadd.f32 %v3732_v7, %v15658_v51  ;;  %2966 = vmatmul.mubr.bf16.gmra.mrb[44].mxu1 %v12295_v34  ;;  %v3734_v50 = vpop.f32.mrb[195].mxu0  ;;  %v15666_v7 = vld [vmem:[#allocation241_spill] sm:$0xff] }
 0x3b2   : > { %2973 = vmatprep.mubr.bf16.mxu1 %v15660_v36 }
 0x3b3   : > { %15659 = vst [vmem:[#allocation185_spill] sm:$0xff] %v12298_v61  ;;  %3944 = vmatmul.mubr.bf16.gmra.mrb[44].mxu0 %v15661_v6  ;;  %v15668_v61 = vld [vmem:[#allocation163_spill] sm:$0xff]  ;;  %v15670_v6 = vld [vmem:[#allocation189_spill] sm:$0xff] }
 0x3b4   : > { %3951 = vmatprep.mubr.bf16.mxu0 %v15662_v43  ;;  %v2759_v29 = vpop.f32.mrb[196].mxu1  ;;  %v12316_v43 = vsel %vm10020_vm4, 0, %v15668_v61 }
 0x3b5   : > { %v12305_v16 = vadd.f32 %v15663_v21, %v2759_v29  ;;  %v2761_v35 = vpop.f32.mrb[197].mxu1  ;;  %15669 = vst [vmem:[#allocation241_spill] sm:$0xff] %v12316_v43 }
 0x3b6   : > { %v3737_v25 = vpop.f32.mrb[196].mxu0  ;;  %v2762_v56 = vpop.f32.mrb[198].mxu1  ;;  %v9065_v35 = vld [vmem:[#allocation8 + $0x210] sm:$0xff]  }
 0x3b7   : > { %15664 = vst [vmem:[#allocation239_spill] sm:$0xff] %v12305_v16  ;;  %v12308_v31 = vadd.f32 %v3737_v25, %v15665_v1  ;;  %v12311_v51 = vadd.f32 %v15666_v7, %v2762_v56  ;;  %v3739_v50 = vpop.f32.mrb[197].mxu0  ;;  %v2764_v34 = vpop.f32.mrb[199].mxu1  ;;  %v15671_v25 = vld [vmem:[#allocation109_spill] sm:$0xff]  ;;  %v15672_v1 = vld [vmem:[#allocation184_spill] sm:$0xff]  ;;  %8587 = vmatprep.subr.bf16.mxu0 %v9065_v35 }
 0x3b8   : > { %v3740_v36 = vpop.f32.mrb[198].mxu0  ;;  %v15673_v56 = vld [vmem:[#allocation112_spill] sm:$0xff]  ;;  %8588 = vmatpush3.bf16.msra.mxu0 %v9065_v35  ;;  %v15677_v16 = vld [vmem:[#allocation165_spill] sm:$0xff]  ;;  %v15679_v35 = vld [vmem:[#allocation194_spill] sm:$0xff] }
 0x3b9   : > { %15667 = vst [vmem:[#allocation188_spill] sm:$0xff] %v12311_v51  ;;  %v12319_v29 = vadd.f32 %v3740_v36, %v15670_v6  ;;  %v3742_v21 = vpop.f32.mrb[199].mxu0  ;;  %2974 = vmatmul.mubr.bf16.gmra.mrb[48].mxu1 %v12316_v43  ;;  %v15675_v6 = vld [vmem:[#allocation193_spill] sm:$0xff] }
 0x3ba   : > { %2981 = vmatprep.mubr.bf16.mxu1 %v15671_v25 }
 0x3bb   : > { %3952 = vmatmul.mubr.bf16.gmra.mrb[48].mxu0 %v15672_v1 }
 0x3bc   : > { %3959 = vmatprep.mubr.bf16.mxu0 %v15673_v56  ;;  %v2767_v34 = vpop.f32.mrb[200].mxu1  ;;  %v12337_v56 = vsel %vm10020_vm4, 0, %v15677_v16 }
 0x3bd   : > { %v12326_v7 = vadd.f32 %v11946_v3, %v2767_v34  ;;  %v2769_v61 = vpop.f32.mrb[201].mxu1  ;;  %15678 = vst [vmem:[#allocation193_spill] sm:$0xff] %v12337_v56 }
 0x3be   : > { %v3745_v50 = vpop.f32.mrb[200].mxu0  ;;  %v2770_v36 = vpop.f32.mrb[202].mxu1  ;;  %v15680_v61 = vld [vmem:[#allocation147_spill] sm:$0xff] }
 0x3bf   : > { %15674 = vst [vmem:[#allocation163_spill] sm:$0xff] %v12326_v7  ;;  %v12329_v21 = vadd.f32 %v3745_v50, %v15675_v6  ;;  %v12332_v43 = vadd.f32 %v11955_v38, %v2770_v36  ;;  %v3747_v25 = vpop.f32.mrb[201].mxu0  ;;  %v2772_v51 = vpop.f32.mrb[203].mxu1  ;;  %v15681_v50 = vld [vmem:[#allocation190_spill] sm:$0xff] }
 0x3c0   : > { %v3748_v1 = vpop.f32.mrb[202].mxu0  ;;  %v15682_v38 = vld [vmem:[#allocation110_spill] sm:$0xff] }
 0x3c1   : > { %15676 = vst [vmem:[#allocation189_spill] sm:$0xff] %v12332_v43  ;;  %v12340_v3 = vadd.f32 %v3748_v1, %v15679_v35  ;;  %v3750_v34 = vpop.f32.mrb[203].mxu0  ;;  %2982 = vmatmul.mubr.bf16.gmra.mrb[52].mxu1 %v12337_v56  ;;  %v15684_v43 = vld [vmem:[#allocation198_spill] sm:$0xff]  ;;  %v15686_v56 = vld [vmem:[#allocation167_spill] sm:$0xff] }
 0x3c2   : > { %2989 = vmatprep.mubr.bf16.mxu1 %v15680_v61 }
 0x3c3   : > { %3960 = vmatmul.mubr.bf16.gmra.mrb[52].mxu0 %v15681_v50  ;;  %v15688_v50 = vld [vmem:[#allocation199_spill] sm:$0xff] }
 0x3c4   : > { %3967 = vmatprep.mubr.bf16.mxu0 %v15682_v38  ;;  %v2775_v25 = vpop.f32.mrb[204].mxu1  ;;  %v12358_v38 = vsel %vm10020_vm4, 0, %v15686_v56 }
 0x3c5   : > { %v12347_v51 = vadd.f32 %v11941_v24, %v2775_v25  ;;  %v2777_v36 = vpop.f32.mrb[205].mxu1  ;;  %15687 = vst [vmem:[#allocation198_spill] sm:$0xff] %v12358_v38 }
 0x3c6   : > { %v3753_v6 = vpop.f32.mrb[204].mxu0  ;;  %v2778_v16 = vpop.f32.mrb[206].mxu1  ;;  %v15689_v36 = vld [vmem:[#allocation146_spill] sm:$0xff] }
 0x3c7   : > { %15683 = vst [vmem:[#allocation165_spill] sm:$0xff] %v12347_v51  ;;  %v12350_v7 = vadd.f32 %v3753_v6, %v15684_v43  ;;  %v12353_v1 = vadd.f32 %v11948_v55, %v2778_v16  ;;  %v3755_v35 = vpop.f32.mrb[205].mxu0  ;;  %v2780_v34 = vpop.f32.mrb[207].mxu1  ;;  %v15690_v43 = vld [vmem:[#allocation195_spill] sm:$0xff]  ;;  %v15691_v55 = vld [vmem:[#allocation121_spill] sm:$0xff] }
 0x3c8   : > { %v3756_v61 = vpop.f32.mrb[206].mxu0 }
 0x3c9   : > { %15685 = vst [vmem:[#allocation194_spill] sm:$0xff] %v12353_v1  ;;  %v12361_v24 = vadd.f32 %v3756_v61, %v15688_v50  ;;  %v3758_v25 = vpop.f32.mrb[207].mxu0  ;;  %2990 = vmatmul.mubr.bf16.gmra.mrb[56].mxu1 %v12358_v38  ;;  %v15693_v1 = vld [vmem:[#allocation203_spill] sm:$0xff]  ;;  %v15695_v38 = vld [vmem:[#allocation169_spill] sm:$0xff] }
 0x3ca   : > { %2997 = vmatprep.mubr.bf16.mxu1 %v15689_v36 }
 0x3cb   : > { %3968 = vmatmul.mubr.bf16.gmra.mrb[56].mxu0 %v15690_v43  ;;  %v15697_v43 = vld [vmem:[#allocation204_spill] sm:$0xff] }
 0x3cc   : > { %3975 = vmatprep.mubr.bf16.mxu0 %v15691_v55  ;;  %v2783_v6 = vpop.f32.mrb[208].mxu1  ;;  %v12379_v55 = vsel %vm10020_vm4, 0, %v15695_v38 }
 0x3cd   : > { %v12368_v16 = vadd.f32 %v11969_v32, %v2783_v6  ;;  %v2785_v35 = vpop.f32.mrb[209].mxu1  ;;  %15696 = vst [vmem:[#allocation203_spill] sm:$0xff] %v12379_v55 }
 0x3ce   : > { %v3761_v34 = vpop.f32.mrb[208].mxu0  ;;  %v2786_v56 = vpop.f32.mrb[210].mxu1 }
 0x3cf   : > { %15692 = vst [vmem:[#allocation167_spill] sm:$0xff] %v12368_v16  ;;  %v12371_v51 = vadd.f32 %v3761_v34, %v15693_v1  ;;  %v12374_v61 = vadd.f32 %v11978_v46, %v2786_v56  ;;  %v3763_v50 = vpop.f32.mrb[209].mxu0  ;;  %v2788_v25 = vpop.f32.mrb[211].mxu1  ;;  %v15699_v1 = vld [vmem:[#allocation200_spill] sm:$0xff] }
 0x3d0   : > { %v3764_v36 = vpop.f32.mrb[210].mxu0  ;;  %v9058_v56 = vld [vmem:[#allocation8 + $0x180] sm:$0xff]  }
 0x3d1   : > { %15694 = vst [vmem:[#allocation199_spill] sm:$0xff] %v12374_v61  ;;  %v12382_v32 = vadd.f32 %v3764_v36, %v15697_v43  ;;  %v3766_v6 = vpop.f32.mrb[211].mxu0  ;;  %2998 = vmatmul.mubr.bf16.gmra.mrb[60].mxu1 %v12379_v55  ;;  %v15701_v50 = vld [vmem:[#allocation207_spill] sm:$0xff] }
 0x3d2   : > { %8455 = vmatprep.mubr.bf16.mxu1 %v15182_v10 }
 0x3d3   : > { %15698 = vst [vmem:[#allocation169_spill] sm:$0xff] %v12382_v32  ;;  %3976 = vmatmul.mubr.bf16.gmra.mrb[60].mxu0 %v15699_v1  ;;  %v15703_v1 = vld [vmem:[#allocation208_spill] sm:$0xff]  ;;  %v15704_v32 = vld [vmem:[#allocation27_spill] sm:$0xff] }
 0x3d4   : > { %v2791_v46 = vpop.f32.mrb[212].mxu1  ;;  %3983 = vmatprep.mubr.bf16.mxu0 %v15182_v10 }
 0x3d5   : > { %v12389_v35 = vadd.f32 %v11964_v15, %v2791_v46  ;;  %v2793_v34 = vpop.f32.mrb[213].mxu1  ;;  %v15705_v15 = vld [vmem:[#allocation28_spill] sm:$0xff] }
 0x3d6   : > { %v3769_v23 = vpop.f32.mrb[212].mxu0  ;;  %v2794_v38 = vpop.f32.mrb[214].mxu1  ;;  %v9059_v46 = vld [vmem:[#allocation8 + $0x188] sm:$0xff]   ;;  %v15706_v34 = vld [vmem:[#allocation23_spill] sm:$0xff] }
 0x3d7   : > { %15700 = vst [vmem:[#allocation204_spill] sm:$0xff] %v12389_v35  ;;  %v12392_v36 = vadd.f32 %v3769_v23, %v15701_v50  ;;  %v12395_v43 = vadd.f32 %v11971_v54, %v2794_v38  ;;  %v3771_v25 = vpop.f32.mrb[213].mxu0  ;;  %v2796_v6 = vpop.f32.mrb[215].mxu1 }
 0x3d8   : > { %v3772_v55 = vpop.f32.mrb[214].mxu0 }
 0x3d9   : > { %15702 = vst [vmem:[#allocation207_spill] sm:$0xff] %v12395_v43  ;;  %v12398_v61 = vadd.f32 %v3772_v55, %v15703_v1  ;;  %v3774_v16 = vpop.f32.mrb[215].mxu0  ;;  %8456 = vmatmul.mubr.bf16.vlgmr.msra.gmra.mrb[64].mxu1 %v15704_v32  ;;  %v15708_v32 = vld [vmem:[#allocation21_spill] sm:$0xff]  ;;  %v15710_v43 = vld [vmem:[#allocation210_spill] sm:$0xff] }
 0x3da   : > { %4979 = vmatpush1.bf16.msra.mxu1 %v9058_v56  ;;  %8459 = vmatprep.mubr.bf16.mxu1 %v15705_v15  ;;  %v9061_v16 = vld [vmem:[#allocation8 + $0x190] sm:$0xff]  }
 0x3db   : > { %3984 = vmatmul.mubr.bf16.gmra.mrb[64].mxu0 %v15182_v10  ;;  %4980 = vmatprep.subr.bf16.mxu1 %v15182_v10 }
 0x3dc   : > { %3991 = vmatprep.mubr.bf16.mxu0 %v15706_v34  ;;  %v2799_v54 = vpop.f32.mrb[216].mxu1 }
 0x3dd   : > { %v12406_v23 = vadd.f32 %v11992_v60, %v2799_v54  ;;  %v2801_v38 = vpop.f32.mrb[217].mxu1  ;;  %v15711_v54 = vld [vmem:[#allocation33_spill] sm:$0xff] }
 0x3de   : > { %v3777_v55 = vpop.f32.mrb[216].mxu0  ;;  %v2802_v1 = vpop.f32.mrb[218].mxu1  ;;  %4981 = vmatpush1.bf16.msra.mxu1 %v9059_v46  ;;  %v15712_v38 = vld [vmem:[#allocation34_spill] sm:$0xff] }
 0x3df   : > { %15707 = vst [vmem:[#allocation208_spill] sm:$0xff] %v12406_v23  ;;  %v12409_v56 = vadd.f32 %v3777_v55, %v15708_v32  ;;  %v12412_v50 = vadd.f32 %v12001_v2, %v2802_v1  ;;  %v3779_v25 = vpop.f32.mrb[217].mxu0  ;;  %v2804_v6 = vpop.f32.mrb[219].mxu1  ;;  %4982 = vmatprep.subr.bf16.mxu1 %v15182_v10  ;;  %v9062_v46 = vld [vmem:[#allocation8 + $0x198] sm:$0xff]   ;;  %v15713_v55 = vld [vmem:[#allocation209_spill] sm:$0xff] }
 0x3e0   : > { %v3780_v34 = vpop.f32.mrb[218].mxu0  ;;  %v15714_v2 = vld [vmem:[#allocation22_spill] sm:$0xff] }
 0x3e1   : > { %15709 = vst [vmem:[#allocation27_spill] sm:$0xff] %v12412_v50  ;;  %v12416_v35 = vadd.f32 %v3780_v34, %v15710_v43  ;;  %v3782_v60 = vpop.f32.mrb[219].mxu0  ;;  %8460 = vmatmul.mubr.bf16.gmra.mrb[68].mxu1 %v15711_v54  ;;  %v9063_v34 = vld [vmem:[#allocation8 + $0x1a0] sm:$0xff]  }
 0x3e2   : > { %8463 = vmatprep.mubr.bf16.mxu1 %v15712_v38  ;;  %4983 = vmatpush1.bf16.msra.mxu1 %v9061_v16  ;;  %v15716_v60 = vld [vmem:[#allocation26_spill] sm:$0xff]  ;;  %v15719_v54 = vld [vmem:[#allocation212_spill] sm:$0xff] }
 0x3e3   : > { %3992 = vmatmul.mubr.bf16.gmra.mrb[68].mxu0 %v15713_v55  ;;  %4984 = vmatprep.subr.bf16.mxu1 %v15182_v10  ;;  %v15717_v16 = vld [vmem:[#allocation250_spill] sm:$0xff] }
 0x3e4   : > { %3999 = vmatprep.mubr.bf16.mxu0 %v15714_v2  ;;  %v2807_v1 = vpop.f32.mrb[220].mxu1 }
 0x3e5   : > { %v12424_v32 = vadd.f32 %v11987_v37, %v2807_v1  ;;  %v2809_v25 = vpop.f32.mrb[221].mxu1  ;;  %v15720_v1 = vld [vmem:[#allocation39_spill] sm:$0xff] }
 0x3e6   : > { %v3785_v43 = vpop.f32.mrb[220].mxu0  ;;  %v2810_v6 = vpop.f32.mrb[222].mxu1  ;;  %4985 = vmatpush1.bf16.msra.mxu1 %v9062_v46  ;;  %v15721_v25 = vld [vmem:[#allocation40_spill] sm:$0xff] }
 0x3e7   : > { %15715 = vst [vmem:[#allocation23_spill] sm:$0xff] %v12424_v32  ;;  %v12427_v50 = vadd.f32 %v3785_v43, %v15716_v60  ;;  %v12430_v23 = vadd.f32 %v15717_v16, %v2810_v6  ;;  %v3787_v55 = vpop.f32.mrb[221].mxu0  ;;  %v2812_v38 = vpop.f32.mrb[223].mxu1  ;;  %4986 = vmatprep.subr.bf16.mxu1 %v15182_v10  ;;  %v9064_v46 = vld [vmem:[#allocation8 + $0x1a8] sm:$0xff]   ;;  %v15722_v43 = vld [vmem:[#allocation211_spill] sm:$0xff] }
 0x3e8   : > { %v3788_v2 = vpop.f32.mrb[222].mxu0  ;;  %v15723_v6 = vld [vmem:[#allocation35_spill] sm:$0xff]  ;;  %v9066_v55 = vld [vmem:[#allocation8 + $0x1b0] sm:$0xff]  }
 0x3e9   : > { %15718 = vst [vmem:[#allocation21_spill] sm:$0xff] %v12430_v23  ;;  %v12434_v15 = vadd.f32 %v3788_v2, %v15719_v54  ;;  %v3790_v37 = vpop.f32.mrb[223].mxu0  ;;  %8464 = vmatmul.mubr.bf16.gmra.mrb[72].mxu1 %v15720_v1 }
 0x3ea   : > { %8467 = vmatprep.mubr.bf16.mxu1 %v15721_v25  ;;  %4987 = vmatpush1.bf16.msra.mxu1 %v9063_v34  ;;  %v15725_v37 = vld [vmem:[#allocation214_spill] sm:$0xff]  ;;  %v15727_v25 = vld [vmem:[#allocation215_spill] sm:$0xff] }
 0x3eb   : > { %4000 = vmatmul.mubr.bf16.gmra.mrb[72].mxu0 %v15722_v43  ;;  %4988 = vmatprep.subr.bf16.mxu1 %v15182_v10 }
 0x3ec   : > { %4007 = vmatprep.mubr.bf16.mxu0 %v15723_v6  ;;  %v2815_v38 = vpop.f32.mrb[224].mxu1 }
 0x3ed   : > { %v12442_v60 = vadd.f32 %v12015_v18, %v2815_v38  ;;  %v2817_v16 = vpop.f32.mrb[225].mxu1  ;;  %v15729_v38 = vld [vmem:[#allocation46_spill] sm:$0xff] }
 0x3ee   : > { %v3793_v54 = vpop.f32.mrb[224].mxu0  ;;  %v2818_v2 = vpop.f32.mrb[226].mxu1  ;;  %4989 = vmatpush1.bf16.msra.mxu1 %v9064_v46  ;;  %v15730_v16 = vld [vmem:[#allocation47_spill] sm:$0xff] }
 0x3ef   : > { %15724 = vst [vmem:[#allocation210_spill] sm:$0xff] %v12442_v60  ;;  %v12445_v23 = vadd.f32 %v3793_v54, %v15725_v37  ;;  %v12448_v34 = vadd.f32 %v12024_v39, %v2818_v2  ;;  %v3795_v43 = vpop.f32.mrb[225].mxu0  ;;  %v2820_v32 = vpop.f32.mrb[227].mxu1  ;;  %4990 = vmatprep.subr.bf16.mxu1 %v15182_v10  ;;  %v9067_v46 = vld [vmem:[#allocation8 + $0x1b8] sm:$0xff]   ;;  %v15731_v54 = vld [vmem:[#allocation213_spill] sm:$0xff]  ;;  %v9068_v37 = vld [vmem:[#allocation8 + $0x1c0] sm:$0xff]  }
 0x3f0   : > { %v3796_v6 = vpop.f32.mrb[226].mxu0  ;;  %v15732_v39 = vld [vmem:[#allocation29_spill] sm:$0xff] }
 0x3f1   : > { %15726 = vst [vmem:[#allocation209_spill] sm:$0xff] %v12448_v34  ;;  %v12452_v1 = vadd.f32 %v3796_v6, %v15727_v25  ;;  %v3798_v18 = vpop.f32.mrb[227].mxu0  ;;  %8468 = vmatmul.mubr.bf16.gmra.mrb[76].mxu1 %v15729_v38  ;;  %v15737_v38 = vld [vmem:[#allocation218_spill] sm:$0xff] }
 0x3f2   : > { %8471 = vmatprep.mubr.bf16.mxu1 %v15730_v16  ;;  %4991 = vmatpush1.bf16.msra.mxu1 %v9066_v55  ;;  %v15734_v18 = vld [vmem:[#allocation217_spill] sm:$0xff]  ;;  %v15735_v55 = vld [vmem:[#allocation254_spill] sm:$0xff] }
 0x3f3   : > { %15728 = vst [vmem:[#allocation26_spill] sm:$0xff] %v12452_v1  ;;  %4008 = vmatmul.mubr.bf16.gmra.mrb[76].mxu0 %v15731_v54  ;;  %4992 = vmatprep.subr.bf16.mxu1 %v15182_v10 }
 0x3f4   : > { %4015 = vmatprep.mubr.bf16.mxu0 %v15732_v39  ;;  %v2823_v32 = vpop.f32.mrb[228].mxu1 }
 0x3f5   : > { %v12460_v43 = vadd.f32 %v12010_v33, %v2823_v32  ;;  %v2825_v2 = vpop.f32.mrb[229].mxu1  ;;  %v15738_v32 = vld [vmem:[#allocation52_spill] sm:$0xff] }
 0x3f6   : > { %v3801_v25 = vpop.f32.mrb[228].mxu0  ;;  %v2826_v6 = vpop.f32.mrb[230].mxu1  ;;  %4993 = vmatpush1.bf16.msra.mxu1 %v9067_v46  ;;  %v9070_v2 = vld [vmem:[#allocation8 + $0x218] sm:$0xff]   ;;  %v15739_v46 = vld [vmem:[#allocation53_spill] sm:$0xff] }
 0x3f7   : > { %15733 = vst [vmem:[#allocation250_spill] sm:$0xff] %v12460_v43  ;;  %v12463_v34 = vadd.f32 %v3801_v25, %v15734_v18  ;;  %v12466_v60 = vadd.f32 %v15735_v55, %v2826_v6  ;;  %v3803_v54 = vpop.f32.mrb[229].mxu0  ;;  %v2828_v16 = vpop.f32.mrb[231].mxu1  ;;  %4994 = vmatprep.subr.bf16.mxu1 %v15182_v10  ;;  %v9069_v25 = vld [vmem:[#allocation8 + $0x1c8] sm:$0xff]   ;;  %8589 = vmatprep.subr.bf16.mxu0 %v9070_v2 }
 0x3f8   : > { %v3804_v39 = vpop.f32.mrb[230].mxu0  ;;  %v15740_v18 = vld [vmem:[#allocation216_spill] sm:$0xff]  ;;  %v15741_v54 = vld [vmem:[#allocation42_spill] sm:$0xff]  ;;  %8590 = vmatpush3.bf16.msra.mxu0 %v9070_v2 }
 0x3f9   : > { %15736 = vst [vmem:[#allocation212_spill] sm:$0xff] %v12466_v60  ;;  %v12470_v1 = vadd.f32 %v3804_v39, %v15737_v38  ;;  %v3806_v33 = vpop.f32.mrb[231].mxu0  ;;  %8472 = vmatmul.mubr.bf16.gmra.mrb[80].mxu1 %v15738_v32  ;;  %v15743_v60 = vld [vmem:[#allocation220_spill] sm:$0xff]  ;;  %v15745_v32 = vld [vmem:[#allocation221_spill] sm:$0xff]  ;;  %v15747_v2 = vld [vmem:[#allocation58_spill] sm:$0xff] }
 0x3fa   : > { %8475 = vmatprep.mubr.bf16.mxu1 %v15739_v46  ;;  %4995 = vmatpush1.bf16.msra.mxu1 %v9068_v37  ;;  %v9071_v33 = vld [vmem:[#allocation8 + $0x1d0] sm:$0xff]  }
 0x3fb   : > { %4016 = vmatmul.mubr.bf16.gmra.mrb[80].mxu0 %v15740_v18  ;;  %4996 = vmatprep.subr.bf16.mxu1 %v15182_v10 }
 0x3fc   : > { %4023 = vmatprep.mubr.bf16.mxu0 %v15741_v54  ;;  %v2831_v16 = vpop.f32.mrb[232].mxu1 }
 0x3fd   : > { %v12478_v6 = vadd.f32 %v12038_v9, %v2831_v16  ;;  %v2833_v38 = vpop.f32.mrb[233].mxu1 }
 0x3fe   : > { %v3809_v39 = vpop.f32.mrb[232].mxu0  ;;  %v2834_v55 = vpop.f32.mrb[234].mxu1  ;;  %4997 = vmatpush1.bf16.msra.mxu1 %v9069_v25  ;;  %v15748_v38 = vld [vmem:[#allocation59_spill] sm:$0xff] }
 0x3ff   : > { %15742 = vst [vmem:[#allocation214_spill] sm:$0xff] %v12478_v6  ;;  %v12481_v37 = vadd.f32 %v3809_v39, %v15743_v60  ;;  %v12484_v18 = vadd.f32 %v12047_v40, %v2834_v55  ;;  %v3811_v43 = vpop.f32.mrb[233].mxu0  ;;  %v2836_v46 = vpop.f32.mrb[235].mxu1  ;;  %4998 = vmatprep.subr.bf16.mxu1 %v15182_v10  ;;  %v15749_v25 = vld [vmem:[#allocation219_spill] sm:$0xff]  ;;  %v15750_v40 = vld [vmem:[#allocation41_spill] sm:$0xff] }
 0x400   : > { %v3812_v54 = vpop.f32.mrb[234].mxu0 }
 0x401   : > { %15744 = vst [vmem:[#allocation215_spill] sm:$0xff] %v12484_v18  ;;  %v12488_v9 = vadd.f32 %v3812_v54, %v15745_v32  ;;  %v3814_v16 = vpop.f32.mrb[235].mxu0  ;;  %8476 = vmatmul.mubr.bf16.gmra.mrb[84].mxu1 %v15747_v2  ;;  %v15752_v54 = vld [vmem:[#allocation223_spill] sm:$0xff] }
 0x402   : > { %8479 = vmatprep.mubr.bf16.mxu1 %v15748_v38  ;;  %4999 = vmatpush1.bf16.msra.mxu1 %v9071_v33  ;;  %v15753_v16 = vld [vmem:[#allocation258_spill] sm:$0xff]  ;;  %v15755_v38 = vld [vmem:[#allocation224_spill] sm:$0xff] }
 0x403   : > { %15746 = vst [vmem:[#allocation217_spill] sm:$0xff] %v12488_v9  ;;  %4024 = vmatmul.mubr.bf16.gmra.mrb[84].mxu0 %v15749_v25  ;;  %5000 = vmatprep.subr.bf16.mxu1 %v15182_v10  ;;  %v15756_v9 = vld [vmem:[#allocation64_spill] sm:$0xff] }
 0x404   : > { %4031 = vmatprep.mubr.bf16.mxu0 %v15750_v40  ;;  %v2839_v60 = vpop.f32.mrb[236].mxu1 }
 0x405   : > { %v12496_v43 = vadd.f32 %v12033_v58, %v2839_v60  ;;  %v2841_v46 = vpop.f32.mrb[237].mxu1  ;;  %v9072_v58 = vld [vmem:[#allocation8 + $0x1d8] sm:$0xff]   ;;  %v15757_v60 = vld [vmem:[#allocation65_spill] sm:$0xff] }
 0x406   : > { %v3817_v39 = vpop.f32.mrb[236].mxu0  ;;  %v2842_v32 = vpop.f32.mrb[238].mxu1  ;;  %v15758_v46 = vld [vmem:[#allocation222_spill] sm:$0xff]  ;;  %5001 = vmatpush1.bf16.msra.mxu1 %v9072_v58 }
 0x407   : > { %15751 = vst [vmem:[#allocation254_spill] sm:$0xff] %v12496_v43  ;;  %v12499_v55 = vadd.f32 %v3817_v39, %v15752_v54  ;;  %v12502_v18 = vadd.f32 %v15753_v16, %v2842_v32  ;;  %v3819_v33 = vpop.f32.mrb[237].mxu0  ;;  %v2844_v6 = vpop.f32.mrb[239].mxu1  ;;  %v15759_v39 = vld [vmem:[#allocation54_spill] sm:$0xff]  ;;  %5002 = vmatprep.subr.bf16.mxu1 %v15182_v10  ;;  %v15763_v43 = vld [vmem:[#allocation227_spill] sm:$0xff] }
 0x408   : > { %v3820_v25 = vpop.f32.mrb[238].mxu0 }
 0x409   : > { %15754 = vst [vmem:[#allocation218_spill] sm:$0xff] %v12502_v18  ;;  %v12505_v2 = vadd.f32 %v3820_v25, %v15755_v38  ;;  %v3822_v40 = vpop.f32.mrb[239].mxu0  ;;  %8480 = vmatmul.mubr.bf16.gmra.mrb[88].mxu1 %v15756_v9  ;;  %v15765_v9 = vld [vmem:[#allocation71_spill] sm:$0xff] }
 0x40a   : > { %8483 = vmatprep.mubr.bf16.mxu1 %v15757_v60  ;;  %v15761_v40 = vld [vmem:[#allocation226_spill] sm:$0xff] }
 0x40b   : > { %4032 = vmatmul.mubr.bf16.gmra.mrb[88].mxu0 %v15758_v46 }
 0x40c   : > { %4039 = vmatprep.mubr.bf16.mxu0 %v15759_v39  ;;  %v2847_v54 = vpop.f32.mrb[240].mxu1 }
 0x40d   : > { %v12513_v6 = vadd.f32 %v12061_v57, %v2847_v54  ;;  %v2849_v32 = vpop.f32.mrb[241].mxu1  ;;  %v15766_v57 = vld [vmem:[#allocation225_spill] sm:$0xff]  ;;  %v15767_v54 = vld [vmem:[#allocation50_spill] sm:$0xff] }
 0x40e   : > { %v3825_v38 = vpop.f32.mrb[240].mxu0  ;;  %v2850_v25 = vpop.f32.mrb[242].mxu1 }
 0x40f   : > { %15760 = vst [vmem:[#allocation220_spill] sm:$0xff] %v12513_v6  ;;  %v12516_v16 = vadd.f32 %v3825_v38, %v15761_v40  ;;  %v12519_v33 = vadd.f32 %v12070_v30, %v2850_v25  ;;  %v3827_v18 = vpop.f32.mrb[241].mxu0  ;;  %v2852_v46 = vpop.f32.mrb[243].mxu1  ;;  %v15769_v25 = vld [vmem:[#allocation229_spill] sm:$0xff] }
 0x410   : > { %v3828_v58 = vpop.f32.mrb[242].mxu0 }
 0x411   : > { %15762 = vst [vmem:[#allocation221_spill] sm:$0xff] %v12519_v33  ;;  %v12522_v39 = vadd.f32 %v3828_v58, %v15763_v43  ;;  %v3830_v60 = vpop.f32.mrb[243].mxu0  ;;  %8484 = vmatmul.mubr.bf16.gmra.mrb[92].mxu1 %v15765_v9  ;;  %v15770_v43 = vld [vmem:[#allocation260_spill] sm:$0xff]  ;;  %v15772_v9 = vld [vmem:[#allocation230_spill] sm:$0xff] }
 0x412   : > { %8487 = vmatprep.mubr.bf16.mxu1 %v15182_v10 }
 0x413   : > { %15764 = vst [vmem:[#allocation223_spill] sm:$0xff] %v12522_v39  ;;  %4040 = vmatmul.mubr.bf16.gmra.mrb[92].mxu0 %v15766_v57  ;;  %v15773_v39 = vld [vmem:[#allocation77_spill] sm:$0xff] }
 0x414   : > { %4047 = vmatprep.mubr.bf16.mxu0 %v15767_v54  ;;  %v2855_v32 = vpop.f32.mrb[244].mxu1 }
 0x415   : > { %v12529_v38 = vadd.f32 %v12056_v28, %v2855_v32  ;;  %v2857_v30 = vpop.f32.mrb[245].mxu1  ;;  %v9073_v28 = vld [vmem:[#allocation8 + $0x1e0] sm:$0xff]   ;;  %v15774_v32 = vld [vmem:[#allocation78_spill] sm:$0xff] }
 0x416   : > { %v3833_v18 = vpop.f32.mrb[244].mxu0  ;;  %v2858_v46 = vpop.f32.mrb[246].mxu1  ;;  %v15775_v30 = vld [vmem:[#allocation228_spill] sm:$0xff]  ;;  %5003 = vmatpush1.bf16.msra.mxu1 %v9073_v28 }
 0x417   : > { %15768 = vst [vmem:[#allocation258_spill] sm:$0xff] %v12529_v38  ;;  %v12532_v40 = vadd.f32 %v3833_v18, %v15769_v25  ;;  %v12535_v60 = vadd.f32 %v15770_v43, %v2858_v46  ;;  %v3835_v58 = vpop.f32.mrb[245].mxu0  ;;  %v2860_v33 = vpop.f32.mrb[247].mxu1  ;;  %v15776_v18 = vld [vmem:[#allocation66_spill] sm:$0xff]  ;;  %5004 = vmatprep.subr.bf16.mxu1 %v15182_v10 }
 0x418   : > { %v3836_v6 = vpop.f32.mrb[246].mxu0 }
 0x419   : > { %15771 = vst [vmem:[#allocation224_spill] sm:$0xff] %v12535_v60  ;;  %v12538_v57 = vadd.f32 %v3836_v6, %v15772_v9  ;;  %v3838_v54 = vpop.f32.mrb[247].mxu0  ;;  %8488 = vmatmul.mubr.bf16.gmra.mrb[96].mxu1 %v15773_v39  ;;  %v15780_v60 = vld [vmem:[#allocation233_spill] sm:$0xff] }
 0x41a   : > { %8491 = vmatprep.mubr.bf16.mxu1 %v15774_v32  ;;  %v15778_v54 = vld [vmem:[#allocation232_spill] sm:$0xff]  ;;  %v15782_v32 = vld [vmem:[#allocation83_spill] sm:$0xff] }
 0x41b   : > { %4048 = vmatmul.mubr.bf16.gmra.mrb[96].mxu0 %v15775_v30 }
 0x41c   : > { %4055 = vmatprep.mubr.bf16.mxu0 %v15776_v18  ;;  %v2863_v25 = vpop.f32.mrb[248].mxu1 }
 0x41d   : > { %v12546_v33 = vadd.f32 %v12084_v17, %v2863_v25  ;;  %v2865_v46 = vpop.f32.mrb[249].mxu1  ;;  %v15783_v17 = vld [vmem:[#allocation84_spill] sm:$0xff]  ;;  %v15784_v25 = vld [vmem:[#allocation231_spill] sm:$0xff] }
 0x41e   : > { %v3841_v9 = vpop.f32.mrb[248].mxu0  ;;  %v2866_v6 = vpop.f32.mrb[250].mxu1  ;;  %v15785_v46 = vld [vmem:[#allocation60_spill] sm:$0xff] }
 0x41f   : > { %15777 = vst [vmem:[#allocation226_spill] sm:$0xff] %v12546_v33  ;;  %v12549_v43 = vadd.f32 %v3841_v9, %v15778_v54  ;;  %v12552_v39 = vadd.f32 %v12093_v62, %v2866_v6  ;;  %v3843_v58 = vpop.f32.mrb[249].mxu0  ;;  %v2868_v30 = vpop.f32.mrb[251].mxu1 }
 0x420   : > { %v3844_v28 = vpop.f32.mrb[250].mxu0  ;;  %v15787_v58 = vld [vmem:[#allocation235_spill] sm:$0xff] }
 0x421   : > { %15779 = vst [vmem:[#allocation227_spill] sm:$0xff] %v12552_v39  ;;  %v12555_v18 = vadd.f32 %v3844_v28, %v15780_v60  ;;  %v3846_v38 = vpop.f32.mrb[251].mxu0  ;;  %8492 = vmatmul.mubr.bf16.gmra.mrb[100].mxu1 %v15782_v32  ;;  %v15788_v60 = vld [vmem:[#allocation262_spill] sm:$0xff]  ;;  %v15790_v32 = vld [vmem:[#allocation236_spill] sm:$0xff] }
 0x422   : > { %8495 = vmatprep.mubr.bf16.mxu1 %v15783_v17 }
 0x423   : > { %15781 = vst [vmem:[#allocation229_spill] sm:$0xff] %v12555_v18  ;;  %4056 = vmatmul.mubr.bf16.gmra.mrb[100].mxu0 %v15784_v25  ;;  %v15791_v18 = vld [vmem:[#allocation89_spill] sm:$0xff] }
 0x424   : > { %4063 = vmatprep.mubr.bf16.mxu0 %v15785_v46  ;;  %v2871_v9 = vpop.f32.mrb[252].mxu1 }
 0x425   : > { %v12562_v54 = vadd.f32 %v12079_v59, %v2871_v9  ;;  %v2873_v62 = vpop.f32.mrb[253].mxu1  ;;  %v9074_v59 = vld [vmem:[#allocation8 + $0x1e8] sm:$0xff]   ;;  %v15792_v9 = vld [vmem:[#allocation90_spill] sm:$0xff] }
 0x426   : > { %v3849_v6 = vpop.f32.mrb[252].mxu0  ;;  %v2874_v30 = vpop.f32.mrb[254].mxu1  ;;  %v15793_v62 = vld [vmem:[#allocation234_spill] sm:$0xff]  ;;  %5005 = vmatpush1.bf16.msra.mxu1 %v9074_v59 }
 0x427   : > { %15786 = vst [vmem:[#allocation260_spill] sm:$0xff] %v12562_v54  ;;  %v12565_v39 = vadd.f32 %v3849_v6, %v15787_v58  ;;  %v12568_v38 = vadd.f32 %v15788_v60, %v2874_v30  ;;  %v3851_v28 = vpop.f32.mrb[253].mxu0  ;;  %v2876_v33 = vpop.f32.mrb[255].mxu1  ;;  %v15794_v6 = vld [vmem:[#allocation73_spill] sm:$0xff]  ;;  %5006 = vmatprep.subr.bf16.mxu1 %v15182_v10  ;;  %v15798_v54 = vld [vmem:[#allocation240_spill] sm:$0xff] }
 0x428   : > { %v3852_v17 = vpop.f32.mrb[254].mxu0 }
 0x429   : > { %15789 = vst [vmem:[#allocation230_spill] sm:$0xff] %v12568_v38  ;;  %v12571_v25 = vadd.f32 %v3852_v17, %v15790_v32  ;;  %v3854_v46 = vpop.f32.mrb[255].mxu0  ;;  %8496 = vmatmul.mubr.bf16.gmra.mrb[104].mxu1 %v15791_v18 }
 0x42a   : > { %8499 = vmatprep.mubr.bf16.mxu1 %v15792_v9  ;;  %v15796_v46 = vld [vmem:[#allocation238_spill] sm:$0xff]  ;;  %v15800_v9 = vld [vmem:[#allocation96_spill] sm:$0xff] }
 0x42b   : > { %4064 = vmatmul.mubr.bf16.gmra.mrb[104].mxu0 %v15793_v62 }
 0x42c   : > { %4071 = vmatprep.mubr.bf16.mxu0 %v15794_v6  ;;  %v2879_v58 = vpop.f32.mrb[0].mxu1 }
 0x42d   : > { %v12579_v33 = vadd.f32 %v12107_v26, %v2879_v58  ;;  %v2881_v30 = vpop.f32.mrb[1].mxu1  ;;  %v15801_v26 = vld [vmem:[#allocation97_spill] sm:$0xff] }
 0x42e   : > { %v3857_v32 = vpop.f32.mrb[0].mxu0  ;;  %v2882_v17 = vpop.f32.mrb[2].mxu1  ;;  %v15802_v58 = vld [vmem:[#allocation237_spill] sm:$0xff]  ;;  %v15803_v30 = vld [vmem:[#allocation68_spill] sm:$0xff] }
 0x42f   : > { %15795 = vst [vmem:[#allocation77_spill] sm:$0xff] %v12579_v33  ;;  %v12582_v60 = vadd.f32 %v3857_v32, %v15796_v46  ;;  %v12585_v28 = vadd.f32 %v12116_v12, %v2882_v17  ;;  %v3859_v38 = vpop.f32.mrb[1].mxu0  ;;  %v2884_v62 = vpop.f32.mrb[3].mxu1  ;;  %v15805_v17 = vld [vmem:[#allocation242_spill] sm:$0xff] }
 0x430   : > { %v3860_v59 = vpop.f32.mrb[2].mxu0 }
 0x431   : > { %15797 = vst [vmem:[#allocation232_spill] sm:$0xff] %v12585_v28  ;;  %v12588_v6 = vadd.f32 %v3860_v59, %v15798_v54  ;;  %8500 = vmatmul.mubr.bf16.gmra.mrb[108].mxu1 %v15800_v9  ;;  %v3862_v18 = vpop.f32.mrb[3].mxu0  ;;  %v15806_v54 = vld [vmem:[#allocation265_spill] sm:$0xff]  ;;  %v15808_v9 = vld [vmem:[#allocation243_spill] sm:$0xff] }
 0x432   : > { %8503 = vmatprep.mubr.bf16.mxu1 %v15801_v26 }
 0x433   : > { %15799 = vst [vmem:[#allocation233_spill] sm:$0xff] %v12588_v6  ;;  %4072 = vmatmul.mubr.bf16.gmra.mrb[108].mxu0 %v15802_v58  ;;  %v15809_v6 = vld [vmem:[#allocation104_spill] sm:$0xff] }
 0x434   : > { %4079 = vmatprep.mubr.bf16.mxu0 %v15803_v30  ;;  %v2887_v32 = vpop.f32.mrb[4].mxu1 }
 0x435   : > { %v12595_v46 = vadd.f32 %v12102_v19, %v2887_v32  ;;  %v2889_v12 = vpop.f32.mrb[5].mxu1  ;;  %v9075_v19 = vld [vmem:[#allocation8 + $0x220] sm:$0xff]   ;;  %v9076_v32 = vld [vmem:[#allocation8 + $0x1f0] sm:$0xff]  }
 0x436   : > { %v3865_v38 = vpop.f32.mrb[4].mxu0  ;;  %v2890_v62 = vpop.f32.mrb[6].mxu1  ;;  %v15810_v12 = vld [vmem:[#allocation102_spill] sm:$0xff]  ;;  %8591 = vmatprep.subr.bf16.mxu0 %v9075_v19  ;;  %5007 = vmatpush1.bf16.msra.mxu1 %v9076_v32 }
 0x437   : > { %15804 = vst [vmem:[#allocation235_spill] sm:$0xff] %v12595_v46  ;;  %v12598_v28 = vadd.f32 %v3865_v38, %v15805_v17  ;;  %v12601_v59 = vadd.f32 %v15806_v54, %v2890_v62  ;;  %v3867_v18 = vpop.f32.mrb[5].mxu0  ;;  %v2892_v33 = vpop.f32.mrb[7].mxu1  ;;  %v15811_v46 = vld [vmem:[#allocation173_spill] sm:$0xff]  ;;  %8592 = vmatpush3.bf16.msra.mxu0 %v9075_v19  ;;  %5008 = vmatprep.subr.bf16.mxu1 %v15182_v10  ;;  %v15819_v19 = vld [vmem:[#allocation114_spill] sm:$0xff] }
 0x438   : > { %v3868_v26 = vpop.f32.mrb[6].mxu0  ;;  %v15812_v38 = vld [vmem:[#allocation85_spill] sm:$0xff] }
 0x439   : > { %15807 = vst [vmem:[#allocation262_spill] sm:$0xff] %v12601_v59  ;;  %v12604_v58 = vadd.f32 %v3868_v26, %v15808_v9  ;;  %v3870_v30 = vpop.f32.mrb[7].mxu0  ;;  %8504 = vmatmul.mubr.bf16.gmra.mrb[112].mxu1 %v15809_v6  ;;  %v15826_v6 = vld [vmem:[#allocation249_spill] sm:$0xff] }
 0x43a   : > { %8507 = vmatprep.mubr.bf16.mxu1 %v15810_v12  ;;  %v15814_v30 = vld [vmem:[#allocation245_spill] sm:$0xff]  ;;  %v15816_v12 = vld [vmem:[#allocation246_spill] sm:$0xff] }
 0x43b   : > { %4080 = vmatmul.mubr.bf16.gmra.mrb[112].mxu0 %v15811_v46 }
 0x43c   : > { %4087 = vmatprep.mubr.bf16.mxu0 %v15812_v38  ;;  %v2895_v62 = vpop.f32.mrb[8].mxu1 }
 0x43d   : > { %v12611_v33 = vadd.f32 %v12130_v48, %v2895_v62  ;;  %v2897_v17 = vpop.f32.mrb[9].mxu1  ;;  %v15818_v62 = vld [vmem:[#allocation113_spill] sm:$0xff] }
 0x43e   : > { %v3873_v9 = vpop.f32.mrb[8].mxu0  ;;  %v2898_v26 = vpop.f32.mrb[10].mxu1  ;;  %v15820_v17 = vld [vmem:[#allocation244_spill] sm:$0xff] }
 0x43f   : > { %15813 = vst [vmem:[#allocation236_spill] sm:$0xff] %v12611_v33  ;;  %v12615_v54 = vadd.f32 %v3873_v9, %v15814_v30  ;;  %v12618_v18 = vadd.f32 %v12139_v27, %v2898_v26  ;;  %v3875_v46 = vpop.f32.mrb[9].mxu0  ;;  %v2900_v59 = vpop.f32.mrb[11].mxu1  ;;  %v15821_v33 = vld [vmem:[#allocation79_spill] sm:$0xff]  ;;  %v15823_v26 = vld [vmem:[#allocation248_spill] sm:$0xff] }
 0x440   : > { %v3876_v38 = vpop.f32.mrb[10].mxu0 }
 0x441   : > { %15815 = vst [vmem:[#allocation238_spill] sm:$0xff] %v12618_v18  ;;  %v12621_v32 = vadd.f32 %v3876_v38, %v15816_v12  ;;  %v3878_v48 = vpop.f32.mrb[11].mxu0  ;;  %8508 = vmatmul.mubr.bf16.gmra.mrb[116].mxu1 %v15818_v62  ;;  %v15824_v12 = vld [vmem:[#allocation268_spill] sm:$0xff] }
 0x442   : > { %8511 = vmatprep.mubr.bf16.mxu1 %v15819_v19 }
 0x443   : > { %15817 = vst [vmem:[#allocation240_spill] sm:$0xff] %v12621_v32  ;;  %4088 = vmatmul.mubr.bf16.gmra.mrb[116].mxu0 %v15820_v17  ;;  %v15828_v32 = vld [vmem:[#allocation122_spill] sm:$0xff] }
 0x444   : > { %4095 = vmatprep.mubr.bf16.mxu0 %v15821_v33  ;;  %v2903_v9 = vpop.f32.mrb[12].mxu1 }
 0x445   : > { %v12628_v30 = vadd.f32 %v12125_v11, %v2903_v9  ;;  %v2905_v27 = vpop.f32.mrb[13].mxu1  ;;  %v9077_v11 = vld [vmem:[#allocation8 + $0x1f8] sm:$0xff]   ;;  %v15829_v9 = vld [vmem:[#allocation120_spill] sm:$0xff] }
 0x446   : > { %v3881_v46 = vpop.f32.mrb[12].mxu0  ;;  %v2906_v59 = vpop.f32.mrb[14].mxu1  ;;  %v15830_v27 = vld [vmem:[#allocation247_spill] sm:$0xff]  ;;  %5009 = vmatpush1.bf16.msra.mxu1 %v9077_v11  ;;  %v15835_v11 = vld [vmem:[#allocation253_spill] sm:$0xff] }
 0x447   : > { %15822 = vst [vmem:[#allocation242_spill] sm:$0xff] %v12628_v30  ;;  %v12631_v18 = vadd.f32 %v3881_v46, %v15823_v26  ;;  %v12634_v38 = vadd.f32 %v15824_v12, %v2906_v59  ;;  %v3883_v48 = vpop.f32.mrb[13].mxu0  ;;  %v2908_v62 = vpop.f32.mrb[15].mxu1  ;;  %v15831_v46 = vld [vmem:[#allocation98_spill] sm:$0xff] }
 0x448   : > { %v3884_v19 = vpop.f32.mrb[14].mxu0 }
 0x449   : > { %15825 = vst [vmem:[#allocation265_spill] sm:$0xff] %v12634_v38  ;;  %v12637_v17 = vadd.f32 %v3884_v19, %v15826_v6  ;;  %v3886_v33 = vpop.f32.mrb[15].mxu0  ;;  %8512 = vmatmul.mubr.bf16.gmra.mrb[120].mxu1 %v15828_v32  ;;  %v15833_v6 = vld [vmem:[#allocation252_spill] sm:$0xff] }
 0x44a   : > { %8515 = vmatprep.mubr.bf16.mxu1 %v15829_v9  ;;  %v9078_v9 = vld [vmem:[#allocation8 + $0x228] sm:$0xff]  }
 0x44b   : > { %15827 = vst [vmem:[#allocation243_spill] sm:$0xff] %v12637_v17  ;;  %4096 = vmatmul.mubr.bf16.gmra.mrb[120].mxu0 %v15830_v27  ;;  %v15836_v17 = vld [vmem:[#allocation127_spill] sm:$0xff]  ;;  %8593 = vmatprep.subr.bf16.mxu0 %v9078_v9 }
 0x44c   : > { %4103 = vmatprep.mubr.bf16.mxu0 %v15831_v46  ;;  %v2911_v26 = vpop.f32.mrb[16].mxu1  ;;  %8594 = vmatpush3.bf16.msra.mxu0 %v9078_v9 }
 0x44d   : > { %v12644_v59 = vadd.f32 %v12153_v52, %v2911_v26  ;;  %v2913_v62 = vpop.f32.mrb[17].mxu1  ;;  %v15837_v52 = vld [vmem:[#allocation251_spill] sm:$0xff]  ;;  %v9079_v26 = vld [vmem:[#allocation8 + $0x230] sm:$0xff]  }
 0x44e   : > { %v3889_v12 = vpop.f32.mrb[16].mxu0  ;;  %v2914_v48 = vpop.f32.mrb[18].mxu1  ;;  %8595 = vmatprep.subr.bf16.mxu0 %v9079_v26 }
 0x44f   : > { %15832 = vst [vmem:[#allocation245_spill] sm:$0xff] %v12644_v59  ;;  %v12647_v19 = vadd.f32 %v3889_v12, %v15833_v6  ;;  %v12650_v33 = vadd.f32 %v12162_v20, %v2914_v48  ;;  %v3891_v38 = vpop.f32.mrb[17].mxu0  ;;  %v2916_v30 = vpop.f32.mrb[19].mxu1  ;;  %v15840_v48 = vld [vmem:[#allocation271_spill] sm:$0xff]  ;;  %v15842_v59 = vld [vmem:[#allocation257_spill] sm:$0xff] }
 0x450   : > { %v3892_v27 = vpop.f32.mrb[18].mxu0  ;;  %8596 = vmatpush3.bf16.msra.mxu0 %v9079_v26  ;;  %v15845_v26 = vld [vmem:[#allocation115_spill] sm:$0xff] }
 0x451   : > { %15834 = vst [vmem:[#allocation246_spill] sm:$0xff] %v12650_v33  ;;  %v12653_v32 = vadd.f32 %v3892_v27, %v15835_v11  ;;  %v3894_v46 = vpop.f32.mrb[19].mxu0  ;;  %8516 = vmatmul.mubr.bf16.gmra.mrb[124].mxu1 %v15836_v17 }
 0x452   : > { %8519 = vmatprep.mubr.bf16.mxu1 %v15182_v10  ;;  %v15839_v46 = vld [vmem:[#allocation256_spill] sm:$0xff] }
 0x453   : > { %4104 = vmatmul.mubr.bf16.gmra.mrb[124].mxu0 %v15837_v52  ;;  %v9080_v52 = vld [vmem:[#allocation8 + $0x238] sm:$0xff]  }
 0x454   : > { %v2919_v62 = vpop.f32.mrb[20].mxu1  ;;  %4111 = vmatprep.mubr.bf16.mxu0 %v15182_v10  ;;  %8597 = vmatprep.subr.bf16.mxu0 %v9080_v52 }
 0x455   : > { %v12660_v20 = vadd.f32 %v12148_v49, %v2919_v62  ;;  %v2921_v30 = vpop.f32.mrb[21].mxu1  ;;  %v15843_v62 = vld [vmem:[#allocation128_spill] sm:$0xff]  ;;  %8598 = vmatpush3.bf16.msra.mxu0 %v9080_v52 }
 0x456   : > { %v3897_v38 = vpop.f32.mrb[20].mxu0  ;;  %v2922_v27 = vpop.f32.mrb[22].mxu1  ;;  %v15844_v30 = vld [vmem:[#allocation132_spill] sm:$0xff] }
 0x457   : > { %15838 = vst [vmem:[#allocation248_spill] sm:$0xff] %v12660_v20  ;;  %v12663_v12 = vadd.f32 %v3897_v38, %v15839_v46  ;;  %v12666_v6 = vadd.f32 %v15840_v48, %v2922_v27  ;;  %v3899_v9 = vpop.f32.mrb[21].mxu0  ;;  %v2924_v11 = vpop.f32.mrb[23].mxu1 }
 0x458   : > { %v3900_v33 = vpop.f32.mrb[22].mxu0 }
 0x459   : > { %15841 = vst [vmem:[#allocation268_spill] sm:$0xff] %v12666_v6  ;;  %v12669_v17 = vadd.f32 %v3900_v33, %v15842_v59  ;;  %v3902_v49 = vpop.f32.mrb[23].mxu0  ;;  %8520 = vmatmul.mubr.bf16.gmra.mrb[128].mxu1 %v15843_v62  ;;  %v15847_v59 = vld [vmem:[#allocation69_spill] sm:$0xff]  ;;  %v15849_v6 = vld [vmem:[#allocation259_spill] sm:$0xff] }
 0x45a   : > { %8523 = vmatprep.mubr.bf16.mxu1 %v15844_v30  ;;  %v15851_v30 = vld [vmem:[#allocation92_spill] sm:$0xff] }
 0x45b   : > { %4112 = vmatmul.mubr.bf16.gmra.mrb[128].mxu0 %v15182_v10 }
 0x45c   : > { %4119 = vmatprep.mubr.bf16.mxu0 %v15845_v26  ;;  %v2927_v38 = vpop.f32.mrb[24].mxu1 }
 0x45d   : > { %v12676_v27 = vadd.f32 %v12176_v13, %v2927_v38  ;;  %v2929_v46 = vpop.f32.mrb[25].mxu1  ;;  %v15852_v13 = vld [vmem:[#allocation136_spill] sm:$0xff]  ;;  %v15853_v38 = vld [vmem:[#allocation105_spill] sm:$0xff] }
 0x45e   : > { %v3905_v48 = vpop.f32.mrb[24].mxu0  ;;  %v2930_v9 = vpop.f32.mrb[26].mxu1  ;;  %v15854_v46 = vld [vmem:[#allocation106_spill] sm:$0xff] }
 0x45f   : > { %15846 = vst [vmem:[#allocation249_spill] sm:$0xff] %v12676_v27  ;;  %v12679_v33 = vadd.f32 %v3905_v48, %v15847_v59  ;;  %v12682_v11 = vadd.f32 %v12185_v45, %v2930_v9  ;;  %v3907_v49 = vpop.f32.mrb[25].mxu0  ;;  %v2932_v62 = vpop.f32.mrb[27].mxu1 }
 0x460   : > { %v3908_v52 = vpop.f32.mrb[26].mxu0  ;;  %v15856_v62 = vld [vmem:[#allocation131_spill] sm:$0xff] }
 0x461   : > { %15848 = vst [vmem:[#allocation252_spill] sm:$0xff] %v12682_v11  ;;  %v12685_v20 = vadd.f32 %v3908_v52, %v15849_v6  ;;  %v3910_v26 = vpop.f32.mrb[27].mxu0  ;;  %8524 = vmatmul.mubr.bf16.gmra.mrb[132].mxu1 %v15851_v30  ;;  %v15857_v6 = vld [vmem:[#allocation274_spill] sm:$0xff]  ;;  %v15859_v30 = vld [vmem:[#allocation261_spill] sm:$0xff] }
 0x462   : > { %8527 = vmatprep.mubr.bf16.mxu1 %v15852_v13 }
 0x463   : > { %15850 = vst [vmem:[#allocation253_spill] sm:$0xff] %v12685_v20  ;;  %4120 = vmatmul.mubr.bf16.gmra.mrb[132].mxu0 %v15853_v38  ;;  %v15860_v20 = vld [vmem:[#allocation99_spill] sm:$0xff] }
 0x464   : > { %4127 = vmatprep.mubr.bf16.mxu0 %v15854_v46  ;;  %v2935_v48 = vpop.f32.mrb[28].mxu1 }
 0x465   : > { %v12692_v59 = vadd.f32 %v12171_v47, %v2935_v48  ;;  %v2937_v45 = vpop.f32.mrb[29].mxu1  ;;  %v15861_v47 = vld [vmem:[#allocation107_spill] sm:$0xff]  ;;  %v15862_v48 = vld [vmem:[#allocation118_spill] sm:$0xff] }
 0x466   : > { %v3913_v9 = vpop.f32.mrb[28].mxu0  ;;  %v2938_v49 = vpop.f32.mrb[30].mxu1  ;;  %v15863_v45 = vld [vmem:[#allocation125_spill] sm:$0xff] }
 0x467   : > { %15855 = vst [vmem:[#allocation256_spill] sm:$0xff] %v12692_v59  ;;  %v12695_v11 = vadd.f32 %v3913_v9, %v15856_v62  ;;  %v12698_v52 = vadd.f32 %v15857_v6, %v2938_v49  ;;  %v3915_v26 = vpop.f32.mrb[29].mxu0  ;;  %v2940_v27 = vpop.f32.mrb[31].mxu1 }
 0x468   : > { %v3916_v13 = vpop.f32.mrb[30].mxu0  ;;  %v15865_v26 = vld [vmem:[#allocation263_spill] sm:$0xff] }
 0x469   : > { %15858 = vst [vmem:[#allocation271_spill] sm:$0xff] %v12698_v52  ;;  %v12701_v38 = vadd.f32 %v3916_v13, %v15859_v30  ;;  %v3918_v46 = vpop.f32.mrb[31].mxu0  ;;  %8528 = vmatmul.mubr.bf16.gmra.mrb[136].mxu1 %v15860_v20  ;;  %v15869_v20 = vld [vmem:[#allocation108_spill] sm:$0xff] }
 0x46a   : > { %8531 = vmatprep.mubr.bf16.mxu1 %v15861_v47  ;;  %v15867_v47 = vld [vmem:[#allocation264_spill] sm:$0xff] }
 0x46b   : > { %4128 = vmatmul.mubr.bf16.gmra.mrb[136].mxu0 %v15862_v48 }
 0x46c   : > { %4135 = vmatprep.mubr.bf16.mxu0 %v15863_v45  ;;  %v2943_v9 = vpop.f32.mrb[32].mxu1 }
 0x46d   : > { %v12708_v62 = vadd.f32 %v12199_v0, %v2943_v9  ;;  %v2945_v49 = vpop.f32.mrb[33].mxu1  ;;  %v15870_v0 = vld [vmem:[#allocation143_spill] sm:$0xff]  ;;  %v15871_v9 = vld [vmem:[#allocation144_spill] sm:$0xff] }
 0x46e   : > { %v3921_v6 = vpop.f32.mrb[32].mxu0  ;;  %v2946_v27 = vpop.f32.mrb[34].mxu1  ;;  %v15872_v49 = vld [vmem:[#allocation123_spill] sm:$0xff] }
 0x46f   : > { %15864 = vst [vmem:[#allocation257_spill] sm:$0xff] %v12708_v62  ;;  %v12711_v52 = vadd.f32 %v3921_v6, %v15865_v26  ;;  %v12714_v30 = vadd.f32 %v12208_v22, %v2946_v27  ;;  %v3923_v13 = vpop.f32.mrb[33].mxu0  ;;  %v2948_v46 = vpop.f32.mrb[35].mxu1 }
 0x470   : > { %v3924_v59 = vpop.f32.mrb[34].mxu0  ;;  %v15874_v46 = vld [vmem:[#allocation266_spill] sm:$0xff] }
 0x471   : > { %15866 = vst [vmem:[#allocation128_spill] sm:$0xff] %v12714_v30  ;;  %v12717_v48 = vadd.f32 %v3924_v59, %v15867_v47  ;;  %v3926_v45 = vpop.f32.mrb[35].mxu0  ;;  %8532 = vmatmul.mubr.bf16.gmra.mrb[140].mxu1 %v15869_v20  ;;  %v15875_v59 = vld [vmem:[#allocation277_spill] sm:$0xff]  ;;  %v15877_v20 = vld [vmem:[#allocation267_spill] sm:$0xff] }
 0x472   : > { %8535 = vmatprep.mubr.bf16.mxu1 %v15870_v0 }
 0x473   : > { %15868 = vst [vmem:[#allocation115_spill] sm:$0xff] %v12717_v48  ;;  %4136 = vmatmul.mubr.bf16.gmra.mrb[140].mxu0 %v15871_v9  ;;  %v15878_v48 = vld [vmem:[#allocation145_spill] sm:$0xff] }
 0x474   : > { %4143 = vmatprep.mubr.bf16.mxu0 %v15872_v49  ;;  %v2951_v6 = vpop.f32.mrb[36].mxu1 }
 0x475   : > { %v12724_v26 = vadd.f32 %v12194_v5, %v2951_v6  ;;  %v2953_v22 = vpop.f32.mrb[37].mxu1  ;;  %v15879_v5 = vld [vmem:[#allocation152_spill] sm:$0xff] }
 0x476   : > { %v3929_v27 = vpop.f32.mrb[36].mxu0  ;;  %v2954_v13 = vpop.f32.mrb[38].mxu1  ;;  %v15880_v6 = vld [vmem:[#allocation148_spill] sm:$0xff]  ;;  %v15881_v22 = vld [vmem:[#allocation130_spill] sm:$0xff] }
 0x477   : > { %15873 = vst [vmem:[#allocation69_spill] sm:$0xff] %v12724_v26  ;;  %v12727_v30 = vadd.f32 %v3929_v27, %v15874_v46  ;;  %v12730_v47 = vadd.f32 %v15875_v59, %v2954_v13  ;;  %v3931_v45 = vpop.f32.mrb[37].mxu0  ;;  %v2956_v62 = vpop.f32.mrb[39].mxu1 }
 0x478   : > { %v3932_v0 = vpop.f32.mrb[38].mxu0  ;;  %v15883_v45 = vld [vmem:[#allocation269_spill] sm:$0xff] }
 0x479   : > { %15876 = vst [vmem:[#allocation259_spill] sm:$0xff] %v12730_v47  ;;  %v12733_v9 = vadd.f32 %v3932_v0, %v15877_v20  ;;  %v3934_v49 = vpop.f32.mrb[39].mxu0  ;;  %8536 = vmatmul.mubr.bf16.gmra.mrb[144].mxu1 %v15878_v48  ;;  %v15887_v48 = vld [vmem:[#allocation154_spill] sm:$0xff] }
 0x47a   : > { %8539 = vmatprep.mubr.bf16.mxu1 %v15879_v5  ;;  %v15885_v5 = vld [vmem:[#allocation270_spill] sm:$0xff] }
 0x47b   : > { %4144 = vmatmul.mubr.bf16.gmra.mrb[144].mxu0 %v15880_v6 }
 0x47c   : > { %4151 = vmatprep.mubr.bf16.mxu0 %v15881_v22  ;;  %v2959_v27 = vpop.f32.mrb[40].mxu1 }
 0x47d   : > { %v12740_v46 = vadd.f32 %v12222_v63, %v2959_v27  ;;  %v2961_v13 = vpop.f32.mrb[41].mxu1  ;;  %v15888_v63 = vld [vmem:[#allocation160_spill] sm:$0xff]  ;;  %v15889_v27 = vld [vmem:[#allocation149_spill] sm:$0xff] }
 0x47e   : > { %v3937_v59 = vpop.f32.mrb[40].mxu0  ;;  %v2962_v62 = vpop.f32.mrb[42].mxu1  ;;  %v15890_v13 = vld [vmem:[#allocation129_spill] sm:$0xff] }
 0x47f   : > { %15882 = vst [vmem:[#allocation105_spill] sm:$0xff] %v12740_v46  ;;  %v12743_v47 = vadd.f32 %v3937_v59, %v15883_v45  ;;  %v12746_v20 = vadd.f32 %v12231_v8, %v2962_v62  ;;  %v3939_v0 = vpop.f32.mrb[41].mxu0  ;;  %v2964_v49 = vpop.f32.mrb[43].mxu1 }
 0x480   : > { %v3940_v26 = vpop.f32.mrb[42].mxu0  ;;  %v15892_v49 = vld [vmem:[#allocation272_spill] sm:$0xff] }
 0x481   : > { %15884 = vst [vmem:[#allocation131_spill] sm:$0xff] %v12746_v20  ;;  %v12749_v6 = vadd.f32 %v3940_v26, %v15885_v5  ;;  %v3942_v22 = vpop.f32.mrb[43].mxu0  ;;  %8540 = vmatmul.mubr.bf16.gmra.mrb[148].mxu1 %v15887_v48  ;;  %v15893_v26 = vld [vmem:[#allocation280_spill] sm:$0xff]  ;;  %v15895_v48 = vld [vmem:[#allocation273_spill] sm:$0xff] }
 0x482   : > { %8543 = vmatprep.mubr.bf16.mxu1 %v15888_v63 }
 0x483   : > { %15886 = vst [vmem:[#allocation274_spill] sm:$0xff] %v12749_v6  ;;  %4152 = vmatmul.mubr.bf16.gmra.mrb[148].mxu0 %v15889_v27  ;;  %v15896_v6 = vld [vmem:[#allocation161_spill] sm:$0xff] }
 0x484   : > { %4159 = vmatprep.mubr.bf16.mxu0 %v15890_v13  ;;  %v2967_v59 = vpop.f32.mrb[44].mxu1 }
 0x485   : > { %v12756_v45 = vadd.f32 %v12217_v42, %v2967_v59  ;;  %v2969_v8 = vpop.f32.mrb[45].mxu1  ;;  %v15897_v42 = vld [vmem:[#allocation166_spill] sm:$0xff] }
 0x486   : > { %v3945_v62 = vpop.f32.mrb[44].mxu0  ;;  %v2970_v0 = vpop.f32.mrb[46].mxu1  ;;  %v15898_v59 = vld [vmem:[#allocation150_spill] sm:$0xff] }
 0x487   : > { %15891 = vst [vmem:[#allocation261_spill] sm:$0xff] %v12756_v45  ;;  %v12759_v20 = vadd.f32 %v3945_v62, %v15892_v49  ;;  %v12762_v5 = vadd.f32 %v15893_v26, %v2970_v0  ;;  %v3947_v22 = vpop.f32.mrb[45].mxu0  ;;  %v2972_v46 = vpop.f32.mrb[47].mxu1  ;;  %v15899_v8 = vld [vmem:[#allocation134_spill] sm:$0xff] }
 0x488   : > { %v3948_v63 = vpop.f32.mrb[46].mxu0  ;;  %v15901_v22 = vld [vmem:[#allocation275_spill] sm:$0xff] }
 0x489   : > { %15894 = vst [vmem:[#allocation263_spill] sm:$0xff] %v12762_v5  ;;  %v12765_v27 = vadd.f32 %v3948_v63, %v15895_v48  ;;  %v3950_v13 = vpop.f32.mrb[47].mxu0  ;;  %8544 = vmatmul.mubr.bf16.gmra.mrb[152].mxu1 %v15896_v6  ;;  %v15905_v6 = vld [vmem:[#allocation168_spill] sm:$0xff] }
 0x48a   : > { %8547 = vmatprep.mubr.bf16.mxu1 %v15897_v42  ;;  %v15903_v42 = vld [vmem:[#allocation276_spill] sm:$0xff] }
 0x48b   : > { %4160 = vmatmul.mubr.bf16.gmra.mrb[152].mxu0 %v15898_v59 }
 0x48c   : > { %4167 = vmatprep.mubr.bf16.mxu0 %v15899_v8  ;;  %v2975_v62 = vpop.f32.mrb[48].mxu1 }
 0x48d   : > { %v12772_v49 = vadd.f32 %v12245_v44, %v2975_v62  ;;  %v2977_v0 = vpop.f32.mrb[49].mxu1  ;;  %v15906_v44 = vld [vmem:[#allocation153_spill] sm:$0xff] }
 0x48e   : > { %v3953_v26 = vpop.f32.mrb[48].mxu0  ;;  %v2978_v46 = vpop.f32.mrb[50].mxu1  ;;  %v15907_v62 = vld [vmem:[#allocation133_spill] sm:$0xff] }
 0x48f   : > { %15900 = vst [vmem:[#allocation264_spill] sm:$0xff] %v12772_v49  ;;  %v12775_v5 = vadd.f32 %v3953_v26, %v15901_v22  ;;  %v12778_v48 = vadd.f32 %v12254_v41, %v2978_v46  ;;  %v3955_v63 = vpop.f32.mrb[49].mxu0  ;;  %v2980_v13 = vpop.f32.mrb[51].mxu1  ;;  %v15911_v49 = vld [vmem:[#allocation279_spill] sm:$0xff] }
 0x490   : > { %v3956_v45 = vpop.f32.mrb[50].mxu0  ;;  %v15909_v63 = vld [vmem:[#allocation278_spill] sm:$0xff] }
 0x491   : > { %15902 = vst [vmem:[#allocation266_spill] sm:$0xff] %v12778_v48  ;;  %v12781_v59 = vadd.f32 %v3956_v45, %v15903_v42  ;;  %v3958_v8 = vpop.f32.mrb[51].mxu0  ;;  %8548 = vmatmul.mubr.bf16.gmra.mrb[156].mxu1 %v15905_v6  ;;  %v15912_v6 = vld [vmem:[#allocation172_spill] sm:$0xff] }
 0x492   : > { %8551 = vmatprep.mubr.bf16.mxu1 %v15182_v10 }
 0x493   : > { %15904 = vst [vmem:[#allocation277_spill] sm:$0xff] %v12781_v59  ;;  %4168 = vmatmul.mubr.bf16.gmra.mrb[156].mxu0 %v15906_v44  ;;  %v15923_v59 = vld [vmem:[#allocation176_spill] sm:$0xff] }
 0x494   : > { %4175 = vmatprep.mubr.bf16.mxu0 %v15907_v62  ;;  %v2983_v0 = vpop.f32.mrb[52].mxu1 }
 0x495   : > { %v12788_v26 = vadd.f32 %v12240_v53, %v2983_v0  ;;  %v2985_v41 = vpop.f32.mrb[53].mxu1  ;;  %v15913_v53 = vld [vmem:[#allocation175_spill] sm:$0xff] }
 0x496   : > { %v3961_v46 = vpop.f32.mrb[52].mxu0  ;;  %v2986_v22 = vpop.f32.mrb[54].mxu1  ;;  %v15914_v0 = vld [vmem:[#allocation155_spill] sm:$0xff]  ;;  %v15915_v41 = vld [vmem:[#allocation138_spill] sm:$0xff] }
 0x497   : > { %15908 = vst [vmem:[#allocation267_spill] sm:$0xff] %v12788_v26  ;;  %v12791_v13 = vadd.f32 %v3961_v46, %v15909_v63  ;;  %v12794_v45 = vadd.f32 %v12247_v4, %v2986_v22  ;;  %v3963_v42 = vpop.f32.mrb[53].mxu0  ;;  %v2988_v8 = vpop.f32.mrb[55].mxu1 }
 0x498   : > { %v3964_v48 = vpop.f32.mrb[54].mxu0  ;;  %v15917_v8 = vld [vmem:[#allocation281_spill] sm:$0xff] }
 0x499   : > { %15910 = vst [vmem:[#allocation269_spill] sm:$0xff] %v12794_v45  ;;  %v12797_v44 = vadd.f32 %v3964_v48, %v15911_v49  ;;  %v3966_v62 = vpop.f32.mrb[55].mxu0  ;;  %8552 = vmatmul.mubr.bf16.gmra.mrb[160].mxu1 %v15912_v6  ;;  %v15919_v49 = vld [vmem:[#allocation287_spill] sm:$0xff] }
 0x49a   : > { %8555 = vmatprep.mubr.bf16.mxu1 %v15913_v53  ;;  %v15921_v53 = vld [vmem:[#allocation282_spill] sm:$0xff] }
 0x49b   : > { %4176 = vmatmul.mubr.bf16.gmra.mrb[160].mxu0 %v15914_v0 }
 0x49c   : > { %4183 = vmatprep.mubr.bf16.mxu0 %v15915_v41  ;;  %v2991_v46 = vpop.f32.mrb[56].mxu1 }
 0x49d   : > { %v12804_v63 = vadd.f32 %v12268_v14, %v2991_v46  ;;  %v2993_v4 = vpop.f32.mrb[57].mxu1  ;;  %v15924_v14 = vld [vmem:[#allocation178_spill] sm:$0xff]  ;;  %v15925_v46 = vld [vmem:[#allocation156_spill] sm:$0xff] }
 0x49e   : > { %v3969_v22 = vpop.f32.mrb[56].mxu0  ;;  %v2994_v42 = vpop.f32.mrb[58].mxu1  ;;  %v15926_v4 = vld [vmem:[#allocation137_spill] sm:$0xff] }
 0x49f   : > { %15916 = vst [vmem:[#allocation270_spill] sm:$0xff] %v12804_v63  ;;  %v12807_v45 = vadd.f32 %v3969_v22, %v15917_v8  ;;  %v12810_v48 = vadd.f32 %v15919_v49, %v2994_v42  ;;  %v3971_v6 = vpop.f32.mrb[57].mxu0  ;;  %v2996_v62 = vpop.f32.mrb[59].mxu1  ;;  %v15927_v8 = vld [vmem:[#allocation284_spill] sm:$0xff] }
 0x4a0   : > { %v3972_v26 = vpop.f32.mrb[58].mxu0  ;;  %v15929_v62 = vld [vmem:[#allocation283_spill] sm:$0xff] }
 0x4a1   : > { %15918 = vst [vmem:[#allocation272_spill] sm:$0xff] %v12807_v45  ;;  %15920 = vst [vmem:[#allocation280_spill] sm:$0xff] %v12810_v48  ;;  %v12813_v0 = vadd.f32 %v3972_v26, %v15921_v53  ;;  %v3974_v41 = vpop.f32.mrb[59].mxu0  ;;  %8556 = vmatmul.mubr.bf16.gmra.mrb[164].mxu1 %v15923_v59  ;;  %v15930_v26 = vld [vmem:[#allocation286_spill] sm:$0xff]  ;;  %v15933_v45 = vld [vmem:[#allocation179_spill] sm:$0xff] }
 0x4a2   : > { %8559 = vmatprep.mubr.bf16.mxu1 %v15924_v14 }
 0x4a3   : > { %15922 = vst [vmem:[#allocation273_spill] sm:$0xff] %v12813_v0  ;;  %4184 = vmatmul.mubr.bf16.gmra.mrb[164].mxu0 %v15925_v46  ;;  %v15932_v0 = vld [vmem:[#allocation285_spill] sm:$0xff] }
 0x4a4   : > { %4191 = vmatprep.mubr.bf16.mxu0 %v15926_v4  ;;  %v2999_v22 = vpop.f32.mrb[60].mxu1 }
 0x4a5   : > { %v12820_v63 = vadd.f32 %v15927_v8, %v2999_v22  ;;  %v3001_v42 = vpop.f32.mrb[61].mxu1  ;;  %v15934_v22 = vld [vmem:[#allocation181_spill] sm:$0xff] }
 0x4a6   : > { %v3977_v49 = vpop.f32.mrb[60].mxu0  ;;  %v3002_v6 = vpop.f32.mrb[62].mxu1  ;;  %v15935_v8 = vld [vmem:[#allocation157_spill] sm:$0xff] }
 0x4a7   : > { %15928 = vst [vmem:[#allocation275_spill] sm:$0xff] %v12820_v63  ;;  %v12823_v48 = vadd.f32 %v3977_v49, %v15929_v62  ;;  %v12826_v53 = vadd.f32 %v15930_v26, %v3002_v6  ;;  %v3979_v41 = vpop.f32.mrb[61].mxu0  ;;  %v3004_v59 = vpop.f32.mrb[63].mxu1  ;;  %v15936_v42 = vld [vmem:[#allocation141_spill] sm:$0xff] }
 0x4a8   : > { %v3980_v14 = vpop.f32.mrb[62].mxu0  ;;  %v15938_v59 = vld [vmem:[#allocation183_spill] sm:$0xff] }
 0x4a9   : > { %15931 = vst [vmem:[#allocation276_spill] sm:$0xff] %v12826_v53  ;;  %v12829_v46 = vadd.f32 %v3980_v14, %v15932_v0  ;;  %v3982_v4 = vpop.f32.mrb[63].mxu0  ;;  %8560 = vmatmul.mubr.bf16.gmra.mrb[168].mxu1 %v15933_v45  ;;  %v15940_v14 = vld [vmem:[#allocation288_spill] sm:$0xff] }
 0x4aa   : > { %8563 = vmatprep.mubr.bf16.mxu1 %v15934_v22 }
 0x4ab   : > { %4192 = vmatmul.mubr.bf16.gmra.mrb[168].mxu0 %v15935_v8 }
 0x4ac   : > { %4199 = vmatprep.mubr.bf16.mxu0 %v15936_v42  ;;  %v8457_v49 = vpop.f32.mrb[64].mxu1  ;;  %v15942_v42 = vld [vmem:[#allocation185_spill] sm:$0xff] }
 0x4ad   : > { %v12836_v62 = vadd.f32 %v8457_v49, %v12308_v31  ;;  %v4274_v6 = vpop.f32.mrb[65].mxu1  ;;  %v15944_v31 = vld [vmem:[#allocation289_spill] sm:$0xff] }
 0x4ae   : > { %v3985_v26 = vpop.f32.mrb[64].mxu0  ;;  %v12839_v41 = vadd.f32 %v4274_v6, %v15938_v59  ;;  %v8458_v0 = vpop.f32.mrb[66].mxu1  ;;  %v15946_v59 = vld [vmem:[#allocation186_spill] sm:$0xff] }
 0x4af   : > { %15937 = vst [vmem:[#allocation278_spill] sm:$0xff] %v12836_v62  ;;  %v12842_v4 = vadd.f32 %v3985_v26, %v15940_v14  ;;  %v3987_v53 = vpop.f32.mrb[65].mxu0  ;;  %v12845_v63 = vadd.f32 %v8458_v0, %v12319_v29  ;;  %v4277_v8 = vpop.f32.mrb[67].mxu1  ;;  %v15945_v62 = vld [vmem:[#allocation182_spill] sm:$0xff]  ;;  %v15948_v26 = vld [vmem:[#allocation140_spill] sm:$0xff] }
 0x4b0   : > { %15939 = vst [vmem:[#allocation279_spill] sm:$0xff] %v12839_v41  ;;  %v3988_v22 = vpop.f32.mrb[66].mxu0  ;;  %v12848_v45 = vadd.f32 %v4277_v8, %v15942_v42  ;;  %v15947_v41 = vld [vmem:[#allocation159_spill] sm:$0xff] }
 0x4b1   : > { %15941 = vst [vmem:[#allocation172_spill] sm:$0xff] %v12845_v63  ;;  %v12851_v49 = vadd.f32 %v3988_v22, %v15944_v31  ;;  %8564 = vmatmul.mubr.bf16.gmra.mrb[172].mxu1 %v15945_v62  ;;  %v3990_v6 = vpop.f32.mrb[67].mxu0  ;;  %v15951_v42 = vld [vmem:[#allocation239_spill] sm:$0xff] }
 0x4b2   : > { %15943 = vst [vmem:[#allocation281_spill] sm:$0xff] %v12848_v45  ;;  %8567 = vmatprep.mubr.bf16.mxu1 %v15946_v59  ;;  %v15955_v59 = vld [vmem:[#allocation187_spill] sm:$0xff] }
 0x4b3   : > { %4200 = vmatmul.mubr.bf16.gmra.mrb[172].mxu0 %v15947_v41 }
 0x4b4   : > { %4207 = vmatprep.mubr.bf16.mxu0 %v15948_v26  ;;  %v8461_v53 = vpop.f32.mrb[68].mxu1 }
 0x4b5   : > { %v12858_v29 = vadd.f32 %v8461_v53, %v12350_v7  ;;  %v4290_v0 = vpop.f32.mrb[69].mxu1  ;;  %v15954_v7 = vld [vmem:[#allocation188_spill] sm:$0xff] }
 0x4b6   : > { %v3993_v14 = vpop.f32.mrb[68].mxu0  ;;  %v12861_v8 = vadd.f32 %v4290_v0, %v12329_v21  ;;  %v8462_v22 = vpop.f32.mrb[70].mxu1  ;;  %v15956_v21 = vld [vmem:[#allocation191_spill] sm:$0xff]  ;;  %v15957_v0 = vld [vmem:[#allocation162_spill] sm:$0xff] }
 0x4b7   : > { %15949 = vst [vmem:[#allocation287_spill] sm:$0xff] %v12858_v29  ;;  %v12864_v31 = vadd.f32 %v3993_v14, %v15951_v42  ;;  %v3995_v6 = vpop.f32.mrb[69].mxu0  ;;  %v12867_v63 = vadd.f32 %v8462_v22, %v12361_v24  ;;  %v4293_v41 = vpop.f32.mrb[71].mxu1  ;;  %v15958_v14 = vld [vmem:[#allocation142_spill] sm:$0xff] }
 0x4b8   : > { %15950 = vst [vmem:[#allocation282_spill] sm:$0xff] %v12861_v8  ;;  %v3996_v45 = vpop.f32.mrb[70].mxu0  ;;  %v12870_v26 = vadd.f32 %v4293_v41, %v12340_v3  ;;  %v15961_v41 = vld [vmem:[#allocation163_spill] sm:$0xff] }
 0x4b9   : > { %15952 = vst [vmem:[#allocation284_spill] sm:$0xff] %v12867_v63  ;;  %v12873_v53 = vadd.f32 %v3996_v45, %v15954_v7  ;;  %v3998_v29 = vpop.f32.mrb[71].mxu0  ;;  %8568 = vmatmul.mubr.bf16.gmra.mrb[176].mxu1 %v15955_v59 }
 0x4ba   : > { %15953 = vst [vmem:[#allocation283_spill] sm:$0xff] %v12870_v26  ;;  %8571 = vmatprep.mubr.bf16.mxu1 %v15956_v21  ;;  %v15966_v21 = vld [vmem:[#allocation192_spill] sm:$0xff] }
 0x4bb   : > { %4208 = vmatmul.mubr.bf16.gmra.mrb[176].mxu0 %v15957_v0 }
 0x4bc   : > { %4215 = vmatprep.mubr.bf16.mxu0 %v15958_v14  ;;  %v8465_v42 = vpop.f32.mrb[72].mxu1  ;;  %v15963_v14 = vld [vmem:[#allocation169_spill] sm:$0xff] }
 0x4bd   : > { %v12880_v24 = vadd.f32 %v8465_v42, %v12392_v36  ;;  %v4306_v22 = vpop.f32.mrb[73].mxu1  ;;  %v15965_v36 = vld [vmem:[#allocation189_spill] sm:$0xff] }
 0x4be   : > { %v4001_v6 = vpop.f32.mrb[72].mxu0  ;;  %v12883_v3 = vadd.f32 %v4306_v22, %v12371_v51  ;;  %v8466_v45 = vpop.f32.mrb[74].mxu1  ;;  %v15967_v51 = vld [vmem:[#allocation196_spill] sm:$0xff]  ;;  %v15968_v22 = vld [vmem:[#allocation241_spill] sm:$0xff] }
 0x4bf   : > { %15959 = vst [vmem:[#allocation286_spill] sm:$0xff] %v12880_v24  ;;  %v12886_v29 = vadd.f32 %v4001_v6, %v15961_v41  ;;  %v4003_v7 = vpop.f32.mrb[73].mxu0  ;;  %v12889_v63 = vadd.f32 %v8466_v45, %v12398_v61  ;;  %v4309_v0 = vpop.f32.mrb[75].mxu1  ;;  %v15969_v6 = vld [vmem:[#allocation109_spill] sm:$0xff] }
 0x4c0   : > { %15960 = vst [vmem:[#allocation285_spill] sm:$0xff] %v12883_v3  ;;  %v4004_v26 = vpop.f32.mrb[74].mxu0  ;;  %v12892_v8 = vadd.f32 %v4309_v0, %v15963_v14  ;;  %v15972_v14 = vld [vmem:[#allocation165_spill] sm:$0xff] }
 0x4c1   : > { %15962 = vst [vmem:[#allocation183_spill] sm:$0xff] %v12889_v63  ;;  %v12895_v42 = vadd.f32 %v4004_v26, %v15965_v36  ;;  %v4006_v24 = vpop.f32.mrb[75].mxu0  ;;  %8572 = vmatmul.mubr.bf16.gmra.mrb[180].mxu1 %v15966_v21  ;;  %v15976_v3 = vld [vmem:[#allocation197_spill] sm:$0xff] }
 0x4c2   : > { %15964 = vst [vmem:[#allocation288_spill] sm:$0xff] %v12892_v8  ;;  %8575 = vmatprep.mubr.bf16.mxu1 %v15967_v51 }
 0x4c3   : > { %4216 = vmatmul.mubr.bf16.gmra.mrb[180].mxu0 %v15968_v22 }
 0x4c4   : > { %4223 = vmatprep.mubr.bf16.mxu0 %v15969_v6  ;;  %v8469_v41 = vpop.f32.mrb[76].mxu1 }
 0x4c5   : > { %v12902_v61 = vadd.f32 %v8469_v41, %v12427_v50  ;;  %v4322_v45 = vpop.f32.mrb[77].mxu1  ;;  %v15975_v50 = vld [vmem:[#allocation194_spill] sm:$0xff] }
 0x4c6   : > { %v4009_v7 = vpop.f32.mrb[76].mxu0  ;;  %v12905_v0 = vadd.f32 %v4322_v45, %v12409_v56  ;;  %v8470_v26 = vpop.f32.mrb[78].mxu1  ;;  %v15977_v56 = vld [vmem:[#allocation201_spill] sm:$0xff] }
 0x4c7   : > { %15970 = vst [vmem:[#allocation185_spill] sm:$0xff] %v12902_v61  ;;  %v12908_v24 = vadd.f32 %v4009_v7, %v15972_v14  ;;  %v4011_v36 = vpop.f32.mrb[77].mxu0  ;;  %v12911_v63 = vadd.f32 %v8470_v26, %v12434_v15  ;;  %v4325_v22 = vpop.f32.mrb[79].mxu1  ;;  %v15978_v45 = vld [vmem:[#allocation193_spill] sm:$0xff]  ;;  %v15979_v7 = vld [vmem:[#allocation147_spill] sm:$0xff] }
 0x4c8   : > { %15971 = vst [vmem:[#allocation289_spill] sm:$0xff] %v12905_v0  ;;  %v4012_v8 = vpop.f32.mrb[78].mxu0  ;;  %v12914_v6 = vadd.f32 %v4325_v22, %v12416_v35  ;;  %v15982_v22 = vld [vmem:[#allocation167_spill] sm:$0xff] }
 0x4c9   : > { %15973 = vst [vmem:[#allocation182_spill] sm:$0xff] %v12911_v63  ;;  %v12917_v41 = vadd.f32 %v4012_v8, %v15975_v50  ;;  %v4014_v61 = vpop.f32.mrb[79].mxu0  ;;  %8576 = vmatmul.mubr.bf16.gmra.mrb[184].mxu1 %v15976_v3 }
 0x4ca   : > { %15974 = vst [vmem:[#allocation239_spill] sm:$0xff] %v12914_v6  ;;  %8579 = vmatprep.mubr.bf16.mxu1 %v15977_v56  ;;  %v15987_v56 = vld [vmem:[#allocation202_spill] sm:$0xff] }
 0x4cb   : > { %4224 = vmatmul.mubr.bf16.gmra.mrb[184].mxu0 %v15978_v45 }
 0x4cc   : > { %4231 = vmatprep.mubr.bf16.mxu0 %v15979_v7  ;;  %v8473_v14 = vpop.f32.mrb[80].mxu1  ;;  %v15984_v7 = vld [vmem:[#allocation26_spill] sm:$0xff] }
 0x4cd   : > { %v12924_v15 = vadd.f32 %v8473_v14, %v12463_v34  ;;  %v4338_v26 = vpop.f32.mrb[81].mxu1  ;;  %v15986_v34 = vld [vmem:[#allocation199_spill] sm:$0xff] }
 0x4ce   : > { %v4017_v36 = vpop.f32.mrb[80].mxu0  ;;  %v12927_v35 = vadd.f32 %v4338_v26, %v12445_v23  ;;  %v8474_v8 = vpop.f32.mrb[82].mxu1  ;;  %v15988_v23 = vld [vmem:[#allocation20_spill] sm:$0xff]  ;;  %v15989_v26 = vld [vmem:[#allocation198_spill] sm:$0xff] }
 0x4cf   : > { %15980 = vst [vmem:[#allocation188_spill] sm:$0xff] %v12924_v15  ;;  %v12930_v61 = vadd.f32 %v4017_v36, %v15982_v22  ;;  %v4019_v50 = vpop.f32.mrb[81].mxu0  ;;  %v12933_v63 = vadd.f32 %v8474_v8, %v12470_v1  ;;  %v4341_v45 = vpop.f32.mrb[83].mxu1  ;;  %v15990_v36 = vld [vmem:[#allocation28_spill] sm:$0xff] }
 0x4d0   : > { %15981 = vst [vmem:[#allocation187_spill] sm:$0xff] %v12927_v35  ;;  %v4020_v6 = vpop.f32.mrb[82].mxu0  ;;  %v12936_v0 = vadd.f32 %v4341_v45, %v15984_v7  ;;  %v15992_v7 = vld [vmem:[#allocation204_spill] sm:$0xff]  ;;  %v15997_v35 = vld [vmem:[#allocation31_spill] sm:$0xff] }
 0x4d1   : > { %15983 = vst [vmem:[#allocation163_spill] sm:$0xff] %v12933_v63  ;;  %v12939_v14 = vadd.f32 %v4020_v6, %v15986_v34  ;;  %v4022_v15 = vpop.f32.mrb[83].mxu0  ;;  %8580 = vmatmul.mubr.bf16.gmra.mrb[188].mxu1 %v15987_v56 }
 0x4d2   : > { %15985 = vst [vmem:[#allocation169_spill] sm:$0xff] %v12936_v0  ;;  %5010 = vmatprep.mubr.bf16.mxu1 %v15988_v23 }
 0x4d3   : > { %4232 = vmatmul.mubr.bf16.gmra.mrb[188].mxu0 %v15989_v26 }
 0x4d4   : > { %8599 = vmatprep.mubr.bf16.mxu0 %v15990_v36  ;;  %v8477_v22 = vpop.f32.mrb[84].mxu1  ;;  %v15994_v36 = vld [vmem:[#allocation217_spill] sm:$0xff] }
 0x4d5   : > { %v12946_v1 = vadd.f32 %v8477_v22, %v12499_v55  ;;  %v4354_v8 = vpop.f32.mrb[85].mxu1  ;;  %v15996_v55 = vld [vmem:[#allocation207_spill] sm:$0xff] }
 0x4d6   : > { %v4025_v50 = vpop.f32.mrb[84].mxu0  ;;  %v12949_v45 = vadd.f32 %v4354_v8, %v12481_v37  ;;  %v8478_v6 = vpop.f32.mrb[86].mxu1  ;;  %v15998_v37 = vld [vmem:[#allocation25_spill] sm:$0xff] }
 0x4d7   : > { %15991 = vst [vmem:[#allocation189_spill] sm:$0xff] %v12946_v1  ;;  %v12952_v15 = vadd.f32 %v4025_v50, %v15992_v7  ;;  %v4027_v34 = vpop.f32.mrb[85].mxu0  ;;  %v12955_v23 = vadd.f32 %v8478_v6, %v12505_v2  ;;  %v4357_v26 = vpop.f32.mrb[87].mxu1  ;;  %v15999_v8 = vld [vmem:[#allocation33_spill] sm:$0xff]  ;;  %v16000_v50 = vld [vmem:[#allocation34_spill] sm:$0xff] }
 0x4d8   : > { %v4028_v63 = vpop.f32.mrb[86].mxu0  ;;  %v12958_v0 = vadd.f32 %v4357_v26, %v15994_v36  ;;  %v16002_v36 = vld [vmem:[#allocation208_spill] sm:$0xff] }
 0x4d9   : > { %15993 = vst [vmem:[#allocation192_spill] sm:$0xff] %v12955_v23  ;;  %v12961_v22 = vadd.f32 %v4028_v63, %v15996_v55  ;;  %v4030_v1 = vpop.f32.mrb[87].mxu0  ;;  %5011 = vmatmul.mubr.bf16.vlgmr.msra.gmra.mrb[192].mxu1 %v15997_v35 }
 0x4da   : > { %15995 = vst [vmem:[#allocation196_spill] sm:$0xff] %v12958_v0  ;;  %5018 = vmatprep.mubr.bf16.mxu1 %v15998_v37  ;;  %v16007_v0 = vld [vmem:[#allocation37_spill] sm:$0xff] }
 0x4db   : > { %8600 = vmatmul.mubr.bf16.vlgmr.msra.gmra.mrb[192].mxu0 %v15999_v8 }
 0x4dc   : > { %8603 = vmatprep.mubr.bf16.mxu0 %v16000_v50  ;;  %v8481_v7 = vpop.f32.mrb[88].mxu1  ;;  %v16004_v50 = vld [vmem:[#allocation223_spill] sm:$0xff] }
 0x4dd   : > { %v12968_v2 = vadd.f32 %v8481_v7, %v12532_v40  ;;  %v4370_v6 = vpop.f32.mrb[89].mxu1  ;;  %v16006_v40 = vld [vmem:[#allocation27_spill] sm:$0xff] }
 0x4de   : > { %v4033_v34 = vpop.f32.mrb[88].mxu0  ;;  %v12971_v26 = vadd.f32 %v4370_v6, %v12516_v16  ;;  %v8482_v63 = vpop.f32.mrb[90].mxu1  ;;  %v16008_v16 = vld [vmem:[#allocation24_spill] sm:$0xff]  ;;  %v16009_v6 = vld [vmem:[#allocation39_spill] sm:$0xff] }
 0x4df   : > { %16001 = vst [vmem:[#allocation165_spill] sm:$0xff] %v12968_v2  ;;  %v12974_v1 = vadd.f32 %v4033_v34, %v16002_v36  ;;  %v4035_v35 = vpop.f32.mrb[89].mxu0  ;;  %v12977_v55 = vadd.f32 %v8482_v63, %v12538_v57  ;;  %v4373_v37 = vpop.f32.mrb[91].mxu1  ;;  %v16010_v34 = vld [vmem:[#allocation40_spill] sm:$0xff] }
 0x4e0   : > { %v4036_v8 = vpop.f32.mrb[90].mxu0  ;;  %v12980_v23 = vadd.f32 %v4373_v37, %v16004_v50  ;;  %v16012_v50 = vld [vmem:[#allocation23_spill] sm:$0xff] }
 0x4e1   : > { %16003 = vst [vmem:[#allocation194_spill] sm:$0xff] %v12977_v55  ;;  %v12983_v7 = vadd.f32 %v4036_v8, %v16006_v40  ;;  %v4038_v2 = vpop.f32.mrb[91].mxu0  ;;  %5019 = vmatmul.mubr.bf16.gmra.mrb[196].mxu1 %v16007_v0 }
 0x4e2   : > { %16005 = vst [vmem:[#allocation197_spill] sm:$0xff] %v12980_v23  ;;  %5026 = vmatprep.mubr.bf16.mxu1 %v16008_v16  ;;  %v16017_v23 = vld [vmem:[#allocation44_spill] sm:$0xff] }
 0x4e3   : > { %8604 = vmatmul.mubr.bf16.gmra.mrb[196].mxu0 %v16009_v6 }
 0x4e4   : > { %8607 = vmatprep.mubr.bf16.mxu0 %v16010_v34  ;;  %v8485_v36 = vpop.f32.mrb[92].mxu1  ;;  %v16014_v34 = vld [vmem:[#allocation229_spill] sm:$0xff] }
 0x4e5   : > { %v12990_v57 = vadd.f32 %v8485_v36, %v12565_v39  ;;  %v4386_v63 = vpop.f32.mrb[93].mxu1  ;;  %v16016_v39 = vld [vmem:[#allocation21_spill] sm:$0xff] }
 0x4e6   : > { %v4041_v35 = vpop.f32.mrb[92].mxu0  ;;  %v12993_v37 = vadd.f32 %v4386_v63, %v12549_v43  ;;  %v8486_v8 = vpop.f32.mrb[94].mxu1  ;;  %v16018_v43 = vld [vmem:[#allocation32_spill] sm:$0xff]  ;;  %v16019_v63 = vld [vmem:[#allocation46_spill] sm:$0xff] }
 0x4e7   : > { %16011 = vst [vmem:[#allocation167_spill] sm:$0xff] %v12990_v57  ;;  %v12996_v2 = vadd.f32 %v4041_v35, %v16012_v50  ;;  %v4043_v0 = vpop.f32.mrb[93].mxu0  ;;  %v12999_v40 = vadd.f32 %v8486_v8, %v12571_v25  ;;  %v4389_v16 = vpop.f32.mrb[95].mxu1  ;;  %v16020_v35 = vld [vmem:[#allocation47_spill] sm:$0xff] }
 0x4e8   : > { %v4044_v6 = vpop.f32.mrb[94].mxu0  ;;  %v13002_v55 = vadd.f32 %v4389_v16, %v16014_v34  ;;  %v16023_v34 = vld [vmem:[#allocation210_spill] sm:$0xff] }
 0x4e9   : > { %16013 = vst [vmem:[#allocation26_spill] sm:$0xff] %v12999_v40  ;;  %v13005_v36 = vadd.f32 %v4044_v6, %v16016_v39  ;;  %v4046_v57 = vpop.f32.mrb[95].mxu0  ;;  %5027 = vmatmul.mubr.bf16.gmra.mrb[200].mxu1 %v16017_v23 }
 0x4ea   : > { %16015 = vst [vmem:[#allocation199_spill] sm:$0xff] %v13002_v55  ;;  %5034 = vmatprep.mubr.bf16.mxu1 %v16018_v43  ;;  %v16028_v55 = vld [vmem:[#allocation49_spill] sm:$0xff] }
 0x4eb   : > { %8608 = vmatmul.mubr.bf16.gmra.mrb[200].mxu0 %v16019_v63 }
 0x4ec   : > { %8611 = vmatprep.mubr.bf16.mxu0 %v16020_v35  ;;  %v8489_v50 = vpop.f32.mrb[96].mxu1  ;;  %v16025_v35 = vld [vmem:[#allocation233_spill] sm:$0xff] }
 0x4ed   : > { %v13012_v25 = vadd.f32 %v8489_v50, %v12598_v28  ;;  %v4402_v8 = vpop.f32.mrb[97].mxu1  ;;  %v16027_v28 = vld [vmem:[#allocation209_spill] sm:$0xff] }
 0x4ee   : > { %v4049_v0 = vpop.f32.mrb[96].mxu0  ;;  %v13015_v16 = vadd.f32 %v4402_v8, %v12582_v60  ;;  %v8490_v6 = vpop.f32.mrb[98].mxu1  ;;  %v16029_v60 = vld [vmem:[#allocation30_spill] sm:$0xff]  ;;  %v16030_v8 = vld [vmem:[#allocation52_spill] sm:$0xff] }
 0x4ef   : > { %16021 = vst [vmem:[#allocation202_spill] sm:$0xff] %v13012_v25  ;;  %v13018_v57 = vadd.f32 %v4049_v0, %v16023_v34  ;;  %v4051_v23 = vpop.f32.mrb[97].mxu0  ;;  %v13021_v39 = vadd.f32 %v8490_v6, %v12604_v58  ;;  %v4405_v43 = vpop.f32.mrb[99].mxu1  ;;  %v16031_v0 = vld [vmem:[#allocation53_spill] sm:$0xff] }
 0x4f0   : > { %16022 = vst [vmem:[#allocation20_spill] sm:$0xff] %v13015_v16  ;;  %v4052_v63 = vpop.f32.mrb[98].mxu0  ;;  %v13024_v40 = vadd.f32 %v4405_v43, %v16025_v35  ;;  %v16033_v35 = vld [vmem:[#allocation250_spill] sm:$0xff]  ;;  %v16038_v16 = vld [vmem:[#allocation55_spill] sm:$0xff] }
 0x4f1   : > { %16024 = vst [vmem:[#allocation28_spill] sm:$0xff] %v13021_v39  ;;  %v13027_v50 = vadd.f32 %v4052_v63, %v16027_v28  ;;  %v4054_v25 = vpop.f32.mrb[99].mxu0  ;;  %5035 = vmatmul.mubr.bf16.gmra.mrb[204].mxu1 %v16028_v55  ;;  %v16034_v28 = vld [vmem:[#allocation243_spill] sm:$0xff] }
 0x4f2   : > { %16026 = vst [vmem:[#allocation204_spill] sm:$0xff] %v13024_v40  ;;  %5042 = vmatprep.mubr.bf16.mxu1 %v16029_v60 }
 0x4f3   : > { %8612 = vmatmul.mubr.bf16.gmra.mrb[204].mxu0 %v16030_v8 }
 0x4f4   : > { %8615 = vmatprep.mubr.bf16.mxu0 %v16031_v0  ;;  %v8493_v34 = vpop.f32.mrb[100].mxu1  ;;  %v16036_v0 = vld [vmem:[#allocation240_spill] sm:$0xff] }
 0x4f5   : > { %v13034_v58 = vadd.f32 %v8493_v34, %v12631_v18  ;;  %v4418_v6 = vpop.f32.mrb[101].mxu1  ;;  %v16037_v18 = vld [vmem:[#allocation212_spill] sm:$0xff] }
 0x4f6   : > { %v4057_v23 = vpop.f32.mrb[100].mxu0  ;;  %v13037_v43 = vadd.f32 %v4418_v6, %v12615_v54  ;;  %v8494_v63 = vpop.f32.mrb[102].mxu1  ;;  %v16039_v54 = vld [vmem:[#allocation38_spill] sm:$0xff] }
 0x4f7   : > { %16032 = vst [vmem:[#allocation217_spill] sm:$0xff] %v13034_v58  ;;  %v13040_v25 = vadd.f32 %v4057_v23, %v16033_v35  ;;  %v4059_v55 = vpop.f32.mrb[101].mxu0  ;;  %v13043_v60 = vadd.f32 %v8494_v63, %v16034_v28  ;;  %v4421_v8 = vpop.f32.mrb[103].mxu1  ;;  %v16040_v6 = vld [vmem:[#allocation58_spill] sm:$0xff]  ;;  %v16041_v23 = vld [vmem:[#allocation59_spill] sm:$0xff] }
 0x4f8   : > { %v4060_v39 = vpop.f32.mrb[102].mxu0  ;;  %v13046_v40 = vadd.f32 %v4421_v8, %v16036_v0  ;;  %v16043_v0 = vld [vmem:[#allocation214_spill] sm:$0xff] }
 0x4f9   : > { %16035 = vst [vmem:[#allocation207_spill] sm:$0xff] %v13043_v60  ;;  %v13049_v34 = vadd.f32 %v4060_v39, %v16037_v18  ;;  %v4062_v58 = vpop.f32.mrb[103].mxu0  ;;  %5043 = vmatmul.mubr.bf16.gmra.mrb[208].mxu1 %v16038_v16  ;;  %v16047_v60 = vld [vmem:[#allocation62_spill] sm:$0xff] }
 0x4fa   : > { %5050 = vmatprep.mubr.bf16.mxu1 %v16039_v54 }
 0x4fb   : > { %8616 = vmatmul.mubr.bf16.gmra.mrb[208].mxu0 %v16040_v6 }
 0x4fc   : > { %8619 = vmatprep.mubr.bf16.mxu0 %v16041_v23  ;;  %v8497_v35 = vpop.f32.mrb[104].mxu1 }
 0x4fd   : > { %v13056_v63 = vadd.f32 %v8497_v35, %v12663_v12  ;;  %v4434_v55 = vpop.f32.mrb[105].mxu1  ;;  %v16046_v12 = vld [vmem:[#allocation215_spill] sm:$0xff] }
 0x4fe   : > { %v4065_v28 = vpop.f32.mrb[104].mxu0  ;;  %v13059_v8 = vadd.f32 %v4434_v55, %v12647_v19  ;;  %v8498_v39 = vpop.f32.mrb[106].mxu1  ;;  %v16048_v19 = vld [vmem:[#allocation36_spill] sm:$0xff] }
 0x4ff   : > { %16042 = vst [vmem:[#allocation31_spill] sm:$0xff] %v13056_v63  ;;  %v13062_v58 = vadd.f32 %v4065_v28, %v16043_v0  ;;  %v4067_v16 = vpop.f32.mrb[105].mxu0  ;;  %v13065_v18 = vadd.f32 %v8498_v39, %v12669_v17  ;;  %v4437_v54 = vpop.f32.mrb[107].mxu1  ;;  %v16049_v55 = vld [vmem:[#allocation64_spill] sm:$0xff]  ;;  %v16050_v28 = vld [vmem:[#allocation65_spill] sm:$0xff] }
 0x500   : > { %v4068_v6 = vpop.f32.mrb[106].mxu0  ;;  %v13068_v23 = vadd.f32 %v4437_v54, %v12653_v32 }
 0x501   : > { %16044 = vst [vmem:[#allocation25_spill] sm:$0xff] %v13065_v18  ;;  %v13071_v35 = vadd.f32 %v4068_v6, %v16046_v12  ;;  %v4070_v63 = vpop.f32.mrb[107].mxu0  ;;  %5051 = vmatmul.mubr.bf16.gmra.mrb[212].mxu1 %v16047_v60  ;;  %v16052_v6 = vld [vmem:[#allocation254_spill] sm:$0xff] }
 0x502   : > { %16045 = vst [vmem:[#allocation33_spill] sm:$0xff] %v13068_v23  ;;  %5058 = vmatprep.mubr.bf16.mxu1 %v16048_v19  ;;  %v16057_v23 = vld [vmem:[#allocation70_spill] sm:$0xff] }
 0x503   : > { %8620 = vmatmul.mubr.bf16.gmra.mrb[212].mxu0 %v16049_v55 }
 0x504   : > { %8623 = vmatprep.mubr.bf16.mxu0 %v16050_v28  ;;  %v8501_v0 = vpop.f32.mrb[108].mxu1  ;;  %v16054_v28 = vld [vmem:[#allocation253_spill] sm:$0xff] }
 0x505   : > { %v13078_v17 = vadd.f32 %v8501_v0, %v12695_v11  ;;  %v4450_v39 = vpop.f32.mrb[109].mxu1  ;;  %v16056_v11 = vld [vmem:[#allocation218_spill] sm:$0xff] }
 0x506   : > { %v4073_v16 = vpop.f32.mrb[108].mxu0  ;;  %v13081_v32 = vadd.f32 %v4450_v39, %v12679_v33  ;;  %v8502_v54 = vpop.f32.mrb[110].mxu1  ;;  %v16058_v33 = vld [vmem:[#allocation45_spill] sm:$0xff]  ;;  %v16059_v39 = vld [vmem:[#allocation71_spill] sm:$0xff] }
 0x507   : > { %16051 = vst [vmem:[#allocation34_spill] sm:$0xff] %v13078_v17  ;;  %v13084_v63 = vadd.f32 %v4073_v16, %v16052_v6  ;;  %v4075_v60 = vpop.f32.mrb[109].mxu0  ;;  %v13087_v12 = vadd.f32 %v8502_v54, %v12701_v38  ;;  %v4453_v19 = vpop.f32.mrb[111].mxu1  ;;  %v16060_v16 = vld [vmem:[#allocation72_spill] sm:$0xff] }
 0x508   : > { %v4076_v55 = vpop.f32.mrb[110].mxu0  ;;  %v13090_v18 = vadd.f32 %v4453_v19, %v16054_v28  ;;  %v16062_v28 = vld [vmem:[#allocation220_spill] sm:$0xff] }
 0x509   : > { %16053 = vst [vmem:[#allocation208_spill] sm:$0xff] %v13087_v12  ;;  %v13093_v0 = vadd.f32 %v4076_v55, %v16056_v11  ;;  %v4078_v17 = vpop.f32.mrb[111].mxu0  ;;  %5059 = vmatmul.mubr.bf16.gmra.mrb[216].mxu1 %v16057_v23 }
 0x50a   : > { %16055 = vst [vmem:[#allocation223_spill] sm:$0xff] %v13090_v18  ;;  %5066 = vmatprep.mubr.bf16.mxu1 %v16058_v33  ;;  %v16067_v18 = vld [vmem:[#allocation75_spill] sm:$0xff] }
 0x50b   : > { %8624 = vmatmul.mubr.bf16.gmra.mrb[216].mxu0 %v16059_v39 }
 0x50c   : > { %8627 = vmatprep.mubr.bf16.mxu0 %v16060_v16  ;;  %v8505_v6 = vpop.f32.mrb[112].mxu1  ;;  %v16064_v16 = vld [vmem:[#allocation115_spill] sm:$0xff] }
 0x50d   : > { %v13100_v38 = vadd.f32 %v8505_v6, %v12727_v30  ;;  %v4466_v54 = vpop.f32.mrb[113].mxu1  ;;  %v16066_v30 = vld [vmem:[#allocation221_spill] sm:$0xff] }
 0x50e   : > { %v4081_v60 = vpop.f32.mrb[112].mxu0  ;;  %v13103_v19 = vadd.f32 %v4466_v54, %v12711_v52  ;;  %v8506_v55 = vpop.f32.mrb[114].mxu1  ;;  %v16068_v52 = vld [vmem:[#allocation43_spill] sm:$0xff]  ;;  %v16069_v54 = vld [vmem:[#allocation78_spill] sm:$0xff] }
 0x50f   : > { %16061 = vst [vmem:[#allocation27_spill] sm:$0xff] %v13100_v38  ;;  %v13106_v17 = vadd.f32 %v4081_v60, %v16062_v28  ;;  %v4083_v23 = vpop.f32.mrb[113].mxu0  ;;  %v13109_v11 = vadd.f32 %v8506_v55, %v12733_v9  ;;  %v4469_v33 = vpop.f32.mrb[115].mxu1 }
 0x510   : > { %v4084_v39 = vpop.f32.mrb[114].mxu0  ;;  %v13112_v12 = vadd.f32 %v4469_v33, %v16064_v16 }
 0x511   : > { %16063 = vst [vmem:[#allocation37_spill] sm:$0xff] %v13109_v11  ;;  %v13115_v6 = vadd.f32 %v4084_v39, %v16066_v30  ;;  %v4086_v38 = vpop.f32.mrb[115].mxu0  ;;  %5067 = vmatmul.mubr.bf16.gmra.mrb[220].mxu1 %v16067_v18  ;;  %v16071_v39 = vld [vmem:[#allocation258_spill] sm:$0xff] }
 0x512   : > { %16065 = vst [vmem:[#allocation24_spill] sm:$0xff] %v13112_v12  ;;  %5074 = vmatprep.mubr.bf16.mxu1 %v16068_v52  ;;  %v16076_v12 = vld [vmem:[#allocation82_spill] sm:$0xff] }
 0x513   : > { %8628 = vmatmul.mubr.bf16.gmra.mrb[220].mxu0 %v15182_v10 }
 0x514   : > { %8631 = vmatprep.mubr.bf16.mxu0 %v16069_v54  ;;  %v8509_v60 = vpop.f32.mrb[116].mxu1  ;;  %v16073_v54 = vld [vmem:[#allocation274_spill] sm:$0xff] }
 0x515   : > { %v13122_v9 = vadd.f32 %v8509_v60, %v12759_v20  ;;  %v4482_v55 = vpop.f32.mrb[117].mxu1  ;;  %v16075_v20 = vld [vmem:[#allocation224_spill] sm:$0xff] }
 0x516   : > { %v4089_v28 = vpop.f32.mrb[116].mxu0  ;;  %v13125_v23 = vadd.f32 %v4482_v55, %v12743_v47  ;;  %v8510_v33 = vpop.f32.mrb[118].mxu1  ;;  %v16077_v47 = vld [vmem:[#allocation51_spill] sm:$0xff] }
 0x517   : > { %16070 = vst [vmem:[#allocation39_spill] sm:$0xff] %v13122_v9  ;;  %v13128_v38 = vadd.f32 %v4089_v28, %v16071_v39  ;;  %v4091_v18 = vpop.f32.mrb[117].mxu0  ;;  %v13131_v16 = vadd.f32 %v8510_v33, %v12765_v27  ;;  %v4485_v30 = vpop.f32.mrb[119].mxu1  ;;  %v16078_v55 = vld [vmem:[#allocation83_spill] sm:$0xff]  ;;  %v16079_v28 = vld [vmem:[#allocation84_spill] sm:$0xff] }
 0x518   : > { %v4092_v52 = vpop.f32.mrb[118].mxu0  ;;  %v13134_v11 = vadd.f32 %v4485_v30, %v16073_v54  ;;  %v16082_v54 = vld [vmem:[#allocation226_spill] sm:$0xff] }
 0x519   : > { %16072 = vst [vmem:[#allocation40_spill] sm:$0xff] %v13131_v16  ;;  %v13137_v60 = vadd.f32 %v4092_v52, %v16075_v20  ;;  %v4094_v9 = vpop.f32.mrb[119].mxu0  ;;  %5075 = vmatmul.mubr.bf16.gmra.mrb[224].mxu1 %v16076_v12 }
 0x51a   : > { %16074 = vst [vmem:[#allocation23_spill] sm:$0xff] %v13134_v11  ;;  %5082 = vmatprep.mubr.bf16.mxu1 %v16077_v47  ;;  %v16087_v11 = vld [vmem:[#allocation87_spill] sm:$0xff] }
 0x51b   : > { %8632 = vmatmul.mubr.bf16.gmra.mrb[224].mxu0 %v16078_v55 }
 0x51c   : > { %8635 = vmatprep.mubr.bf16.mxu0 %v16079_v28  ;;  %v8513_v39 = vpop.f32.mrb[120].mxu1  ;;  %v16084_v28 = vld [vmem:[#allocation277_spill] sm:$0xff] }
 0x51d   : > { %v13144_v27 = vadd.f32 %v8513_v39, %v12791_v13  ;;  %v4498_v33 = vpop.f32.mrb[121].mxu1  ;;  %v16086_v13 = vld [vmem:[#allocation227_spill] sm:$0xff] }
 0x51e   : > { %v4097_v18 = vpop.f32.mrb[120].mxu0  ;;  %v13147_v30 = vadd.f32 %v4498_v33, %v12775_v5  ;;  %v8514_v52 = vpop.f32.mrb[122].mxu1  ;;  %v16088_v5 = vld [vmem:[#allocation48_spill] sm:$0xff]  ;;  %v16089_v33 = vld [vmem:[#allocation89_spill] sm:$0xff] }
 0x51f   : > { %16080 = vst [vmem:[#allocation229_spill] sm:$0xff] %v13144_v27  ;;  %v13150_v9 = vadd.f32 %v4097_v18, %v16082_v54  ;;  %v4099_v12 = vpop.f32.mrb[121].mxu0  ;;  %v13153_v20 = vadd.f32 %v8514_v52, %v12797_v44  ;;  %v4501_v47 = vpop.f32.mrb[123].mxu1  ;;  %v16090_v18 = vld [vmem:[#allocation90_spill] sm:$0xff] }
 0x520   : > { %16081 = vst [vmem:[#allocation21_spill] sm:$0xff] %v13147_v30  ;;  %v4100_v55 = vpop.f32.mrb[122].mxu0  ;;  %v13156_v16 = vadd.f32 %v4501_v47, %v16084_v28  ;;  %v16092_v47 = vld [vmem:[#allocation272_spill] sm:$0xff]  ;;  %v16096_v30 = vld [vmem:[#allocation94_spill] sm:$0xff] }
 0x521   : > { %16083 = vst [vmem:[#allocation44_spill] sm:$0xff] %v13153_v20  ;;  %v13159_v39 = vadd.f32 %v4100_v55, %v16086_v13  ;;  %v4102_v27 = vpop.f32.mrb[123].mxu0  ;;  %5083 = vmatmul.mubr.bf16.gmra.mrb[228].mxu1 %v16087_v11  ;;  %v16093_v13 = vld [vmem:[#allocation260_spill] sm:$0xff] }
 0x522   : > { %16085 = vst [vmem:[#allocation32_spill] sm:$0xff] %v13156_v16  ;;  %5090 = vmatprep.mubr.bf16.mxu1 %v16088_v5 }
 0x523   : > { %8636 = vmatmul.mubr.bf16.gmra.mrb[228].mxu0 %v16089_v33 }
 0x524   : > { %8639 = vmatprep.mubr.bf16.mxu0 %v16090_v18  ;;  %v8517_v54 = vpop.f32.mrb[124].mxu1  ;;  %v16094_v18 = vld [vmem:[#allocation273_spill] sm:$0xff] }
 0x525   : > { %v13166_v44 = vadd.f32 %v8517_v54, %v12823_v48  ;;  %v4514_v52 = vpop.f32.mrb[125].mxu1  ;;  %v16095_v48 = vld [vmem:[#allocation230_spill] sm:$0xff] }
 0x526   : > { %v4105_v12 = vpop.f32.mrb[124].mxu0  ;;  %v13169_v28 = vadd.f32 %v4514_v52, %v16092_v47  ;;  %v8518_v55 = vpop.f32.mrb[126].mxu1  ;;  %v16097_v52 = vld [vmem:[#allocation57_spill] sm:$0xff]  ;;  %v16098_v47 = vld [vmem:[#allocation96_spill] sm:$0xff] }
 0x527   : > { %16091 = vst [vmem:[#allocation46_spill] sm:$0xff] %v13166_v44  ;;  %v13172_v27 = vadd.f32 %v4105_v12, %v16093_v13  ;;  %v4107_v11 = vpop.f32.mrb[125].mxu0  ;;  %v13175_v5 = vadd.f32 %v8518_v55, %v12829_v46  ;;  %v4517_v33 = vpop.f32.mrb[127].mxu1  ;;  %v16099_v12 = vld [vmem:[#allocation97_spill] sm:$0xff] }
 0x528   : > { %v4108_v20 = vpop.f32.mrb[126].mxu0  ;;  %v13178_v16 = vadd.f32 %v4517_v33, %v16094_v18  ;;  %v16102_v18 = vld [vmem:[#allocation77_spill] sm:$0xff] }
 0x529   : > { %v13181_v54 = vadd.f32 %v4108_v20, %v16095_v48  ;;  %v4110_v44 = vpop.f32.mrb[127].mxu0  ;;  %5091 = vmatmul.mubr.bf16.gmra.mrb[232].mxu1 %v16096_v30 }
 0x52a   : > { %5098 = vmatprep.mubr.bf16.mxu1 %v16097_v52 }
 0x52b   : > { %8640 = vmatmul.mubr.bf16.gmra.mrb[232].mxu0 %v16098_v47 }
 0x52c   : > { %8643 = vmatprep.mubr.bf16.mxu0 %v16099_v12  ;;  %v8521_v13 = vpop.f32.mrb[128].mxu1 }
 0x52d   : > { %v13188_v46 = vadd.f32 %v8521_v13, %v12864_v31  ;;  %v4530_v55 = vpop.f32.mrb[129].mxu1  ;;  %v16104_v31 = vld [vmem:[#allocation232_spill] sm:$0xff] }
 0x52e   : > { %v4113_v11 = vpop.f32.mrb[128].mxu0  ;;  %v13191_v33 = vadd.f32 %v4530_v55, %v12842_v4  ;;  %v8522_v20 = vpop.f32.mrb[130].mxu1  ;;  %v16106_v55 = vld [vmem:[#allocation56_spill] sm:$0xff] }
 0x52f   : > { %16100 = vst [vmem:[#allocation47_spill] sm:$0xff] %v13188_v46  ;;  %v13194_v44 = vadd.f32 %v4113_v11, %v16102_v18  ;;  %v4115_v30 = vpop.f32.mrb[129].mxu0  ;;  %v13197_v48 = vadd.f32 %v8522_v20, %v12873_v53  ;;  %v4533_v52 = vpop.f32.mrb[131].mxu1  ;;  %v16105_v46 = vld [vmem:[#allocation100_spill] sm:$0xff]  ;;  %v16108_v11 = vld [vmem:[#allocation102_spill] sm:$0xff] }
 0x530   : > { %16101 = vst [vmem:[#allocation210_spill] sm:$0xff] %v13191_v33  ;;  %v4116_v47 = vpop.f32.mrb[130].mxu0  ;;  %v13200_v12 = vadd.f32 %v4533_v52, %v12851_v49  ;;  %v16107_v33 = vld [vmem:[#allocation104_spill] sm:$0xff] }
 0x531   : > { %16103 = vst [vmem:[#allocation233_spill] sm:$0xff] %v13197_v48  ;;  %v13203_v13 = vadd.f32 %v4116_v47, %v16104_v31  ;;  %5099 = vmatmul.mubr.bf16.gmra.mrb[236].mxu1 %v16105_v46  ;;  %v4118_v4 = vpop.f32.mrb[131].mxu0  ;;  %v16111_v47 = vld [vmem:[#allocation235_spill] sm:$0xff] }
 0x532   : > { %5106 = vmatprep.mubr.bf16.mxu1 %v16106_v55  ;;  %v16115_v48 = vld [vmem:[#allocation111_spill] sm:$0xff] }
 0x533   : > { %8644 = vmatmul.mubr.bf16.gmra.mrb[236].mxu0 %v16107_v33 }
 0x534   : > { %8647 = vmatprep.mubr.bf16.mxu0 %v16108_v11  ;;  %v8525_v18 = vpop.f32.mrb[132].mxu1 }
 0x535   : > { %v13210_v53 = vadd.f32 %v8525_v18, %v12908_v24  ;;  %v4546_v20 = vpop.f32.mrb[133].mxu1  ;;  %v16114_v24 = vld [vmem:[#allocation262_spill] sm:$0xff] }
 0x536   : > { %v4121_v30 = vpop.f32.mrb[132].mxu0  ;;  %v13213_v49 = vadd.f32 %v4546_v20, %v12886_v29  ;;  %v8526_v52 = vpop.f32.mrb[134].mxu1  ;;  %v16116_v29 = vld [vmem:[#allocation63_spill] sm:$0xff]  ;;  %v16117_v20 = vld [vmem:[#allocation113_spill] sm:$0xff] }
 0x537   : > { %16109 = vst [vmem:[#allocation209_spill] sm:$0xff] %v13210_v53  ;;  %v13216_v31 = vadd.f32 %v4121_v30, %v16111_v47  ;;  %v4123_v46 = vpop.f32.mrb[133].mxu0  ;;  %v13219_v4 = vadd.f32 %v8526_v52, %v12917_v41  ;;  %v4549_v33 = vpop.f32.mrb[135].mxu1  ;;  %v16118_v30 = vld [vmem:[#allocation114_spill] sm:$0xff] }
 0x538   : > { %16110 = vst [vmem:[#allocation49_spill] sm:$0xff] %v13213_v49  ;;  %v4124_v55 = vpop.f32.mrb[134].mxu0  ;;  %v13222_v11 = vadd.f32 %v4549_v33, %v12895_v42 }
 0x539   : > { %16112 = vst [vmem:[#allocation30_spill] sm:$0xff] %v13219_v4  ;;  %v13225_v18 = vadd.f32 %v4124_v55, %v16114_v24  ;;  %v4126_v53 = vpop.f32.mrb[135].mxu0  ;;  %5107 = vmatmul.mubr.bf16.gmra.mrb[240].mxu1 %v16115_v48  ;;  %v16121_v55 = vld [vmem:[#allocation236_spill] sm:$0xff] }
 0x53a   : > { %16113 = vst [vmem:[#allocation52_spill] sm:$0xff] %v13222_v11  ;;  %5114 = vmatprep.mubr.bf16.mxu1 %v16116_v29 }
 0x53b   : > { %8648 = vmatmul.mubr.bf16.gmra.mrb[240].mxu0 %v16117_v20  ;;  %v9081_v20 = vld [vmem:[#allocation11] sm:$0xff]  }
 0x53c   : > { %8651 = vmatprep.mubr.bf16.mxu0 %v16118_v30  ;;  %v8529_v47 = vpop.f32.mrb[136].mxu1  ;;  %8727 = vmatprep.subr.bf16.mxu0 %v9081_v20 }
 0x53d   : > { %v13232_v41 = vadd.f32 %v8529_v47, %v12952_v15  ;;  %v4562_v52 = vpop.f32.mrb[137].mxu1  ;;  %v16124_v15 = vld [vmem:[#allocation238_spill] sm:$0xff]  ;;  %8728 = vmatpush3.bf16.msra.mxu0 %v9081_v20 }
 0x53e   : > { %v4129_v46 = vpop.f32.mrb[136].mxu0  ;;  %v13235_v42 = vadd.f32 %v4562_v52, %v12930_v61  ;;  %v8530_v33 = vpop.f32.mrb[138].mxu1  ;;  %v16125_v61 = vld [vmem:[#allocation117_spill] sm:$0xff] }
 0x53f   : > { %16119 = vst [vmem:[#allocation53_spill] sm:$0xff] %v13232_v41  ;;  %v13238_v53 = vadd.f32 %v4129_v46, %v16121_v55  ;;  %v4131_v48 = vpop.f32.mrb[137].mxu0  ;;  %v13241_v24 = vadd.f32 %v8530_v33, %v12961_v22  ;;  %v4565_v29 = vpop.f32.mrb[139].mxu1  ;;  %v16126_v52 = vld [vmem:[#allocation61_spill] sm:$0xff]  ;;  %v16127_v46 = vld [vmem:[#allocation122_spill] sm:$0xff]  ;;  %v16128_v22 = vld [vmem:[#allocation120_spill] sm:$0xff] }
 0x540   : > { %16120 = vst [vmem:[#allocation250_spill] sm:$0xff] %v13235_v42  ;;  %v4132_v30 = vpop.f32.mrb[138].mxu0  ;;  %v13244_v4 = vadd.f32 %v4565_v29, %v12939_v14  ;;  %v9082_v48 = vld [vmem:[#allocation11 + $0x8] sm:$0xff]   ;;  %v9083_v29 = vld [vmem:[#allocation11 + $0x10] sm:$0xff]  }
 0x541   : > { %16122 = vst [vmem:[#allocation243_spill] sm:$0xff] %v13241_v24  ;;  %v13247_v47 = vadd.f32 %v4132_v30, %v16124_v15  ;;  %v4134_v41 = vpop.f32.mrb[139].mxu0  ;;  %5115 = vmatmul.mubr.bf16.gmra.mrb[244].mxu1 %v16125_v61  ;;  %v16131_v61 = vld [vmem:[#allocation242_spill] sm:$0xff]  ;;  %8729 = vmatprep.subr.bf16.mxu0 %v9082_v48 }
 0x542   : > { %16123 = vst [vmem:[#allocation240_spill] sm:$0xff] %v13244_v4  ;;  %5122 = vmatprep.mubr.bf16.mxu1 %v16126_v52  ;;  %8730 = vmatpush3.bf16.msra.mxu0 %v9082_v48 }
 0x543   : > { %8652 = vmatmul.mubr.bf16.gmra.mrb[244].mxu0 %v16127_v46  ;;  %8731 = vmatprep.subr.bf16.mxu0 %v9083_v29 }
 0x544   : > { %8655 = vmatprep.mubr.bf16.mxu0 %v16128_v22  ;;  %v8533_v33 = vpop.f32.mrb[140].mxu1 }
 0x545   : > { %v13254_v55 = vadd.f32 %v8533_v33, %v12996_v2  ;;  %v4578_v14 = vpop.f32.mrb[141].mxu1  ;;  %v16134_v33 = vld [vmem:[#allocation265_spill] sm:$0xff] }
 0x546   : > { %v4137_v30 = vpop.f32.mrb[140].mxu0  ;;  %v13257_v41 = vadd.f32 %v4578_v14, %v12974_v1  ;;  %v8534_v15 = vpop.f32.mrb[142].mxu1  ;;  %v16135_v14 = vld [vmem:[#allocation124_spill] sm:$0xff]  ;;  %8732 = vmatpush3.bf16.msra.mxu0 %v9083_v29 }
 0x547   : > { %16129 = vst [vmem:[#allocation212_spill] sm:$0xff] %v13254_v55  ;;  %v13260_v24 = vadd.f32 %v4137_v30, %v16131_v61  ;;  %v4139_v20 = vpop.f32.mrb[141].mxu0  ;;  %v13263_v52 = vadd.f32 %v8534_v15, %v13005_v36  ;;  %v4581_v46 = vpop.f32.mrb[143].mxu1  ;;  %v16136_v30 = vld [vmem:[#allocation127_spill] sm:$0xff]  ;;  %v16137_v36 = vld [vmem:[#allocation126_spill] sm:$0xff] }
 0x548   : > { %16130 = vst [vmem:[#allocation55_spill] sm:$0xff] %v13257_v41  ;;  %v4140_v22 = vpop.f32.mrb[142].mxu0  ;;  %v13266_v2 = vadd.f32 %v4581_v46, %v12983_v7  ;;  %v16314_v41 = vld [vmem:[#allocation173_spill] sm:$0xff] }
 0x549   : > { %16132 = vst [vmem:[#allocation38_spill] sm:$0xff] %v13263_v52  ;;  %v13269_v55 = vadd.f32 %v4140_v22, %v16134_v33  ;;  %v4142_v1 = vpop.f32.mrb[143].mxu0  ;;  %5123 = vmatmul.mubr.bf16.gmra.mrb[248].mxu1 %v16135_v14  ;;  %v16140_v22 = vld [vmem:[#allocation245_spill] sm:$0xff]  ;;  %v9085_v52 = vld [vmem:[#allocation11 + $0x20] sm:$0xff]  }
 0x54a   : > { %16133 = vst [vmem:[#allocation58_spill] sm:$0xff] %v13266_v2  ;;  %5130 = vmatprep.mubr.bf16.mxu1 %v15182_v10 }
 0x54b   : > { %8656 = vmatmul.mubr.bf16.gmra.mrb[248].mxu0 %v16136_v30 }
 0x54c   : > { %8659 = vmatprep.mubr.bf16.mxu0 %v16137_v36  ;;  %v8537_v15 = vpop.f32.mrb[144].mxu1  ;;  %v9084_v36 = vld [vmem:[#allocation11 + $0x18] sm:$0xff]  }
 0x54d   : > { %v13276_v61 = vadd.f32 %v8537_v15, %v13040_v25  ;;  %v4594_v7 = vpop.f32.mrb[145].mxu1  ;;  %v16143_v15 = vld [vmem:[#allocation246_spill] sm:$0xff]  ;;  %8733 = vmatprep.subr.bf16.mxu0 %v9084_v36 }
 0x54e   : > { %v4145_v48 = vpop.f32.mrb[144].mxu0  ;;  %v13279_v20 = vadd.f32 %v4594_v7, %v13018_v57  ;;  %v8538_v46 = vpop.f32.mrb[146].mxu1  ;;  %v16144_v7 = vld [vmem:[#allocation67_spill] sm:$0xff]  ;;  %8734 = vmatpush3.bf16.msra.mxu0 %v9084_v36 }
 0x54f   : > { %16138 = vst [vmem:[#allocation59_spill] sm:$0xff] %v13276_v61  ;;  %v13282_v33 = vadd.f32 %v4145_v48, %v16140_v22  ;;  %v4147_v1 = vpop.f32.mrb[145].mxu0  ;;  %v13285_v14 = vadd.f32 %v8538_v46, %v13049_v34  ;;  %v4597_v30 = vpop.f32.mrb[147].mxu1  ;;  %8735 = vmatprep.subr.bf16.mxu0 %v9085_v52  ;;  %v16145_v34 = vld [vmem:[#allocation132_spill] sm:$0xff] }
 0x550   : > { %16139 = vst [vmem:[#allocation214_spill] sm:$0xff] %v13279_v20  ;;  %v4148_v29 = vpop.f32.mrb[146].mxu0  ;;  %v13288_v25 = vadd.f32 %v4597_v30, %v13027_v50  ;;  %v9086_v22 = vld [vmem:[#allocation11 + $0x28] sm:$0xff]  }
 0x551   : > { %16141 = vst [vmem:[#allocation215_spill] sm:$0xff] %v13285_v14  ;;  %v13291_v61 = vadd.f32 %v4148_v29, %v16143_v15  ;;  %v4150_v57 = vpop.f32.mrb[147].mxu0  ;;  %5131 = vmatmul.mubr.bf16.gmra.mrb[252].mxu1 %v15182_v10  ;;  %v16148_v15 = vld [vmem:[#allocation248_spill] sm:$0xff]  ;;  %v9087_v14 = vld [vmem:[#allocation11 + $0x30] sm:$0xff]  }
 0x552   : > { %16142 = vst [vmem:[#allocation62_spill] sm:$0xff] %v13288_v25  ;;  %5138 = vmatprep.mubr.bf16.mxu1 %v16144_v7  ;;  %8736 = vmatpush3.bf16.msra.mxu0 %v9085_v52  ;;  %v16153_v52 = vld [vmem:[#allocation76_spill] sm:$0xff] }
 0x553   : > { %8660 = vmatmul.mubr.bf16.gmra.mrb[252].mxu0 %v15182_v10  ;;  %8737 = vmatprep.subr.bf16.mxu0 %v9086_v22 }
 0x554   : > { %8663 = vmatprep.mubr.bf16.mxu0 %v16145_v34  ;;  %v8541_v48 = vpop.f32.mrb[148].mxu1 }
 0x555   : > { %v13298_v46 = vadd.f32 %v8541_v48, %v13084_v63  ;;  %v4610_v50 = vpop.f32.mrb[149].mxu1 }
 0x556   : > { %v4153_v1 = vpop.f32.mrb[148].mxu0  ;;  %v13301_v30 = vadd.f32 %v4610_v50, %v13062_v58  ;;  %v8542_v29 = vpop.f32.mrb[150].mxu1  ;;  %v16152_v50 = vld [vmem:[#allocation135_spill] sm:$0xff]  ;;  %8738 = vmatpush3.bf16.msra.mxu0 %v9086_v22 }
 0x557   : > { %16146 = vst [vmem:[#allocation36_spill] sm:$0xff] %v13298_v46  ;;  %v13304_v57 = vadd.f32 %v4153_v1, %v16148_v15  ;;  %v4155_v36 = vpop.f32.mrb[149].mxu0  ;;  %v13307_v7 = vadd.f32 %v8542_v29, %v13093_v0  ;;  %v4613_v34 = vpop.f32.mrb[151].mxu1  ;;  %v16151_v46 = vld [vmem:[#allocation268_spill] sm:$0xff]  ;;  %8739 = vmatprep.subr.bf16.mxu0 %v9087_v14 }
 0x558   : > { %16147 = vst [vmem:[#allocation64_spill] sm:$0xff] %v13301_v30  ;;  %v4156_v63 = vpop.f32.mrb[150].mxu0  ;;  %v13310_v48 = vadd.f32 %v4613_v34, %v13071_v35  ;;  %v16154_v1 = vld [vmem:[#allocation92_spill] sm:$0xff] }
 0x559   : > { %16149 = vst [vmem:[#allocation65_spill] sm:$0xff] %v13307_v7  ;;  %v13313_v25 = vadd.f32 %v4156_v63, %v16151_v46  ;;  %v4158_v58 = vpop.f32.mrb[151].mxu0  ;;  %5139 = vmatmul.mubr.bf16.gmra.mrb[0].mxu1 %v16152_v50  ;;  %v16155_v0 = vld [vmem:[#allocation136_spill] sm:$0xff]  ;;  %v16158_v63 = vld [vmem:[#allocation249_spill] sm:$0xff] }
 0x55a   : > { %16150 = vst [vmem:[#allocation254_spill] sm:$0xff] %v13310_v48  ;;  %5146 = vmatprep.mubr.bf16.mxu1 %v16153_v52  ;;  %8740 = vmatpush3.bf16.msra.mxu0 %v9087_v14  ;;  %v16163_v14 = vld [vmem:[#allocation74_spill] sm:$0xff] }
 0x55b   : > { %8664 = vmatmul.mubr.bf16.gmra.mrb[0].mxu0 %v16154_v1  ;;  %v9088_v1 = vld [vmem:[#allocation11 + $0x38] sm:$0xff]  }
 0x55c   : > { %8667 = vmatprep.mubr.bf16.mxu0 %v16155_v0  ;;  %v8545_v29 = vpop.f32.mrb[152].mxu1  ;;  %8741 = vmatprep.subr.bf16.mxu0 %v9088_v1 }
 0x55d   : > { %v13320_v15 = vadd.f32 %v8545_v29, %v13128_v38  ;;  %v4626_v35 = vpop.f32.mrb[153].mxu1  ;;  %v16161_v29 = vld [vmem:[#allocation252_spill] sm:$0xff] }
 0x55e   : > { %v4161_v36 = vpop.f32.mrb[152].mxu0  ;;  %v13323_v46 = vadd.f32 %v4626_v35, %v13106_v17  ;;  %v8546_v34 = vpop.f32.mrb[154].mxu1  ;;  %v16162_v35 = vld [vmem:[#allocation139_spill] sm:$0xff]  ;;  %8742 = vmatpush3.bf16.msra.mxu0 %v9088_v1 }
 0x55f   : > { %16156 = vst [vmem:[#allocation253_spill] sm:$0xff] %v13320_v15  ;;  %v13326_v58 = vadd.f32 %v4161_v36, %v16158_v63  ;;  %v4163_v22 = vpop.f32.mrb[153].mxu0  ;;  %v13329_v50 = vadd.f32 %v8546_v34, %v13137_v60  ;;  %v4629_v52 = vpop.f32.mrb[155].mxu1  ;;  %v16164_v36 = vld [vmem:[#allocation99_spill] sm:$0xff] }
 0x560   : > { %16157 = vst [vmem:[#allocation218_spill] sm:$0xff] %v13323_v46  ;;  %v4164_v0 = vpop.f32.mrb[154].mxu0  ;;  %v13332_v38 = vadd.f32 %v4629_v52, %v13115_v6  ;;  %v16165_v60 = vld [vmem:[#allocation107_spill] sm:$0xff] }
 0x561   : > { %16159 = vst [vmem:[#allocation70_spill] sm:$0xff] %v13329_v50  ;;  %v13335_v15 = vadd.f32 %v4164_v0, %v16161_v29  ;;  %v4166_v17 = vpop.f32.mrb[155].mxu0  ;;  %5147 = vmatmul.mubr.bf16.gmra.mrb[4].mxu1 %v16162_v35  ;;  %v16168_v29 = vld [vmem:[#allocation256_spill] sm:$0xff] }
 0x562   : > { %16160 = vst [vmem:[#allocation45_spill] sm:$0xff] %v13332_v38  ;;  %5154 = vmatprep.mubr.bf16.mxu1 %v16163_v14  ;;  %v16172_v50 = vld [vmem:[#allocation116_spill] sm:$0xff] }
 0x563   : > { %8668 = vmatmul.mubr.bf16.gmra.mrb[4].mxu0 %v16164_v36 }
 0x564   : > { %8671 = vmatprep.mubr.bf16.mxu0 %v16165_v60  ;;  %v8549_v34 = vpop.f32.mrb[156].mxu1 }
 0x565   : > { %v13342_v63 = vadd.f32 %v8549_v34, %v13172_v27  ;;  %v4642_v6 = vpop.f32.mrb[157].mxu1  ;;  %v16171_v27 = vld [vmem:[#allocation271_spill] sm:$0xff] }
 0x566   : > { %v4169_v22 = vpop.f32.mrb[156].mxu0  ;;  %v13345_v52 = vadd.f32 %v4642_v6, %v13150_v9  ;;  %v8550_v0 = vpop.f32.mrb[158].mxu1  ;;  %v16173_v9 = vld [vmem:[#allocation81_spill] sm:$0xff]  ;;  %v16174_v6 = vld [vmem:[#allocation108_spill] sm:$0xff] }
 0x567   : > { %16166 = vst [vmem:[#allocation71_spill] sm:$0xff] %v13342_v63  ;;  %v13348_v17 = vadd.f32 %v4169_v22, %v16168_v29  ;;  %v4171_v35 = vpop.f32.mrb[157].mxu0  ;;  %v13351_v1 = vadd.f32 %v8550_v0, %v13181_v54  ;;  %v4645_v14 = vpop.f32.mrb[159].mxu1  ;;  %v16175_v22 = vld [vmem:[#allocation143_spill] sm:$0xff] }
 0x568   : > { %16167 = vst [vmem:[#allocation72_spill] sm:$0xff] %v13345_v52  ;;  %v4172_v36 = vpop.f32.mrb[158].mxu0  ;;  %v13354_v60 = vadd.f32 %v4645_v14, %v13159_v39 }
 0x569   : > { %16169 = vst [vmem:[#allocation220_spill] sm:$0xff] %v13351_v1  ;;  %v13357_v34 = vadd.f32 %v4172_v36, %v16171_v27  ;;  %v4174_v63 = vpop.f32.mrb[159].mxu0  ;;  %5155 = vmatmul.mubr.bf16.gmra.mrb[8].mxu1 %v16172_v50  ;;  %v16178_v36 = vld [vmem:[#allocation257_spill] sm:$0xff]  ;;  %v16182_v1 = vld [vmem:[#allocation151_spill] sm:$0xff] }
 0x56a   : > { %16170 = vst [vmem:[#allocation115_spill] sm:$0xff] %v13354_v60  ;;  %5162 = vmatprep.mubr.bf16.mxu1 %v16173_v9 }
 0x56b   : > { %8672 = vmatmul.mubr.bf16.gmra.mrb[8].mxu0 %v16174_v6 }
 0x56c   : > { %8675 = vmatprep.mubr.bf16.mxu0 %v16175_v22  ;;  %v8553_v29 = vpop.f32.mrb[160].mxu1 }
 0x56d   : > { %v13364_v54 = vadd.f32 %v8553_v29, %v13216_v31  ;;  %v4658_v0 = vpop.f32.mrb[161].mxu1  ;;  %v16181_v31 = vld [vmem:[#allocation128_spill] sm:$0xff] }
 0x56e   : > { %v4177_v35 = vpop.f32.mrb[160].mxu0  ;;  %v13367_v39 = vadd.f32 %v4658_v0, %v13194_v44  ;;  %v8554_v14 = vpop.f32.mrb[162].mxu1  ;;  %v16183_v44 = vld [vmem:[#allocation80_spill] sm:$0xff]  ;;  %v16184_v0 = vld [vmem:[#allocation145_spill] sm:$0xff] }
 0x56f   : > { %16176 = vst [vmem:[#allocation221_spill] sm:$0xff] %v13364_v54  ;;  %v13370_v63 = vadd.f32 %v4177_v35, %v16178_v36  ;;  %v4179_v50 = vpop.f32.mrb[161].mxu0  ;;  %v13373_v27 = vadd.f32 %v8554_v14, %v13225_v18  ;;  %v4661_v9 = vpop.f32.mrb[163].mxu1  ;;  %v16185_v35 = vld [vmem:[#allocation152_spill] sm:$0xff] }
 0x570   : > { %16177 = vst [vmem:[#allocation75_spill] sm:$0xff] %v13367_v39  ;;  %v4180_v6 = vpop.f32.mrb[162].mxu0  ;;  %v13376_v22 = vadd.f32 %v4661_v9, %v13203_v13 }
 0x571   : > { %16179 = vst [vmem:[#allocation43_spill] sm:$0xff] %v13373_v27  ;;  %v13379_v29 = vadd.f32 %v4180_v6, %v16181_v31  ;;  %v4182_v54 = vpop.f32.mrb[163].mxu0  ;;  %5163 = vmatmul.mubr.bf16.gmra.mrb[12].mxu1 %v16182_v1  ;;  %v16188_v6 = vld [vmem:[#allocation69_spill] sm:$0xff]  ;;  %v16191_v27 = vld [vmem:[#allocation259_spill] sm:$0xff] }
 0x572   : > { %16180 = vst [vmem:[#allocation78_spill] sm:$0xff] %v13376_v22  ;;  %5170 = vmatprep.mubr.bf16.mxu1 %v16183_v44  ;;  %v16193_v22 = vld [vmem:[#allocation88_spill] sm:$0xff] }
 0x573   : > { %8676 = vmatmul.mubr.bf16.gmra.mrb[12].mxu0 %v16184_v0 }
 0x574   : > { %8679 = vmatprep.mubr.bf16.mxu0 %v16185_v35  ;;  %v8557_v36 = vpop.f32.mrb[164].mxu1 }
 0x575   : > { %v13386_v18 = vadd.f32 %v8557_v36, %v13260_v24  ;;  %v4674_v14 = vpop.f32.mrb[165].mxu1 }
 0x576   : > { %v4185_v50 = vpop.f32.mrb[164].mxu0  ;;  %v13389_v13 = vadd.f32 %v4674_v14, %v13238_v53  ;;  %v8558_v9 = vpop.f32.mrb[166].mxu1  ;;  %v16194_v53 = vld [vmem:[#allocation154_spill] sm:$0xff]  ;;  %v16195_v14 = vld [vmem:[#allocation160_spill] sm:$0xff] }
 0x577   : > { %16186 = vst [vmem:[#allocation258_spill] sm:$0xff] %v13386_v18  ;;  %v4186_v54 = vadd.f32 %v4185_v50, %v16188_v6  ;;  %v4187_v31 = vpop.f32.mrb[165].mxu0  ;;  %v13393_v1 = vadd.f32 %v8558_v9, %v13269_v55  ;;  %v4677_v44 = vpop.f32.mrb[167].mxu1  ;;  %v16192_v18 = vld [vmem:[#allocation158_spill] sm:$0xff] }
 0x578   : > { %16187 = vst [vmem:[#allocation274_spill] sm:$0xff] %v13389_v13  ;;  %v4188_v0 = vpop.f32.mrb[166].mxu0  ;;  %v13396_v35 = vadd.f32 %v4677_v44, %v13247_v47 }
 0x579   : > { %16189 = vst [vmem:[#allocation224_spill] sm:$0xff] %v13393_v1  ;;  %v4189_v24 = vadd.f32 %v4188_v0, %v16191_v27  ;;  %v4190_v36 = vpop.f32.mrb[167].mxu0  ;;  %5171 = vmatmul.mubr.bf16.gmra.mrb[16].mxu1 %v16192_v18  ;;  %v16198_v27 = vld [vmem:[#allocation105_spill] sm:$0xff]  ;;  %v16203_v1 = vld [vmem:[#allocation86_spill] sm:$0xff] }
 0x57a   : > { %16190 = vst [vmem:[#allocation82_spill] sm:$0xff] %v13396_v35  ;;  %5178 = vmatprep.mubr.bf16.mxu1 %v16193_v22 }
 0x57b   : > { %8680 = vmatmul.mubr.bf16.gmra.mrb[16].mxu0 %v16194_v53 }
 0x57c   : > { %8683 = vmatprep.mubr.bf16.mxu0 %v16195_v14  ;;  %v8561_v50 = vpop.f32.mrb[168].mxu1  ;;  %v16201_v14 = vld [vmem:[#allocation131_spill] sm:$0xff] }
 0x57d   : > { %v13404_v55 = vadd.f32 %v8561_v50, %v13304_v57  ;;  %v4690_v9 = vpop.f32.mrb[169].mxu1 }
 0x57e   : > { %v4193_v6 = vpop.f32.mrb[168].mxu0  ;;  %v13407_v47 = vadd.f32 %v4690_v9, %v13282_v33  ;;  %v8562_v31 = vpop.f32.mrb[170].mxu1  ;;  %v16204_v33 = vld [vmem:[#allocation161_spill] sm:$0xff]  ;;  %v16205_v9 = vld [vmem:[#allocation166_spill] sm:$0xff] }
 0x57f   : > { %16196 = vst [vmem:[#allocation51_spill] sm:$0xff] %v13404_v55  ;;  %v4194_v44 = vadd.f32 %v4193_v6, %v16198_v27  ;;  %v4195_v0 = vpop.f32.mrb[169].mxu0  ;;  %v13411_v18 = vadd.f32 %v8562_v31, %v13313_v25  ;;  %v4693_v22 = vpop.f32.mrb[171].mxu1  ;;  %v16202_v55 = vld [vmem:[#allocation164_spill] sm:$0xff] }
 0x580   : > { %16197 = vst [vmem:[#allocation83_spill] sm:$0xff] %v13407_v47  ;;  %v4196_v36 = vpop.f32.mrb[170].mxu0  ;;  %v13414_v53 = vadd.f32 %v4693_v22, %v13291_v61  ;;  %v16208_v22 = vld [vmem:[#allocation261_spill] sm:$0xff] }
 0x581   : > { %16199 = vst [vmem:[#allocation84_spill] sm:$0xff] %v13411_v18  ;;  %v4197_v57 = vadd.f32 %v4196_v36, %v16201_v14  ;;  %v4198_v50 = vpop.f32.mrb[171].mxu0  ;;  %5179 = vmatmul.mubr.bf16.gmra.mrb[20].mxu1 %v16202_v55  ;;  %v16213_v18 = vld [vmem:[#allocation95_spill] sm:$0xff] }
 0x582   : > { %16200 = vst [vmem:[#allocation226_spill] sm:$0xff] %v13414_v53  ;;  %5186 = vmatprep.mubr.bf16.mxu1 %v16203_v1 }
 0x583   : > { %8684 = vmatmul.mubr.bf16.gmra.mrb[20].mxu0 %v16204_v33 }
 0x584   : > { %8687 = vmatprep.mubr.bf16.mxu0 %v16205_v9  ;;  %v8565_v6 = vpop.f32.mrb[172].mxu1  ;;  %v16211_v9 = vld [vmem:[#allocation263_spill] sm:$0xff] }
 0x585   : > { %v13422_v25 = vadd.f32 %v8565_v6, %v13348_v17  ;;  %v4706_v31 = vpop.f32.mrb[173].mxu1 }
 0x586   : > { %v4201_v27 = vpop.f32.mrb[172].mxu0  ;;  %v13425_v61 = vadd.f32 %v4706_v31, %v13326_v58  ;;  %v8566_v0 = vpop.f32.mrb[174].mxu1  ;;  %v16214_v58 = vld [vmem:[#allocation168_spill] sm:$0xff]  ;;  %v16215_v31 = vld [vmem:[#allocation171_spill] sm:$0xff] }
 0x587   : > { %16206 = vst [vmem:[#allocation277_spill] sm:$0xff] %v13422_v25  ;;  %v4202_v36 = vadd.f32 %v4201_v27, %v16208_v22  ;;  %v4203_v14 = vpop.f32.mrb[173].mxu0  ;;  %v13429_v55 = vadd.f32 %v8566_v0, %v13357_v34  ;;  %v4709_v1 = vpop.f32.mrb[175].mxu1  ;;  %v16212_v25 = vld [vmem:[#allocation170_spill] sm:$0xff] }
 0x588   : > { %16207 = vst [vmem:[#allocation227_spill] sm:$0xff] %v13425_v61  ;;  %v4204_v50 = vpop.f32.mrb[174].mxu0  ;;  %v13432_v33 = vadd.f32 %v4709_v1, %v13335_v15  ;;  %v16218_v1 = vld [vmem:[#allocation264_spill] sm:$0xff] }
 0x589   : > { %16209 = vst [vmem:[#allocation87_spill] sm:$0xff] %v13429_v55  ;;  %v4205_v17 = vadd.f32 %v4204_v50, %v16211_v9  ;;  %v4206_v6 = vpop.f32.mrb[175].mxu0  ;;  %5187 = vmatmul.mubr.bf16.gmra.mrb[24].mxu1 %v16212_v25 }
 0x58a   : > { %16210 = vst [vmem:[#allocation48_spill] sm:$0xff] %v13432_v33  ;;  %5194 = vmatprep.mubr.bf16.mxu1 %v16213_v18 }
 0x58b   : > { %8688 = vmatmul.mubr.bf16.gmra.mrb[24].mxu0 %v16214_v58 }
 0x58c   : > { %8691 = vmatprep.mubr.bf16.mxu0 %v16215_v31  ;;  %v8569_v27 = vpop.f32.mrb[176].mxu1  ;;  %v16221_v31 = vld [vmem:[#allocation266_spill] sm:$0xff] }
 0x58d   : > { %v13439_v22 = vadd.f32 %v8569_v27, %v4186_v54  ;;  %v4722_v34 = vpop.f32.mrb[177].mxu1  ;;  %v16222_v27 = vld [vmem:[#allocation174_spill] sm:$0xff] }
 0x58e   : > { %v4209_v0 = vpop.f32.mrb[176].mxu0  ;;  %v13442_v14 = vadd.f32 %v4722_v34, %v13370_v63  ;;  %v8570_v15 = vpop.f32.mrb[178].mxu1  ;;  %v16224_v63 = vld [vmem:[#allocation175_spill] sm:$0xff] }
 0x58f   : > { %16216 = vst [vmem:[#allocation89_spill] sm:$0xff] %v13439_v22  ;;  %v4210_v50 = vadd.f32 %v4209_v0, %v16218_v1  ;;  %v4211_v9 = vpop.f32.mrb[177].mxu0  ;;  %v13445_v6 = vadd.f32 %v8570_v15, %v4189_v24  ;;  %v4725_v25 = vpop.f32.mrb[179].mxu1  ;;  %v16223_v22 = vld [vmem:[#allocation93_spill] sm:$0xff] }
 0x590   : > { %16217 = vst [vmem:[#allocation90_spill] sm:$0xff] %v13442_v14  ;;  %v4212_v18 = vpop.f32.mrb[178].mxu0  ;;  %v13448_v58 = vadd.f32 %v4725_v25, %v13379_v29  ;;  %v16227_v9 = vld [vmem:[#allocation267_spill] sm:$0xff]  ;;  %v16231_v14 = vld [vmem:[#allocation177_spill] sm:$0xff] }
 0x591   : > { %16219 = vst [vmem:[#allocation272_spill] sm:$0xff] %v13445_v6  ;;  %v4213_v55 = vadd.f32 %v4212_v18, %v16221_v31  ;;  %v4214_v54 = vpop.f32.mrb[179].mxu0  ;;  %5195 = vmatmul.mubr.bf16.gmra.mrb[28].mxu1 %v16222_v27  ;;  %v16230_v6 = vld [vmem:[#allocation269_spill] sm:$0xff] }
 0x592   : > { %16220 = vst [vmem:[#allocation260_spill] sm:$0xff] %v13448_v58  ;;  %5202 = vmatprep.mubr.bf16.mxu1 %v16223_v22 }
 0x593   : > { %8692 = vmatmul.mubr.bf16.gmra.mrb[28].mxu0 %v15182_v10 }
 0x594   : > { %8695 = vmatprep.mubr.bf16.mxu0 %v16224_v63  ;;  %v8573_v34 = vpop.f32.mrb[180].mxu1 }
 0x595   : > { %v13455_v0 = vadd.f32 %v8573_v34, %v4202_v36  ;;  %v4738_v24 = vpop.f32.mrb[181].mxu1  ;;  %v16232_v36 = vld [vmem:[#allocation103_spill] sm:$0xff]  ;;  %v16233_v34 = vld [vmem:[#allocation176_spill] sm:$0xff] }
 0x596   : > { %v4217_v15 = vpop.f32.mrb[180].mxu0  ;;  %v13457_v1 = vadd.f32 %v4738_v24, %v4194_v44  ;;  %v8574_v29 = vpop.f32.mrb[182].mxu1  ;;  %v16234_v44 = vld [vmem:[#allocation178_spill] sm:$0xff] }
 0x597   : > { %16225 = vst [vmem:[#allocation273_spill] sm:$0xff] %v13455_v0  ;;  %v4218_v25 = vadd.f32 %v4217_v15, %v16227_v9  ;;  %v4219_v18 = vpop.f32.mrb[181].mxu0  ;;  %v13460_v31 = vadd.f32 %v8574_v29, %v4205_v17  ;;  %v4741_v54 = vpop.f32.mrb[183].mxu1  ;;  %v16241_v0 = vld [vmem:[#allocation180_spill] sm:$0xff] }
 0x598   : > { %16226 = vst [vmem:[#allocation230_spill] sm:$0xff] %v13457_v1  ;;  %v4220_v27 = vpop.f32.mrb[182].mxu0  ;;  %v13462_v22 = vadd.f32 %v4741_v54, %v4197_v57  ;;  %v16237_v18 = vld [vmem:[#allocation270_spill] sm:$0xff]  ;;  %v16265_v1 = vld [vmem:[#allocation200_spill] sm:$0xff] }
 0x599   : > { %16228 = vst [vmem:[#allocation94_spill] sm:$0xff] %v13460_v31  ;;  %v4221_v58 = vadd.f32 %v4220_v27, %v16230_v6  ;;  %v4222_v63 = vpop.f32.mrb[183].mxu0  ;;  %5203 = vmatmul.mubr.bf16.gmra.mrb[32].mxu1 %v16231_v14 }
 0x59a   : > { %16229 = vst [vmem:[#allocation57_spill] sm:$0xff] %v13462_v22  ;;  %5210 = vmatprep.mubr.bf16.mxu1 %v16232_v36  ;;  %v16261_v22 = vld [vmem:[#allocation195_spill] sm:$0xff] }
 0x59b   : > { %8696 = vmatmul.mubr.bf16.gmra.mrb[32].mxu0 %v16233_v34  ;;  %v16240_v34 = vld [vmem:[#allocation280_spill] sm:$0xff] }
 0x59c   : > { %8699 = vmatprep.mubr.bf16.mxu0 %v16234_v44  ;;  %v8577_v24 = vpop.f32.mrb[184].mxu1 }
 0x59d   : > { %v13469_v15 = vadd.f32 %v8577_v24, %v4218_v25  ;;  %v4754_v17 = vpop.f32.mrb[185].mxu1  ;;  %v16242_v25 = vld [vmem:[#allocation101_spill] sm:$0xff]  ;;  %v16243_v24 = vld [vmem:[#allocation179_spill] sm:$0xff] }
 0x59e   : > { %v4225_v29 = vpop.f32.mrb[184].mxu0  ;;  %v13471_v9 = vadd.f32 %v4754_v17, %v4210_v50  ;;  %v8578_v57 = vpop.f32.mrb[186].mxu1  ;;  %v16244_v50 = vld [vmem:[#allocation181_spill] sm:$0xff] }
 0x59f   : > { %16235 = vst [vmem:[#allocation96_spill] sm:$0xff] %v13469_v15  ;;  %v4226_v54 = vadd.f32 %v4225_v29, %v16237_v18  ;;  %v4227_v6 = vpop.f32.mrb[185].mxu0  ;;  %v13474_v27 = vadd.f32 %v8578_v57, %v4221_v58  ;;  %v4757_v14 = vpop.f32.mrb[187].mxu1  ;;  %v16249_v15 = vld [vmem:[#allocation184_spill] sm:$0xff] }
 0x5a0   : > { %16236 = vst [vmem:[#allocation97_spill] sm:$0xff] %v13471_v9  ;;  %v4228_v63 = vpop.f32.mrb[186].mxu0  ;;  %v13476_v36 = vadd.f32 %v4757_v14, %v4213_v55  ;;  %v16246_v6 = vld [vmem:[#allocation275_spill] sm:$0xff] }
 0x5a1   : > { %16238 = vst [vmem:[#allocation77_spill] sm:$0xff] %v13474_v27  ;;  %v4229_v31 = vadd.f32 %v4228_v63, %v16240_v34  ;;  %v4230_v44 = vpop.f32.mrb[187].mxu0  ;;  %5211 = vmatmul.mubr.bf16.gmra.mrb[36].mxu1 %v16241_v0  ;;  %v16248_v0 = vld [vmem:[#allocation276_spill] sm:$0xff] }
 0x5a2   : > { %16239 = vst [vmem:[#allocation232_spill] sm:$0xff] %v13476_v36  ;;  %5218 = vmatprep.mubr.bf16.mxu1 %v16242_v25  ;;  %v16259_v36 = vld [vmem:[#allocation278_spill] sm:$0xff] }
 0x5a3   : > { %8700 = vmatmul.mubr.bf16.gmra.mrb[36].mxu0 %v16243_v24 }
 0x5a4   : > { %8703 = vmatprep.mubr.bf16.mxu0 %v16244_v50  ;;  %v8581_v17 = vpop.f32.mrb[188].mxu1  ;;  %v16251_v50 = vld [vmem:[#allocation112_spill] sm:$0xff] }
 0x5a5   : > { %v4770_v29 = vpop.f32.mrb[189].mxu1 }
 0x5a6   : > { %v4233_v18 = vpop.f32.mrb[188].mxu0  ;;  %v13483_v58 = vadd.f32 %v4770_v29, %v4226_v54  ;;  %v8582_v57 = vpop.f32.mrb[190].mxu1  ;;  %v16253_v29 = vld [vmem:[#allocation186_spill] sm:$0xff] }
 0x5a7   : > { %v4234_v55 = vadd.f32 %v4233_v18, %v16246_v6  ;;  %v4235_v14 = vpop.f32.mrb[189].mxu0  ;;  %v4773_v27 = vpop.f32.mrb[191].mxu1 }
 0x5a8   : > { %16245 = vst [vmem:[#allocation100_spill] sm:$0xff] %v13483_v58  ;;  %v4236_v63 = vpop.f32.mrb[190].mxu0  ;;  %v13486_v34 = vadd.f32 %v4773_v27, %v4229_v31 }
 0x5a9   : > { %v4237_v44 = vadd.f32 %v4236_v63, %v16248_v0  ;;  %v4238_v25 = vpop.f32.mrb[191].mxu0  ;;  %5219 = vmatmul.mubr.bf16.gmra.mrb[40].mxu1 %v16249_v15  ;;  %v13490_v24 = vadd.f32 %v8581_v17, %v4234_v55  ;;  %v16254_v17 = vld [vmem:[#allocation190_spill] sm:$0xff]  ;;  %v16255_v55 = vld [vmem:[#allocation279_spill] sm:$0xff] }
 0x5aa   : > { %16247 = vst [vmem:[#allocation56_spill] sm:$0xff] %v13486_v34  ;;  %5226 = vmatprep.mubr.bf16.mxu1 %v16251_v50  ;;  %v13497_v25 = vld [vmem:[#allocation10] ss:$0 sm:$0xff] }
 0x5ab   : > { %16250 = vst [vmem:[#allocation104_spill] sm:$0xff] %v13490_v24  ;;  %8704 = vmatmul.mubr.bf16.gmra.mrb[40].mxu0 %v15945_v62  ;;  %v13494_v54 = vadd.f32 %v8582_v57, %v4237_v44  ;;  %v16256_v57 = vld [vmem:[#allocation110_spill] sm:$0xff] }
 0x5ac   : > { %8707 = vmatprep.mubr.bf16.mxu0 %v16253_v29  ;;  %v5012_v18 = vpop.f32.mrb[192].mxu1  ;;  %v16257_v29 = vld [vmem:[#allocation281_spill] sm:$0xff] }
 0x5ad   : > { %16252 = vst [vmem:[#allocation102_spill] sm:$0xff] %v13494_v54  ;;  %v5014_v6 = vpop.f32.mrb[193].mxu1  ;;  %v16258_v54 = vld [vmem:[#allocation191_spill] sm:$0xff] }
 0x5ae   : > { %v8601_v14 = vpop.f32.mrb[192].mxu0  ;;  %v5015_v31 = vpop.f32.mrb[194].mxu1 }
 0x5af   : > { %v5557_v27 = vpop.f32.mrb[193].mxu0  ;;  %v5017_v34 = vpop.f32.mrb[195].mxu1 }
 0x5b0   : > { %v5558_v63 = vadd.f32 %v5557_v27, %v5012_v18  ;;  %v8602_v0 = vpop.f32.mrb[194].mxu0 }
 0x5b1   : > { %v5560_v15 = vpop.f32.mrb[195].mxu0  ;;  %5227 = vmatmul.mubr.bf16.gmra.mrb[44].mxu1 %v16254_v17 }
 0x5b2   : > { %v6068_v50 = vadd.f32 %v5558_v63, %v16255_v55  ;;  %v5561_v62 = vadd.f32 %v5560_v15, %v5015_v31  ;;  %5234 = vmatprep.mubr.bf16.mxu1 %v16256_v57 }
 0x5b3   : > { %8708 = vmatmul.mubr.bf16.gmra.mrb[44].mxu0 %v15955_v59 }
 0x5b4   : > { %v6203_v44 = vadd.f32 %v13497_v25, %v6068_v50  ;;  %v6069_v6 = vadd.f32 %v5561_v62, %v16257_v29  ;;  %8711 = vmatprep.mubr.bf16.mxu0 %v16258_v54  ;;  %v5020_v34 = vpop.f32.mrb[196].mxu1  ;;  %v16260_v62 = vld [vmem:[#allocation172_spill] sm:$0xff] }
 0x5b5   : > { %v5566_v18 = vadd.f32 %v8601_v14, %v5020_v34  ;;  %v5022_v27 = vpop.f32.mrb[197].mxu1  ;;  %v16262_v14 = vld [vmem:[#allocation121_spill] sm:$0xff] }
 0x5b6   : > { %v6204_v24 = vadd.f32 %v13497_v25, %v6069_v6  ;;  %v8605_v58 = vpop.f32.mrb[196].mxu0  ;;  %v5023_v17 = vpop.f32.mrb[198].mxu1  ;;  %v6331_v57 = vmax.f32 %v6203_v44, 0.0 }
 0x5b7   : > { %v6070_v63 = vadd.f32 %v5566_v18, %v16259_v36  ;;  %v5569_v31 = vadd.f32 %v8602_v0, %v5023_v17  ;;  %v5573_v15 = vpop.f32.mrb[197].mxu0  ;;  %v5025_v55 = vpop.f32.mrb[199].mxu1 }
 0x5b8   : > { %v6332_v59 = vmax.f32 %v6204_v24, 0.0  ;;  %v8606_v9 = vpop.f32.mrb[198].mxu0 }
 0x5b9   : > { %v6205_v50 = vadd.f32 %v13497_v25, %v6070_v63  ;;  %v6071_v29 = vadd.f32 %v5569_v31, %v16260_v62  ;;  %v5576_v54 = vpop.f32.mrb[199].mxu0  ;;  %5235 = vmatmul.mubr.bf16.gmra.mrb[48].mxu1 %v16261_v22  ;;  %v16263_v22 = vld [vmem:[#allocation282_spill] sm:$0xff] }
 0x5ba   : > { %5242 = vmatprep.mubr.bf16.mxu1 %v16262_v14  ;;  %v13512_v6 = vpack.c.bf16 %v6332_v59, %v6331_v57 }
 0x5bb   : > { %v6206_v34 = vadd.f32 %v13497_v25, %v6071_v29  ;;  %8712 = vmatmul.mubr.bf16.gmra.mrb[48].mxu0 %v15966_v21  ;;  %v6333_v24 = vmax.f32 %v6205_v50, 0.0  ;;  %v16264_v21 = vld [vmem:[#allocation283_spill] sm:$0xff] }
 0x5bc   : > { %8715 = vmatprep.mubr.bf16.mxu0 %v15967_v51  ;;  %v5028_v36 = vpop.f32.mrb[200].mxu1  ;;  %v16266_v50 = vld [vmem:[#allocation119_spill] sm:$0xff] }
 0x5bd   : > { %v6334_v0 = vmax.f32 %v6206_v34, 0.0  ;;  %v5574_v44 = vadd.f32 %v5573_v15, %v5028_v36  ;;  %v5030_v18 = vpop.f32.mrb[201].mxu1  ;;  %v16267_v34 = vld [vmem:[#allocation201_spill] sm:$0xff] }
 0x5be   : > { %v8609_v27 = vpop.f32.mrb[200].mxu0  ;;  %v5031_v17 = vpop.f32.mrb[202].mxu1 }
 0x5bf   : > { %v13517_v63 = vpack.c.bf16 %v6334_v0, %v6333_v24  ;;  %v6072_v31 = vadd.f32 %v5574_v44, %v16263_v22  ;;  %v5577_v55 = vadd.f32 %v5576_v54, %v5031_v17  ;;  %v5589_v57 = vpop.f32.mrb[201].mxu0  ;;  %v5033_v59 = vpop.f32.mrb[203].mxu1  ;;  %v16268_v22 = vld [vmem:[#allocation287_spill] sm:$0xff] }
 0x5c0   : > { %v8610_v62 = vpop.f32.mrb[202].mxu0 }
 0x5c1   : > { %v6207_v29 = vadd.f32 %v13497_v25, %v6072_v31  ;;  %v6073_v14 = vadd.f32 %v5577_v55, %v16264_v21  ;;  %v5592_v51 = vpop.f32.mrb[203].mxu0  ;;  %5243 = vmatmul.mubr.bf16.gmra.mrb[52].mxu1 %v16265_v1 }
 0x5c2   : > { %5250 = vmatprep.mubr.bf16.mxu1 %v16266_v50 }
 0x5c3   : > { %v6208_v15 = vadd.f32 %v13497_v25, %v6073_v14  ;;  %8716 = vmatmul.mubr.bf16.gmra.mrb[52].mxu0 %v15976_v3  ;;  %v6335_v54 = vmax.f32 %v6207_v29, 0.0  ;;  %v16269_v14 = vld [vmem:[#allocation284_spill] sm:$0xff]  ;;  %v16270_v29 = vld [vmem:[#allocation205_spill] sm:$0xff] }
 0x5c4   : > { %8719 = vmatprep.mubr.bf16.mxu0 %v16267_v34  ;;  %v5036_v36 = vpop.f32.mrb[204].mxu1 }
 0x5c5   : > { %v6336_v24 = vmax.f32 %v6208_v15, 0.0  ;;  %v5582_v0 = vadd.f32 %v8605_v58, %v5036_v36  ;;  %v5038_v44 = vpop.f32.mrb[205].mxu1  ;;  %v16271_v15 = vld [vmem:[#allocation206_spill] sm:$0xff] }
 0x5c6   : > { %v13527_v18 = vpop.f32.mrb[204].mxu0  ;;  %v5039_v17 = vpop.f32.mrb[206].mxu1 }
 0x5c7   : > { %v6074_v31 = vadd.f32 %v5582_v0, %v16268_v22  ;;  %v5585_v55 = vadd.f32 %v8606_v9, %v5039_v17  ;;  %v5605_v1 = vpop.f32.mrb[205].mxu0  ;;  %v5041_v59 = vpop.f32.mrb[207].mxu1  ;;  %v6461_v21 = vpack.c.bf16 %v6336_v24, %v6335_v54 }
 0x5c8   : > { %v13530_v50 = vpop.f32.mrb[206].mxu0 }
 0x5c9   : > { %v6209_v3 = vadd.f32 %v13497_v25, %v6074_v31  ;;  %v6075_v34 = vadd.f32 %v5585_v55, %v16269_v14  ;;  %v5608_v33 = vpop.f32.mrb[207].mxu0  ;;  %5251 = vmatmul.mubr.bf16.gmra.mrb[56].mxu1 %v16270_v29  ;;  %v16272_v31 = vld [vmem:[#allocation285_spill] sm:$0xff] }
 0x5ca   : > { %5258 = vmatprep.mubr.bf16.mxu1 %v15182_v10 }
 0x5cb   : > { %v6210_v58 = vadd.f32 %v13497_v25, %v6075_v34  ;;  %8720 = vmatmul.mubr.bf16.gmra.mrb[56].mxu0 %v15987_v56  ;;  %v6337_v36 = vmax.f32 %v6209_v3, 0.0 }
 0x5cc   : > { %8723 = vmatprep.mubr.bf16.mxu0 %v16271_v15  ;;  %v5044_v9 = vpop.f32.mrb[208].mxu1  ;;  %v16273_v15 = vld [vmem:[#allocation288_spill] sm:$0xff] }
 0x5cd   : > { %v6338_v54 = vmax.f32 %v6210_v58, 0.0  ;;  %v5590_v24 = vadd.f32 %v5589_v57, %v5044_v9  ;;  %v5046_v0 = vpop.f32.mrb[209].mxu1  ;;  %v16274_v57 = vld [vmem:[#allocation22_spill] sm:$0xff] }
 0x5ce   : > { %v13539_v44 = vpop.f32.mrb[208].mxu0  ;;  %v5047_v17 = vpop.f32.mrb[210].mxu1 }
 0x5cf   : > { %v6462_v22 = vpack.c.bf16 %v6338_v54, %v6337_v36  ;;  %v6076_v55 = vadd.f32 %v5590_v24, %v16272_v31  ;;  %v5593_v59 = vadd.f32 %v5592_v51, %v5047_v17  ;;  %v13542_v14 = vpop.f32.mrb[209].mxu0  ;;  %v5049_v29 = vpop.f32.mrb[211].mxu1  ;;  %v16275_v31 = vld [vmem:[#allocation286_spill] sm:$0xff] }
 0x5d0   : > { %v13544_v34 = vpop.f32.mrb[210].mxu0 }
 0x5d1   : > { %v6211_v56 = vadd.f32 %v13497_v25, %v6076_v55  ;;  %v6077_v61 = vadd.f32 %v5593_v59, %v16273_v15  ;;  %v13548_v3 = vpop.f32.mrb[211].mxu0  ;;  %5259 = vmatmul.mubr.bf16.gmra.mrb[60].mxu1 %v15182_v10 }
 0x5d2   : > { %5266 = vmatprep.mubr.bf16.mxu1 %v16274_v57 }
 0x5d3   : > { %v6212_v58 = vadd.f32 %v13497_v25, %v6077_v61  ;;  %8724 = vmatmul.mubr.bf16.gmra.mrb[60].mxu0 %v15182_v10  ;;  %v6339_v9 = vmax.f32 %v6211_v56, 0.0 }
 0x5d4   : > { %8743 = vmatprep.mubr.bf16.mxu0 %v13512_v6  ;;  %v5052_v51 = vpop.f32.mrb[212].mxu1  ;;  %v16276_v6 = vld [vmem:[#allocation183_spill] sm:$0xff] }
 0x5d5   : > { %v6340_v36 = vmax.f32 %v6212_v58, 0.0  ;;  %v5598_v54 = vadd.f32 %v8609_v27, %v5052_v51  ;;  %v5054_v24 = vpop.f32.mrb[213].mxu1  ;;  %v16277_v27 = vld [vmem:[#allocation211_spill] sm:$0xff] }
 0x5d6   : > { %v13555_v0 = vpop.f32.mrb[212].mxu0  ;;  %v5055_v17 = vpop.f32.mrb[214].mxu1  ;;  %v16278_v58 = vld [vmem:[#allocation35_spill] sm:$0xff] }
 0x5d7   : > { %v6078_v55 = vadd.f32 %v5598_v54, %v16275_v31  ;;  %v5601_v59 = vadd.f32 %v8610_v62, %v5055_v17  ;;  %v13558_v29 = vpop.f32.mrb[213].mxu0  ;;  %v5057_v15 = vpop.f32.mrb[215].mxu1  ;;  %v6463_v57 = vpack.c.bf16 %v6340_v36, %v6339_v9 }
 0x5d8   : > { %v13560_v61 = vpop.f32.mrb[214].mxu0 }
 0x5d9   : > { %v6213_v53 = vadd.f32 %v13497_v25, %v6078_v55  ;;  %v6079_v47 = vadd.f32 %v5601_v59, %v16276_v6  ;;  %v13564_v56 = vpop.f32.mrb[215].mxu0  ;;  %5267 = vmatmul.mubr.bf16.gmra.mrb[64].mxu1 %v16277_v27  ;;  %v16279_v59 = vld [vmem:[#allocation289_spill] sm:$0xff] }
 0x5da   : > { %5274 = vmatprep.mubr.bf16.mxu1 %v16278_v58 }
 0x5db   : > { %v6214_v51 = vadd.f32 %v13497_v25, %v6079_v47  ;;  %8744 = vmatmul.mubr.bf16.vlgmr.msra.gmra.mrb[64].mxu0 %v13517_v63  ;;  %v6341_v54 = vmax.f32 %v6213_v53, 0.0  ;;  %v16280_v63 = vld [vmem:[#allocation239_spill] sm:$0xff] }
 0x5dc   : > { %8747 = vmatprep.mubr.bf16.mxu0 %v6461_v21  ;;  %v5060_v62 = vpop.f32.mrb[216].mxu1 }
 0x5dd   : > { %v6342_v9 = vmax.f32 %v6214_v51, 0.0  ;;  %v5606_v36 = vadd.f32 %v5605_v1, %v5060_v62  ;;  %v5062_v24 = vpop.f32.mrb[217].mxu1  ;;  %v16281_v1 = vld [vmem:[#allocation213_spill] sm:$0xff] }
 0x5de   : > { %v13570_v17 = vpop.f32.mrb[216].mxu0  ;;  %v5063_v31 = vpop.f32.mrb[218].mxu1  ;;  %v16282_v51 = vld [vmem:[#allocation29_spill] sm:$0xff] }
 0x5df   : > { %v6464_v55 = vpack.c.bf16 %v6342_v9, %v6341_v54  ;;  %v6080_v15 = vadd.f32 %v5606_v36, %v16279_v59  ;;  %v5609_v6 = vadd.f32 %v5608_v33, %v5063_v31  ;;  %v13573_v27 = vpop.f32.mrb[217].mxu0  ;;  %v5065_v58 = vpop.f32.mrb[219].mxu1 }
 0x5e0   : > { %v13575_v35 = vpop.f32.mrb[218].mxu0 }
 0x5e1   : > { %v6215_v47 = vadd.f32 %v13497_v25, %v6080_v15  ;;  %v6081_v21 = vadd.f32 %v5609_v6, %v16280_v63  ;;  %v13579_v53 = vpop.f32.mrb[219].mxu0  ;;  %5275 = vmatmul.mubr.bf16.gmra.mrb[68].mxu1 %v16281_v1  ;;  %v16283_v15 = vld [vmem:[#allocation185_spill] sm:$0xff] }
 0x5e2   : > { %5282 = vmatprep.mubr.bf16.mxu1 %v16282_v51 }
 0x5e3   : > { %v6216_v62 = vadd.f32 %v13497_v25, %v6081_v21  ;;  %8748 = vmatmul.mubr.bf16.gmra.mrb[68].mxu0 %v6462_v22  ;;  %v6343_v54 = vmax.f32 %v6215_v47, 0.0 }
 0x5e4   : > { %8751 = vmatprep.mubr.bf16.mxu0 %v6463_v57  ;;  %v5068_v33 = vpop.f32.mrb[220].mxu1  ;;  %v16284_v57 = vld [vmem:[#allocation182_spill] sm:$0xff] }
 0x5e5   : > { %v6344_v9 = vmax.f32 %v6216_v62, 0.0  ;;  %v5614_v36 = vadd.f32 %v13527_v18, %v5068_v33  ;;  %v5070_v24 = vpop.f32.mrb[221].mxu1  ;;  %v16285_v62 = vld [vmem:[#allocation216_spill] sm:$0xff]  ;;  %v16286_v33 = vld [vmem:[#allocation42_spill] sm:$0xff] }
 0x5e6   : > { %v5071_v31 = vpop.f32.mrb[222].mxu1  ;;  %v13585_v59 = vpop.f32.mrb[220].mxu0 }
 0x5e7   : > { %v6082_v6 = vadd.f32 %v5614_v36, %v16283_v15  ;;  %v5617_v58 = vadd.f32 %v13530_v50, %v5071_v31  ;;  %v5073_v63 = vpop.f32.mrb[223].mxu1  ;;  %v13589_v1 = vpop.f32.mrb[221].mxu0  ;;  %v6465_v51 = vpack.c.bf16 %v6344_v9, %v6343_v54 }
 0x5e8   : > { %v13591_v21 = vpop.f32.mrb[222].mxu0  ;;  %v16287_v63 = vld [vmem:[#allocation187_spill] sm:$0xff] }
 0x5e9   : > { %v6217_v22 = vadd.f32 %v13497_v25, %v6082_v6  ;;  %v6083_v47 = vadd.f32 %v5617_v58, %v16284_v57  ;;  %5283 = vmatmul.mubr.bf16.gmra.mrb[72].mxu1 %v16285_v62  ;;  %v13596_v18 = vpop.f32.mrb[223].mxu0 }
 0x5ea   : > { %5290 = vmatprep.mubr.bf16.mxu1 %v16286_v33 }
 0x5eb   : > { %v6218_v36 = vadd.f32 %v13497_v25, %v6083_v47  ;;  %8752 = vmatmul.mubr.bf16.gmra.mrb[72].mxu0 %v6464_v55  ;;  %v6345_v24 = vmax.f32 %v6217_v22, 0.0 }
 0x5ec   : > { %8755 = vmatprep.mubr.bf16.mxu0 %v6465_v51  ;;  %v5076_v50 = vpop.f32.mrb[224].mxu1  ;;  %v16288_v51 = vld [vmem:[#allocation169_spill] sm:$0xff] }
 0x5ed   : > { %v6346_v31 = vmax.f32 %v6218_v36, 0.0  ;;  %v5622_v54 = vadd.f32 %v13542_v14, %v5076_v50  ;;  %v5078_v9 = vpop.f32.mrb[225].mxu1  ;;  %v16289_v14 = vld [vmem:[#allocation219_spill] sm:$0xff]  ;;  %v16290_v50 = vld [vmem:[#allocation41_spill] sm:$0xff] }
 0x5ee   : > { %v13601_v15 = vpop.f32.mrb[224].mxu0  ;;  %v5079_v6 = vpop.f32.mrb[226].mxu1 }
 0x5ef   : > { %v6466_v58 = vpack.c.bf16 %v6346_v31, %v6345_v24  ;;  %v6084_v57 = vadd.f32 %v5622_v54, %v16287_v63  ;;  %v5625_v62 = vadd.f32 %v13548_v3, %v5079_v6  ;;  %v13605_v13 = vpop.f32.mrb[225].mxu0  ;;  %v5081_v33 = vpop.f32.mrb[227].mxu1 }
 0x5f0   : > { %v13607_v47 = vpop.f32.mrb[226].mxu0  ;;  %v16291_v33 = vld [vmem:[#allocation188_spill] sm:$0xff] }
 0x5f1   : > { %v6219_v55 = vadd.f32 %v13497_v25, %v6084_v57  ;;  %v6085_v22 = vadd.f32 %v5625_v62, %v16288_v51  ;;  %v13611_v36 = vpop.f32.mrb[227].mxu0  ;;  %5291 = vmatmul.mubr.bf16.gmra.mrb[76].mxu1 %v16289_v14 }
 0x5f2   : > { %5298 = vmatprep.mubr.bf16.mxu1 %v16290_v50 }
 0x5f3   : > { %v6220_v24 = vadd.f32 %v13497_v25, %v6085_v22  ;;  %8756 = vmatmul.mubr.bf16.gmra.mrb[76].mxu0 %v6466_v58  ;;  %v6347_v3 = vmax.f32 %v6219_v55, 0.0  ;;  %v16292_v55 = vld [vmem:[#allocation163_spill] sm:$0xff] }
 0x5f4   : > { %v5084_v31 = vpop.f32.mrb[228].mxu1 }
 0x5f5   : > { %v6348_v54 = vmax.f32 %v6220_v24, 0.0  ;;  %v5630_v9 = vadd.f32 %v13539_v44, %v5084_v31  ;;  %v5086_v6 = vpop.f32.mrb[229].mxu1  ;;  %v16293_v44 = vld [vmem:[#allocation222_spill] sm:$0xff] }
 0x5f6   : > { %v13617_v63 = vpop.f32.mrb[228].mxu0  ;;  %v5087_v57 = vpop.f32.mrb[230].mxu1  ;;  %v16294_v31 = vld [vmem:[#allocation54_spill] sm:$0xff] }
 0x5f7   : > { %v6086_v62 = vadd.f32 %v5630_v9, %v16291_v33  ;;  %v5633_v51 = vadd.f32 %v13544_v34, %v5087_v57  ;;  %v13621_v39 = vpop.f32.mrb[229].mxu0  ;;  %v5089_v14 = vpop.f32.mrb[231].mxu1  ;;  %v6467_v50 = vpack.c.bf16 %v6348_v54, %v6347_v3 }
 0x5f8   : > { %v13623_v60 = vpop.f32.mrb[230].mxu0 }
 0x5f9   : > { %v6221_v58 = vadd.f32 %v13497_v25, %v6086_v62  ;;  %v6087_v22 = vadd.f32 %v5633_v51, %v16292_v55  ;;  %v13627_v24 = vpop.f32.mrb[231].mxu0  ;;  %5299 = vmatmul.mubr.bf16.gmra.mrb[80].mxu1 %v16293_v44  ;;  %8759 = vmatprep.mubr.bf16.mxu0 %v6467_v50 }
 0x5fa   : > { %5306 = vmatprep.mubr.bf16.mxu1 %v16294_v31 }
 0x5fb   : > { %v6222_v9 = vadd.f32 %v13497_v25, %v6087_v22  ;;  %v6349_v6 = vmax.f32 %v6221_v58, 0.0  ;;  %v16295_v58 = vld [vmem:[#allocation196_spill] sm:$0xff] }
 0x5fc   : > { %v5092_v34 = vpop.f32.mrb[232].mxu1 }
 0x5fd   : > { %v6350_v57 = vmax.f32 %v6222_v9, 0.0  ;;  %v5638_v3 = vadd.f32 %v13558_v29, %v5092_v34  ;;  %v5094_v54 = vpop.f32.mrb[233].mxu1  ;;  %v16296_v29 = vld [vmem:[#allocation225_spill] sm:$0xff]  ;;  %v16297_v34 = vld [vmem:[#allocation50_spill] sm:$0xff] }
 0x5fe   : > { %v13633_v33 = vpop.f32.mrb[232].mxu0  ;;  %v5095_v62 = vpop.f32.mrb[234].mxu1 }
 0x5ff   : > { %v6468_v14 = vpack.c.bf16 %v6350_v57, %v6349_v6  ;;  %v6088_v51 = vadd.f32 %v5638_v3, %v12949_v45  ;;  %v5641_v55 = vadd.f32 %v13564_v56, %v5095_v62  ;;  %v13637_v44 = vpop.f32.mrb[233].mxu0  ;;  %v5097_v50 = vpop.f32.mrb[235].mxu1 }
 0x600   : > { %v13639_v31 = vpop.f32.mrb[234].mxu0  ;;  %v16298_v50 = vld [vmem:[#allocation189_spill] sm:$0xff] }
 0x601   : > { %v6223_v22 = vadd.f32 %v13497_v25, %v6088_v51  ;;  %v6089_v9 = vadd.f32 %v5641_v55, %v16295_v58  ;;  %v13643_v52 = vpop.f32.mrb[235].mxu0  ;;  %5307 = vmatmul.mubr.bf16.gmra.mrb[84].mxu1 %v16296_v29  ;;  %8760 = vmatmul.mubr.bf16.gmra.mrb[80].mxu0 %v6468_v14 }
 0x602   : > { %5314 = vmatprep.mubr.bf16.mxu1 %v16297_v34 }
 0x603   : > { %v6224_v45 = vadd.f32 %v13497_v25, %v6089_v9  ;;  %v6351_v56 = vmax.f32 %v6223_v22, 0.0  ;;  %v16299_v22 = vld [vmem:[#allocation192_spill] sm:$0xff] }
 0x604   : > { %v5100_v6 = vpop.f32.mrb[236].mxu1 }
 0x605   : > { %v6352_v57 = vmax.f32 %v6224_v45, 0.0  ;;  %v5646_v3 = vadd.f32 %v13555_v0, %v5100_v6  ;;  %v5102_v54 = vpop.f32.mrb[237].mxu1  ;;  %v16300_v0 = vld [vmem:[#allocation228_spill] sm:$0xff]  ;;  %v16301_v6 = vld [vmem:[#allocation66_spill] sm:$0xff] }
 0x606   : > { %v13649_v62 = vpop.f32.mrb[236].mxu0  ;;  %v5103_v51 = vpop.f32.mrb[238].mxu1 }
 0x607   : > { %v6090_v55 = vadd.f32 %v5646_v3, %v16298_v50  ;;  %v5649_v58 = vadd.f32 %v13560_v61, %v5103_v51  ;;  %v13653_v38 = vpop.f32.mrb[237].mxu0  ;;  %v5105_v14 = vpop.f32.mrb[239].mxu1  ;;  %v6469_v29 = vpack.c.bf16 %v6352_v57, %v6351_v56 }
 0x608   : > { %v13655_v34 = vpop.f32.mrb[238].mxu0 }
 0x609   : > { %v6225_v9 = vadd.f32 %v13497_v25, %v6090_v55  ;;  %v6091_v45 = vadd.f32 %v5649_v58, %v16299_v22  ;;  %v13659_v46 = vpop.f32.mrb[239].mxu0  ;;  %5315 = vmatmul.mubr.bf16.gmra.mrb[88].mxu1 %v16300_v0  ;;  %8763 = vmatprep.mubr.bf16.mxu0 %v6469_v29 }
 0x60a   : > { %5322 = vmatprep.mubr.bf16.mxu1 %v16301_v6 }
 0x60b   : > { %v6226_v3 = vadd.f32 %v13497_v25, %v6091_v45  ;;  %v6353_v54 = vmax.f32 %v6225_v9, 0.0  ;;  %v16302_v9 = vld [vmem:[#allocation197_spill] sm:$0xff] }
 0x60c   : > { %v5108_v61 = vpop.f32.mrb[240].mxu1 }
 0x60d   : > { %v6354_v51 = vmax.f32 %v6226_v3, 0.0  ;;  %v5654_v56 = vadd.f32 %v13573_v27, %v5108_v61  ;;  %v5110_v57 = vpop.f32.mrb[241].mxu1  ;;  %v16303_v27 = vld [vmem:[#allocation231_spill] sm:$0xff]  ;;  %v16304_v61 = vld [vmem:[#allocation60_spill] sm:$0xff] }
 0x60e   : > { %v13665_v50 = vpop.f32.mrb[240].mxu0  ;;  %v5111_v55 = vpop.f32.mrb[242].mxu1 }
 0x60f   : > { %v6470_v14 = vpack.c.bf16 %v6354_v51, %v6353_v54  ;;  %v6092_v58 = vadd.f32 %v5654_v56, %v12971_v26  ;;  %v5657_v22 = vadd.f32 %v13579_v53, %v5111_v55  ;;  %v13669_v0 = vpop.f32.mrb[241].mxu0  ;;  %v5113_v29 = vpop.f32.mrb[243].mxu1 }
 0x610   : > { %v13671_v6 = vpop.f32.mrb[242].mxu0  ;;  %v16305_v29 = vld [vmem:[#allocation165_spill] sm:$0xff] }
 0x611   : > { %v6227_v45 = vadd.f32 %v13497_v25, %v6092_v58  ;;  %v6093_v3 = vadd.f32 %v5657_v22, %v16302_v9  ;;  %v13675_v7 = vpop.f32.mrb[243].mxu0  ;;  %5323 = vmatmul.mubr.bf16.gmra.mrb[92].mxu1 %v16303_v27  ;;  %8764 = vmatmul.mubr.bf16.gmra.mrb[84].mxu0 %v6470_v14 }
 0x612   : > { %5330 = vmatprep.mubr.bf16.mxu1 %v16304_v61 }
 0x613   : > { %v6228_v26 = vadd.f32 %v13497_v25, %v6093_v3  ;;  %v6355_v53 = vmax.f32 %v6227_v45, 0.0  ;;  %v16306_v45 = vld [vmem:[#allocation194_spill] sm:$0xff] }
 0x614   : > { %v5116_v54 = vpop.f32.mrb[244].mxu1 }
 0x615   : > { %v6356_v51 = vmax.f32 %v6228_v26, 0.0  ;;  %v5662_v56 = vadd.f32 %v13570_v17, %v5116_v54  ;;  %v5118_v57 = vpop.f32.mrb[245].mxu1  ;;  %v16307_v17 = vld [vmem:[#allocation234_spill] sm:$0xff]  ;;  %v16308_v54 = vld [vmem:[#allocation73_spill] sm:$0xff] }
 0x616   : > { %v13681_v55 = vpop.f32.mrb[244].mxu0  ;;  %v5119_v58 = vpop.f32.mrb[246].mxu1 }
 0x617   : > { %v6094_v22 = vadd.f32 %v5662_v56, %v16305_v29  ;;  %v5665_v9 = vadd.f32 %v13575_v35, %v5119_v58  ;;  %v13685_v48 = vpop.f32.mrb[245].mxu0  ;;  %v5121_v14 = vpop.f32.mrb[247].mxu1  ;;  %v6471_v27 = vpack.c.bf16 %v6356_v51, %v6355_v53 }
 0x618   : > { %v13687_v61 = vpop.f32.mrb[246].mxu0 }
 0x619   : > { %v6229_v3 = vadd.f32 %v13497_v25, %v6094_v22  ;;  %v6095_v26 = vadd.f32 %v5665_v9, %v16306_v45  ;;  %v13691_v30 = vpop.f32.mrb[247].mxu0  ;;  %5331 = vmatmul.mubr.bf16.gmra.mrb[96].mxu1 %v16307_v17  ;;  %8767 = vmatprep.mubr.bf16.mxu0 %v6471_v27 }
 0x61a   : > { %5338 = vmatprep.mubr.bf16.mxu1 %v16308_v54 }
 0x61b   : > { %v6230_v56 = vadd.f32 %v13497_v25, %v6095_v26  ;;  %v6357_v57 = vmax.f32 %v6229_v3, 0.0  ;;  %v16309_v3 = vld [vmem:[#allocation199_spill] sm:$0xff] }
 0x61c   : > { %v5124_v35 = vpop.f32.mrb[248].mxu1 }
 0x61d   : > { %v6358_v58 = vmax.f32 %v6230_v56, 0.0  ;;  %v5670_v53 = vadd.f32 %v13589_v1, %v5124_v35  ;;  %v5126_v51 = vpop.f32.mrb[249].mxu1  ;;  %v16310_v1 = vld [vmem:[#allocation237_spill] sm:$0xff]  ;;  %v16311_v35 = vld [vmem:[#allocation68_spill] sm:$0xff] }
 0x61e   : > { %v13697_v29 = vpop.f32.mrb[248].mxu0  ;;  %v5127_v22 = vpop.f32.mrb[250].mxu1 }
 0x61f   : > { %v6472_v14 = vpack.c.bf16 %v6358_v58, %v6357_v57  ;;  %v6096_v9 = vadd.f32 %v5670_v53, %v12993_v37  ;;  %v5673_v45 = vadd.f32 %v13596_v18, %v5127_v22  ;;  %v13701_v17 = vpop.f32.mrb[249].mxu0  ;;  %v5129_v27 = vpop.f32.mrb[251].mxu1 }
 0x620   : > { %v13703_v54 = vpop.f32.mrb[250].mxu0 }
 0x621   : > { %v6231_v26 = vadd.f32 %v13497_v25, %v6096_v9  ;;  %v6097_v56 = vadd.f32 %v5673_v45, %v16309_v3  ;;  %v13707_v20 = vpop.f32.mrb[251].mxu0  ;;  %5339 = vmatmul.mubr.bf16.gmra.mrb[100].mxu1 %v16310_v1  ;;  %8768 = vmatmul.mubr.bf16.gmra.mrb[88].mxu0 %v6472_v14  ;;  %v16312_v9 = vld [vmem:[#allocation167_spill] sm:$0xff] }
 0x622   : > { %5346 = vmatprep.mubr.bf16.mxu1 %v16311_v35 }
 0x623   : > { %v6232_v37 = vadd.f32 %v13497_v25, %v6097_v56  ;;  %v6359_v18 = vmax.f32 %v6231_v26, 0.0  ;;  %v16313_v26 = vld [vmem:[#allocation26_spill] sm:$0xff] }
 0x624   : > { %v5132_v57 = vpop.f32.mrb[252].mxu1 }
 0x625   : > { %v6360_v58 = vmax.f32 %v6232_v37, 0.0  ;;  %v5678_v53 = vadd.f32 %v13585_v59, %v5132_v57  ;;  %v5134_v51 = vpop.f32.mrb[253].mxu1  ;;  %v16315_v57 = vld [vmem:[#allocation85_spill] sm:$0xff] }
 0x626   : > { %v5135_v22 = vpop.f32.mrb[254].mxu1  ;;  %v13713_v27 = vpop.f32.mrb[252].mxu0 }
 0x627   : > { %v6098_v45 = vadd.f32 %v5678_v53, %v16312_v9  ;;  %v5681_v3 = vadd.f32 %v13591_v21, %v5135_v22  ;;  %v5137_v2 = vpop.f32.mrb[255].mxu1  ;;  %v6473_v1 = vpack.c.bf16 %v6360_v58, %v6359_v18  ;;  %v13717_v14 = vpop.f32.mrb[253].mxu0 }
 0x628   : > { %v13719_v35 = vpop.f32.mrb[254].mxu0 }
 0x629   : > { %v6233_v56 = vadd.f32 %v13497_v25, %v6098_v45  ;;  %v6099_v37 = vadd.f32 %v5681_v3, %v16313_v26  ;;  %5347 = vmatmul.mubr.bf16.gmra.mrb[104].mxu1 %v16314_v41  ;;  %8771 = vmatprep.mubr.bf16.mxu0 %v6473_v1  ;;  %v13724_v59 = vpop.f32.mrb[255].mxu0  ;;  %v16316_v3 = vld [vmem:[#allocation20_spill] sm:$0xff] }
 0x62a   : > { %5354 = vmatprep.mubr.bf16.mxu1 %v16315_v57 }
 0x62b   : > { %v6234_v53 = vadd.f32 %v13497_v25, %v6099_v37  ;;  %v6361_v2 = vmax.f32 %v6233_v56, 0.0  ;;  %v16317_v56 = vld [vmem:[#allocation204_spill] sm:$0xff] }
 0x62c   : > { %v5140_v21 = vpop.f32.mrb[0].mxu1 }
 0x62d   : > { %v6362_v18 = vmax.f32 %v6234_v53, 0.0  ;;  %v5686_v58 = vadd.f32 %v13605_v13, %v5140_v21  ;;  %v5142_v51 = vpop.f32.mrb[1].mxu1  ;;  %v16318_v13 = vld [vmem:[#allocation244_spill] sm:$0xff]  ;;  %v16319_v21 = vld [vmem:[#allocation79_spill] sm:$0xff] }
 0x62e   : > { %v13729_v22 = vpop.f32.mrb[0].mxu0  ;;  %v5143_v9 = vpop.f32.mrb[2].mxu1 }
 0x62f   : > { %v6474_v45 = vpack.c.bf16 %v6362_v18, %v6361_v2  ;;  %v6100_v26 = vadd.f32 %v5686_v58, %v16316_v3  ;;  %v5689_v41 = vadd.f32 %v13611_v36, %v5143_v9  ;;  %v13733_v1 = vpop.f32.mrb[1].mxu0  ;;  %v5145_v4 = vpop.f32.mrb[3].mxu1 }
 0x630   : > { %v13735_v57 = vpop.f32.mrb[2].mxu0 }
 0x631   : > { %v6235_v37 = vadd.f32 %v13497_v25, %v6100_v26  ;;  %v6101_v53 = vadd.f32 %v5689_v41, %v16317_v56  ;;  %v13739_v42 = vpop.f32.mrb[3].mxu0  ;;  %5355 = vmatmul.mubr.bf16.gmra.mrb[108].mxu1 %v16318_v13  ;;  %8772 = vmatmul.mubr.bf16.gmra.mrb[92].mxu0 %v6474_v45  ;;  %v16320_v26 = vld [vmem:[#allocation202_spill] sm:$0xff] }
 0x632   : > { %5362 = vmatprep.mubr.bf16.mxu1 %v16319_v21 }
 0x633   : > { %v6236_v2 = vadd.f32 %v13497_v25, %v6101_v53  ;;  %v6363_v36 = vmax.f32 %v6235_v37, 0.0  ;;  %v16321_v37 = vld [vmem:[#allocation28_spill] sm:$0xff] }
 0x634   : > { %v5148_v18 = vpop.f32.mrb[4].mxu1 }
 0x635   : > { %v6364_v58 = vmax.f32 %v6236_v2, 0.0  ;;  %v5694_v4 = vadd.f32 %v13601_v15, %v5148_v18  ;;  %v5150_v51 = vpop.f32.mrb[5].mxu1  ;;  %v16322_v15 = vld [vmem:[#allocation247_spill] sm:$0xff]  ;;  %v16323_v18 = vld [vmem:[#allocation98_spill] sm:$0xff] }
 0x636   : > { %v13745_v9 = vpop.f32.mrb[4].mxu0  ;;  %v5151_v3 = vpop.f32.mrb[6].mxu1 }
 0x637   : > { %v6102_v41 = vadd.f32 %v5694_v4, %v16320_v26  ;;  %v5697_v56 = vadd.f32 %v13607_v47, %v5151_v3  ;;  %v13749_v11 = vpop.f32.mrb[5].mxu0  ;;  %v5153_v45 = vpop.f32.mrb[7].mxu1  ;;  %v6475_v13 = vpack.c.bf16 %v6364_v58, %v6363_v36 }
 0x638   : > { %v13751_v21 = vpop.f32.mrb[6].mxu0 }
 0x639   : > { %v6237_v53 = vadd.f32 %v13497_v25, %v6102_v41  ;;  %v6103_v2 = vadd.f32 %v5697_v56, %v16321_v37  ;;  %v13755_v49 = vpop.f32.mrb[7].mxu0  ;;  %5363 = vmatmul.mubr.bf16.gmra.mrb[112].mxu1 %v16322_v15  ;;  %8775 = vmatprep.mubr.bf16.mxu0 %v6475_v13 }
 0x63a   : > { %5370 = vmatprep.mubr.bf16.mxu1 %v16323_v18 }
 0x63b   : > { %v6238_v4 = vadd.f32 %v13497_v25, %v6103_v2  ;;  %v6365_v51 = vmax.f32 %v6237_v53, 0.0 }
 0x63c   : > { %v5156_v47 = vpop.f32.mrb[8].mxu1 }
 0x63d   : > { %v6366_v3 = vmax.f32 %v6238_v4, 0.0  ;;  %v5702_v36 = vadd.f32 %v13621_v39, %v5156_v47  ;;  %v5158_v58 = vpop.f32.mrb[9].mxu1  ;;  %v16326_v39 = vld [vmem:[#allocation251_spill] sm:$0xff] }
 0x63e   : > { %v13761_v26 = vpop.f32.mrb[8].mxu0  ;;  %v5159_v41 = vpop.f32.mrb[10].mxu1  ;;  %v16327_v47 = vld [vmem:[#allocation91_spill] sm:$0xff] }
 0x63f   : > { %16324 = vst [vmem:[#allocation235_spill] sm:$0xff] %v13761_v26  ;;  %v6476_v45 = vpack.c.bf16 %v6366_v3, %v6365_v51  ;;  %v6104_v56 = vadd.f32 %v5702_v36, %v13037_v43  ;;  %v5705_v37 = vadd.f32 %v13627_v24, %v5159_v41  ;;  %v13765_v15 = vpop.f32.mrb[9].mxu0  ;;  %v5161_v13 = vpop.f32.mrb[11].mxu1 }
 0x640   : > { %v13767_v18 = vpop.f32.mrb[10].mxu0  ;;  %v16328_v13 = vld [vmem:[#allocation217_spill] sm:$0xff] }
 0x641   : > { %16325 = vst [vmem:[#allocation262_spill] sm:$0xff] %v13767_v18  ;;  %v6239_v2 = vadd.f32 %v13497_v25, %v6104_v56  ;;  %v6105_v53 = vadd.f32 %v5705_v37, %v13046_v40  ;;  %v13771_v4 = vpop.f32.mrb[11].mxu0  ;;  %5371 = vmatmul.mubr.bf16.gmra.mrb[116].mxu1 %v16326_v39  ;;  %8776 = vmatmul.mubr.bf16.gmra.mrb[96].mxu0 %v6476_v45 }
 0x642   : > { %5378 = vmatprep.mubr.bf16.mxu1 %v16327_v47 }
 0x643   : > { %v6240_v43 = vadd.f32 %v13497_v25, %v6105_v53  ;;  %v6367_v24 = vmax.f32 %v6239_v2, 0.0  ;;  %v16330_v2 = vld [vmem:[#allocation207_spill] sm:$0xff] }
 0x644   : > { %v5164_v51 = vpop.f32.mrb[12].mxu1 }
 0x645   : > { %v6368_v3 = vmax.f32 %v6240_v43, 0.0  ;;  %v5710_v36 = vadd.f32 %v13617_v63, %v5164_v51  ;;  %v5166_v58 = vpop.f32.mrb[13].mxu1  ;;  %v16331_v63 = vld [vmem:[#allocation255_spill] sm:$0xff] }
 0x646   : > { %v13777_v41 = vpop.f32.mrb[12].mxu0  ;;  %v5167_v56 = vpop.f32.mrb[14].mxu1 }
 0x647   : > { %v6106_v40 = vadd.f32 %v5710_v36, %v16328_v13  ;;  %v5713_v37 = vadd.f32 %v13623_v60, %v5167_v56  ;;  %v13781_v18 = vpop.f32.mrb[13].mxu0  ;;  %v5169_v45 = vpop.f32.mrb[15].mxu1  ;;  %v6477_v39 = vpack.c.bf16 %v6368_v3, %v6367_v24 }
 0x648   : > { %v13783_v47 = vpop.f32.mrb[14].mxu0 }
 0x649   : > { %16329 = vst [vmem:[#allocation111_spill] sm:$0xff] %v13783_v47  ;;  %v6241_v53 = vadd.f32 %v13497_v25, %v6106_v40  ;;  %v6107_v43 = vadd.f32 %v5713_v37, %v16330_v2  ;;  %v13787_v26 = vpop.f32.mrb[15].mxu0  ;;  %5379 = vmatmul.mubr.bf16.gmra.mrb[120].mxu1 %v16331_v63  ;;  %8779 = vmatprep.mubr.bf16.mxu0 %v6477_v39 }
 0x64a   : > { %5386 = vmatprep.mubr.bf16.mxu1 %v15182_v10 }
 0x64b   : > { %v6242_v51 = vadd.f32 %v13497_v25, %v6107_v43  ;;  %v6369_v36 = vmax.f32 %v6241_v53, 0.0  ;;  %v16334_v53 = vld [vmem:[#allocation33_spill] sm:$0xff] }
 0x64c   : > { %v5172_v60 = vpop.f32.mrb[16].mxu1 }
 0x64d   : > { %v6370_v58 = vmax.f32 %v6242_v51, 0.0  ;;  %v5718_v24 = vadd.f32 %v13637_v44, %v5172_v60  ;;  %v5174_v3 = vpop.f32.mrb[17].mxu1  ;;  %v16335_v44 = vld [vmem:[#allocation106_spill] sm:$0xff] }
 0x64e   : > { %v13793_v56 = vpop.f32.mrb[16].mxu0  ;;  %v5175_v13 = vpop.f32.mrb[18].mxu1 }
 0x64f   : > { %16332 = vst [vmem:[#allocation63_spill] sm:$0xff] %v13793_v56  ;;  %v6478_v40 = vpack.c.bf16 %v6370_v58, %v6369_v36  ;;  %v6108_v37 = vadd.f32 %v5718_v24, %v13059_v8  ;;  %v5721_v45 = vadd.f32 %v13643_v52, %v5175_v13  ;;  %v13797_v2 = vpop.f32.mrb[17].mxu0  ;;  %v5177_v39 = vpop.f32.mrb[19].mxu1 }
 0x650   : > { %v13799_v63 = vpop.f32.mrb[18].mxu0 }
 0x651   : > { %16333 = vst [vmem:[#allocation113_spill] sm:$0xff] %v13799_v63  ;;  %v6243_v43 = vadd.f32 %v13497_v25, %v6108_v37  ;;  %v6109_v51 = vadd.f32 %v5721_v45, %v16334_v53  ;;  %v13803_v47 = vpop.f32.mrb[19].mxu0  ;;  %5387 = vmatmul.mubr.bf16.gmra.mrb[124].mxu1 %v15182_v10  ;;  %8780 = vmatmul.mubr.bf16.gmra.mrb[100].mxu0 %v6478_v40  ;;  %v16336_v37 = vld [vmem:[#allocation31_spill] sm:$0xff] }
 0x652   : > { %5394 = vmatprep.mubr.bf16.mxu1 %v16335_v44 }
 0x653   : > { %v6244_v8 = vadd.f32 %v13497_v25, %v6109_v51  ;;  %v6371_v52 = vmax.f32 %v6243_v43, 0.0  ;;  %v16338_v43 = vld [vmem:[#allocation25_spill] sm:$0xff] }
 0x654   : > { %v5180_v60 = vpop.f32.mrb[20].mxu1 }
 0x655   : > { %v6372_v36 = vmax.f32 %v6244_v8, 0.0  ;;  %v5726_v58 = vadd.f32 %v13633_v33, %v5180_v60  ;;  %v5182_v24 = vpop.f32.mrb[21].mxu1  ;;  %v16339_v33 = vld [vmem:[#allocation118_spill] sm:$0xff]  ;;  %v16340_v60 = vld [vmem:[#allocation125_spill] sm:$0xff] }
 0x656   : > { %v13809_v3 = vpop.f32.mrb[20].mxu0  ;;  %v5183_v13 = vpop.f32.mrb[22].mxu1 }
 0x657   : > { %v6110_v45 = vadd.f32 %v5726_v58, %v16336_v37  ;;  %v5729_v39 = vadd.f32 %v13639_v31, %v5183_v13  ;;  %v13813_v53 = vpop.f32.mrb[21].mxu0  ;;  %v5185_v40 = vpop.f32.mrb[23].mxu1  ;;  %v6479_v63 = vpack.c.bf16 %v6372_v36, %v6371_v52 }
 0x658   : > { %v13815_v44 = vpop.f32.mrb[22].mxu0 }
 0x659   : > { %16337 = vst [vmem:[#allocation114_spill] sm:$0xff] %v13815_v44  ;;  %v6245_v51 = vadd.f32 %v13497_v25, %v6110_v45  ;;  %v6111_v8 = vadd.f32 %v5729_v39, %v16338_v43  ;;  %v13819_v56 = vpop.f32.mrb[23].mxu0  ;;  %5395 = vmatmul.mubr.bf16.gmra.mrb[128].mxu1 %v16339_v33  ;;  %8783 = vmatprep.mubr.bf16.mxu0 %v6479_v63 }
 0x65a   : > { %5402 = vmatprep.mubr.bf16.mxu1 %v16340_v60 }
 0x65b   : > { %v6246_v58 = vadd.f32 %v13497_v25, %v6111_v8  ;;  %v6373_v24 = vmax.f32 %v6245_v51, 0.0  ;;  %v16343_v51 = vld [vmem:[#allocation223_spill] sm:$0xff] }
 0x65c   : > { %v5188_v31 = vpop.f32.mrb[24].mxu1 }
 0x65d   : > { %v6374_v13 = vmax.f32 %v6246_v58, 0.0  ;;  %v5734_v52 = vadd.f32 %v13653_v38, %v5188_v31  ;;  %v5190_v36 = vpop.f32.mrb[25].mxu1  ;;  %v16344_v38 = vld [vmem:[#allocation144_spill] sm:$0xff]  ;;  %v16345_v31 = vld [vmem:[#allocation123_spill] sm:$0xff] }
 0x65e   : > { %v13825_v37 = vpop.f32.mrb[24].mxu0  ;;  %v5191_v45 = vpop.f32.mrb[26].mxu1 }
 0x65f   : > { %16341 = vst [vmem:[#allocation236_spill] sm:$0xff] %v13825_v37  ;;  %v6480_v40 = vpack.c.bf16 %v6374_v13, %v6373_v24  ;;  %v6112_v39 = vadd.f32 %v5734_v52, %v13081_v32  ;;  %v5737_v43 = vadd.f32 %v13659_v46, %v5191_v45  ;;  %v13829_v33 = vpop.f32.mrb[25].mxu0  ;;  %v5193_v63 = vpop.f32.mrb[27].mxu1  ;;  %v16349_v37 = vld [vmem:[#allocation148_spill] sm:$0xff] }
 0x660   : > { %v13831_v60 = vpop.f32.mrb[26].mxu0 }
 0x661   : > { %16342 = vst [vmem:[#allocation238_spill] sm:$0xff] %v13831_v60  ;;  %v6247_v8 = vadd.f32 %v13497_v25, %v6112_v39  ;;  %v6113_v58 = vadd.f32 %v5737_v43, %v16343_v51  ;;  %v13835_v44 = vpop.f32.mrb[27].mxu0  ;;  %5403 = vmatmul.mubr.bf16.gmra.mrb[132].mxu1 %v16344_v38  ;;  %8784 = vmatmul.mubr.bf16.gmra.mrb[104].mxu0 %v6480_v40  ;;  %v16346_v39 = vld [vmem:[#allocation34_spill] sm:$0xff] }
 0x662   : > { %5410 = vmatprep.mubr.bf16.mxu1 %v16345_v31 }
 0x663   : > { %v6248_v32 = vadd.f32 %v13497_v25, %v6113_v58  ;;  %v6375_v46 = vmax.f32 %v6247_v8, 0.0  ;;  %v16348_v8 = vld [vmem:[#allocation208_spill] sm:$0xff] }
 0x664   : > { %v5196_v24 = vpop.f32.mrb[28].mxu1 }
 0x665   : > { %v6376_v13 = vmax.f32 %v6248_v32, 0.0  ;;  %v5742_v52 = vadd.f32 %v13649_v62, %v5196_v24  ;;  %v5198_v36 = vpop.f32.mrb[29].mxu1  ;;  %v16350_v24 = vld [vmem:[#allocation130_spill] sm:$0xff] }
 0x666   : > { %v5199_v45 = vpop.f32.mrb[30].mxu1  ;;  %v13841_v63 = vpop.f32.mrb[28].mxu0 }
 0x667   : > { %v6114_v43 = vadd.f32 %v5742_v52, %v16346_v39  ;;  %v5745_v51 = vadd.f32 %v13655_v34, %v5199_v45  ;;  %v5201_v60 = vpop.f32.mrb[31].mxu1  ;;  %v6481_v38 = vpack.c.bf16 %v6376_v13, %v6375_v46  ;;  %v13845_v40 = vpop.f32.mrb[29].mxu0 }
 0x668   : > { %v13847_v31 = vpop.f32.mrb[30].mxu0 }
 0x669   : > { %16347 = vst [vmem:[#allocation117_spill] sm:$0xff] %v13847_v31  ;;  %v6249_v58 = vadd.f32 %v13497_v25, %v6114_v43  ;;  %v6115_v32 = vadd.f32 %v5745_v51, %v16348_v8  ;;  %5411 = vmatmul.mubr.bf16.gmra.mrb[136].mxu1 %v16349_v37  ;;  %8787 = vmatprep.mubr.bf16.mxu0 %v6481_v38  ;;  %v13852_v62 = vpop.f32.mrb[31].mxu0 }
 0x66a   : > { %5418 = vmatprep.mubr.bf16.mxu1 %v16350_v24 }
 0x66b   : > { %v6250_v52 = vadd.f32 %v13497_v25, %v6115_v32  ;;  %v6377_v60 = vmax.f32 %v6249_v58, 0.0  ;;  %v16353_v58 = vld [vmem:[#allocation24_spill] sm:$0xff] }
 0x66c   : > { %v5204_v34 = vpop.f32.mrb[32].mxu1 }
 0x66d   : > { %v6378_v46 = vmax.f32 %v6250_v52, 0.0  ;;  %v5750_v13 = vadd.f32 %v13669_v0, %v5204_v34  ;;  %v5206_v36 = vpop.f32.mrb[33].mxu1  ;;  %v16354_v0 = vld [vmem:[#allocation149_spill] sm:$0xff] }
 0x66e   : > { %v13857_v45 = vpop.f32.mrb[32].mxu0  ;;  %v5207_v39 = vpop.f32.mrb[34].mxu1  ;;  %v16355_v34 = vld [vmem:[#allocation129_spill] sm:$0xff] }
 0x66f   : > { %16351 = vst [vmem:[#allocation61_spill] sm:$0xff] %v13857_v45  ;;  %v6482_v43 = vpack.c.bf16 %v6378_v46, %v6377_v60  ;;  %v6116_v51 = vadd.f32 %v5750_v13, %v13103_v19  ;;  %v5753_v37 = vadd.f32 %v13675_v7, %v5207_v39  ;;  %v13861_v38 = vpop.f32.mrb[33].mxu0  ;;  %v5209_v8 = vpop.f32.mrb[35].mxu1 }
 0x670   : > { %v13863_v24 = vpop.f32.mrb[34].mxu0  ;;  %v16356_v8 = vld [vmem:[#allocation27_spill] sm:$0xff] }
 0x671   : > { %16352 = vst [vmem:[#allocation122_spill] sm:$0xff] %v13863_v24  ;;  %v6251_v32 = vadd.f32 %v13497_v25, %v6116_v51  ;;  %v6117_v52 = vadd.f32 %v5753_v37, %v16353_v58  ;;  %v13867_v31 = vpop.f32.mrb[35].mxu0  ;;  %5419 = vmatmul.mubr.bf16.gmra.mrb[140].mxu1 %v16354_v0  ;;  %8788 = vmatmul.mubr.bf16.gmra.mrb[108].mxu0 %v6482_v43 }
 0x672   : > { %5426 = vmatprep.mubr.bf16.mxu1 %v16355_v34 }
 0x673   : > { %v6252_v19 = vadd.f32 %v13497_v25, %v6117_v52  ;;  %v6379_v7 = vmax.f32 %v6251_v32, 0.0  ;;  %v16358_v32 = vld [vmem:[#allocation37_spill] sm:$0xff] }
 0x674   : > { %v5212_v60 = vpop.f32.mrb[36].mxu1 }
 0x675   : > { %v6380_v46 = vmax.f32 %v6252_v19, 0.0  ;;  %v5758_v13 = vadd.f32 %v13665_v50, %v5212_v60  ;;  %v5214_v36 = vpop.f32.mrb[37].mxu1  ;;  %v16359_v50 = vld [vmem:[#allocation150_spill] sm:$0xff] }
 0x676   : > { %v13873_v39 = vpop.f32.mrb[36].mxu0  ;;  %v5215_v51 = vpop.f32.mrb[38].mxu1  ;;  %v16360_v60 = vld [vmem:[#allocation134_spill] sm:$0xff] }
 0x677   : > { %v6118_v37 = vadd.f32 %v5758_v13, %v16356_v8  ;;  %v5761_v58 = vadd.f32 %v13671_v6, %v5215_v51  ;;  %v13877_v24 = vpop.f32.mrb[37].mxu0  ;;  %v5217_v43 = vpop.f32.mrb[39].mxu1  ;;  %v6483_v0 = vpack.c.bf16 %v6380_v46, %v6379_v7  ;;  %v13887_v13 = vld [vmem:[#allocation10] ss:$0 sm:$0xff] }
 0x678   : > { %v13879_v34 = vpop.f32.mrb[38].mxu0 }
 0x679   : > { %16357 = vst [vmem:[#allocation120_spill] sm:$0xff] %v13879_v34  ;;  %v6253_v52 = vadd.f32 %v13497_v25, %v6118_v37  ;;  %v6119_v19 = vadd.f32 %v5761_v58, %v16358_v32  ;;  %v13883_v45 = vpop.f32.mrb[39].mxu0  ;;  %5427 = vmatmul.mubr.bf16.gmra.mrb[144].mxu1 %v16359_v50  ;;  %8791 = vmatprep.mubr.bf16.mxu0 %v6483_v0 }
 0x67a   : > { %5434 = vmatprep.mubr.bf16.mxu1 %v16360_v60 }
 0x67b   : > { %v6254_v6 = vadd.f32 %v13887_v13, %v6119_v19  ;;  %v6381_v51 = vmax.f32 %v6253_v52, 0.0  ;;  %v16363_v52 = vld [vmem:[#allocation23_spill] sm:$0xff] }
 0x67c   : > { %v5220_v36 = vpop.f32.mrb[40].mxu1 }
 0x67d   : > { %v6382_v7 = vmax.f32 %v6254_v6, 0.0  ;;  %v5766_v46 = vadd.f32 %v13685_v48, %v5220_v36  ;;  %v5222_v8 = vpop.f32.mrb[41].mxu1  ;;  %v16364_v48 = vld [vmem:[#allocation153_spill] sm:$0xff] }
 0x67e   : > { %v13891_v25 = vpop.f32.mrb[40].mxu0  ;;  %v5223_v37 = vpop.f32.mrb[42].mxu1  ;;  %v16365_v36 = vld [vmem:[#allocation133_spill] sm:$0xff] }
 0x67f   : > { %16361 = vst [vmem:[#allocation242_spill] sm:$0xff] %v13891_v25  ;;  %v6484_v58 = vpack.c.bf16 %v6382_v7, %v6381_v51  ;;  %v6120_v43 = vadd.f32 %v5766_v46, %v13125_v23  ;;  %v5769_v0 = vadd.f32 %v13691_v30, %v5223_v37  ;;  %v13895_v32 = vpop.f32.mrb[41].mxu0  ;;  %v5225_v50 = vpop.f32.mrb[43].mxu1 }
 0x680   : > { %v13897_v60 = vpop.f32.mrb[42].mxu0  ;;  %v16367_v50 = vld [vmem:[#allocation39_spill] sm:$0xff] }
 0x681   : > { %16362 = vst [vmem:[#allocation265_spill] sm:$0xff] %v13897_v60  ;;  %v6255_v19 = vadd.f32 %v13887_v13, %v6120_v43  ;;  %v6121_v6 = vadd.f32 %v5769_v0, %v16363_v52  ;;  %v13901_v34 = vpop.f32.mrb[43].mxu0  ;;  %5435 = vmatmul.mubr.bf16.gmra.mrb[148].mxu1 %v16364_v48  ;;  %8792 = vmatmul.mubr.bf16.gmra.mrb[112].mxu0 %v6484_v58 }
 0x682   : > { %5442 = vmatprep.mubr.bf16.mxu1 %v16365_v36 }
 0x683   : > { %v6256_v23 = vadd.f32 %v13887_v13, %v6121_v6  ;;  %v6383_v30 = vmax.f32 %v6255_v19, 0.0  ;;  %v16369_v19 = vld [vmem:[#allocation40_spill] sm:$0xff] }
 0x684   : > { %v5228_v51 = vpop.f32.mrb[44].mxu1 }
 0x685   : > { %v6384_v7 = vmax.f32 %v6256_v23, 0.0  ;;  %v5774_v46 = vadd.f32 %v13681_v55, %v5228_v51  ;;  %v5230_v8 = vpop.f32.mrb[45].mxu1  ;;  %v16370_v55 = vld [vmem:[#allocation155_spill] sm:$0xff]  ;;  %v16371_v51 = vld [vmem:[#allocation138_spill] sm:$0xff] }
 0x686   : > { %v13907_v37 = vpop.f32.mrb[44].mxu0  ;;  %v5231_v43 = vpop.f32.mrb[46].mxu1 }
 0x687   : > { %16366 = vst [vmem:[#allocation124_spill] sm:$0xff] %v13907_v37  ;;  %v6122_v0 = vadd.f32 %v5774_v46, %v16367_v50  ;;  %v5777_v52 = vadd.f32 %v13687_v61, %v5231_v43  ;;  %v13911_v60 = vpop.f32.mrb[45].mxu0  ;;  %v5233_v58 = vpop.f32.mrb[47].mxu1  ;;  %v6485_v48 = vpack.c.bf16 %v6384_v7, %v6383_v30 }
 0x688   : > { %v13913_v36 = vpop.f32.mrb[46].mxu0 }
 0x689   : > { %16368 = vst [vmem:[#allocation127_spill] sm:$0xff] %v13913_v36  ;;  %v6257_v6 = vadd.f32 %v13887_v13, %v6122_v0  ;;  %v6123_v23 = vadd.f32 %v5777_v52, %v16369_v19  ;;  %v13917_v25 = vpop.f32.mrb[47].mxu0  ;;  %5443 = vmatmul.mubr.bf16.gmra.mrb[152].mxu1 %v16370_v55  ;;  %8795 = vmatprep.mubr.bf16.mxu0 %v6485_v48  ;;  %v16373_v52 = vld [vmem:[#allocation21_spill] sm:$0xff] }
 0x68a   : > { %5450 = vmatprep.mubr.bf16.mxu1 %v16371_v51 }
 0x68b   : > { %v6258_v46 = vadd.f32 %v13887_v13, %v6123_v23  ;;  %v6385_v8 = vmax.f32 %v6257_v6, 0.0  ;;  %v16375_v6 = vld [vmem:[#allocation32_spill] sm:$0xff] }
 0x68c   : > { %v5236_v61 = vpop.f32.mrb[48].mxu1 }
 0x68d   : > { %v6386_v43 = vmax.f32 %v6258_v46, 0.0  ;;  %v5782_v30 = vadd.f32 %v13701_v17, %v5236_v61  ;;  %v5238_v7 = vpop.f32.mrb[49].mxu1  ;;  %v16376_v17 = vld [vmem:[#allocation156_spill] sm:$0xff]  ;;  %v16377_v61 = vld [vmem:[#allocation137_spill] sm:$0xff] }
 0x68e   : > { %v13923_v50 = vpop.f32.mrb[48].mxu0  ;;  %v5239_v0 = vpop.f32.mrb[50].mxu1 }
 0x68f   : > { %16372 = vst [vmem:[#allocation126_spill] sm:$0xff] %v13923_v50  ;;  %v6486_v58 = vpack.c.bf16 %v6386_v43, %v6385_v8  ;;  %v6124_v19 = vadd.f32 %v5782_v30, %v16373_v52  ;;  %v5785_v36 = vadd.f32 %v13707_v20, %v5239_v0  ;;  %v13927_v55 = vpop.f32.mrb[49].mxu0  ;;  %v5241_v48 = vpop.f32.mrb[51].mxu1 }
 0x690   : > { %v13929_v51 = vpop.f32.mrb[50].mxu0  ;;  %v16378_v48 = vld [vmem:[#allocation229_spill] sm:$0xff] }
 0x691   : > { %16374 = vst [vmem:[#allocation245_spill] sm:$0xff] %v13929_v51  ;;  %v6259_v23 = vadd.f32 %v13887_v13, %v6124_v19  ;;  %v6125_v46 = vadd.f32 %v5785_v36, %v16375_v6  ;;  %v13933_v37 = vpop.f32.mrb[51].mxu0  ;;  %5451 = vmatmul.mubr.bf16.gmra.mrb[156].mxu1 %v16376_v17  ;;  %8796 = vmatmul.mubr.bf16.gmra.mrb[116].mxu0 %v6486_v58 }
 0x692   : > { %5458 = vmatprep.mubr.bf16.mxu1 %v16377_v61 }
 0x693   : > { %v6260_v8 = vadd.f32 %v13887_v13, %v6125_v46  ;;  %v6387_v20 = vmax.f32 %v6259_v23, 0.0  ;;  %v16379_v23 = vld [vmem:[#allocation44_spill] sm:$0xff] }
 0x694   : > { %v5244_v43 = vpop.f32.mrb[52].mxu1 }
 0x695   : > { %v6388_v30 = vmax.f32 %v6260_v8, 0.0  ;;  %v5790_v7 = vadd.f32 %v13697_v29, %v5244_v43  ;;  %v5246_v0 = vpop.f32.mrb[53].mxu1  ;;  %v16380_v29 = vld [vmem:[#allocation157_spill] sm:$0xff] }
 0x696   : > { %v13939_v52 = vpop.f32.mrb[52].mxu0  ;;  %v5247_v19 = vpop.f32.mrb[54].mxu1  ;;  %v16381_v43 = vld [vmem:[#allocation141_spill] sm:$0xff] }
 0x697   : > { %v6126_v36 = vadd.f32 %v5790_v7, %v16378_v48  ;;  %v5793_v6 = vadd.f32 %v13703_v54, %v5247_v19  ;;  %v13943_v51 = vpop.f32.mrb[53].mxu0  ;;  %v5249_v58 = vpop.f32.mrb[55].mxu1  ;;  %v6487_v17 = vpack.c.bf16 %v6388_v30, %v6387_v20 }
 0x698   : > { %v13945_v61 = vpop.f32.mrb[54].mxu0 }
 0x699   : > { %v6261_v46 = vadd.f32 %v13887_v13, %v6126_v36  ;;  %v6127_v8 = vadd.f32 %v5793_v6, %v16379_v23  ;;  %v13949_v50 = vpop.f32.mrb[55].mxu0  ;;  %5459 = vmatmul.mubr.bf16.gmra.mrb[160].mxu1 %v16380_v29  ;;  %8799 = vmatprep.mubr.bf16.mxu0 %v6487_v17 }
 0x69a   : > { %5466 = vmatprep.mubr.bf16.mxu1 %v16381_v43 }
 0x69b   : > { %v6262_v7 = vadd.f32 %v13887_v13, %v6127_v8  ;;  %v6389_v0 = vmax.f32 %v6261_v46, 0.0 }
 0x69c   : > { %v5252_v54 = vpop.f32.mrb[56].mxu1 }
 0x69d   : > { %v6390_v19 = vmax.f32 %v6262_v7, 0.0  ;;  %v5798_v20 = vadd.f32 %v13717_v14, %v5252_v54  ;;  %v5254_v30 = vpop.f32.mrb[57].mxu1  ;;  %v16383_v14 = vld [vmem:[#allocation159_spill] sm:$0xff]  ;;  %v16384_v54 = vld [vmem:[#allocation140_spill] sm:$0xff] }
 0x69e   : > { %v13955_v48 = vpop.f32.mrb[56].mxu0  ;;  %v5255_v36 = vpop.f32.mrb[58].mxu1 }
 0x69f   : > { %v6488_v58 = vpack.c.bf16 %v6390_v19, %v6389_v0  ;;  %v6128_v6 = vadd.f32 %v5798_v20, %v13169_v28  ;;  %v5801_v23 = vadd.f32 %v13724_v59, %v5255_v36  ;;  %v13959_v29 = vpop.f32.mrb[57].mxu0  ;;  %v5257_v17 = vpop.f32.mrb[59].mxu1 }
 0x6a0   : > { %v13961_v43 = vpop.f32.mrb[58].mxu0 }
 0x6a1   : > { %16382 = vst [vmem:[#allocation246_spill] sm:$0xff] %v13961_v43  ;;  %v6263_v8 = vadd.f32 %v13887_v13, %v6128_v6  ;;  %v6129_v46 = vadd.f32 %v5801_v23, %v13178_v16  ;;  %v13965_v7 = vpop.f32.mrb[59].mxu0  ;;  %5467 = vmatmul.mubr.bf16.gmra.mrb[164].mxu1 %v16383_v14  ;;  %8800 = vmatmul.mubr.bf16.gmra.mrb[120].mxu0 %v6488_v58  ;;  %v16386_v6 = vld [vmem:[#allocation46_spill] sm:$0xff] }
 0x6a2   : > { %5474 = vmatprep.mubr.bf16.mxu1 %v16384_v54 }
 0x6a3   : > { %v6264_v28 = vadd.f32 %v13887_v13, %v6129_v46  ;;  %v6391_v59 = vmax.f32 %v6263_v8, 0.0 }
 0x6a4   : > { %v5260_v0 = vpop.f32.mrb[60].mxu1 }
 0x6a5   : > { %v6392_v19 = vmax.f32 %v6264_v28, 0.0  ;;  %v5806_v20 = vadd.f32 %v13713_v27, %v5260_v0  ;;  %v5262_v30 = vpop.f32.mrb[61].mxu1  ;;  %v16388_v28 = vld [vmem:[#allocation162_spill] sm:$0xff] }
 0x6a6   : > { %v5263_v36 = vpop.f32.mrb[62].mxu1  ;;  %v13971_v17 = vpop.f32.mrb[60].mxu0  ;;  %v16390_v0 = vld [vmem:[#allocation142_spill] sm:$0xff] }
 0x6a7   : > { %16385 = vst [vmem:[#allocation67_spill] sm:$0xff] %v13971_v17  ;;  %v6130_v16 = vadd.f32 %v5806_v20, %v16386_v6  ;;  %v5809_v23 = vadd.f32 %v13719_v35, %v5263_v36  ;;  %v5265_v43 = vpop.f32.mrb[63].mxu1  ;;  %v6489_v14 = vpack.c.bf16 %v6392_v19, %v6391_v59  ;;  %v13975_v58 = vpop.f32.mrb[61].mxu0 }
 0x6a8   : > { %v13977_v54 = vpop.f32.mrb[62].mxu0  ;;  %v13986_v43 = vld [vmem:[#allocation13] ss:$0 sm:$0xff] }
 0x6a9   : > { %16387 = vst [vmem:[#allocation132_spill] sm:$0xff] %v13977_v54  ;;  %v6265_v46 = vadd.f32 %v13887_v13, %v6130_v16  ;;  %v6131_v8 = vadd.f32 %v5809_v23, %v13175_v5  ;;  %5475 = vmatmul.mubr.bf16.gmra.mrb[168].mxu1 %v16388_v28  ;;  %8803 = vmatprep.mubr.bf16.mxu0 %v6489_v14  ;;  %v13982_v27 = vpop.f32.mrb[63].mxu0  ;;  %v16391_v23 = vld [vmem:[#allocation210_spill] sm:$0xff] }
 0x6aa   : > { %16389 = vst [vmem:[#allocation248_spill] sm:$0xff] %v13982_v27  ;;  %5482 = vmatprep.mubr.bf16.mxu1 %v16390_v0 }
 0x6ab   : > { %v6266_v20 = vadd.f32 %v13887_v13, %v6131_v8  ;;  %v6393_v59 = vmax.f32 %v6265_v46, 0.0 }
 0x6ac   : > { %v5268_v35 = vpop.f32.mrb[64].mxu1 }
 0x6ad   : > { %v6394_v19 = vmax.f32 %v6266_v20, 0.0  ;;  %v5814_v30 = vadd.f32 %v13733_v1, %v5268_v35  ;;  %v5270_v36 = vpop.f32.mrb[65].mxu1  ;;  %v9091_v1 = vld [vmem:[%s9824_s10 + $0x10] sm:$0xff] }
 0x6ae   : > { %v8745_v6 = vpop.f32.mrb[64].mxu0  ;;  %v5271_v5 = vpop.f32.mrb[66].mxu1 }
 0x6af   : > { %v6490_v16 = vpack.c.bf16 %v6394_v19, %v6393_v59  ;;  %v6132_v14 = vadd.f32 %v5814_v30, %v16391_v23  ;;  %v6637_v28 = vadd.f32 %v8745_v6, %v13986_v43  ;;  %v5817_v0 = vadd.f32 %v13739_v42, %v5271_v5  ;;  %v6628_v8 = vpop.f32.mrb[65].mxu0  ;;  %v5273_v54 = vpop.f32.mrb[67].mxu1  ;;  %v16392_v30 = vld [vmem:[#allocation241_spill] sm:$0xff]  ;;  %v9092_v42 = vld [vmem:[%s9824_s10] sm:$0xff] }
 0x6b0   : > { %v6629_v17 = vadd.f32 %v13986_v43, %v6628_v8  ;;  %v8746_v46 = vpop.f32.mrb[66].mxu0  ;;  %v16393_v5 = vld [vmem:[#allocation109_spill] sm:$0xff]  ;;  %v9093_v8 = vld [vmem:[%s9824_s10 + $0x18] sm:$0xff] }
 0x6b1   : > { %v6267_v20 = vadd.f32 %v13887_v13, %v6132_v14  ;;  %v7141_v35 = vadd.f32 %v9091_v1, %v6637_v28  ;;  %v6133_v36 = vadd.f32 %v5817_v0, %v13200_v12  ;;  %v6640_v59 = vadd.f32 %v8746_v46, %v13986_v43  ;;  %v6631_v19 = vpop.f32.mrb[67].mxu0  ;;  %5483 = vmatmul.mubr.bf16.gmra.mrb[172].mxu1 %v16392_v30  ;;  %v9094_v12 = vld [vmem:[%s9824_s10 + $0x8] sm:$0xff] }
 0x6b2   : > { %v7139_v6 = vadd.f32 %v9092_v42, %v6629_v17  ;;  %v6632_v54 = vadd.f32 %v13986_v43, %v6631_v19  ;;  %8804 = vmatmul.mubr.bf16.gmra.mrb[124].mxu0 %v6490_v16  ;;  %5490 = vmatprep.mubr.bf16.mxu1 %v16393_v5 }
 0x6b3   : > { %v7269_v23 = vmax.f32 %v7141_v35, 0.0  ;;  %v6268_v14 = vadd.f32 %v13887_v13, %v6133_v36  ;;  %v7142_v28 = vadd.f32 %v9093_v8, %v6640_v59  ;;  %v6395_v27 = vmax.f32 %v6267_v20, 0.0  ;;  %v16394_v20 = vld [vmem:[#allocation47_spill] sm:$0xff] }
 0x6b4   : > { %v7267_v1 = vmax.f32 %v7139_v6, 0.0  ;;  %v7140_v0 = vadd.f32 %v9094_v12, %v6632_v54  ;;  %v5276_v46 = vpop.f32.mrb[68].mxu1 }
 0x6b5   : > { %7397 = vst [vmem:[%s14006_s8 + $0x10] sm:$0xff] %v7269_v23  ;;  %v6396_v17 = vmax.f32 %v6268_v14, 0.0  ;;  %v7270_v16 = vmax.f32 %v7142_v28, 0.0  ;;  %v5822_v35 = vadd.f32 %v13729_v22, %v5276_v46  ;;  %v5278_v36 = vpop.f32.mrb[69].mxu1 }
 0x6b6   : > { %7395 = vst [vmem:[%s14006_s8] sm:$0xff] %v7267_v1  ;;  %v7268_v59 = vmax.f32 %v7140_v0, 0.0  ;;  %v8749_v19 = vpop.f32.mrb[68].mxu0  ;;  %v5279_v30 = vpop.f32.mrb[70].mxu1  ;;  %v9095_v1 = vld [vmem:[%s9824_s10 + $0x30] sm:$0xff] }
 0x6b7   : > { %7398 = vst [vmem:[%s14006_s8 + $0x18] sm:$0xff] %v7270_v16  ;;  %v6134_v42 = vadd.f32 %v5822_v35, %v16394_v20  ;;  %v6653_v6 = vadd.f32 %v8749_v19, %v13986_v43  ;;  %v5825_v54 = vadd.f32 %v13735_v57, %v5279_v30  ;;  %v6644_v5 = vpop.f32.mrb[69].mxu0  ;;  %v5281_v23 = vpop.f32.mrb[71].mxu1  ;;  %v6491_v14 = vpack.c.bf16 %v6396_v17, %v6395_v27  ;;  %v16395_v0 = vld [vmem:[#allocation233_spill] sm:$0xff]  ;;  %v9096_v57 = vld [vmem:[%s9824_s10 + $0x20] sm:$0xff]  ;;  %v9097_v20 = vld [vmem:[%s9824_s10 + $0x38] sm:$0xff] }
 0x6b8   : > { %7396 = vst [vmem:[%s14006_s8 + $0x8] sm:$0xff] %v7268_v59  ;;  %v6645_v22 = vadd.f32 %v13986_v43, %v6644_v5  ;;  %v8750_v8 = vpop.f32.mrb[70].mxu0  ;;  %v16396_v36 = vld [vmem:[#allocation193_spill] sm:$0xff]  ;;  %v16397_v59 = vld [vmem:[#allocation147_spill] sm:$0xff] }
 0x6b9   : > { %v6269_v28 = vadd.f32 %v13887_v13, %v6134_v42  ;;  %v7145_v12 = vadd.f32 %v9095_v1, %v6653_v6  ;;  %v6135_v46 = vadd.f32 %v5825_v54, %v16395_v0  ;;  %v6656_v16 = vadd.f32 %v8750_v8, %v13986_v43  ;;  %v6647_v35 = vpop.f32.mrb[71].mxu0  ;;  %5491 = vmatmul.mubr.bf16.gmra.mrb[176].mxu1 %v16396_v36  ;;  %v9098_v54 = vld [vmem:[%s9824_s10 + $0x28] sm:$0xff] }
 0x6ba   : > { %v7143_v27 = vadd.f32 %v9096_v57, %v6645_v22  ;;  %v6648_v17 = vadd.f32 %v13986_v43, %v6647_v35  ;;  %8807 = vmatprep.mubr.bf16.mxu0 %v6491_v14  ;;  %5498 = vmatprep.mubr.bf16.mxu1 %v16397_v59 }
 0x6bb   : > { %v7273_v19 = vmax.f32 %v7145_v12, 0.0  ;;  %v6270_v30 = vadd.f32 %v13887_v13, %v6135_v46  ;;  %v7146_v42 = vadd.f32 %v9097_v20, %v6656_v16  ;;  %v6397_v8 = vmax.f32 %v6269_v28, 0.0  ;;  %v16398_v16 = vld [vmem:[#allocation49_spill] sm:$0xff] }
 0x6bc   : > { %v7271_v6 = vmax.f32 %v7143_v27, 0.0  ;;  %v7144_v5 = vadd.f32 %v9098_v54, %v6648_v17  ;;  %v5284_v23 = vpop.f32.mrb[72].mxu1  ;;  %v9099_v20 = vld [vmem:[%s9824_s10 + $0x50] sm:$0xff] }
 0x6bd   : > { %7401 = vst [vmem:[%s14006_s8 + $0x30] sm:$0xff] %v7273_v19  ;;  %v6398_v22 = vmax.f32 %v6270_v30, 0.0  ;;  %v7274_v1 = vmax.f32 %v7146_v42, 0.0  ;;  %v5830_v14 = vadd.f32 %v13749_v11, %v5284_v23  ;;  %v5286_v0 = vpop.f32.mrb[73].mxu1 }
 0x6be   : > { %7399 = vst [vmem:[%s14006_s8 + $0x20] sm:$0xff] %v7271_v6  ;;  %v7272_v12 = vmax.f32 %v7144_v5, 0.0  ;;  %v8753_v35 = vpop.f32.mrb[72].mxu0  ;;  %v5287_v46 = vpop.f32.mrb[74].mxu1  ;;  %v16399_v6 = vld [vmem:[#allocation52_spill] sm:$0xff] }
 0x6bf   : > { %v6492_v36 = vpack.c.bf16 %v6398_v22, %v6397_v8  ;;  %7402 = vst [vmem:[%s14006_s8 + $0x38] sm:$0xff] %v7274_v1  ;;  %v6136_v57 = vadd.f32 %v5830_v14, %v16398_v16  ;;  %v6669_v27 = vadd.f32 %v8753_v35, %v13986_v43  ;;  %v5833_v28 = vadd.f32 %v13755_v49, %v5287_v46  ;;  %v6660_v17 = vpop.f32.mrb[73].mxu0  ;;  %v5289_v59 = vpop.f32.mrb[75].mxu1  ;;  %v16400_v8 = vld [vmem:[#allocation198_spill] sm:$0xff]  ;;  %v9100_v49 = vld [vmem:[%s9824_s10 + $0x40] sm:$0xff] }
 0x6c0   : > { %7400 = vst [vmem:[%s14006_s8 + $0x28] sm:$0xff] %v7272_v12  ;;  %v6661_v11 = vadd.f32 %v13986_v43, %v6660_v17  ;;  %v8754_v19 = vpop.f32.mrb[74].mxu0  ;;  %v16401_v14 = vld [vmem:[#allocation146_spill] sm:$0xff] }
 0x6c1   : > { %v6271_v30 = vadd.f32 %v13887_v13, %v6136_v57  ;;  %v7149_v42 = vadd.f32 %v9099_v20, %v6669_v27  ;;  %v6137_v54 = vadd.f32 %v5833_v28, %v16399_v6  ;;  %v6672_v5 = vadd.f32 %v8754_v19, %v13986_v43  ;;  %v6663_v23 = vpop.f32.mrb[75].mxu0  ;;  %5499 = vmatmul.mubr.bf16.gmra.mrb[180].mxu1 %v16400_v8  ;;  %v9101_v35 = vld [vmem:[%s9824_s10 + $0x58] sm:$0xff]  ;;  %v9102_v57 = vld [vmem:[%s9824_s10 + $0x48] sm:$0xff] }
 0x6c2   : > { %v7147_v22 = vadd.f32 %v9100_v49, %v6661_v11  ;;  %v6664_v1 = vadd.f32 %v13986_v43, %v6663_v23  ;;  %8808 = vmatmul.mubr.bf16.gmra.mrb[128].mxu0 %v6492_v36  ;;  %5506 = vmatprep.mubr.bf16.mxu1 %v16401_v14 }
 0x6c3   : > { %v7277_v0 = vmax.f32 %v7149_v42, 0.0  ;;  %v6272_v12 = vadd.f32 %v13887_v13, %v6137_v54  ;;  %v7150_v46 = vadd.f32 %v9101_v35, %v6672_v5  ;;  %v6399_v17 = vmax.f32 %v6271_v30, 0.0  ;;  %v16402_v54 = vld [vmem:[#allocation209_spill] sm:$0xff]  ;;  %v16403_v35 = vld [vmem:[#allocation30_spill] sm:$0xff] }
 0x6c4   : > { %v7275_v16 = vmax.f32 %v7147_v22, 0.0  ;;  %v7148_v27 = vadd.f32 %v9102_v57, %v6664_v1  ;;  %v5292_v28 = vpop.f32.mrb[76].mxu1 }
 0x6c5   : > { %7405 = vst [vmem:[%s14006_s8 + $0x50] sm:$0xff] %v7277_v0  ;;  %v6400_v59 = vmax.f32 %v6272_v12, 0.0  ;;  %v7278_v11 = vmax.f32 %v7150_v46, 0.0  ;;  %v5838_v36 = vadd.f32 %v13745_v9, %v5292_v28  ;;  %v5294_v19 = vpop.f32.mrb[77].mxu1  ;;  %v9103_v0 = vld [vmem:[%s9824_s10 + $0x70] sm:$0xff] }
 0x6c6   : > { %7403 = vst [vmem:[%s14006_s8 + $0x40] sm:$0xff] %v7275_v16  ;;  %v7276_v20 = vmax.f32 %v7148_v27, 0.0  ;;  %v8757_v42 = vpop.f32.mrb[76].mxu0  ;;  %v5295_v6 = vpop.f32.mrb[78].mxu1  ;;  %v16404_v27 = vld [vmem:[#allocation203_spill] sm:$0xff] }
 0x6c7   : > { %7406 = vst [vmem:[%s14006_s8 + $0x58] sm:$0xff] %v7278_v11  ;;  %v6138_v5 = vadd.f32 %v5838_v36, %v16402_v54  ;;  %v6685_v23 = vadd.f32 %v8757_v42, %v13986_v43  ;;  %v5841_v30 = vadd.f32 %v13751_v21, %v5295_v6  ;;  %v6676_v8 = vpop.f32.mrb[77].mxu0  ;;  %v5297_v49 = vpop.f32.mrb[79].mxu1  ;;  %v6493_v22 = vpack.c.bf16 %v6400_v59, %v6399_v17  ;;  %v9104_v21 = vld [vmem:[%s9824_s10 + $0x60] sm:$0xff]  ;;  %v9105_v36 = vld [vmem:[%s9824_s10 + $0x78] sm:$0xff]  ;;  %v9106_v42 = vld [vmem:[%s9824_s10 + $0x68] sm:$0xff] }
 0x6c8   : > { %7404 = vst [vmem:[%s14006_s8 + $0x48] sm:$0xff] %v7276_v20  ;;  %v6677_v9 = vadd.f32 %v13986_v43, %v6676_v8  ;;  %v8758_v1 = vpop.f32.mrb[78].mxu0 }
 0x6c9   : > { %v6273_v14 = vadd.f32 %v13887_v13, %v6138_v5  ;;  %v7153_v12 = vadd.f32 %v9103_v0, %v6685_v23  ;;  %v6139_v46 = vadd.f32 %v5841_v30, %v16403_v35  ;;  %v6688_v16 = vadd.f32 %v8758_v1, %v13986_v43  ;;  %v6679_v57 = vpop.f32.mrb[79].mxu0  ;;  %5507 = vmatmul.mubr.bf16.gmra.mrb[184].mxu1 %v16404_v27  ;;  %v16405_v0 = vld [vmem:[#allocation250_spill] sm:$0xff] }
 0x6ca   : > { %v7151_v28 = vadd.f32 %v9104_v21, %v6677_v9  ;;  %v6680_v17 = vadd.f32 %v13986_v43, %v6679_v57  ;;  %8811 = vmatprep.mubr.bf16.mxu0 %v6493_v22  ;;  %5514 = vmatprep.mubr.bf16.mxu1 %v15182_v10 }
 0x6cb   : > { %v7281_v59 = vmax.f32 %v7153_v12, 0.0  ;;  %v6274_v11 = vadd.f32 %v13887_v13, %v6139_v46  ;;  %v7154_v19 = vadd.f32 %v9105_v36, %v6688_v16  ;;  %v6401_v5 = vmax.f32 %v6273_v14, 0.0  ;;  %v16406_v16 = vld [vmem:[#allocation240_spill] sm:$0xff] }
 0x6cc   : > { %v7279_v20 = vmax.f32 %v7151_v28, 0.0  ;;  %v7152_v6 = vadd.f32 %v9106_v42, %v6680_v17  ;;  %v5300_v54 = vpop.f32.mrb[80].mxu1  ;;  %v16407_v17 = vld [vmem:[#allocation235_spill] sm:$0xff] }
 0x6cd   : > { %7409 = vst [vmem:[%s14006_s8 + $0x70] sm:$0xff] %v7281_v59  ;;  %v6402_v23 = vmax.f32 %v6274_v11, 0.0  ;;  %v7282_v30 = vmax.f32 %v7154_v19, 0.0  ;;  %v5846_v8 = vadd.f32 %v13765_v15, %v5300_v54  ;;  %v5302_v49 = vpop.f32.mrb[81].mxu1 }
 0x6ce   : > { %7407 = vst [vmem:[%s14006_s8 + $0x60] sm:$0xff] %v7279_v20  ;;  %v7280_v22 = vmax.f32 %v7152_v6, 0.0  ;;  %v5303_v9 = vpop.f32.mrb[82].mxu1  ;;  %v16408_v6 = vld [vmem:[#allocation53_spill] sm:$0xff] }
 0x6cf   : > { %v6494_v1 = vpack.c.bf16 %v6402_v23, %v6401_v5  ;;  %7410 = vst [vmem:[%s14006_s8 + $0x78] sm:$0xff] %v7282_v30  ;;  %v6140_v12 = vadd.f32 %v5846_v8, %v16405_v0  ;;  %v5849_v35 = vadd.f32 %v13771_v4, %v5303_v9  ;;  %v5305_v46 = vpop.f32.mrb[83].mxu1  ;;  %v9107_v5 = vld [vmem:[%s9824_s10 + $0x90] sm:$0xff] }
 0x6d0   : > { %7408 = vst [vmem:[%s14006_s8 + $0x68] sm:$0xff] %v7280_v22  ;;  %v16409_v30 = vld [vmem:[#allocation262_spill] sm:$0xff] }
 0x6d1   : > { %v6141_v57 = vadd.f32 %v5849_v35, %v16406_v16  ;;  %5515 = vmatmul.mubr.bf16.gmra.mrb[188].mxu1 %v15182_v10  ;;  %8812 = vmatmul.mubr.bf16.gmra.mrb[132].mxu0 %v6494_v1  ;;  %v6275_v15 = vadd.f32 %v13887_v13, %v6140_v12  ;;  %v9108_v1 = vld [vmem:[%s9824_s10 + $0x80] sm:$0xff] }
 0x6d3   : > { %v6276_v14 = vadd.f32 %v13887_v13, %v6141_v57  ;;  %v6403_v19 = vmax.f32 %v6275_v15, 0.0  ;;  %v16410_v57 = vld [vmem:[#allocation243_spill] sm:$0xff] }
 0x6d4   : > { %v5308_v27 = vpop.f32.mrb[84].mxu1  ;;  %v8761_v21 = vpop.f32.mrb[80].mxu0 }
 0x6d5   : > { %v6404_v28 = vmax.f32 %v6276_v14, 0.0  ;;  %v5854_v59 = vadd.f32 %v16407_v17, %v5308_v27  ;;  %v6701_v4 = vadd.f32 %v8761_v21, %v13986_v43  ;;  %v5310_v11 = vpop.f32.mrb[85].mxu1  ;;  %v6692_v36 = vpop.f32.mrb[81].mxu0  ;;  %v9109_v14 = vld [vmem:[%s9824_s10 + $0x98] sm:$0xff]  ;;  %v9110_v17 = vld [vmem:[%s9824_s10 + $0x88] sm:$0xff] }
 0x6d6   : > { %v6693_v20 = vadd.f32 %v13986_v43, %v6692_v36  ;;  %v5311_v10 = vpop.f32.mrb[86].mxu1  ;;  %v8762_v42 = vpop.f32.mrb[82].mxu0 }
 0x6d7   : > { %v6142_v54 = vadd.f32 %v5854_v59, %v16408_v6  ;;  %v7157_v23 = vadd.f32 %v9107_v5, %v6701_v4  ;;  %v5857_v8 = vadd.f32 %v16409_v30, %v5311_v10  ;;  %v6704_v49 = vadd.f32 %v8762_v42, %v13986_v43  ;;  %v5313_v22 = vpop.f32.mrb[87].mxu1  ;;  %v6695_v9 = vpop.f32.mrb[83].mxu0  ;;  %v16411_v5 = vld [vmem:[#allocation55_spill] sm:$0xff] }
 0x6d8   : > { %v7155_v0 = vadd.f32 %v9108_v1, %v6693_v20  ;;  %v6696_v12 = vadd.f32 %v13986_v43, %v6695_v9  ;;  %v6495_v35 = vpack.c.bf16 %v6404_v28, %v6403_v19 }
 0x6d9   : > { %v6277_v46 = vadd.f32 %v13887_v13, %v6142_v54  ;;  %v7285_v16 = vmax.f32 %v7157_v23, 0.0  ;;  %v6143_v15 = vadd.f32 %v5857_v8, %v16410_v57  ;;  %v7158_v27 = vadd.f32 %v9109_v14, %v6704_v49  ;;  %v16412_v49 = vld [vmem:[#allocation58_spill] sm:$0xff] }
 0x6da   : > { %v7283_v21 = vmax.f32 %v7155_v0, 0.0  ;;  %v7156_v59 = vadd.f32 %v9110_v17, %v6696_v12  ;;  %8815 = vmatprep.mubr.bf16.mxu0 %v6495_v35 }
 0x6db   : > { %7413 = vst [vmem:[%s14006_s8 + $0x90] sm:$0xff] %v7285_v16  ;;  %v6278_v4 = vadd.f32 %v13887_v13, %v6143_v15  ;;  %v7286_v11 = vmax.f32 %v7158_v27, 0.0  ;;  %v6405_v19 = vmax.f32 %v6277_v46, 0.0 }
 0x6dc   : > { %7411 = vst [vmem:[%s14006_s8 + $0x80] sm:$0xff] %v7283_v21  ;;  %v7284_v36 = vmax.f32 %v7156_v59, 0.0  ;;  %v5316_v28 = vpop.f32.mrb[88].mxu1  ;;  %v16413_v21 = vld [vmem:[#allocation212_spill] sm:$0xff]  ;;  %v9111_v59 = vld [vmem:[%s9824_s10 + $0xb0] sm:$0xff] }
 0x6dd   : > { %v6406_v20 = vmax.f32 %v6278_v4, 0.0  ;;  %7414 = vst [vmem:[%s14006_s8 + $0x98] sm:$0xff] %v7286_v11  ;;  %v5862_v10 = vadd.f32 %v13781_v18, %v5316_v28  ;;  %v5318_v42 = vpop.f32.mrb[89].mxu1  ;;  %v16414_v11 = vld [vmem:[#allocation111_spill] sm:$0xff] }
 0x6de   : > { %7412 = vst [vmem:[%s14006_s8 + $0x88] sm:$0xff] %v7284_v36  ;;  %v5319_v6 = vpop.f32.mrb[90].mxu1 }
 0x6df   : > { %v6496_v54 = vpack.c.bf16 %v6406_v20, %v6405_v19  ;;  %v6144_v23 = vadd.f32 %v5862_v10, %v16411_v5  ;;  %v5865_v30 = vadd.f32 %v13787_v26, %v5319_v6  ;;  %v5321_v8 = vpop.f32.mrb[91].mxu1  ;;  %v9112_v20 = vld [vmem:[%s9824_s10 + $0xa0] sm:$0xff] }
 0x6e0   : > { %v9113_v8 = vld [vmem:[%s9824_s10 + $0xb8] sm:$0xff] }
 0x6e1   : > { %v6145_v22 = vadd.f32 %v5865_v30, %v16412_v49  ;;  %8816 = vmatmul.mubr.bf16.gmra.mrb[136].mxu0 %v6496_v54  ;;  %v6279_v9 = vadd.f32 %v13887_v13, %v6144_v23  ;;  %v16415_v23 = vld [vmem:[#allocation38_spill] sm:$0xff] }
 0x6e3   : > { %v6280_v1 = vadd.f32 %v13887_v13, %v6145_v22  ;;  %v6407_v26 = vmax.f32 %v6279_v9, 0.0  ;;  %v9114_v9 = vld [vmem:[%s9824_s10 + $0xa8] sm:$0xff] }
 0x6e4   : > { %v5324_v0 = vpop.f32.mrb[92].mxu1  ;;  %v8765_v12 = vpop.f32.mrb[84].mxu0 }
 0x6e5   : > { %v6408_v18 = vmax.f32 %v6280_v1, 0.0  ;;  %v5870_v35 = vadd.f32 %v13777_v41, %v5324_v0  ;;  %v6717_v46 = vadd.f32 %v8765_v12, %v13986_v43  ;;  %v5326_v16 = vpop.f32.mrb[93].mxu1  ;;  %v6708_v57 = vpop.f32.mrb[85].mxu0 }
 0x6e6   : > { %v6709_v15 = vadd.f32 %v13986_v43, %v6708_v57  ;;  %v5327_v14 = vpop.f32.mrb[94].mxu1  ;;  %v8766_v27 = vpop.f32.mrb[86].mxu0 }
 0x6e7   : > { %v6146_v17 = vadd.f32 %v5870_v35, %v16413_v21  ;;  %v7161_v4 = vadd.f32 %v9111_v59, %v6717_v46  ;;  %v5873_v36 = vadd.f32 %v16414_v11, %v5327_v14  ;;  %v6720_v28 = vadd.f32 %v8766_v27, %v13986_v43  ;;  %v5329_v41 = vpop.f32.mrb[95].mxu1  ;;  %v6711_v19 = vpop.f32.mrb[87].mxu0  ;;  %v16416_v27 = vld [vmem:[#allocation214_spill] sm:$0xff] }
 0x6e8   : > { %v7159_v10 = vadd.f32 %v9112_v20, %v6709_v15  ;;  %v6712_v42 = vadd.f32 %v13986_v43, %v6711_v19  ;;  %v6497_v6 = vpack.c.bf16 %v6408_v18, %v6407_v26  ;;  %v16418_v20 = vld [vmem:[#allocation63_spill] sm:$0xff] }
 0x6e9   : > { %v6281_v54 = vadd.f32 %v13887_v13, %v6146_v17  ;;  %v7289_v5 = vmax.f32 %v7161_v4, 0.0  ;;  %v6147_v30 = vadd.f32 %v5873_v36, %v16415_v23  ;;  %v7162_v49 = vadd.f32 %v9113_v8, %v6720_v28  ;;  %v16417_v4 = vld [vmem:[#allocation62_spill] sm:$0xff]  ;;  %v16419_v8 = vld [vmem:[#allocation59_spill] sm:$0xff] }
 0x6ea   : > { %v7287_v22 = vmax.f32 %v7159_v10, 0.0  ;;  %v7160_v1 = vadd.f32 %v9114_v9, %v6712_v42  ;;  %8819 = vmatprep.mubr.bf16.mxu0 %v6497_v6 }
 0x6eb   : > { %7417 = vst [vmem:[%s14006_s8 + $0xb0] sm:$0xff] %v7289_v5  ;;  %v6282_v0 = vadd.f32 %v13887_v13, %v6147_v30  ;;  %v7290_v12 = vmax.f32 %v7162_v49, 0.0  ;;  %v6409_v46 = vmax.f32 %v6281_v54, 0.0 }
 0x6ec   : > { %7415 = vst [vmem:[%s14006_s8 + $0xa0] sm:$0xff] %v7287_v22  ;;  %v7288_v35 = vmax.f32 %v7160_v1, 0.0  ;;  %v5332_v18 = vpop.f32.mrb[96].mxu1  ;;  %v9115_v22 = vld [vmem:[%s9824_s10 + $0xd0] sm:$0xff] }
 0x6ed   : > { %v6410_v16 = vmax.f32 %v6282_v0, 0.0  ;;  %7418 = vst [vmem:[%s14006_s8 + $0xb8] sm:$0xff] %v7290_v12  ;;  %v5878_v57 = vadd.f32 %v13797_v2, %v5332_v18  ;;  %v5334_v26 = vpop.f32.mrb[97].mxu1  ;;  %v16420_v1 = vld [vmem:[#allocation113_spill] sm:$0xff] }
 0x6ee   : > { %7416 = vst [vmem:[%s14006_s8 + $0xa8] sm:$0xff] %v7288_v35  ;;  %v5335_v15 = vpop.f32.mrb[98].mxu1 }
 0x6ef   : > { %v6498_v14 = vpack.c.bf16 %v6410_v16, %v6409_v46  ;;  %v6148_v21 = vadd.f32 %v5878_v57, %v16416_v27  ;;  %v5881_v17 = vadd.f32 %v13803_v47, %v5335_v15  ;;  %v5337_v59 = vpop.f32.mrb[99].mxu1  ;;  %v9116_v46 = vld [vmem:[%s9824_s10 + $0xc0] sm:$0xff] }
 0x6f0   : > { %v16421_v27 = vld [vmem:[#allocation215_spill] sm:$0xff] }
 0x6f1   : > { %v6149_v11 = vadd.f32 %v5881_v17, %v16417_v4  ;;  %8820 = vmatmul.mubr.bf16.gmra.mrb[140].mxu0 %v6498_v14  ;;  %v6283_v36 = vadd.f32 %v13887_v13, %v6148_v21  ;;  %v9117_v17 = vld [vmem:[%s9824_s10 + $0xd8] sm:$0xff] }
 0x6f3   : > { %v6284_v28 = vadd.f32 %v13887_v13, %v6149_v11  ;;  %v6411_v47 = vmax.f32 %v6283_v36, 0.0  ;;  %v9118_v11 = vld [vmem:[%s9824_s10 + $0xc8] sm:$0xff] }
 0x6f4   : > { %v5340_v41 = vpop.f32.mrb[100].mxu1  ;;  %v8769_v19 = vpop.f32.mrb[88].mxu0 }
 0x6f5   : > { %v6412_v2 = vmax.f32 %v6284_v28, 0.0  ;;  %v5886_v10 = vadd.f32 %v16418_v20, %v5340_v41  ;;  %v6733_v42 = vadd.f32 %v8769_v19, %v13986_v43  ;;  %v5342_v6 = vpop.f32.mrb[101].mxu1  ;;  %v6724_v54 = vpop.f32.mrb[89].mxu0 }
 0x6f6   : > { %v6725_v5 = vadd.f32 %v13986_v43, %v6724_v54  ;;  %v5343_v23 = vpop.f32.mrb[102].mxu1  ;;  %v8770_v30 = vpop.f32.mrb[90].mxu0 }
 0x6f7   : > { %v6150_v49 = vadd.f32 %v5886_v10, %v16419_v8  ;;  %v7165_v9 = vadd.f32 %v9115_v22, %v6733_v42  ;;  %v5889_v0 = vadd.f32 %v16420_v1, %v5343_v23  ;;  %v6736_v12 = vadd.f32 %v8770_v30, %v13986_v43  ;;  %v5345_v35 = vpop.f32.mrb[103].mxu1  ;;  %v6727_v18 = vpop.f32.mrb[91].mxu0 }
 0x6f8   : > { %v7163_v16 = vadd.f32 %v9116_v46, %v6725_v5  ;;  %v6728_v57 = vadd.f32 %v13986_v43, %v6727_v18  ;;  %v6499_v26 = vpack.c.bf16 %v6412_v2, %v6411_v47  ;;  %v16422_v5 = vld [vmem:[#allocation64_spill] sm:$0xff] }
 0x6f9   : > { %v6285_v15 = vadd.f32 %v13887_v13, %v6150_v49  ;;  %v7293_v14 = vmax.f32 %v7165_v9, 0.0  ;;  %v6151_v21 = vadd.f32 %v5889_v0, %v16421_v27  ;;  %v7166_v59 = vadd.f32 %v9117_v17, %v6736_v12  ;;  %v16423_v49 = vld [vmem:[#allocation254_spill] sm:$0xff] }
 0x6fa   : > { %v7291_v4 = vmax.f32 %v7163_v16, 0.0  ;;  %v7164_v36 = vadd.f32 %v9118_v11, %v6728_v57  ;;  %8823 = vmatprep.mubr.bf16.mxu0 %v6499_v26 }
 0x6fb   : > { %7421 = vst [vmem:[%s14006_s8 + $0xd0] sm:$0xff] %v7293_v14  ;;  %v6286_v28 = vadd.f32 %v13887_v13, %v6151_v21  ;;  %v7294_v41 = vmax.f32 %v7166_v59, 0.0  ;;  %v6413_v20 = vmax.f32 %v6285_v15, 0.0  ;;  %v16424_v14 = vld [vmem:[#allocation36_spill] sm:$0xff]  ;;  %v9119_v21 = vld [vmem:[%s9824_s10 + $0xf0] sm:$0xff] }
 0x6fc   : > { %7419 = vst [vmem:[%s14006_s8 + $0xc0] sm:$0xff] %v7291_v4  ;;  %v7292_v19 = vmax.f32 %v7164_v36, 0.0  ;;  %v5348_v2 = vpop.f32.mrb[104].mxu1  ;;  %v16425_v59 = vld [vmem:[#allocation114_spill] sm:$0xff] }
 0x6fd   : > { %v6414_v10 = vmax.f32 %v6286_v28, 0.0  ;;  %7422 = vst [vmem:[%s14006_s8 + $0xd8] sm:$0xff] %v7294_v41  ;;  %v5894_v42 = vadd.f32 %v13813_v53, %v5348_v2  ;;  %v5350_v6 = vpop.f32.mrb[105].mxu1  ;;  %v9120_v28 = vld [vmem:[%s9824_s10 + $0xe0] sm:$0xff] }
 0x6fe   : > { %7420 = vst [vmem:[%s14006_s8 + $0xc8] sm:$0xff] %v7292_v19  ;;  %v5351_v54 = vpop.f32.mrb[106].mxu1 }
 0x6ff   : > { %v6500_v47 = vpack.c.bf16 %v6414_v10, %v6413_v20  ;;  %v6152_v23 = vadd.f32 %v5894_v42, %v16422_v5  ;;  %v5897_v30 = vadd.f32 %v13819_v56, %v5351_v54  ;;  %v5353_v8 = vpop.f32.mrb[107].mxu1  ;;  %v16426_v42 = vld [vmem:[#allocation65_spill] sm:$0xff]  ;;  %v9121_v54 = vld [vmem:[%s9824_s10 + $0xf8] sm:$0xff] }
 0x701   : > { %v6153_v22 = vadd.f32 %v5897_v30, %v16423_v49  ;;  %8824 = vmatmul.mubr.bf16.gmra.mrb[144].mxu0 %v6500_v47  ;;  %v6287_v9 = vadd.f32 %v13887_v13, %v6152_v23  ;;  %v9122_v23 = vld [vmem:[%s9824_s10 + $0xe8] sm:$0xff] }
 0x703   : > { %v6288_v1 = vadd.f32 %v13887_v13, %v6153_v22  ;;  %v6415_v56 = vmax.f32 %v6287_v9, 0.0 }
 0x704   : > { %v5356_v0 = vpop.f32.mrb[108].mxu1  ;;  %v8773_v12 = vpop.f32.mrb[92].mxu0 }
 0x705   : > { %v6416_v53 = vmax.f32 %v6288_v1, 0.0  ;;  %v5902_v35 = vadd.f32 %v13809_v3, %v5356_v0  ;;  %v6749_v18 = vadd.f32 %v8773_v12, %v13986_v43  ;;  %v5358_v46 = vpop.f32.mrb[109].mxu1  ;;  %v6740_v16 = vpop.f32.mrb[93].mxu0 }
 0x706   : > { %v6741_v57 = vadd.f32 %v13986_v43, %v6740_v16  ;;  %v5359_v26 = vpop.f32.mrb[110].mxu1  ;;  %v8774_v15 = vpop.f32.mrb[94].mxu0  ;;  %v16427_v46 = vld [vmem:[#allocation218_spill] sm:$0xff] }
 0x707   : > { %v6154_v27 = vadd.f32 %v5902_v35, %v16424_v14  ;;  %v7169_v17 = vadd.f32 %v9119_v21, %v6749_v18  ;;  %v5905_v4 = vadd.f32 %v16425_v59, %v5359_v26  ;;  %v6752_v11 = vadd.f32 %v8774_v15, %v13986_v43  ;;  %v5361_v3 = vpop.f32.mrb[111].mxu1  ;;  %v6743_v36 = vpop.f32.mrb[95].mxu0  ;;  %v16428_v26 = vld [vmem:[#allocation45_spill] sm:$0xff]  ;;  %v16429_v59 = vld [vmem:[#allocation236_spill] sm:$0xff] }
 0x708   : > { %v7167_v41 = vadd.f32 %v9120_v28, %v6741_v57  ;;  %v6744_v19 = vadd.f32 %v13986_v43, %v6743_v36  ;;  %v6501_v2 = vpack.c.bf16 %v6416_v53, %v6415_v56 }
 0x709   : > { %v6289_v20 = vadd.f32 %v13887_v13, %v6154_v27  ;;  %v7297_v10 = vmax.f32 %v7169_v17, 0.0  ;;  %v6155_v6 = vadd.f32 %v5905_v4, %v16426_v42  ;;  %v7170_v47 = vadd.f32 %v9121_v54, %v6752_v11 }
 0x70a   : > { %v7295_v5 = vmax.f32 %v7167_v41, 0.0  ;;  %v7168_v30 = vadd.f32 %v9122_v23, %v6744_v19  ;;  %8827 = vmatprep.mubr.bf16.mxu0 %v6501_v2  ;;  %v16430_v2 = vld [vmem:[#allocation253_spill] sm:$0xff] }
 0x70b   : > { %7425 = vst [vmem:[%s14006_s8 + $0xf0] sm:$0xff] %v7297_v10  ;;  %v6290_v8 = vadd.f32 %v13887_v13, %v6155_v6  ;;  %v7298_v49 = vmax.f32 %v7170_v47, 0.0  ;;  %v6417_v1 = vmax.f32 %v6289_v20, 0.0  ;;  %v9123_v10 = vld [vmem:[%s9824_s10 + $0x110] sm:$0xff] }
 0x70c   : > { %7423 = vst [vmem:[%s14006_s8 + $0xe0] sm:$0xff] %v7295_v5  ;;  %v7296_v22 = vmax.f32 %v7168_v30, 0.0  ;;  %v5364_v9 = vpop.f32.mrb[112].mxu1  ;;  %v16431_v6 = vld [vmem:[#allocation238_spill] sm:$0xff]  ;;  %v9124_v30 = vld [vmem:[%s9824_s10 + $0x100] sm:$0xff] }
 0x70d   : > { %v6418_v0 = vmax.f32 %v6290_v8, 0.0  ;;  %7426 = vst [vmem:[%s14006_s8 + $0xf8] sm:$0xff] %v7298_v49  ;;  %v5910_v12 = vadd.f32 %v13829_v33, %v5364_v9  ;;  %v5366_v53 = vpop.f32.mrb[113].mxu1 }
 0x70e   : > { %7424 = vst [vmem:[%s14006_s8 + $0xe8] sm:$0xff] %v7296_v22  ;;  %v5367_v35 = vpop.f32.mrb[114].mxu1  ;;  %v9125_v53 = vld [vmem:[%s9824_s10 + $0x118] sm:$0xff] }
 0x70f   : > { %v6502_v18 = vpack.c.bf16 %v6418_v0, %v6417_v1  ;;  %v6156_v16 = vadd.f32 %v5910_v12, %v16427_v46  ;;  %v5913_v56 = vadd.f32 %v13835_v44, %v5367_v35  ;;  %v5369_v57 = vpop.f32.mrb[115].mxu1  ;;  %v16432_v0 = vld [vmem:[#allocation70_spill] sm:$0xff]  ;;  %v9126_v46 = vld [vmem:[%s9824_s10 + $0x108] sm:$0xff] }
 0x711   : > { %v6157_v15 = vadd.f32 %v5913_v56, %v16428_v26  ;;  %8828 = vmatmul.mubr.bf16.gmra.mrb[148].mxu0 %v6502_v18  ;;  %v6291_v14 = vadd.f32 %v13887_v13, %v6156_v16 }
 0x713   : > { %v6292_v27 = vadd.f32 %v13887_v13, %v6157_v15  ;;  %v6419_v44 = vmax.f32 %v6291_v14, 0.0 }
 0x714   : > { %v5372_v21 = vpop.f32.mrb[116].mxu1  ;;  %v8777_v17 = vpop.f32.mrb[96].mxu0 }
 0x715   : > { %v6420_v33 = vmax.f32 %v6292_v27, 0.0  ;;  %v5918_v4 = vadd.f32 %v16429_v59, %v5372_v21  ;;  %v6765_v11 = vadd.f32 %v8777_v17, %v13986_v43  ;;  %v5374_v3 = vpop.f32.mrb[117].mxu1  ;;  %v6756_v36 = vpop.f32.mrb[97].mxu0 }
 0x716   : > { %v6757_v28 = vadd.f32 %v13986_v43, %v6756_v36  ;;  %v5375_v41 = vpop.f32.mrb[118].mxu1  ;;  %v8778_v19 = vpop.f32.mrb[98].mxu0 }
 0x717   : > { %v6158_v20 = vadd.f32 %v5918_v4, %v16430_v2  ;;  %v7173_v42 = vadd.f32 %v9123_v10, %v6765_v11  ;;  %v5921_v54 = vadd.f32 %v16431_v6, %v5375_v41  ;;  %v6768_v47 = vadd.f32 %v8778_v19, %v13986_v43  ;;  %v5377_v5 = vpop.f32.mrb[119].mxu1  ;;  %v6759_v23 = vpop.f32.mrb[99].mxu0  ;;  %v16433_v4 = vld [vmem:[#allocation72_spill] sm:$0xff] }
 0x718   : > { %v7171_v8 = vadd.f32 %v9124_v30, %v6757_v28  ;;  %v6760_v49 = vadd.f32 %v13986_v43, %v6759_v23  ;;  %v6503_v22 = vpack.c.bf16 %v6420_v33, %v6419_v44  ;;  %v16434_v44 = vld [vmem:[#allocation115_spill] sm:$0xff] }
 0x719   : > { %v6293_v9 = vadd.f32 %v13887_v13, %v6158_v20  ;;  %v7301_v1 = vmax.f32 %v7173_v42, 0.0  ;;  %v6159_v12 = vadd.f32 %v5921_v54, %v16432_v0  ;;  %v7174_v35 = vadd.f32 %v9125_v53, %v6768_v47  ;;  %v14197_v28 = vld [vmem:[#allocation10] ss:$0 sm:$0xff] }
 0x71a   : > { %v7299_v18 = vmax.f32 %v7171_v8, 0.0  ;;  %v7172_v16 = vadd.f32 %v9126_v46, %v6760_v49  ;;  %8831 = vmatprep.mubr.bf16.mxu0 %v6503_v22  ;;  %v16435_v30 = vld [vmem:[#allocation71_spill] sm:$0xff]  ;;  %v9128_v49 = vld [vmem:[%s9824_s10 + $0x130] sm:$0xff] }
 0x71b   : > { %7429 = vst [vmem:[%s14006_s8 + $0x110] sm:$0xff] %v7301_v1  ;;  %v6294_v56 = vadd.f32 %v13887_v13, %v6159_v12  ;;  %v7302_v57 = vmax.f32 %v7174_v35, 0.0  ;;  %v6421_v14 = vmax.f32 %v6293_v9, 0.0  ;;  %v16436_v9 = vld [vmem:[#allocation117_spill] sm:$0xff]  ;;  %v9129_v53 = vld [vmem:[%s9824_s10 + $0x120] sm:$0xff] }
 0x71c   : > { %7427 = vst [vmem:[%s14006_s8 + $0x100] sm:$0xff] %v7299_v18  ;;  %v7300_v26 = vmax.f32 %v7172_v16, 0.0  ;;  %v5380_v15 = vpop.f32.mrb[120].mxu1 }
 0x71d   : > { %v6422_v27 = vmax.f32 %v6294_v56, 0.0  ;;  %7430 = vst [vmem:[%s14006_s8 + $0x118] sm:$0xff] %v7302_v57  ;;  %v5926_v21 = vadd.f32 %v13845_v40, %v5380_v15  ;;  %v5382_v17 = vpop.f32.mrb[121].mxu1  ;;  %v16437_v57 = vld [vmem:[#allocation220_spill] sm:$0xff]  ;;  %v9130_v15 = vld [vmem:[%s9824_s10 + $0x138] sm:$0xff] }
 0x71e   : > { %7428 = vst [vmem:[%s14006_s8 + $0x108] sm:$0xff] %v7300_v26  ;;  %v5383_v33 = vpop.f32.mrb[122].mxu1 }
 0x71f   : > { %v6504_v59 = vpack.c.bf16 %v6422_v27, %v6421_v14  ;;  %v6160_v11 = vadd.f32 %v5926_v21, %v16433_v4  ;;  %v5929_v3 = vadd.f32 %v13852_v62, %v5383_v33  ;;  %v5385_v36 = vpop.f32.mrb[123].mxu1  ;;  %v9131_v21 = vld [vmem:[%s9824_s10 + $0x128] sm:$0xff] }
 0x721   : > { %v6161_v13 = vadd.f32 %v5929_v3, %v16434_v44  ;;  %8832 = vmatmul.mubr.bf16.gmra.mrb[152].mxu0 %v6504_v59  ;;  %v6295_v41 = vadd.f32 %v14197_v28, %v6160_v11 }
 0x723   : > { %v6296_v19 = vadd.f32 %v14197_v28, %v6161_v13  ;;  %v6423_v54 = vmax.f32 %v6295_v41, 0.0 }
 0x724   : > { %v5388_v40 = vpop.f32.mrb[124].mxu1  ;;  %v8781_v2 = vpop.f32.mrb[100].mxu0 }
 0x725   : > { %v6424_v20 = vmax.f32 %v6296_v19, 0.0  ;;  %v5934_v10 = vadd.f32 %v13841_v63, %v5388_v40  ;;  %v6781_v42 = vadd.f32 %v8781_v2, %v13986_v43  ;;  %v5390_v62 = vpop.f32.mrb[125].mxu1  ;;  %v6772_v6 = vpop.f32.mrb[101].mxu0  ;;  %v16438_v40 = vld [vmem:[#allocation75_spill] sm:$0xff] }
 0x726   : > { %v6773_v47 = vadd.f32 %v13986_v43, %v6772_v6  ;;  %v5391_v5 = vpop.f32.mrb[126].mxu1  ;;  %v8782_v23 = vpop.f32.mrb[102].mxu0 }
 0x727   : > { %v6162_v8 = vadd.f32 %v5934_v10, %v16435_v30  ;;  %v7177_v22 = vadd.f32 %v9128_v49, %v6781_v42  ;;  %v5937_v1 = vadd.f32 %v16436_v9, %v5391_v5  ;;  %v6784_v0 = vadd.f32 %v8782_v23, %v13986_v43  ;;  %v5393_v63 = vpop.f32.mrb[127].mxu1  ;;  %v6775_v12 = vpop.f32.mrb[103].mxu0  ;;  %v16439_v42 = vld [vmem:[#allocation78_spill] sm:$0xff]  ;;  %v16440_v23 = vld [vmem:[#allocation61_spill] sm:$0xff] }
 0x728   : > { %v7175_v35 = vadd.f32 %v9129_v53, %v6773_v47  ;;  %v6776_v18 = vadd.f32 %v13986_v43, %v6775_v12  ;;  %v6505_v46 = vpack.c.bf16 %v6424_v20, %v6423_v54  ;;  %v16441_v63 = vld [vmem:[#allocation221_spill] sm:$0xff] }
 0x729   : > { %v6297_v16 = vadd.f32 %v14197_v28, %v6162_v8  ;;  %v7305_v56 = vmax.f32 %v7177_v22, 0.0  ;;  %v6163_v26 = vadd.f32 %v5937_v1, %v16437_v57  ;;  %v7178_v14 = vadd.f32 %v9130_v15, %v6784_v0  ;;  %v9132_v53 = vld [vmem:[%s9824_s10 + $0x150] sm:$0xff] }
 0x72a   : > { %v7303_v27 = vmax.f32 %v7175_v35, 0.0  ;;  %v7176_v17 = vadd.f32 %v9131_v21, %v6776_v18  ;;  %8835 = vmatprep.mubr.bf16.mxu0 %v6505_v46  ;;  %v16442_v18 = vld [vmem:[#allocation122_spill] sm:$0xff] }
 0x72b   : > { %7433 = vst [vmem:[%s14006_s8 + $0x130] sm:$0xff] %v7305_v56  ;;  %v6298_v33 = vadd.f32 %v14197_v28, %v6163_v26  ;;  %v7306_v59 = vmax.f32 %v7178_v14, 0.0  ;;  %v6425_v3 = vmax.f32 %v6297_v16, 0.0  ;;  %v9133_v26 = vld [vmem:[%s9824_s10 + $0x140] sm:$0xff] }
 0x72c   : > { %7431 = vst [vmem:[%s14006_s8 + $0x120] sm:$0xff] %v7303_v27  ;;  %v7304_v4 = vmax.f32 %v7176_v17, 0.0  ;;  %v5396_v11 = vpop.f32.mrb[128].mxu1 }
 0x72d   : > { %v6426_v36 = vmax.f32 %v6298_v33, 0.0  ;;  %7434 = vst [vmem:[%s14006_s8 + $0x138] sm:$0xff] %v7306_v59  ;;  %v5942_v44 = vadd.f32 %v13861_v38, %v5396_v11  ;;  %v5398_v13 = vpop.f32.mrb[129].mxu1  ;;  %v16443_v33 = vld [vmem:[#allocation43_spill] sm:$0xff] }
 0x72e   : > { %7432 = vst [vmem:[%s14006_s8 + $0x128] sm:$0xff] %v7304_v4  ;;  %v5399_v41 = vpop.f32.mrb[130].mxu1  ;;  %v9134_v4 = vld [vmem:[%s9824_s10 + $0x158] sm:$0xff] }
 0x72f   : > { %v6506_v19 = vpack.c.bf16 %v6426_v36, %v6425_v3  ;;  %v6164_v2 = vadd.f32 %v5942_v44, %v16438_v40  ;;  %v5945_v20 = vadd.f32 %v13867_v31, %v5399_v41  ;;  %v5401_v10 = vpop.f32.mrb[131].mxu1  ;;  %v9135_v36 = vld [vmem:[%s9824_s10 + $0x148] sm:$0xff] }
 0x731   : > { %v6165_v62 = vadd.f32 %v5945_v20, %v16439_v42  ;;  %8836 = vmatmul.mubr.bf16.gmra.mrb[156].mxu0 %v6506_v19  ;;  %v6299_v6 = vadd.f32 %v14197_v28, %v6164_v2 }
 0x733   : > { %v6300_v54 = vadd.f32 %v14197_v28, %v6165_v62  ;;  %v6427_v31 = vmax.f32 %v6299_v6, 0.0 }
 0x734   : > { %v5404_v47 = vpop.f32.mrb[132].mxu1  ;;  %v8785_v5 = vpop.f32.mrb[104].mxu0 }
 0x735   : > { %v6428_v38 = vmax.f32 %v6300_v54, 0.0  ;;  %v5950_v30 = vadd.f32 %v16440_v23, %v5404_v47  ;;  %v6797_v8 = vadd.f32 %v8785_v5, %v13986_v43  ;;  %v5406_v49 = vpop.f32.mrb[133].mxu1  ;;  %v6788_v22 = vpop.f32.mrb[105].mxu0  ;;  %v16444_v54 = vld [vmem:[#allocation274_spill] sm:$0xff] }
 0x736   : > { %v6789_v9 = vadd.f32 %v13986_v43, %v6788_v22  ;;  %v5407_v1 = vpop.f32.mrb[134].mxu1  ;;  %v8786_v0 = vpop.f32.mrb[106].mxu0  ;;  %v16445_v23 = vld [vmem:[#allocation82_spill] sm:$0xff] }
 0x737   : > { %v6166_v12 = vadd.f32 %v5950_v30, %v16441_v63  ;;  %v7181_v35 = vadd.f32 %v9132_v53, %v6797_v8  ;;  %v5953_v46 = vadd.f32 %v16442_v18, %v5407_v1  ;;  %v6800_v16 = vadd.f32 %v8786_v0, %v13986_v43  ;;  %v5409_v56 = vpop.f32.mrb[135].mxu1  ;;  %v6791_v57 = vpop.f32.mrb[107].mxu0  ;;  %v16446_v18 = vld [vmem:[#allocation258_spill] sm:$0xff] }
 0x738   : > { %v7179_v15 = vadd.f32 %v9133_v26, %v6789_v9  ;;  %v6792_v14 = vadd.f32 %v13986_v43, %v6791_v57  ;;  %v6507_v27 = vpack.c.bf16 %v6428_v38, %v6427_v31  ;;  %v16447_v57 = vld [vmem:[#allocation120_spill] sm:$0xff] }
 0x739   : > { %v6301_v21 = vadd.f32 %v14197_v28, %v6166_v12  ;;  %v7309_v17 = vmax.f32 %v7181_v35, 0.0  ;;  %v6167_v59 = vadd.f32 %v5953_v46, %v16443_v33  ;;  %v7182_v11 = vadd.f32 %v9134_v4, %v6800_v16  ;;  %v9136_v16 = vld [vmem:[%s9824_s10 + $0x170] sm:$0xff] }
 0x73a   : > { %v7307_v3 = vmax.f32 %v7179_v15, 0.0  ;;  %v7180_v44 = vadd.f32 %v9135_v36, %v6792_v14  ;;  %8839 = vmatprep.mubr.bf16.mxu0 %v6507_v27  ;;  %v9137_v27 = vld [vmem:[%s9824_s10 + $0x160] sm:$0xff] }
 0x73b   : > { %7437 = vst [vmem:[%s14006_s8 + $0x150] sm:$0xff] %v7309_v17  ;;  %v6302_v13 = vadd.f32 %v14197_v28, %v6167_v59  ;;  %v7310_v41 = vmax.f32 %v7182_v11, 0.0  ;;  %v6429_v2 = vmax.f32 %v6301_v21, 0.0  ;;  %v14257_v17 = vld [vmem:[#allocation13] ss:$0 sm:$0xff] }
 0x73c   : > { %7435 = vst [vmem:[%s14006_s8 + $0x140] sm:$0xff] %v7307_v3  ;;  %v7308_v19 = vmax.f32 %v7180_v44, 0.0  ;;  %v5412_v40 = vpop.f32.mrb[136].mxu1  ;;  %v16448_v3 = vld [vmem:[#allocation224_spill] sm:$0xff]  ;;  %v9139_v44 = vld [vmem:[%s9824_s10 + $0x178] sm:$0xff] }
 0x73d   : > { %v6430_v20 = vmax.f32 %v6302_v13, 0.0  ;;  %7438 = vst [vmem:[%s14006_s8 + $0x158] sm:$0xff] %v7310_v41  ;;  %v5958_v10 = vadd.f32 %v13877_v24, %v5412_v40  ;;  %v5414_v42 = vpop.f32.mrb[137].mxu1  ;;  %v9140_v41 = vld [vmem:[%s9824_s10 + $0x168] sm:$0xff] }
 0x73e   : > { %7436 = vst [vmem:[%s14006_s8 + $0x148] sm:$0xff] %v7308_v19  ;;  %v5415_v62 = vpop.f32.mrb[138].mxu1 }
 0x73f   : > { %v6508_v6 = vpack.c.bf16 %v6430_v20, %v6429_v2  ;;  %v6168_v47 = vadd.f32 %v5958_v10, %v16444_v54  ;;  %v5961_v5 = vadd.f32 %v13883_v45, %v5415_v62  ;;  %v5417_v38 = vpop.f32.mrb[139].mxu1 }
 0x740   : > { %v16449_v38 = vld [vmem:[#allocation83_spill] sm:$0xff] }
 0x741   : > { %v6169_v30 = vadd.f32 %v5961_v5, %v16445_v23  ;;  %8840 = vmatmul.mubr.bf16.gmra.mrb[160].mxu0 %v6508_v6  ;;  %v6303_v8 = vadd.f32 %v14197_v28, %v6168_v47 }
 0x743   : > { %v6304_v49 = vadd.f32 %v14197_v28, %v6169_v30  ;;  %v6431_v45 = vmax.f32 %v6303_v8, 0.0 }
 0x744   : > { %v5420_v22 = vpop.f32.mrb[140].mxu1  ;;  %v8789_v31 = vpop.f32.mrb[108].mxu0 }
 0x745   : > { %v6432_v24 = vmax.f32 %v6304_v49, 0.0  ;;  %v5966_v9 = vadd.f32 %v13873_v39, %v5420_v22  ;;  %v6813_v1 = vadd.f32 %v8789_v31, %v13986_v43  ;;  %v5422_v0 = vpop.f32.mrb[141].mxu1  ;;  %v6804_v63 = vpop.f32.mrb[109].mxu0  ;;  %v16450_v49 = vld [vmem:[#allocation226_spill] sm:$0xff] }
 0x746   : > { %v6805_v12 = vadd.f32 %v13986_v43, %v6804_v63  ;;  %v5423_v53 = vpop.f32.mrb[142].mxu1  ;;  %v8790_v35 = vpop.f32.mrb[110].mxu0  ;;  %v16451_v0 = vld [vmem:[#allocation242_spill] sm:$0xff] }
 0x747   : > { %v6170_v46 = vadd.f32 %v5966_v9, %v16446_v18  ;;  %v7185_v56 = vadd.f32 %v9136_v16, %v6813_v1  ;;  %v5969_v26 = vadd.f32 %v16447_v57, %v5423_v53  ;;  %v6816_v15 = vadd.f32 %v8790_v35, %v13986_v43  ;;  %v5425_v39 = vpop.f32.mrb[143].mxu1  ;;  %v6807_v14 = vpop.f32.mrb[111].mxu0  ;;  %v16452_v16 = vld [vmem:[#allocation51_spill] sm:$0xff]  ;;  %v9141_v57 = vld [vmem:[%s9824_s10 + $0x190] sm:$0xff] }
 0x748   : > { %v7183_v21 = vadd.f32 %v9137_v27, %v6805_v12  ;;  %v6808_v33 = vadd.f32 %v14257_v17, %v6807_v14  ;;  %v6509_v59 = vpack.c.bf16 %v6432_v24, %v6431_v45 }
 0x749   : > { %v6305_v4 = vadd.f32 %v14197_v28, %v6170_v46  ;;  %v7313_v11 = vmax.f32 %v7185_v56, 0.0  ;;  %v6171_v36 = vadd.f32 %v5969_v26, %v16448_v3  ;;  %v7186_v13 = vadd.f32 %v9139_v44, %v6816_v15  ;;  %v16453_v15 = vld [vmem:[#allocation265_spill] sm:$0xff]  ;;  %v16454_v44 = vld [vmem:[#allocation84_spill] sm:$0xff] }
 0x74a   : > { %v7311_v43 = vmax.f32 %v7183_v21, 0.0  ;;  %v7184_v19 = vadd.f32 %v9140_v41, %v6808_v33  ;;  %8843 = vmatprep.mubr.bf16.mxu0 %v6509_v59  ;;  %v9142_v33 = vld [vmem:[%s9824_s10 + $0x180] sm:$0xff] }
 0x74b   : > { %7441 = vst [vmem:[%s14006_s8 + $0x170] sm:$0xff] %v7313_v11  ;;  %v6306_v40 = vadd.f32 %v14197_v28, %v6171_v36  ;;  %v7314_v2 = vmax.f32 %v7186_v13, 0.0  ;;  %v6433_v42 = vmax.f32 %v6305_v4, 0.0 }
 0x74c   : > { %7439 = vst [vmem:[%s14006_s8 + $0x160] sm:$0xff] %v7311_v43  ;;  %v7312_v20 = vmax.f32 %v7184_v19, 0.0  ;;  %v5428_v10 = vpop.f32.mrb[144].mxu1  ;;  %v9143_v43 = vld [vmem:[%s9824_s10 + $0x198] sm:$0xff] }
 0x74d   : > { %v6434_v62 = vmax.f32 %v6306_v40, 0.0  ;;  %7442 = vst [vmem:[%s14006_s8 + $0x178] sm:$0xff] %v7314_v2  ;;  %v5974_v6 = vadd.f32 %v13895_v32, %v5428_v10  ;;  %v5430_v54 = vpop.f32.mrb[145].mxu1  ;;  %v9144_v40 = vld [vmem:[%s9824_s10 + $0x188] sm:$0xff] }
 0x74e   : > { %7440 = vst [vmem:[%s14006_s8 + $0x168] sm:$0xff] %v7312_v20  ;;  %v5431_v47 = vpop.f32.mrb[146].mxu1 }
 0x74f   : > { %v6510_v5 = vpack.c.bf16 %v6434_v62, %v6433_v42  ;;  %v6172_v23 = vadd.f32 %v5974_v6, %v16449_v38  ;;  %v5977_v30 = vadd.f32 %v13901_v34, %v5431_v47  ;;  %v5433_v8 = vpop.f32.mrb[147].mxu1 }
 0x751   : > { %v6173_v22 = vadd.f32 %v5977_v30, %v16450_v49  ;;  %8844 = vmatmul.mubr.bf16.gmra.mrb[164].mxu0 %v6510_v5  ;;  %v6307_v31 = vadd.f32 %v14197_v28, %v6172_v23  ;;  %v16455_v30 = vld [vmem:[#allocation227_spill] sm:$0xff] }
 0x753   : > { %v6308_v24 = vadd.f32 %v14197_v28, %v6173_v22  ;;  %v6435_v34 = vmax.f32 %v6307_v31, 0.0  ;;  %v16456_v31 = vld [vmem:[#allocation48_spill] sm:$0xff] }
 0x754   : > { %v5436_v9 = vpop.f32.mrb[148].mxu1  ;;  %v8793_v1 = vpop.f32.mrb[112].mxu0 }
 0x755   : > { %v6436_v32 = vmax.f32 %v6308_v24, 0.0  ;;  %v5982_v63 = vadd.f32 %v16451_v0, %v5436_v9  ;;  %v6829_v45 = vadd.f32 %v14257_v17, %v8793_v1  ;;  %v5438_v12 = vpop.f32.mrb[149].mxu1  ;;  %v6820_v53 = vpop.f32.mrb[113].mxu0 }
 0x756   : > { %v6821_v35 = vadd.f32 %v14257_v17, %v6820_v53  ;;  %v5439_v18 = vpop.f32.mrb[150].mxu1  ;;  %v8794_v46 = vpop.f32.mrb[114].mxu0 }
 0x757   : > { %v6174_v56 = vadd.f32 %v5982_v63, %v16452_v16  ;;  %v7189_v26 = vadd.f32 %v9141_v57, %v6829_v45  ;;  %v5985_v39 = vadd.f32 %v16453_v15, %v5439_v18  ;;  %v6832_v14 = vadd.f32 %v14257_v17, %v8794_v46  ;;  %v5441_v27 = vpop.f32.mrb[151].mxu1  ;;  %v6823_v21 = vpop.f32.mrb[115].mxu0  ;;  %v16457_v63 = vld [vmem:[#allocation124_spill] sm:$0xff]  ;;  %v16458_v16 = vld [vmem:[#allocation277_spill] sm:$0xff]  ;;  %v16459_v15 = vld [vmem:[#allocation127_spill] sm:$0xff] }
 0x758   : > { %v7187_v59 = vadd.f32 %v9142_v33, %v6821_v35  ;;  %v6824_v4 = vadd.f32 %v14257_v17, %v6823_v21  ;;  %v6511_v11 = vpack.c.bf16 %v6436_v32, %v6435_v34  ;;  %v9145_v57 = vld [vmem:[%s9824_s10 + $0x1b0] sm:$0xff]  ;;  %v9146_v33 = vld [vmem:[%s9824_s10 + $0x1a0] sm:$0xff] }
 0x759   : > { %v6309_v3 = vadd.f32 %v14197_v28, %v6174_v56  ;;  %v7317_v36 = vmax.f32 %v7189_v26, 0.0  ;;  %v6175_v13 = vadd.f32 %v5985_v39, %v16454_v44  ;;  %v7190_v41 = vadd.f32 %v9143_v43, %v6832_v14  ;;  %v16460_v44 = vld [vmem:[#allocation87_spill] sm:$0xff] }
 0x75a   : > { %v7315_v19 = vmax.f32 %v7187_v59, 0.0  ;;  %v7188_v2 = vadd.f32 %v9144_v40, %v6824_v4  ;;  %8847 = vmatprep.mubr.bf16.mxu0 %v6511_v11  ;;  %v9147_v43 = vld [vmem:[%s9824_s10 + $0x1b8] sm:$0xff]  ;;  %v9148_v40 = vld [vmem:[%s9824_s10 + $0x1a8] sm:$0xff] }
 0x75b   : > { %7445 = vst [vmem:[%s14006_s8 + $0x190] sm:$0xff] %v7317_v36  ;;  %v6310_v20 = vadd.f32 %v14197_v28, %v6175_v13  ;;  %v7318_v10 = vmax.f32 %v7190_v41, 0.0  ;;  %v6437_v6 = vmax.f32 %v6309_v3, 0.0 }
 0x75c   : > { %7443 = vst [vmem:[%s14006_s8 + $0x180] sm:$0xff] %v7315_v19  ;;  %v7316_v42 = vmax.f32 %v7188_v2, 0.0  ;;  %v5444_v62 = vpop.f32.mrb[152].mxu1 }
 0x75d   : > { %v6438_v54 = vmax.f32 %v6310_v20, 0.0  ;;  %7446 = vst [vmem:[%s14006_s8 + $0x198] sm:$0xff] %v7318_v10  ;;  %v5990_v47 = vadd.f32 %v13911_v60, %v5444_v62  ;;  %v5446_v5 = vpop.f32.mrb[153].mxu1 }
 0x75e   : > { %7444 = vst [vmem:[%s14006_s8 + $0x188] sm:$0xff] %v7316_v42  ;;  %v5447_v38 = vpop.f32.mrb[154].mxu1 }
 0x75f   : > { %v6512_v23 = vpack.c.bf16 %v6438_v54, %v6437_v6  ;;  %v6176_v8 = vadd.f32 %v5990_v47, %v16455_v30  ;;  %v5993_v49 = vadd.f32 %v13917_v25, %v5447_v38  ;;  %v5449_v22 = vpop.f32.mrb[155].mxu1  ;;  %v16461_v30 = vld [vmem:[#allocation90_spill] sm:$0xff] }
 0x761   : > { %v6177_v24 = vadd.f32 %v5993_v49, %v16456_v31  ;;  %8848 = vmatmul.mubr.bf16.gmra.mrb[168].mxu0 %v6512_v23  ;;  %v6311_v9 = vadd.f32 %v14197_v28, %v6176_v8  ;;  %v16462_v31 = vld [vmem:[#allocation260_spill] sm:$0xff] }
 0x763   : > { %v6312_v1 = vadd.f32 %v14197_v28, %v6177_v24  ;;  %v6439_v25 = vmax.f32 %v6311_v9, 0.0 }
 0x764   : > { %v5452_v32 = vpop.f32.mrb[156].mxu1  ;;  %v8797_v0 = vpop.f32.mrb[116].mxu0 }
 0x765   : > { %v6440_v60 = vmax.f32 %v6312_v1, 0.0  ;;  %v5998_v45 = vadd.f32 %v16457_v63, %v5452_v32  ;;  %v6845_v12 = vadd.f32 %v14257_v17, %v8797_v0  ;;  %v5454_v53 = vpop.f32.mrb[157].mxu1  ;;  %v6836_v34 = vpop.f32.mrb[117].mxu0 }
 0x766   : > { %v6837_v35 = vadd.f32 %v14257_v17, %v6836_v34  ;;  %v5455_v18 = vpop.f32.mrb[158].mxu1  ;;  %v8798_v46 = vpop.f32.mrb[118].mxu0 }
 0x767   : > { %v6178_v56 = vadd.f32 %v5998_v45, %v16458_v16  ;;  %v7193_v26 = vadd.f32 %v9145_v57, %v6845_v12  ;;  %v6001_v39 = vadd.f32 %v16459_v15, %v5455_v18  ;;  %v6848_v14 = vadd.f32 %v14257_v17, %v8798_v46  ;;  %v5457_v27 = vpop.f32.mrb[159].mxu1  ;;  %v6839_v21 = vpop.f32.mrb[119].mxu0  ;;  %v16464_v18 = vld [vmem:[#allocation89_spill] sm:$0xff] }
 0x768   : > { %v7191_v59 = vadd.f32 %v9146_v33, %v6837_v35  ;;  %v6840_v4 = vadd.f32 %v14257_v17, %v6839_v21  ;;  %v6513_v11 = vpack.c.bf16 %v6440_v60, %v6439_v25  ;;  %v16463_v60 = vld [vmem:[#allocation126_spill] sm:$0xff]  ;;  %v16465_v57 = vld [vmem:[#allocation245_spill] sm:$0xff]  ;;  %v9150_v27 = vld [vmem:[%s9824_s10 + $0x1c0] sm:$0xff] }
 0x769   : > { %v6313_v3 = vadd.f32 %v14197_v28, %v6178_v56  ;;  %v7321_v36 = vmax.f32 %v7193_v26, 0.0  ;;  %v6179_v13 = vadd.f32 %v6001_v39, %v16460_v44  ;;  %v7194_v41 = vadd.f32 %v9147_v43, %v6848_v14  ;;  %v9149_v16 = vld [vmem:[%s9824_s10 + $0x1d0] sm:$0xff]  ;;  %v9151_v44 = vld [vmem:[%s9824_s10 + $0x1d8] sm:$0xff] }
 0x76a   : > { %v7319_v19 = vmax.f32 %v7191_v59, 0.0  ;;  %v7192_v2 = vadd.f32 %v9148_v40, %v6840_v4  ;;  %8851 = vmatprep.mubr.bf16.mxu0 %v6513_v11 }
 0x76b   : > { %7449 = vst [vmem:[%s14006_s8 + $0x1b0] sm:$0xff] %v7321_v36  ;;  %v6314_v20 = vadd.f32 %v14197_v28, %v6179_v13  ;;  %v7322_v10 = vmax.f32 %v7194_v41, 0.0  ;;  %v6441_v6 = vmax.f32 %v6313_v3, 0.0  ;;  %v16466_v3 = vld [vmem:[#allocation272_spill] sm:$0xff] }
 0x76c   : > { %7447 = vst [vmem:[%s14006_s8 + $0x1a0] sm:$0xff] %v7319_v19  ;;  %v7320_v42 = vmax.f32 %v7192_v2, 0.0  ;;  %v5460_v62 = vpop.f32.mrb[160].mxu1  ;;  %v9152_v41 = vld [vmem:[%s9824_s10 + $0x1c8] sm:$0xff] }
 0x76d   : > { %v6442_v54 = vmax.f32 %v6314_v20, 0.0  ;;  %7450 = vst [vmem:[%s14006_s8 + $0x1b8] sm:$0xff] %v7322_v10  ;;  %v6006_v47 = vadd.f32 %v13927_v55, %v5460_v62  ;;  %v5462_v5 = vpop.f32.mrb[161].mxu1 }
 0x76e   : > { %7448 = vst [vmem:[%s14006_s8 + $0x1a8] sm:$0xff] %v7320_v42  ;;  %v5463_v38 = vpop.f32.mrb[162].mxu1 }
 0x76f   : > { %v6514_v23 = vpack.c.bf16 %v6442_v54, %v6441_v6  ;;  %v6180_v8 = vadd.f32 %v6006_v47, %v16461_v30  ;;  %v6009_v49 = vadd.f32 %v13933_v37, %v5463_v38  ;;  %v5465_v22 = vpop.f32.mrb[163].mxu1  ;;  %v16467_v38 = vld [vmem:[#allocation230_spill] sm:$0xff] }
 0x770   : > { %v16468_v22 = vld [vmem:[#allocation57_spill] sm:$0xff] }
 0x771   : > { %v6181_v24 = vadd.f32 %v6009_v49, %v16462_v31  ;;  %8852 = vmatmul.mubr.bf16.gmra.mrb[172].mxu0 %v6514_v23  ;;  %v6315_v9 = vadd.f32 %v14197_v28, %v6180_v8 }
 0x773   : > { %v6316_v1 = vadd.f32 %v14197_v28, %v6181_v24  ;;  %v6443_v37 = vmax.f32 %v6315_v9, 0.0 }
 0x774   : > { %v5468_v32 = vpop.f32.mrb[164].mxu1  ;;  %v8801_v0 = vpop.f32.mrb[120].mxu0 }
 0x775   : > { %v6444_v55 = vmax.f32 %v6316_v1, 0.0  ;;  %v6014_v63 = vadd.f32 %v16463_v60, %v5468_v32  ;;  %v6861_v45 = vadd.f32 %v14257_v17, %v8801_v0  ;;  %v5470_v12 = vpop.f32.mrb[165].mxu1  ;;  %v6852_v53 = vpop.f32.mrb[121].mxu0 }
 0x776   : > { %v6853_v34 = vadd.f32 %v14257_v17, %v6852_v53  ;;  %v5471_v25 = vpop.f32.mrb[166].mxu1  ;;  %v8802_v35 = vpop.f32.mrb[122].mxu0 }
 0x777   : > { %v6182_v46 = vadd.f32 %v6014_v63, %v16464_v18  ;;  %v7197_v56 = vadd.f32 %v9149_v16, %v6861_v45  ;;  %v6017_v26 = vadd.f32 %v16465_v57, %v5471_v25  ;;  %v6864_v15 = vadd.f32 %v14257_v17, %v8802_v35  ;;  %v5473_v39 = vpop.f32.mrb[167].mxu1  ;;  %v6855_v14 = vpop.f32.mrb[123].mxu0  ;;  %v16469_v45 = vld [vmem:[#allocation273_spill] sm:$0xff]  ;;  %v9154_v57 = vld [vmem:[%s9824_s10 + $0x1e0] sm:$0xff] }
 0x778   : > { %v7195_v21 = vadd.f32 %v9150_v27, %v6853_v34  ;;  %v6856_v33 = vadd.f32 %v14257_v17, %v6855_v14  ;;  %v6515_v59 = vpack.c.bf16 %v6444_v55, %v6443_v37  ;;  %v9153_v18 = vld [vmem:[%s9824_s10 + $0x1f0] sm:$0xff]  ;;  %v9155_v27 = vld [vmem:[%s9824_s10 + $0x1f8] sm:$0xff] }
 0x779   : > { %v6317_v4 = vadd.f32 %v14197_v28, %v6182_v46  ;;  %v7325_v11 = vmax.f32 %v7197_v56, 0.0  ;;  %v6183_v36 = vadd.f32 %v6017_v26, %v16466_v3  ;;  %v7198_v13 = vadd.f32 %v9151_v44, %v6864_v15  ;;  %v16470_v15 = vld [vmem:[#allocation94_spill] sm:$0xff] }
 0x77a   : > { %v7323_v43 = vmax.f32 %v7195_v21, 0.0  ;;  %v7196_v19 = vadd.f32 %v9152_v41, %v6856_v33  ;;  %8855 = vmatprep.mubr.bf16.mxu0 %v6515_v59 }
 0x77b   : > { %7453 = vst [vmem:[%s14006_s8 + $0x1d0] sm:$0xff] %v7325_v11  ;;  %v6318_v40 = vadd.f32 %v14197_v28, %v6183_v36  ;;  %v7326_v2 = vmax.f32 %v7198_v13, 0.0  ;;  %v6445_v42 = vmax.f32 %v6317_v4, 0.0  ;;  %v9156_v4 = vld [vmem:[%s9824_s10 + $0x1e8] sm:$0xff] }
 0x77c   : > { %7451 = vst [vmem:[%s14006_s8 + $0x1c0] sm:$0xff] %v7323_v43  ;;  %v7324_v20 = vmax.f32 %v7196_v19, 0.0  ;;  %v5476_v10 = vpop.f32.mrb[168].mxu1 }
 0x77d   : > { %v6446_v62 = vmax.f32 %v6318_v40, 0.0  ;;  %7454 = vst [vmem:[%s14006_s8 + $0x1d8] sm:$0xff] %v7326_v2  ;;  %v6022_v6 = vadd.f32 %v13943_v51, %v5476_v10  ;;  %v5478_v54 = vpop.f32.mrb[169].mxu1 }
 0x77e   : > { %7452 = vst [vmem:[%s14006_s8 + $0x1c8] sm:$0xff] %v7324_v20  ;;  %v5479_v47 = vpop.f32.mrb[170].mxu1  ;;  %v16471_v20 = vld [vmem:[#allocation97_spill] sm:$0xff]  ;;  %v16472_v54 = vld [vmem:[#allocation232_spill] sm:$0xff] }
 0x77f   : > { %v6516_v5 = vpack.c.bf16 %v6446_v62, %v6445_v42  ;;  %v6184_v23 = vadd.f32 %v6022_v6, %v16467_v38  ;;  %v6025_v30 = vadd.f32 %v13949_v50, %v5479_v47  ;;  %v5481_v8 = vpop.f32.mrb[171].mxu1 }
 0x781   : > { %v6319_v49 = vadd.f32 %v14197_v28, %v6184_v23  ;;  %v6185_v31 = vadd.f32 %v6025_v30, %v16468_v22  ;;  %8856 = vmatmul.mubr.bf16.gmra.mrb[176].mxu0 %v6516_v5 }
 0x783   : > { %v6320_v24 = vadd.f32 %v14197_v28, %v6185_v31  ;;  %v6447_v1 = vmax.f32 %v6319_v49, 0.0 }
 0x784   : > { %v5484_v9 = vpop.f32.mrb[172].mxu1 }
 0x785   : > { %v6448_v51 = vmax.f32 %v6320_v24, 0.0  ;;  %v6030_v32 = vadd.f32 %v13939_v52, %v5484_v9  ;;  %v8805_v0 = vpop.f32.mrb[124].mxu0  ;;  %v5486_v55 = vpop.f32.mrb[173].mxu1  ;;  %v16473_v24 = vld [vmem:[#allocation96_spill] sm:$0xff] }
 0x786   : > { %v6877_v60 = vadd.f32 %v14257_v17, %v8805_v0  ;;  %v6868_v50 = vpop.f32.mrb[125].mxu0  ;;  %v5487_v63 = vpop.f32.mrb[174].mxu1 }
 0x787   : > { %v6186_v12 = vadd.f32 %v6030_v32, %v16469_v45  ;;  %v6869_v53 = vadd.f32 %v14257_v17, %v6868_v50  ;;  %v6033_v37 = vadd.f32 %v13945_v61, %v5487_v63  ;;  %v8806_v34 = vpop.f32.mrb[126].mxu0  ;;  %v5489_v25 = vpop.f32.mrb[175].mxu1  ;;  %v6517_v35 = vpack.c.bf16 %v6448_v51, %v6447_v1  ;;  %v16474_v51 = vld [vmem:[#allocation246_spill] sm:$0xff] }
 0x788   : > { %v7201_v52 = vadd.f32 %v9153_v18, %v6877_v60  ;;  %v6880_v46 = vadd.f32 %v14257_v17, %v8806_v34  ;;  %v6871_v16 = vpop.f32.mrb[127].mxu0  ;;  %v9157_v50 = vld [vmem:[%s9824_s10 + $0x210] sm:$0xff] }
 0x789   : > { %v6321_v56 = vadd.f32 %v14197_v28, %v6186_v12  ;;  %v7199_v26 = vadd.f32 %v9154_v57, %v6869_v53  ;;  %v6187_v39 = vadd.f32 %v6033_v37, %v16470_v15  ;;  %v6872_v14 = vadd.f32 %v14257_v17, %v6871_v16  ;;  %8859 = vmatprep.mubr.bf16.mxu0 %v6517_v35  ;;  %v9158_v53 = vld [vmem:[%s9824_s10 + $0x200] sm:$0xff]  ;;  %v16475_v34 = vld [vmem:[#allocation77_spill] sm:$0xff] }
 0x78a   : > { %v7329_v61 = vmax.f32 %v7201_v52, 0.0  ;;  %v7202_v21 = vadd.f32 %v9155_v27, %v6880_v46  ;;  %v9159_v52 = vld [vmem:[%s9824_s10 + $0x218] sm:$0xff]  ;;  %v9160_v57 = vld [vmem:[%s9824_s10 + $0x208] sm:$0xff] }
 0x78b   : > { %v7327_v33 = vmax.f32 %v7199_v26, 0.0  ;;  %v6322_v59 = vadd.f32 %v14197_v28, %v6187_v39  ;;  %v7200_v11 = vadd.f32 %v9156_v4, %v6872_v14  ;;  %v6449_v44 = vmax.f32 %v6321_v56, 0.0 }
 0x78c   : > { %7457 = vst [vmem:[%s14006_s8 + $0x1f0] sm:$0xff] %v7329_v61  ;;  %v7330_v3 = vmax.f32 %v7202_v21, 0.0  ;;  %v5492_v36 = vpop.f32.mrb[176].mxu1 }
 0x78d   : > { %7455 = vst [vmem:[%s14006_s8 + $0x1e0] sm:$0xff] %v7327_v33  ;;  %v6450_v13 = vmax.f32 %v6322_v59, 0.0  ;;  %v7328_v43 = vmax.f32 %v7200_v11, 0.0  ;;  %v6038_v41 = vadd.f32 %v13959_v29, %v5492_v36  ;;  %v5494_v19 = vpop.f32.mrb[177].mxu1  ;;  %v16476_v11 = vld [vmem:[#allocation100_spill] sm:$0xff] }
 0x78e   : > { %7458 = vst [vmem:[%s14006_s8 + $0x1f8] sm:$0xff] %v7330_v3  ;;  %v5495_v40 = vpop.f32.mrb[178].mxu1  ;;  %v16477_v36 = vld [vmem:[#allocation248_spill] sm:$0xff] }
 0x78f   : > { %v6518_v2 = vpack.c.bf16 %v6450_v13, %v6449_v44  ;;  %7456 = vst [vmem:[%s14006_s8 + $0x1e8] sm:$0xff] %v7328_v43  ;;  %v6188_v10 = vadd.f32 %v6038_v41, %v16471_v20  ;;  %v6041_v42 = vadd.f32 %v13965_v7, %v5495_v40  ;;  %v5497_v62 = vpop.f32.mrb[179].mxu1  ;;  %v16478_v43 = vld [vmem:[#allocation56_spill] sm:$0xff] }
 0x791   : > { %v6323_v6 = vadd.f32 %v14197_v28, %v6188_v10  ;;  %v6189_v47 = vadd.f32 %v6041_v42, %v16472_v54  ;;  %8860 = vmatmul.mubr.bf16.gmra.mrb[180].mxu0 %v6518_v2  ;;  %v16479_v10 = vld [vmem:[#allocation67_spill] sm:$0xff] }
 0x793   : > { %v6324_v5 = vadd.f32 %v14197_v28, %v6189_v47  ;;  %v6451_v29 = vmax.f32 %v6323_v6, 0.0 }
 0x794   : > { %v5500_v38 = vpop.f32.mrb[180].mxu1 }
 0x795   : > { %v6452_v23 = vmax.f32 %v6324_v5, 0.0  ;;  %v6046_v30 = vadd.f32 %v13955_v48, %v5500_v38  ;;  %v8809_v8 = vpop.f32.mrb[128].mxu0  ;;  %v5502_v49 = vpop.f32.mrb[181].mxu1 }
 0x796   : > { %v6893_v22 = vadd.f32 %v14257_v17, %v8809_v8  ;;  %v6884_v7 = vpop.f32.mrb[129].mxu0  ;;  %v5503_v31 = vpop.f32.mrb[182].mxu1  ;;  %v9161_v8 = vld [vmem:[%s9824_s10 + $0x230] sm:$0xff] }
 0x797   : > { %v6190_v9 = vadd.f32 %v6046_v30, %v16473_v24  ;;  %v6885_v1 = vadd.f32 %v14257_v17, %v6884_v7  ;;  %v6049_v32 = vadd.f32 %v16474_v51, %v5503_v31  ;;  %v8810_v0 = vpop.f32.mrb[130].mxu0  ;;  %v5505_v55 = vpop.f32.mrb[183].mxu1  ;;  %v6519_v60 = vpack.c.bf16 %v6452_v23, %v6451_v29  ;;  %v16480_v23 = vld [vmem:[#allocation104_spill] sm:$0xff] }
 0x798   : > { %v7205_v48 = vadd.f32 %v9157_v50, %v6893_v22  ;;  %v6896_v63 = vadd.f32 %v14257_v17, %v8810_v0  ;;  %v6887_v45 = vpop.f32.mrb[131].mxu0  ;;  %v16481_v22 = vld [vmem:[#allocation132_spill] sm:$0xff]  ;;  %v16482_v50 = vld [vmem:[#allocation102_spill] sm:$0xff] }
 0x799   : > { %v6325_v12 = vadd.f32 %v14197_v28, %v6190_v9  ;;  %v7203_v37 = vadd.f32 %v9158_v53, %v6885_v1  ;;  %v6191_v25 = vadd.f32 %v6049_v32, %v16475_v34  ;;  %v6888_v35 = vadd.f32 %v14257_v17, %v6887_v45  ;;  %8863 = vmatprep.mubr.bf16.mxu0 %v6519_v60  ;;  %v9162_v1 = vld [vmem:[%s9824_s10 + $0x220] sm:$0xff]  ;;  %v9164_v53 = vld [vmem:[%s9824_s10 + $0x228] sm:$0xff] }
 0x79a   : > { %v7333_v18 = vmax.f32 %v7205_v48, 0.0  ;;  %v7206_v46 = vadd.f32 %v9159_v52, %v6896_v63  ;;  %v9163_v63 = vld [vmem:[%s9824_s10 + $0x238] sm:$0xff] }
 0x79b   : > { %v7331_v16 = vmax.f32 %v7203_v37, 0.0  ;;  %v6326_v56 = vadd.f32 %v14197_v28, %v6191_v25  ;;  %v7204_v26 = vadd.f32 %v9160_v57, %v6888_v35  ;;  %v6453_v14 = vmax.f32 %v6325_v12, 0.0 }
 0x79c   : > { %7461 = vst [vmem:[%s14006_s8 + $0x210] sm:$0xff] %v7333_v18  ;;  %v7334_v15 = vmax.f32 %v7206_v46, 0.0  ;;  %v5508_v39 = vpop.f32.mrb[184].mxu1 }
 0x79d   : > { %7459 = vst [vmem:[%s14006_s8 + $0x200] sm:$0xff] %v7331_v16  ;;  %v6454_v61 = vmax.f32 %v6326_v56, 0.0  ;;  %v7332_v27 = vmax.f32 %v7204_v26, 0.0  ;;  %v6054_v21 = vadd.f32 %v13975_v58, %v5508_v39  ;;  %v5510_v33 = vpop.f32.mrb[185].mxu1 }
 0x79e   : > { %7462 = vst [vmem:[%s14006_s8 + $0x218] sm:$0xff] %v7334_v15  ;;  %v5511_v59 = vpop.f32.mrb[186].mxu1  ;;  %v9165_v15 = vld [vmem:[%s9824_s10 + $0x250] sm:$0xff] }
 0x79f   : > { %v6520_v4 = vpack.c.bf16 %v6454_v61, %v6453_v14  ;;  %7460 = vst [vmem:[%s14006_s8 + $0x208] sm:$0xff] %v7332_v27  ;;  %v6192_v3 = vadd.f32 %v6054_v21, %v16476_v11  ;;  %v6057_v44 = vadd.f32 %v16477_v36, %v5511_v59  ;;  %v5513_v13 = vpop.f32.mrb[187].mxu1  ;;  %v9166_v27 = vld [vmem:[%s9824_s10 + $0x240] sm:$0xff]  ;;  %v9168_v36 = vld [vmem:[%s9824_s10 + $0x248] sm:$0xff] }
 0x7a1   : > { %v6193_v41 = vadd.f32 %v6057_v44, %v16478_v43  ;;  %8864 = vmatmul.mubr.bf16.gmra.mrb[184].mxu0 %v6520_v4  ;;  %v6327_v19 = vadd.f32 %v14197_v28, %v6192_v3  ;;  %v9167_v4 = vld [vmem:[%s9824_s10 + $0x258] sm:$0xff] }
 0x7a3   : > { %v6328_v40 = vadd.f32 %v14197_v28, %v6193_v41  ;;  %v6455_v47 = vmax.f32 %v6327_v19, 0.0 }
 0x7a4   : > { %v5516_v2 = vpop.f32.mrb[188].mxu1  ;;  %v8813_v58 = vpop.f32.mrb[132].mxu0 }
 0x7a5   : > { %v6456_v20 = vmax.f32 %v6328_v40, 0.0  ;;  %v6062_v42 = vadd.f32 %v16479_v10, %v5516_v2  ;;  %v6909_v62 = vadd.f32 %v14257_v17, %v8813_v58  ;;  %v5518_v6 = vpop.f32.mrb[189].mxu1  ;;  %v6900_v54 = vpop.f32.mrb[133].mxu0 }
 0x7a6   : > { %v6901_v5 = vadd.f32 %v14257_v17, %v6900_v54  ;;  %v5519_v38 = vpop.f32.mrb[190].mxu1  ;;  %v8814_v29 = vpop.f32.mrb[134].mxu0  ;;  %v9170_v6 = vld [vmem:[%s9824_s10 + $0x260] sm:$0xff] }
 0x7a7   : > { %v6194_v30 = vadd.f32 %v6062_v42, %v16480_v23  ;;  %v7209_v49 = vadd.f32 %v9161_v8, %v6909_v62  ;;  %v6065_v7 = vadd.f32 %v16481_v22, %v5519_v38  ;;  %v6912_v31 = vadd.f32 %v14257_v17, %v8814_v29  ;;  %v5521_v24 = vpop.f32.mrb[191].mxu1  ;;  %v6903_v9 = vpop.f32.mrb[135].mxu0  ;;  %v9171_v38 = vld [vmem:[%s9824_s10 + $0x278] sm:$0xff] }
 0x7a8   : > { %v7207_v51 = vadd.f32 %v9162_v1, %v6901_v5  ;;  %v6904_v32 = vadd.f32 %v14257_v17, %v6903_v9  ;;  %v6521_v0 = vpack.c.bf16 %v6456_v20, %v6455_v47  ;;  %v9169_v20 = vld [vmem:[%s9824_s10 + $0x270] sm:$0xff] }
 0x7a9   : > { %v6329_v55 = vadd.f32 %v14197_v28, %v6194_v30  ;;  %v7337_v60 = vmax.f32 %v7209_v49, 0.0  ;;  %v6195_v48 = vadd.f32 %v6065_v7, %v16482_v50  ;;  %v7210_v45 = vadd.f32 %v9163_v63, %v6912_v31  ;;  %v9172_v30 = vld [vmem:[%s9824_s10 + $0x268] sm:$0xff] }
 0x7aa   : > { %v7335_v12 = vmax.f32 %v7207_v51, 0.0  ;;  %v7208_v37 = vadd.f32 %v9164_v53, %v6904_v32  ;;  %8867 = vmatprep.mubr.bf16.mxu0 %v6521_v0  ;;  %v9173_v51 = vld [vmem:[%s9824_s10 + $0x290] sm:$0xff] }
 0x7ab   : > { %7465 = vst [vmem:[%s14006_s8 + $0x230] sm:$0xff] %v7337_v60  ;;  %v6330_v34 = vadd.f32 %v14197_v28, %v6195_v48  ;;  %v7338_v25 = vmax.f32 %v7210_v45, 0.0  ;;  %v6457_v18 = vmax.f32 %v6329_v55, 0.0  ;;  %v9174_v60 = vld [vmem:[%s9824_s10 + $0x280] sm:$0xff]  ;;  %v9175_v45 = vld [vmem:[%s9824_s10 + $0x298] sm:$0xff] }
 0x7ac   : > { %7463 = vst [vmem:[%s14006_s8 + $0x220] sm:$0xff] %v7335_v12  ;;  %v7336_v35 = vmax.f32 %v7208_v37, 0.0  ;;  %v9176_v37 = vld [vmem:[%s9824_s10 + $0x288] sm:$0xff] }
 0x7ad   : > { %v6458_v52 = vmax.f32 %v6330_v34, 0.0  ;;  %7466 = vst [vmem:[%s14006_s8 + $0x238] sm:$0xff] %v7338_v25 }
 0x7ae   : > { %7464 = vst [vmem:[%s14006_s8 + $0x228] sm:$0xff] %v7336_v35 }
 0x7af   : > { %v6522_v46 = vpack.c.bf16 %v6458_v52, %v6457_v18 }
 0x7b1   : > { %8868 = vmatmul.mubr.bf16.gmra.mrb[188].mxu0 %v6522_v46 }
 0x7b4   : > { %v8817_v16 = vpop.f32.mrb[136].mxu0 }
 0x7b5   : > { %v6925_v56 = vadd.f32 %v14257_v17, %v8817_v16  ;;  %v6916_v57 = vpop.f32.mrb[137].mxu0 }
 0x7b6   : > { %v6917_v26 = vadd.f32 %v14257_v17, %v6916_v57  ;;  %v8818_v28 = vpop.f32.mrb[138].mxu0  ;;  %v9177_v57 = vld [vmem:[%s9824_s10 + $0x2b0] sm:$0xff] }
 0x7b7   : > { %v7213_v39 = vadd.f32 %v9165_v15, %v6925_v56  ;;  %v6928_v14 = vadd.f32 %v14257_v17, %v8818_v28  ;;  %v6919_v61 = vpop.f32.mrb[139].mxu0 }
 0x7b8   : > { %v7211_v21 = vadd.f32 %v9166_v27, %v6917_v26  ;;  %v6920_v33 = vadd.f32 %v14257_v17, %v6919_v61 }
 0x7b9   : > { %v7341_v59 = vmax.f32 %v7213_v39, 0.0  ;;  %v7214_v11 = vadd.f32 %v9167_v4, %v6928_v14  ;;  %v9178_v39 = vld [vmem:[%s9824_s10 + $0x2a0] sm:$0xff]  ;;  %v9180_v4 = vld [vmem:[%s9824_s10 + $0x2a8] sm:$0xff] }
 0x7ba   : > { %v7339_v3 = vmax.f32 %v7211_v21, 0.0  ;;  %v7212_v44 = vadd.f32 %v9168_v36, %v6920_v33  ;;  %v9179_v21 = vld [vmem:[%s9824_s10 + $0x2b8] sm:$0xff] }
 0x7bb   : > { %7469 = vst [vmem:[%s14006_s8 + $0x250] sm:$0xff] %v7341_v59  ;;  %v7342_v13 = vmax.f32 %v7214_v11, 0.0 }
 0x7bc   : > { %7467 = vst [vmem:[%s14006_s8 + $0x240] sm:$0xff] %v7339_v3  ;;  %v7340_v43 = vmax.f32 %v7212_v44, 0.0 }
 0x7bd   : > { %7470 = vst [vmem:[%s14006_s8 + $0x258] sm:$0xff] %v7342_v13 }
 0x7be   : > { %7468 = vst [vmem:[%s14006_s8 + $0x248] sm:$0xff] %v7340_v43 }
 0x7c4   : > { %v8821_v41 = vpop.f32.mrb[140].mxu0 }
 0x7c5   : > { %v6941_v19 = vadd.f32 %v14257_v17, %v8821_v41  ;;  %v6932_v40 = vpop.f32.mrb[141].mxu0 }
 0x7c6   : > { %v6933_v2 = vadd.f32 %v14257_v17, %v6932_v40  ;;  %v8822_v58 = vpop.f32.mrb[142].mxu0  ;;  %v9181_v40 = vld [vmem:[%s9824_s10 + $0x2d0] sm:$0xff] }
 0x7c7   : > { %v7217_v10 = vadd.f32 %v9169_v20, %v6941_v19  ;;  %v6944_v42 = vadd.f32 %v14257_v17, %v8822_v58  ;;  %v6935_v62 = vpop.f32.mrb[143].mxu0 }
 0x7c8   : > { %v7215_v54 = vadd.f32 %v9170_v6, %v6933_v2  ;;  %v6936_v47 = vadd.f32 %v14257_v17, %v6935_v62 }
 0x7c9   : > { %v7345_v5 = vmax.f32 %v7217_v10, 0.0  ;;  %v7218_v29 = vadd.f32 %v9171_v38, %v6944_v42  ;;  %v9182_v10 = vld [vmem:[%s9824_s10 + $0x2c0] sm:$0xff]  ;;  %v9184_v38 = vld [vmem:[%s9824_s10 + $0x2c8] sm:$0xff] }
 0x7ca   : > { %v7343_v23 = vmax.f32 %v7215_v54, 0.0  ;;  %v7216_v8 = vadd.f32 %v9172_v30, %v6936_v47  ;;  %v9183_v54 = vld [vmem:[%s9824_s10 + $0x2d8] sm:$0xff] }
 0x7cb   : > { %7473 = vst [vmem:[%s14006_s8 + $0x270] sm:$0xff] %v7345_v5  ;;  %v7346_v49 = vmax.f32 %v7218_v29, 0.0 }
 0x7cc   : > { %7471 = vst [vmem:[%s14006_s8 + $0x260] sm:$0xff] %v7343_v23  ;;  %v7344_v22 = vmax.f32 %v7216_v8, 0.0 }
 0x7cd   : > { %7474 = vst [vmem:[%s14006_s8 + $0x278] sm:$0xff] %v7346_v49 }
 0x7ce   : > { %7472 = vst [vmem:[%s14006_s8 + $0x268] sm:$0xff] %v7344_v22 }
 0x7d4   : > { %v8825_v7 = vpop.f32.mrb[144].mxu0 }
 0x7d5   : > { %v6957_v31 = vadd.f32 %v14257_v17, %v8825_v7  ;;  %v6948_v24 = vpop.f32.mrb[145].mxu0 }
 0x7d6   : > { %v6949_v9 = vadd.f32 %v14257_v17, %v6948_v24  ;;  %v8826_v1 = vpop.f32.mrb[146].mxu0  ;;  %v9185_v24 = vld [vmem:[%s9824_s10 + $0x2f0] sm:$0xff] }
 0x7d7   : > { %v7221_v32 = vadd.f32 %v9173_v51, %v6957_v31  ;;  %v6960_v0 = vadd.f32 %v14257_v17, %v8826_v1  ;;  %v6951_v55 = vpop.f32.mrb[147].mxu0 }
 0x7d8   : > { %v7219_v50 = vadd.f32 %v9174_v60, %v6949_v9  ;;  %v6952_v48 = vadd.f32 %v14257_v17, %v6951_v55 }
 0x7d9   : > { %v7349_v63 = vmax.f32 %v7221_v32, 0.0  ;;  %v7222_v12 = vadd.f32 %v9175_v45, %v6960_v0  ;;  %v9186_v32 = vld [vmem:[%s9824_s10 + $0x2e0] sm:$0xff]  ;;  %v9188_v45 = vld [vmem:[%s9824_s10 + $0x2e8] sm:$0xff] }
 0x7da   : > { %v7347_v53 = vmax.f32 %v7219_v50, 0.0  ;;  %v7220_v34 = vadd.f32 %v9176_v37, %v6952_v48  ;;  %v9187_v50 = vld [vmem:[%s9824_s10 + $0x2f8] sm:$0xff] }
 0x7db   : > { %7477 = vst [vmem:[%s14006_s8 + $0x290] sm:$0xff] %v7349_v63  ;;  %v7350_v25 = vmax.f32 %v7222_v12, 0.0 }
 0x7dc   : > { %7475 = vst [vmem:[%s14006_s8 + $0x280] sm:$0xff] %v7347_v53  ;;  %v7348_v35 = vmax.f32 %v7220_v34, 0.0 }
 0x7dd   : > { %7478 = vst [vmem:[%s14006_s8 + $0x298] sm:$0xff] %v7350_v25 }
 0x7de   : > { %7476 = vst [vmem:[%s14006_s8 + $0x288] sm:$0xff] %v7348_v35 }
 0x7e4   : > { %v8829_v18 = vpop.f32.mrb[148].mxu0 }
 0x7e5   : > { %v6973_v52 = vadd.f32 %v14257_v17, %v8829_v18  ;;  %v6964_v46 = vpop.f32.mrb[149].mxu0 }
 0x7e6   : > { %v6965_v16 = vadd.f32 %v14257_v17, %v6964_v46  ;;  %v8830_v56 = vpop.f32.mrb[150].mxu0  ;;  %v9189_v46 = vld [vmem:[%s9824_s10 + $0x310] sm:$0xff] }
 0x7e7   : > { %v7225_v26 = vadd.f32 %v9177_v57, %v6973_v52  ;;  %v6976_v28 = vadd.f32 %v14257_v17, %v8830_v56  ;;  %v6967_v15 = vpop.f32.mrb[151].mxu0 }
 0x7e8   : > { %v7223_v14 = vadd.f32 %v9178_v39, %v6965_v16  ;;  %v6968_v61 = vadd.f32 %v14257_v17, %v6967_v15 }
 0x7e9   : > { %v7353_v27 = vmax.f32 %v7225_v26, 0.0  ;;  %v7226_v33 = vadd.f32 %v9179_v21, %v6976_v28  ;;  %v9190_v26 = vld [vmem:[%s9824_s10 + $0x300] sm:$0xff]  ;;  %v9192_v21 = vld [vmem:[%s9824_s10 + $0x308] sm:$0xff] }
 0x7ea   : > { %v7351_v59 = vmax.f32 %v7223_v14, 0.0  ;;  %v7224_v11 = vadd.f32 %v9180_v4, %v6968_v61  ;;  %v9191_v14 = vld [vmem:[%s9824_s10 + $0x318] sm:$0xff] }
 0x7eb   : > { %7481 = vst [vmem:[%s14006_s8 + $0x2b0] sm:$0xff] %v7353_v27  ;;  %v7354_v3 = vmax.f32 %v7226_v33, 0.0 }
 0x7ec   : > { %7479 = vst [vmem:[%s14006_s8 + $0x2a0] sm:$0xff] %v7351_v59  ;;  %v7352_v36 = vmax.f32 %v7224_v11, 0.0 }
 0x7ed   : > { %7482 = vst [vmem:[%s14006_s8 + $0x2b8] sm:$0xff] %v7354_v3 }
 0x7ee   : > { %7480 = vst [vmem:[%s14006_s8 + $0x2a8] sm:$0xff] %v7352_v36 }
 0x7f4   : > { %v8833_v44 = vpop.f32.mrb[152].mxu0 }
 0x7f5   : > { %v6989_v13 = vadd.f32 %v14257_v17, %v8833_v44  ;;  %v6980_v43 = vpop.f32.mrb[153].mxu0 }
 0x7f6   : > { %v6981_v41 = vadd.f32 %v14257_v17, %v6980_v43  ;;  %v8834_v19 = vpop.f32.mrb[154].mxu0  ;;  %v9193_v43 = vld [vmem:[%s9824_s10 + $0x330] sm:$0xff] }
 0x7f7   : > { %v7229_v2 = vadd.f32 %v9181_v40, %v6989_v13  ;;  %v6992_v58 = vadd.f32 %v14257_v17, %v8834_v19  ;;  %v6983_v20 = vpop.f32.mrb[155].mxu0 }
 0x7f8   : > { %v7227_v42 = vadd.f32 %v9182_v10, %v6981_v41  ;;  %v6984_v62 = vadd.f32 %v14257_v17, %v6983_v20 }
 0x7f9   : > { %v7357_v6 = vmax.f32 %v7229_v2, 0.0  ;;  %v7230_v47 = vadd.f32 %v9183_v54, %v6992_v58  ;;  %v9194_v2 = vld [vmem:[%s9824_s10 + $0x320] sm:$0xff]  ;;  %v9196_v54 = vld [vmem:[%s9824_s10 + $0x328] sm:$0xff] }
 0x7fa   : > { %v7355_v5 = vmax.f32 %v7227_v42, 0.0  ;;  %v7228_v29 = vadd.f32 %v9184_v38, %v6984_v62  ;;  %v9195_v42 = vld [vmem:[%s9824_s10 + $0x338] sm:$0xff] }
 0x7fb   : > { %7485 = vst [vmem:[%s14006_s8 + $0x2d0] sm:$0xff] %v7357_v6  ;;  %v7358_v23 = vmax.f32 %v7230_v47, 0.0 }
 0x7fc   : > { %7483 = vst [vmem:[%s14006_s8 + $0x2c0] sm:$0xff] %v7355_v5  ;;  %v7356_v30 = vmax.f32 %v7228_v29, 0.0 }
 0x7fd   : > { %7486 = vst [vmem:[%s14006_s8 + $0x2d8] sm:$0xff] %v7358_v23 }
 0x7fe   : > { %7484 = vst [vmem:[%s14006_s8 + $0x2c8] sm:$0xff] %v7356_v30 }
 0x804   : > { %v8837_v8 = vpop.f32.mrb[156].mxu0 }
 0x805   : > { %v7005_v49 = vadd.f32 %v14257_v17, %v8837_v8  ;;  %v6996_v22 = vpop.f32.mrb[157].mxu0 }
 0x806   : > { %v6997_v7 = vadd.f32 %v14257_v17, %v6996_v22  ;;  %v8838_v31 = vpop.f32.mrb[158].mxu0  ;;  %v9197_v22 = vld [vmem:[%s9824_s10 + $0x350] sm:$0xff] }
 0x807   : > { %v7233_v9 = vadd.f32 %v9185_v24, %v7005_v49  ;;  %v7008_v1 = vadd.f32 %v14257_v17, %v8838_v31  ;;  %v6999_v51 = vpop.f32.mrb[159].mxu0 }
 0x808   : > { %v7231_v0 = vadd.f32 %v9186_v32, %v6997_v7  ;;  %v7000_v55 = vadd.f32 %v14257_v17, %v6999_v51 }
 0x809   : > { %v7361_v60 = vmax.f32 %v7233_v9, 0.0  ;;  %v7234_v48 = vadd.f32 %v9187_v50, %v7008_v1  ;;  %v9198_v9 = vld [vmem:[%s9824_s10 + $0x340] sm:$0xff]  ;;  %v9200_v50 = vld [vmem:[%s9824_s10 + $0x348] sm:$0xff] }
 0x80a   : > { %v7359_v63 = vmax.f32 %v7231_v0, 0.0  ;;  %v7232_v12 = vadd.f32 %v9188_v45, %v7000_v55  ;;  %v9199_v0 = vld [vmem:[%s9824_s10 + $0x358] sm:$0xff] }
 0x80b   : > { %7489 = vst [vmem:[%s14006_s8 + $0x2f0] sm:$0xff] %v7361_v60  ;;  %v7362_v53 = vmax.f32 %v7234_v48, 0.0 }
 0x80c   : > { %7487 = vst [vmem:[%s14006_s8 + $0x2e0] sm:$0xff] %v7359_v63  ;;  %v7360_v37 = vmax.f32 %v7232_v12, 0.0 }
 0x80d   : > { %7490 = vst [vmem:[%s14006_s8 + $0x2f8] sm:$0xff] %v7362_v53 }
 0x80e   : > { %7488 = vst [vmem:[%s14006_s8 + $0x2e8] sm:$0xff] %v7360_v37 }
 0x814   : > { %v8841_v34 = vpop.f32.mrb[160].mxu0 }
 0x815   : > { %v7021_v25 = vadd.f32 %v14257_v17, %v8841_v34  ;;  %v7012_v35 = vpop.f32.mrb[161].mxu0 }
 0x816   : > { %v7013_v18 = vadd.f32 %v14257_v17, %v7012_v35  ;;  %v8842_v52 = vpop.f32.mrb[162].mxu0  ;;  %v9201_v35 = vld [vmem:[%s9824_s10 + $0x370] sm:$0xff] }
 0x817   : > { %v7237_v16 = vadd.f32 %v9189_v46, %v7021_v25  ;;  %v7024_v56 = vadd.f32 %v14257_v17, %v8842_v52  ;;  %v7015_v57 = vpop.f32.mrb[163].mxu0 }
 0x818   : > { %v7235_v28 = vadd.f32 %v9190_v26, %v7013_v18  ;;  %v7016_v15 = vadd.f32 %v14257_v17, %v7015_v57 }
 0x819   : > { %v7365_v39 = vmax.f32 %v7237_v16, 0.0  ;;  %v7238_v61 = vadd.f32 %v9191_v14, %v7024_v56  ;;  %v9202_v16 = vld [vmem:[%s9824_s10 + $0x360] sm:$0xff]  ;;  %v9204_v14 = vld [vmem:[%s9824_s10 + $0x368] sm:$0xff] }
 0x81a   : > { %v7363_v27 = vmax.f32 %v7235_v28, 0.0  ;;  %v7236_v33 = vadd.f32 %v9192_v21, %v7016_v15  ;;  %v9203_v28 = vld [vmem:[%s9824_s10 + $0x378] sm:$0xff] }
 0x81b   : > { %7493 = vst [vmem:[%s14006_s8 + $0x310] sm:$0xff] %v7365_v39  ;;  %v7366_v59 = vmax.f32 %v7238_v61, 0.0 }
 0x81c   : > { %7491 = vst [vmem:[%s14006_s8 + $0x300] sm:$0xff] %v7363_v27  ;;  %v7364_v4 = vmax.f32 %v7236_v33, 0.0 }
 0x81d   : > { %7494 = vst [vmem:[%s14006_s8 + $0x318] sm:$0xff] %v7366_v59 }
 0x81e   : > { %7492 = vst [vmem:[%s14006_s8 + $0x308] sm:$0xff] %v7364_v4 }
 0x824   : > { %v8845_v11 = vpop.f32.mrb[164].mxu0 }
 0x825   : > { %v7037_v3 = vadd.f32 %v14257_v17, %v8845_v11  ;;  %v7028_v36 = vpop.f32.mrb[165].mxu0 }
 0x826   : > { %v7029_v44 = vadd.f32 %v14257_v17, %v7028_v36  ;;  %v8846_v13 = vpop.f32.mrb[166].mxu0  ;;  %v9205_v36 = vld [vmem:[%s9824_s10 + $0x390] sm:$0xff] }
 0x827   : > { %v7241_v41 = vadd.f32 %v9193_v43, %v7037_v3  ;;  %v7040_v19 = vadd.f32 %v14257_v17, %v8846_v13  ;;  %v7031_v40 = vpop.f32.mrb[167].mxu0  ;;  %v14536_v13 = vld [vmem:[#allocation13] ss:$0 sm:$0xff] }
 0x828   : > { %v7239_v58 = vadd.f32 %v9194_v2, %v7029_v44  ;;  %v7032_v20 = vadd.f32 %v14257_v17, %v7031_v40 }
 0x829   : > { %v7369_v10 = vmax.f32 %v7241_v41, 0.0  ;;  %v7242_v62 = vadd.f32 %v9195_v42, %v7040_v19  ;;  %v9207_v19 = vld [vmem:[%s9824_s10 + $0x380] sm:$0xff]  ;;  %v9209_v42 = vld [vmem:[%s9824_s10 + $0x388] sm:$0xff] }
 0x82a   : > { %v7367_v6 = vmax.f32 %v7239_v58, 0.0  ;;  %v7240_v47 = vadd.f32 %v9196_v54, %v7032_v20  ;;  %v9208_v20 = vld [vmem:[%s9824_s10 + $0x398] sm:$0xff] }
 0x82b   : > { %7497 = vst [vmem:[%s14006_s8 + $0x330] sm:$0xff] %v7369_v10  ;;  %v7370_v5 = vmax.f32 %v7242_v62, 0.0 }
 0x82c   : > { %7495 = vst [vmem:[%s14006_s8 + $0x320] sm:$0xff] %v7367_v6  ;;  %v7368_v38 = vmax.f32 %v7240_v47, 0.0 }
 0x82d   : > { %7498 = vst [vmem:[%s14006_s8 + $0x338] sm:$0xff] %v7370_v5 }
 0x82e   : > { %7496 = vst [vmem:[%s14006_s8 + $0x328] sm:$0xff] %v7368_v38 }
 0x834   : > { %v8849_v29 = vpop.f32.mrb[168].mxu0 }
 0x835   : > { %v7053_v23 = vadd.f32 %v14257_v17, %v8849_v29  ;;  %v7044_v30 = vpop.f32.mrb[169].mxu0 }
 0x836   : > { %v7045_v8 = vadd.f32 %v14257_v17, %v7044_v30  ;;  %v8850_v49 = vpop.f32.mrb[170].mxu0  ;;  %v9210_v30 = vld [vmem:[%s9824_s10 + $0x3b0] sm:$0xff] }
 0x837   : > { %v7245_v7 = vadd.f32 %v9197_v22, %v7053_v23  ;;  %v7056_v31 = vadd.f32 %v14257_v17, %v8850_v49  ;;  %v7047_v24 = vpop.f32.mrb[171].mxu0 }
 0x838   : > { %v7243_v1 = vadd.f32 %v9198_v9, %v7045_v8  ;;  %v7048_v51 = vadd.f32 %v14257_v17, %v7047_v24 }
 0x839   : > { %v7373_v32 = vmax.f32 %v7245_v7, 0.0  ;;  %v7246_v55 = vadd.f32 %v9199_v0, %v7056_v31  ;;  %v9211_v7 = vld [vmem:[%s9824_s10 + $0x3a0] sm:$0xff]  ;;  %v9213_v0 = vld [vmem:[%s9824_s10 + $0x3a8] sm:$0xff] }
 0x83a   : > { %v7371_v60 = vmax.f32 %v7243_v1, 0.0  ;;  %v7244_v48 = vadd.f32 %v9200_v50, %v7048_v51  ;;  %v9212_v1 = vld [vmem:[%s9824_s10 + $0x3b8] sm:$0xff] }
 0x83b   : > { %7501 = vst [vmem:[%s14006_s8 + $0x350] sm:$0xff] %v7373_v32  ;;  %v7374_v63 = vmax.f32 %v7246_v55, 0.0 }
 0x83c   : > { %7499 = vst [vmem:[%s14006_s8 + $0x340] sm:$0xff] %v7371_v60  ;;  %v7372_v45 = vmax.f32 %v7244_v48, 0.0 }
 0x83d   : > { %7502 = vst [vmem:[%s14006_s8 + $0x358] sm:$0xff] %v7374_v63 }
 0x83e   : > { %7500 = vst [vmem:[%s14006_s8 + $0x348] sm:$0xff] %v7372_v45 }
 0x844   : > { %v8853_v12 = vpop.f32.mrb[172].mxu0 }
 0x845   : > { %v7069_v53 = vadd.f32 %v14257_v17, %v8853_v12  ;;  %v7060_v37 = vpop.f32.mrb[173].mxu0 }
 0x846   : > { %v7061_v34 = vadd.f32 %v14257_v17, %v7060_v37  ;;  %v8854_v25 = vpop.f32.mrb[174].mxu0  ;;  %v9214_v37 = vld [vmem:[%s9824_s10 + $0x3d0] sm:$0xff] }
 0x847   : > { %v7249_v18 = vadd.f32 %v9201_v35, %v7069_v53  ;;  %v7072_v52 = vadd.f32 %v14257_v17, %v8854_v25  ;;  %v7063_v46 = vpop.f32.mrb[175].mxu0 }
 0x848   : > { %v7247_v56 = vadd.f32 %v9202_v16, %v7061_v34  ;;  %v7064_v57 = vadd.f32 %v14257_v17, %v7063_v46 }
 0x849   : > { %v7377_v26 = vmax.f32 %v7249_v18, 0.0  ;;  %v7250_v15 = vadd.f32 %v9203_v28, %v7072_v52  ;;  %v9215_v18 = vld [vmem:[%s9824_s10 + $0x3c0] sm:$0xff]  ;;  %v9217_v28 = vld [vmem:[%s9824_s10 + $0x3c8] sm:$0xff] }
 0x84a   : > { %v7375_v39 = vmax.f32 %v7247_v56, 0.0  ;;  %v7248_v61 = vadd.f32 %v9204_v14, %v7064_v57  ;;  %v9216_v56 = vld [vmem:[%s9824_s10 + $0x3d8] sm:$0xff] }
 0x84b   : > { %7505 = vst [vmem:[%s14006_s8 + $0x370] sm:$0xff] %v7377_v26  ;;  %v7378_v27 = vmax.f32 %v7250_v15, 0.0 }
 0x84c   : > { %7503 = vst [vmem:[%s14006_s8 + $0x360] sm:$0xff] %v7375_v39  ;;  %v7376_v21 = vmax.f32 %v7248_v61, 0.0 }
 0x84d   : > { %7506 = vst [vmem:[%s14006_s8 + $0x378] sm:$0xff] %v7378_v27 }
 0x84e   : > { %7504 = vst [vmem:[%s14006_s8 + $0x368] sm:$0xff] %v7376_v21 }
 0x854   : > { %v8857_v33 = vpop.f32.mrb[176].mxu0 }
 0x855   : > { %v7085_v59 = vadd.f32 %v14257_v17, %v8857_v33  ;;  %v7076_v4 = vpop.f32.mrb[177].mxu0 }
 0x856   : > { %v7077_v11 = vadd.f32 %v14257_v17, %v7076_v4  ;;  %v8858_v3 = vpop.f32.mrb[178].mxu0  ;;  %v9218_v4 = vld [vmem:[%s9824_s10 + $0x3f0] sm:$0xff] }
 0x857   : > { %v7253_v44 = vadd.f32 %v9205_v36, %v7085_v59  ;;  %v7088_v43 = vadd.f32 %v14536_v13, %v8858_v3  ;;  %v7079_v41 = vpop.f32.mrb[179].mxu0 }
 0x858   : > { %v7251_v40 = vadd.f32 %v9207_v19, %v7077_v11  ;;  %v7080_v2 = vadd.f32 %v14536_v13, %v7079_v41 }
 0x859   : > { %v7381_v58 = vmax.f32 %v7253_v44, 0.0  ;;  %v7254_v17 = vadd.f32 %v9208_v20, %v7088_v43  ;;  %v9219_v44 = vld [vmem:[%s9824_s10 + $0x3e0] sm:$0xff]  ;;  %v9221_v20 = vld [vmem:[%s9824_s10 + $0x3e8] sm:$0xff] }
 0x85a   : > { %v7379_v10 = vmax.f32 %v7251_v40, 0.0  ;;  %v7252_v62 = vadd.f32 %v9209_v42, %v7080_v2  ;;  %v9220_v40 = vld [vmem:[%s9824_s10 + $0x3f8] sm:$0xff] }
 0x85b   : > { %7509 = vst [vmem:[%s14006_s8 + $0x390] sm:$0xff] %v7381_v58  ;;  %v7382_v6 = vmax.f32 %v7254_v17, 0.0 }
 0x85c   : > { %7507 = vst [vmem:[%s14006_s8 + $0x380] sm:$0xff] %v7379_v10  ;;  %v7380_v54 = vmax.f32 %v7252_v62, 0.0 }
 0x85d   : > { %7510 = vst [vmem:[%s14006_s8 + $0x398] sm:$0xff] %v7382_v6 }
 0x85e   : > { %7508 = vst [vmem:[%s14006_s8 + $0x388] sm:$0xff] %v7380_v54 }
 0x864   : > { %v8861_v47 = vpop.f32.mrb[180].mxu0 }
 0x865   : > { %v7101_v5 = vadd.f32 %v14536_v13, %v8861_v47  ;;  %v7092_v38 = vpop.f32.mrb[181].mxu0 }
 0x866   : > { %v7093_v29 = vadd.f32 %v14536_v13, %v7092_v38  ;;  %v8862_v23 = vpop.f32.mrb[182].mxu0 }
 0x867   : > { %v7257_v8 = vadd.f32 %v9210_v30, %v7101_v5  ;;  %v7104_v49 = vadd.f32 %v14536_v13, %v8862_v23  ;;  %v7095_v22 = vpop.f32.mrb[183].mxu0 }
 0x868   : > { %v7255_v31 = vadd.f32 %v9211_v7, %v7093_v29  ;;  %v7096_v24 = vadd.f32 %v14536_v13, %v7095_v22 }
 0x869   : > { %v7385_v9 = vmax.f32 %v7257_v8, 0.0  ;;  %v7258_v51 = vadd.f32 %v9212_v1, %v7104_v49 }
 0x86a   : > { %v7383_v32 = vmax.f32 %v7255_v31, 0.0  ;;  %v7256_v55 = vadd.f32 %v9213_v0, %v7096_v24 }
 0x86b   : > { %7513 = vst [vmem:[%s14006_s8 + $0x3b0] sm:$0xff] %v7385_v9  ;;  %v7386_v60 = vmax.f32 %v7258_v51, 0.0 }
 0x86c   : > { %7511 = vst [vmem:[%s14006_s8 + $0x3a0] sm:$0xff] %v7383_v32  ;;  %v7384_v50 = vmax.f32 %v7256_v55, 0.0 }
 0x86d   : > { %7514 = vst [vmem:[%s14006_s8 + $0x3b8] sm:$0xff] %v7386_v60 }
 0x86e   : > { %7512 = vst [vmem:[%s14006_s8 + $0x3a8] sm:$0xff] %v7384_v50 }
 0x874   : > { %v8865_v48 = vpop.f32.mrb[184].mxu0 }
 0x875   : > { %v7117_v63 = vadd.f32 %v14536_v13, %v8865_v48  ;;  %v7108_v45 = vpop.f32.mrb[185].mxu0 }
 0x876   : > { %v7109_v12 = vadd.f32 %v14536_v13, %v7108_v45  ;;  %v8866_v53 = vpop.f32.mrb[186].mxu0 }
 0x877   : > { %v7261_v34 = vadd.f32 %v9214_v37, %v7117_v63  ;;  %v7120_v25 = vadd.f32 %v14536_v13, %v8866_v53  ;;  %v7111_v35 = vpop.f32.mrb[187].mxu0 }
 0x878   : > { %v7259_v52 = vadd.f32 %v9215_v18, %v7109_v12  ;;  %v7112_v46 = vadd.f32 %v14536_v13, %v7111_v35 }
 0x879   : > { %v7389_v16 = vmax.f32 %v7261_v34, 0.0  ;;  %v7262_v57 = vadd.f32 %v9216_v56, %v7120_v25 }
 0x87a   : > { %v7387_v26 = vmax.f32 %v7259_v52, 0.0  ;;  %v7260_v15 = vadd.f32 %v9217_v28, %v7112_v46 }
 0x87b   : > { %7517 = vst [vmem:[%s14006_s8 + $0x3d0] sm:$0xff] %v7389_v16  ;;  %v7390_v39 = vmax.f32 %v7262_v57, 0.0 }
 0x87c   : > { %7515 = vst [vmem:[%s14006_s8 + $0x3c0] sm:$0xff] %v7387_v26  ;;  %v7388_v14 = vmax.f32 %v7260_v15, 0.0 }
 0x87d   : > { %7518 = vst [vmem:[%s14006_s8 + $0x3d8] sm:$0xff] %v7390_v39 }
 0x87e   : > { %7516 = vst [vmem:[%s14006_s8 + $0x3c8] sm:$0xff] %v7388_v14 }
 0x884   : > { %v8869_v61 = vpop.f32.mrb[188].mxu0 }
 0x885   : > { %v7133_v27 = vadd.f32 %v14536_v13, %v8869_v61  ;;  %v7124_v21 = vpop.f32.mrb[189].mxu0 }
 0x886   : > { %v7125_v33 = vadd.f32 %v14536_v13, %v7124_v21  ;;  %v8870_v59 = vpop.f32.mrb[190].mxu0 }
 0x887   : > { %v7265_v11 = vadd.f32 %v9218_v4, %v7133_v27  ;;  %v7136_v3 = vadd.f32 %v14536_v13, %v8870_v59  ;;  %v7127_v36 = vpop.f32.mrb[191].mxu0 }
 0x888   : > { %v7263_v43 = vadd.f32 %v9219_v44, %v7125_v33  ;;  %v7128_v41 = vadd.f32 %v14536_v13, %v7127_v36 }
 0x889   : > { %v7393_v19 = vmax.f32 %v7265_v11, 0.0  ;;  %v7266_v2 = vadd.f32 %v9220_v40, %v7136_v3 }
 0x88a   : > { %v7391_v58 = vmax.f32 %v7263_v43, 0.0  ;;  %v7264_v17 = vadd.f32 %v9221_v20, %v7128_v41 }
 0x88b   : > { %7521 = vst [vmem:[%s14006_s8 + $0x3f0] sm:$0xff] %v7393_v19  ;;  %v7394_v10 = vmax.f32 %v7266_v2, 0.0 }
 0x88c   : > { %7519 = vst [vmem:[%s14006_s8 + $0x3e0] sm:$0xff] %v7391_v58  ;;  %v7392_v13 = vmax.f32 %v7264_v17, 0.0 }
 0x88d   : > { %7522 = vst [vmem:[%s14006_s8 + $0x3f8] sm:$0xff] %v7394_v10 }
 0x88e   : > { %7520 = vst [vmem:[%s14006_s8 + $0x3e8] sm:$0xff] %v7392_v13 }
 0x88f   : > { %9433 = shalt.err (!%p9430_p7)
}
 0x890   : > { %s9434_s14 = scalar_lea.hbm %s14585_s21, 16384  ;;  %s9438_s8 = scalar_lea.hbm %s14640_s7, 65536 }
 0x891   : > { %p9435_p9 = scmp.ne.s32.totalorder %s14585_s21, %s9434_s14  ;;  %p9439_p0 = scmp.lt.u32.totalorder %s14585_s21, %s14640_s7 }
 0x892   : > { %p9440_p4 = scmp.lt.u32.totalorder %s9438_s8, %s9434_s14  ;;  %p9442_p5 = scmp.lt.u32.totalorder %s9434_s14, %s14585_s21 }
 0x893   : > { %p9436_p10 = pnand %p9435_p9, %p16483_p8 }
 0x894   : > { %p9441_p6 = por %p9440_p4, %p9439_p0 }
 0x895   : > { %p9437_p11 = pneg %p9436_p10 }
 0x896   : > { %p9443_p12 = por %p9442_p5, %p9441_p6 }
 0x898   : > { %p9444_p13 = pnand %p9443_p12, %p9437_p11 }
 0x89a   : > { %9447 = shalt.err (!%p9444_p13)
}
 0x89b   : > { %s9513_s19 = smov 128   ;;  %s9514_s16 = smov 8  }
 0x89c   : > { %8913 = dma.vmem_to_hbm [thread:$0]  (%p16483_p8), %s14587_s20, 16384, %s14585_s21, %s7524_s30, %s9513_s19, %s9513_s19, %s9514_s16  }
 0x89d PF: > { %p8955_p1 = scmp.ge.s32.totalorder %s9498_s27, 2  ;;  %s7553_s17 = sand.u32 1, %s9486_s24  }
 0x89e   : > { %p16484_p3 = scmp.ne.s32.totalorder %s15088_s15, 0  ;;  %s7554_s13 = scalar_lea.sflag [#allocation4], %s7553_s17 }
 0x8a0   : > { %p8939_p2 = pnand %p8955_p1, %p16484_p3 }
 0x8a2   : > { %9481 = dma.done.wait (!%p8939_p2), %s7554_s13, 16384  }
 0x8a3   : > { %9483 = vsyncadd (!%p8939_p2), %s7554_s13, 4294950912  ;;  %p23_p7 = scmp.ge.s32.totalorder %s9739_s11, 6   ;;  %s16485_s24 = smov %s9490_s25 }
 0x8a4   : > { %s16486_s25 = smov %s9494_s26  ;;  %s16487_s26 = smov %s9750_s23 }
 0x8a5   : > { %s16488_s27 = smov %s9739_s11  ;;  %25 = sbr.rel (!%p23_p7) target bundleno = 8 (0x8), region = 119 }
 0x8ac   :  { %7559 = vsyncpa [#allocation3], 1 }
 0x8ad   :  { %7561 = vsyncpa [#allocation3 + $0x1], 1 }
 0x8ae   :  { %7562 = vsyncpa [#allocation6], 1 }
 0x8af   :  { %7563 = vsyncpa [#allocation9], 1 }
 0x8b0   :  { %7564 = vsyncpa [#allocation12], 1 }
 0x8b1   :  { %7565 = vsyncpa [#allocation4], 1 }
 0x8b2   :  { %7567 = vsyncpa [#allocation4 + $0x1], 1 }

</bundles_post_ra>
